<compile_context>
chip_gen: v6e
topology: v6e:2x2x1
jax: 0.10.0
libtpu: 0.0.40
codegen_flags: <defaults>
</compile_context>

<pallas_src>
import jax
import jax.numpy as jnp
from jax.experimental import pallas as pl
from jax.experimental.pallas import tpu as pltpu

STRIDES = (4, 8, 16, 32)          # synthetic backbone downsample strides
CHANNELS = (64, 128, 320, 512)    # multi-scale feature channels (stage 3 = 512)
EMBED_DIM = 256
AUDIO_DIM = 128
AUDIO_SPEC_SHAPE = (1, 24, 16)    # small synthetic "spectrogram" per clip


def _round_up(x, m):
    return ((x + m - 1) // m) * m


# --------------------------- the fused Pallas kernel ------------------------

def _fused_forward_kernel(mask_ref, bq_ref,                       # SMEM scalars
                          x0_ref, xp_ref, au_ref,                 # activations
                          wf_ref, bf_ref, bp_ref, wq_ref,         # head path
                          wv_ref, bv_ref, wa_ref, ba_ref,         # audio chain
                          wc_ref, bc_ref, w3_ref, b3_ref,         # cosine path
                          mf_ref, pr_ref, sim_ref):               # outputs
    """One pass: audio chain + fused(stage0∘head) + CosineModule + temporal mask."""
    bidx = pl.program_id(0)
    ti = pl.program_id(1)
    m = mask_ref[bidx]                                   # temporal mask flag (SMEM)

    # ---- audio chain: VGGish stand-in -> audio_proj (tiny M=1 fp32 matmuls,
    #      recomputed per tile — negligible vs one HBM round trip of a256) ----
    a = au_ref[0]                                                  # [1, Ka]
    a128 = jnp.dot(a, wv_ref[...], preferred_element_type=jnp.float32) + bv_ref[...]
    a256 = jnp.dot(a128, wa_ref[...], preferred_element_type=jnp.float32) + ba_ref[...]
    gate = jax.nn.sigmoid(a256)                                    # [1, E]  (EUP)

    # ---- fused (stage-0 linear ∘ head projection): bf16 MXU, fp32 accum ----
    # h == (masked img_feat[0]) @ w_proj + b_proj, with w_fused = w0 @ w_proj.
    x = x0_ref[0]                                                  # [TM, K0p] bf16
    acc = jnp.dot(x, wf_ref[...], preferred_element_type=jnp.float32)
    h = (acc + bf_ref[...]) * m + bp_ref[...]
    mf = h * gate                                                  # [TM, E]
    pred = jnp.sum(mf * wq_ref[...], axis=-1) + bq_ref[0]          # [TM] lane-dense
    mf_ref[0] = (mf * m).astype(mf_ref.dtype)                      # mask outputs again
    pr_ref[0, 0] = (pred * m).astype(pr_ref.dtype)

    # ---- CosineModule(audio_feat, img_feat[3]) on the pooled visual feature.
    #      avg-pool commutes with the stage-3 linear, so xp is the per-batch
    #      patch mean; exact division for the returned similarity. ----
    v = (jnp.dot(xp_ref[0], w3_ref[...], preferred_element_type=jnp.float32)
         + b3_ref[...]) * m                                        # [1, 512]
    a512 = jnp.dot(a256, wc_ref[...], preferred_element_type=jnp.float32) + bc_ref[...]
    dot_av = jnp.sum(a512 * v)
    na = jnp.sqrt(jnp.sum(a512 * a512))
    nv = jnp.sqrt(jnp.sum(v * v))
    eps = jnp.float32(1e-8)
    sim = dot_av / (jnp.maximum(na, eps) * jnp.maximum(nv, eps))   # torch-style clamp

    @pl.when(ti == 0)                     # one lane-dense store per batch
    def _():
        sim_ref[0, 0] = jnp.full((128,), sim, jnp.float32)


def fused_forward(mask_b, bq, x0, xp, au, wf, bf, bp, wq,
                  wv, bv, wa, ba, wc, bc, w3, b3, *, tm):
    B, Pp, K0p = x0.shape
    E = wf.shape[1]
    nt = Pp // tm

    def _const(arr):
        nd = arr.ndim
        # constant index map -> DMA'd once for the whole grid
        # (pl.Buffered(1) would halve its VMEM on v7x if tiles are scaled up)
        return pl.BlockSpec(arr.shape, lambda bi, ti: (0,) * nd)

    return pl.pallas_call(
        _fused_forward_kernel,
        grid=(B, nt),
        in_specs=[
            pl.BlockSpec(memory_space=pltpu.MemorySpace.SMEM),      # mask [B]
            pl.BlockSpec(memory_space=pltpu.MemorySpace.SMEM),      # pred bias (1,)
            pl.BlockSpec((1, tm, K0p), lambda bi, ti: (bi, ti, 0)),   # stage-0 patches
            pl.BlockSpec((1, 1, xp.shape[-1]), lambda bi, ti: (bi, 0, 0)),  # pooled s3
            pl.BlockSpec((1, 1, au.shape[-1]), lambda bi, ti: (bi, 0, 0)),  # audio
            _const(wf), _const(bf), _const(bp), _const(wq),
            _const(wv), _const(bv), _const(wa), _const(ba),
            _const(wc), _const(bc), _const(w3), _const(b3),
        ],
        out_specs=[
            pl.BlockSpec((1, tm, E), lambda bi, ti: (bi, ti, 0)),   # mask_feature
            pl.BlockSpec((1, 1, tm), lambda bi, ti: (bi, 0, ti)),   # pred (lane-dense)
            pl.BlockSpec((1, 1, 128), lambda bi, ti: (bi, 0, 0)),   # similarity
        ],
        out_shape=(
            jax.ShapeDtypeStruct((B, Pp, E), jnp.float32),
            jax.ShapeDtypeStruct((B, 1, Pp), jnp.float32),
            jax.ShapeDtypeStruct((B, 1, 128), jnp.float32),
        ),
        compiler_params=pltpu.CompilerParams(
            dimension_semantics=("parallel", "arbitrary"),
            vmem_limit_bytes=32 * 1024 * 1024),
    )(mask_b, bq, x0, xp, au, wf, bf, bp, wq, wv, bv, wa, ba, wc, bc, w3, b3)


# --------------------------- parameter init ---------------------------------

def init_params(key):
    keys = jax.random.split(key, 8)
    it = iter(keys)

    def lin(fan_in, fan_out, pad_in_to=None, w_dtype=jnp.float32):
        kw, kb = jax.random.split(next(it))
        w = jax.random.normal(kw, (fan_in, fan_out), jnp.float32) / jnp.sqrt(
            jnp.float32(fan_in))
        b = 0.01 * jax.random.normal(kb, (fan_out,), jnp.float32)
        if pad_in_to is not None and pad_in_to > fan_in:
            w = jnp.pad(w, ((0, pad_in_to - fan_in), (0, 0)))   # zero rows
        return w.astype(w_dtype), b.reshape(1, fan_out)

    flat_audio = AUDIO_SPEC_SHAPE[0] * AUDIO_SPEC_SHAPE[1] * AUDIO_SPEC_SHAPE[2]
    k0 = STRIDES[0] * STRIDES[0] * 3
    k3 = STRIDES[3] * STRIDES[3] * 3
    params = {
        # exact-module parts kept fp32
        "vggish": lin(flat_audio, AUDIO_DIM,
                      pad_in_to=_round_up(flat_audio, 128)),   # synthetic frozen VGGish
        "audio_proj": lin(AUDIO_DIM, EMBED_DIM),               # nn.Linear(128, 256)
        "cos_audio_proj": lin(EMBED_DIM, 512),                 # CosineModule.audio_proj
        # synthetic backbone stages actually consumed (bf16 MXU weights);
        # stages 1/2 are never used downstream, so they are not instantiated.
        "stage0": lin(k0, CHANNELS[0], pad_in_to=_round_up(k0, 128),
                      w_dtype=jnp.bfloat16),
        "stage3": lin(k3, CHANNELS[3], pad_in_to=_round_up(k3, 128),
                      w_dtype=jnp.bfloat16),
        # synthetic head: proj + sigmoid audio gate + per-pixel pred
        "head_proj": lin(CHANNELS[0], EMBED_DIM, w_dtype=jnp.bfloat16),
    }
    wq, bq = lin(EMBED_DIM, 1)
    params["head_pred"] = (jnp.transpose(wq), bq.reshape(1,))  # row [1,256], bias (1,)
    return params


# ------------------------------ forward -------------------------------------

def _patchify_padded(frames_nhwc, stride):
    """NHWC -> [B, h*w, stride*stride*C] with K zero-padded to a 128 multiple."""
    B, H, W, C = frames_nhwc.shape
    h, w = H // stride, W // stride
    x = frames_nhwc.reshape(B, h, stride, w, stride, C)
    x = x.transpose(0, 1, 3, 2, 4, 5).reshape(B, h * w, stride * stride * C)
    K = stride * stride * C
    Kp = _round_up(K, 128)
    if Kp != K:
        x = jnp.pad(x, ((0, 0), (0, 0), (0, Kp - K)))
    return x


@jax.jit
def _forward_jit(params, audio, frames_nchw, vid_mask):
    B, _, H, W = frames_nchw.shape
    frames = jnp.transpose(frames_nchw, (0, 2, 3, 1))          # NCHW -> NHWC

    # ---- stage-0 patches for the head path (bf16 activation DMA) ----
    # TODO(synk): real hierarchical transformer backbone not reproduced;
    #             patchify + linear projection stand-in.
    x0 = _patchify_padded(frames, STRIDES[0])                  # [B, P0, K0p]
    P0 = x0.shape[1]
    tm = min(512, _round_up(P0, 128))                          # lane/sublane-safe tile
    Pp = _round_up(P0, tm)
    if Pp != P0:
        x0 = jnp.pad(x0, ((0, 0), (0, Pp - P0), (0, 0)))
    x0 = x0.astype(jnp.bfloat16)

    # ---- stage-3 pooled patches for the cosine path (pool before the linear:
    #      adaptive_avg_pool2d(stage3(x)) == stage3(mean of patches)) ----
    x3 = _patchify_padded(frames, STRIDES[3])                  # [B, P3, K3p]
    xp = jnp.mean(x3, axis=1, keepdims=True).astype(jnp.bfloat16)   # [B, 1, K3p]

    # ---- audio flattened, lane-padded ----
    # TODO(synk): real VGGish CNN backbone not reproduced; linear stand-in.
    a = audio.reshape(B, 1, -1)
    Ka = a.shape[-1]
    Kap = _round_up(Ka, 128)
    if Kap != Ka:
        a = jnp.pad(a, ((0, 0), (0, 0), (0, Kap - Ka)))

    # ---- algebraic fold: stage-0 linear into the head projection ----
    # TODO(synk): real AVSegFormer transformer head not reproduced;
    #             projection + sigmoid audio gate + per-pixel pred stand-in.
    w0, b0 = params["stage0"]
    wp, bp = params["head_proj"]
    wp32 = wp.astype(jnp.float32)
    w_fused = jnp.dot(w0.astype(jnp.float32), wp32).astype(jnp.bfloat16)   # [K0p, E]
    b_fused = jnp.dot(b0, wp32)                                            # [1, E]

    wv, bv = params["vggish"]
    wa, ba = params["audio_proj"]
    wc, bc = params["cos_audio_proj"]
    w3, b3 = params["stage3"]
    wq, bq = params["head_pred"]

    mf, pr, sim = fused_forward(vid_mask, bq, x0, xp, a,
                                w_fused, b_fused, bp, wq,
                                wv, bv, wa, ba, wc, bc, w3, b3, tm=tm)

    H0, W0 = H // STRIDES[0], W // STRIDES[0]
    pred_nchw = pr[:, :, :P0].reshape(B, 1, H0, W0)
    mask_feature_nchw = jnp.transpose(
        mf[:, :P0, :].reshape(B, H0, W0, EMBED_DIM), (0, 3, 1, 2))
    similarity = sim[:, 0, 0]
    return pred_nchw, mask_feature_nchw, similarity


def avsegformer_robust_forward(params, audio, frames_nchw,
                               vid_temporal_mask_flag=None):
    B = frames_nchw.shape[0]
    if vid_temporal_mask_flag is None:      # mask=None == multiply by ones
        vid_temporal_mask_flag = jnp.ones((B,), jnp.float32)
    return _forward_jit(params, audio, frames_nchw,
                        vid_temporal_mask_flag.astype(jnp.float32))


# ------------------------------ main -----------------------------------------

if __name__ == "__main__":
    key = jax.random.PRNGKey(0)
    pkey, akey, fkey = jax.random.split(key, 3)

    params = init_params(pkey)

    B = 2                                 # (batch * T) collapsed, as in the module
    audio = jax.random.normal(akey, (B,) + AUDIO_SPEC_SHAPE, jnp.float32)
    frames = jax.random.normal(fkey, (B, 3, 64, 64), jnp.float32)   # NCHW input
    vid_mask = jnp.array([1.0, 0.5], dtype=jnp.float32)             # temporal mask flags

    pred, mask_feature, similarity = avsegformer_robust_forward(
        params, audio, frames, vid_mask)
    jax.block_until_ready((pred, mask_feature, similarity))

    assert pred.shape == (B, 1, 16, 16)
    assert mask_feature.shape == (B, EMBED_DIM, 16, 16)
    assert similarity.shape == (B,)
    assert bool(jnp.all(jnp.isfinite(pred)))
    assert bool(jnp.all(jnp.isfinite(mask_feature)))
    assert bool(jnp.all(jnp.isfinite(similarity)))
    print("KERNEL_OK")
</pallas_src>

<mosaic_0001>
module attributes {stable_mosaic.version = 11 : i64} {
  func.func @_fused_forward_kernel(%arg0: i32, %arg1: i32, %arg2: memref<2xf32, #tpu.memory_space<smem>>, %arg3: memref<1xf32, #tpu.memory_space<smem>>, %arg4: memref<1x256x128xbf16, #tpu.memory_space<vmem>>, %arg5: memref<1x1x3072xbf16, #tpu.memory_space<vmem>>, %arg6: memref<1x1x384xf32, #tpu.memory_space<vmem>>, %arg7: memref<128x256xbf16, #tpu.memory_space<vmem>>, %arg8: memref<1x256xf32, #tpu.memory_space<vmem>>, %arg9: memref<1x256xf32, #tpu.memory_space<vmem>>, %arg10: memref<1x256xf32, #tpu.memory_space<vmem>>, %arg11: memref<384x128xf32, #tpu.memory_space<vmem>>, %arg12: memref<1x128xf32, #tpu.memory_space<vmem>>, %arg13: memref<128x256xf32, #tpu.memory_space<vmem>>, %arg14: memref<1x256xf32, #tpu.memory_space<vmem>>, %arg15: memref<256x512xf32, #tpu.memory_space<vmem>>, %arg16: memref<1x512xf32, #tpu.memory_space<vmem>>, %arg17: memref<3072x512xbf16, #tpu.memory_space<vmem>>, %arg18: memref<1x512xf32, #tpu.memory_space<vmem>>, %arg19: memref<1x256x256xf32, #tpu.memory_space<vmem>>, %arg20: memref<1x1x256xf32, #tpu.memory_space<vmem>>, %arg21: memref<1x1x128xf32, #tpu.memory_space<vmem>>) attributes {dimension_semantics = [#tpu.dimension_semantics<parallel>, #tpu.dimension_semantics<arbitrary>], iteration_bounds = array<i64: 2, 1>, scalar_prefetch = 0 : i64, scratch_operands = 0 : i64, tpu.core_type = #tpu.core_type<tc>, window_params = [{transform_indices = @transform_0, window_bounds = array<i64: 2>}, {transform_indices = @transform_1, window_bounds = array<i64: 1>}, {transform_indices = @transform_2, window_bounds = array<i64: 1, 256, 128>}, {transform_indices = @transform_3, window_bounds = array<i64: 1, 1, 3072>}, {transform_indices = @transform_4, window_bounds = array<i64: 1, 1, 384>}, {pipeline_mode = #tpu.pipeline_mode<synchronous>, transform_indices = @transform_5, window_bounds = array<i64: 128, 256>}, {pipeline_mode = #tpu.pipeline_mode<synchronous>, transform_indices = @transform_6, window_bounds = array<i64: 1, 256>}, {pipeline_mode = #tpu.pipeline_mode<synchronous>, transform_indices = @transform_7, window_bounds = array<i64: 1, 256>}, {pipeline_mode = #tpu.pipeline_mode<synchronous>, transform_indices = @transform_8, window_bounds = array<i64: 1, 256>}, {pipeline_mode = #tpu.pipeline_mode<synchronous>, transform_indices = @transform_9, window_bounds = array<i64: 384, 128>}, {pipeline_mode = #tpu.pipeline_mode<synchronous>, transform_indices = @transform_10, window_bounds = array<i64: 1, 128>}, {pipeline_mode = #tpu.pipeline_mode<synchronous>, transform_indices = @transform_11, window_bounds = array<i64: 128, 256>}, {pipeline_mode = #tpu.pipeline_mode<synchronous>, transform_indices = @transform_12, window_bounds = array<i64: 1, 256>}, {pipeline_mode = #tpu.pipeline_mode<synchronous>, transform_indices = @transform_13, window_bounds = array<i64: 256, 512>}, {pipeline_mode = #tpu.pipeline_mode<synchronous>, transform_indices = @transform_14, window_bounds = array<i64: 1, 512>}, {pipeline_mode = #tpu.pipeline_mode<synchronous>, transform_indices = @transform_15, window_bounds = array<i64: 3072, 512>}, {pipeline_mode = #tpu.pipeline_mode<synchronous>, transform_indices = @transform_16, window_bounds = array<i64: 1, 512>}, {transform_indices = @transform_17, window_bounds = array<i64: 1, 256, 256>}, {transform_indices = @transform_18, window_bounds = array<i64: 1, 1, 256>}, {transform_indices = @transform_19, window_bounds = array<i64: 1, 1, 128>}]} {
    %0 = arith.index_cast %arg0 : i32 to index
    %1 = memref.load %arg2[%0] : memref<2xf32, #tpu.memory_space<smem>>
    %c0 = arith.constant 0 : index
    %c0_0 = arith.constant 0 : index
    %c0_1 = arith.constant 0 : index
    %2 = vector.load %arg6[%c0, %c0_0, %c0_1] : memref<1x1x384xf32, #tpu.memory_space<vmem>>, vector<1x1x384xf32>
    %3 = vector.shape_cast %2 : vector<1x1x384xf32> to vector<1x384xf32>
    %c0_2 = arith.constant 0 : index
    %c0_3 = arith.constant 0 : index
    %4 = vector.load %arg11[%c0_2, %c0_3] : memref<384x128xf32, #tpu.memory_space<vmem>>, vector<384x128xf32>
    %cst = arith.constant dense<0.000000e+00> : vector<1x128xf32>
    %5 = tpu.matmul %3, %4, %cst {dimension_numbers = #tpu.dot_dimension_numbers<[1], [0], [0], [1], [0, 0, 1, 1], [], []>} : vector<1x384xf32>, vector<384x128xf32>, vector<1x128xf32> -> vector<1x128xf32>
    %c0_4 = arith.constant 0 : index
    %c0_5 = arith.constant 0 : index
    %6 = vector.load %arg12[%c0_4, %c0_5] : memref<1x128xf32, #tpu.memory_space<vmem>>, vector<1x128xf32>
    %7 = arith.addf %5, %6 : vector<1x128xf32>
    %c0_6 = arith.constant 0 : index
    %c0_7 = arith.constant 0 : index
    %8 = vector.load %arg13[%c0_6, %c0_7] : memref<128x256xf32, #tpu.memory_space<vmem>>, vector<128x256xf32>
    %cst_8 = arith.constant dense<0.000000e+00> : vector<1x256xf32>
    %9 = tpu.matmul %7, %8, %cst_8 {dimension_numbers = #tpu.dot_dimension_numbers<[1], [0], [0], [1], [0, 0, 1, 1], [], []>} : vector<1x128xf32>, vector<128x256xf32>, vector<1x256xf32> -> vector<1x256xf32>
    %c0_9 = arith.constant 0 : index
    %c0_10 = arith.constant 0 : index
    %10 = vector.load %arg14[%c0_9, %c0_10] : memref<1x256xf32, #tpu.memory_space<vmem>>, vector<1x256xf32>
    %11 = arith.addf %9, %10 : vector<1x256xf32>
    %12 = arith.negf %11 : vector<1x256xf32>
    %13 = math.exp %12 : vector<1x256xf32>
    %cst_11 = arith.constant 1.000000e+00 : f32
    %14 = vector.broadcast %cst_11 : f32 to vector<1x256xf32>
    %15 = arith.addf %14, %13 : vector<1x256xf32>
    %16 = arith.divf %14, %15 : vector<1x256xf32>
    %c0_12 = arith.constant 0 : index
    %c0_13 = arith.constant 0 : index
    %c0_14 = arith.constant 0 : index
    %17 = vector.load %arg4[%c0_12, %c0_13, %c0_14] : memref<1x256x128xbf16, #tpu.memory_space<vmem>>, vector<1x256x128xbf16>
    %18 = vector.shape_cast %17 : vector<1x256x128xbf16> to vector<256x128xbf16>
    %c0_15 = arith.constant 0 : index
    %c0_16 = arith.constant 0 : index
    %19 = vector.load %arg7[%c0_15, %c0_16] : memref<128x256xbf16, #tpu.memory_space<vmem>>, vector<128x256xbf16>
    %cst_17 = arith.constant dense<0.000000e+00> : vector<256x256xf32>
    %20 = tpu.matmul %18, %19, %cst_17 {dimension_numbers = #tpu.dot_dimension_numbers<[1], [0], [0], [1], [0, 0, 1, 1], [], []>} : vector<256x128xbf16>, vector<128x256xbf16>, vector<256x256xf32> -> vector<256x256xf32>
    %c0_18 = arith.constant 0 : index
    %c0_19 = arith.constant 0 : index
    %21 = vector.load %arg8[%c0_18, %c0_19] : memref<1x256xf32, #tpu.memory_space<vmem>>, vector<1x256xf32>
    %22 = vector.broadcast %21 : vector<1x256xf32> to vector<256x256xf32>
    %23 = arith.addf %20, %22 : vector<256x256xf32>
    %24 = vector.broadcast %1 : f32 to vector<256x256xf32>
    %25 = arith.mulf %23, %24 : vector<256x256xf32>
    %c0_20 = arith.constant 0 : index
    %c0_21 = arith.constant 0 : index
    %26 = vector.load %arg9[%c0_20, %c0_21] : memref<1x256xf32, #tpu.memory_space<vmem>>, vector<1x256xf32>
    %27 = vector.broadcast %26 : vector<1x256xf32> to vector<256x256xf32>
    %28 = arith.addf %25, %27 : vector<256x256xf32>
    %29 = vector.broadcast %16 : vector<1x256xf32> to vector<256x256xf32>
    %30 = arith.mulf %28, %29 : vector<256x256xf32>
    %c0_22 = arith.constant 0 : index
    %c0_23 = arith.constant 0 : index
    %31 = vector.load %arg10[%c0_22, %c0_23] : memref<1x256xf32, #tpu.memory_space<vmem>>, vector<1x256xf32>
    %32 = vector.broadcast %31 : vector<1x256xf32> to vector<256x256xf32>
    %33 = arith.mulf %30, %32 : vector<256x256xf32>
    %cst_24 = arith.constant dense<0.000000e+00> : vector<256xf32>
    %34 = vector.multi_reduction <add>, %33, %cst_24 [1] : vector<256x256xf32> to vector<256xf32>
    %c0_25 = arith.constant 0 : index
    %35 = memref.load %arg3[%c0_25] : memref<1xf32, #tpu.memory_space<smem>>
    %36 = vector.broadcast %35 : f32 to vector<256xf32>
    %37 = arith.addf %34, %36 : vector<256xf32>
    %38 = vector.broadcast %1 : f32 to vector<256x256xf32>
    %39 = arith.mulf %30, %38 : vector<256x256xf32>
    %c0_26 = arith.constant 0 : index
    %c0_27 = arith.constant 0 : index
    %c0_28 = arith.constant 0 : index
    %40 = vector.load %arg19[%c0_26, %c0_27, %c0_28] : memref<1x256x256xf32, #tpu.memory_space<vmem>>, vector<1x256x256xf32>
    %41 = vector.shape_cast %40 : vector<1x256x256xf32> to vector<256x256xf32>
    %42 = vector.shape_cast %39 : vector<256x256xf32> to vector<1x256x256xf32>
    tpu.vector_store %arg19[%c0_26, %c0_27, %c0_28], %42 {strides = array<i32>} : memref<1x256x256xf32, #tpu.memory_space<vmem>>, vector<1x256x256xf32>,
    %43 = vector.broadcast %1 : f32 to vector<256xf32>
    %44 = arith.mulf %37, %43 : vector<256xf32>
    %c0_29 = arith.constant 0 : index
    %c0_30 = arith.constant 0 : index
    %c0_31 = arith.constant 0 : index
    %45 = vector.load %arg20[%c0_29, %c0_30, %c0_31] : memref<1x1x256xf32, #tpu.memory_space<vmem>>, vector<1x1x256xf32>
    %46 = vector.shape_cast %45 : vector<1x1x256xf32> to vector<256xf32>
    %47 = vector.shape_cast %44 : vector<256xf32> to vector<1x1x256xf32>
    tpu.vector_store %arg20[%c0_29, %c0_30, %c0_31], %47 {strides = array<i32>} : memref<1x1x256xf32, #tpu.memory_space<vmem>>, vector<1x1x256xf32>,
    %c0_32 = arith.constant 0 : index
    %c0_33 = arith.constant 0 : index
    %c0_34 = arith.constant 0 : index
    %48 = vector.load %arg5[%c0_32, %c0_33, %c0_34] : memref<1x1x3072xbf16, #tpu.memory_space<vmem>>, vector<1x1x3072xbf16>
    %49 = vector.shape_cast %48 : vector<1x1x3072xbf16> to vector<1x3072xbf16>
    %c0_35 = arith.constant 0 : index
    %c0_36 = arith.constant 0 : index
    %50 = vector.load %arg17[%c0_35, %c0_36] : memref<3072x512xbf16, #tpu.memory_space<vmem>>, vector<3072x512xbf16>
    %cst_37 = arith.constant dense<0.000000e+00> : vector<1x512xf32>
    %51 = tpu.matmul %49, %50, %cst_37 {dimension_numbers = #tpu.dot_dimension_numbers<[1], [0], [0], [1], [0, 0, 1, 1], [], []>} : vector<1x3072xbf16>, vector<3072x512xbf16>, vector<1x512xf32> -> vector<1x512xf32>
    %c0_38 = arith.constant 0 : index
    %c0_39 = arith.constant 0 : index
    %52 = vector.load %arg18[%c0_38, %c0_39] : memref<1x512xf32, #tpu.memory_space<vmem>>, vector<1x512xf32>
    %53 = arith.addf %51, %52 : vector<1x512xf32>
    %54 = vector.broadcast %1 : f32 to vector<1x512xf32>
    %55 = arith.mulf %53, %54 : vector<1x512xf32>
    %c0_40 = arith.constant 0 : index
    %c0_41 = arith.constant 0 : index
    %56 = vector.load %arg15[%c0_40, %c0_41] : memref<256x512xf32, #tpu.memory_space<vmem>>, vector<256x512xf32>
    %cst_42 = arith.constant dense<0.000000e+00> : vector<1x512xf32>
    %57 = tpu.matmul %11, %56, %cst_42 {dimension_numbers = #tpu.dot_dimension_numbers<[1], [0], [0], [1], [0, 0, 1, 1], [], []>} : vector<1x256xf32>, vector<256x512xf32>, vector<1x512xf32> -> vector<1x512xf32>
    %c0_43 = arith.constant 0 : index
    %c0_44 = arith.constant 0 : index
    %58 = vector.load %arg16[%c0_43, %c0_44] : memref<1x512xf32, #tpu.memory_space<vmem>>, vector<1x512xf32>
    %59 = arith.addf %57, %58 : vector<1x512xf32>
    %60 = arith.mulf %59, %55 : vector<1x512xf32>
    %61 = vector.shape_cast %60 : vector<1x512xf32> to vector<1x1x512xf32>
    %cst_45 = arith.constant dense<0.000000e+00> : vector<1xf32>
    %62 = vector.multi_reduction <add>, %61, %cst_45 [1, 2] : vector<1x1x512xf32> to vector<1xf32>
    %63 = vector.shape_cast %62 : vector<1xf32> to vector<1x1x1xf32>
    %64 = vector.extract %63[0, 0, 0] : f32 from vector<1x1x1xf32>
    %65 = arith.mulf %59, %59 : vector<1x512xf32>
    %66 = vector.shape_cast %65 : vector<1x512xf32> to vector<1x1x512xf32>
    %cst_46 = arith.constant dense<0.000000e+00> : vector<1xf32>
    %67 = vector.multi_reduction <add>, %66, %cst_46 [1, 2] : vector<1x1x512xf32> to vector<1xf32>
    %68 = vector.shape_cast %67 : vector<1xf32> to vector<1x1x1xf32>
    %69 = vector.extract %68[0, 0, 0] : f32 from vector<1x1x1xf32>
    %70 = math.sqrt %69 : f32
    %71 = arith.mulf %55, %55 : vector<1x512xf32>
    %72 = vector.shape_cast %71 : vector<1x512xf32> to vector<1x1x512xf32>
    %cst_47 = arith.constant dense<0.000000e+00> : vector<1xf32>
    %73 = vector.multi_reduction <add>, %72, %cst_47 [1, 2] : vector<1x1x512xf32> to vector<1xf32>
    %74 = vector.shape_cast %73 : vector<1xf32> to vector<1x1x1xf32>
    %75 = vector.extract %74[0, 0, 0] : f32 from vector<1x1x1xf32>
    %76 = math.sqrt %75 : f32
    %cst_48 = arith.constant 9.99999993E-9 : f32
    %77 = arith.maximumf %70, %cst_48 : f32
    %cst_49 = arith.constant 9.99999993E-9 : f32
    %78 = arith.maximumf %76, %cst_49 : f32
    %79 = arith.mulf %77, %78 : f32
    %80 = arith.divf %64, %79 : f32
    %c0_i32 = arith.constant 0 : i32
    %81 = arith.cmpi eq, %arg1, %c0_i32 : i32
    %82 = arith.extui %81 : i1 to i32
    %c0_i32_50 = arith.constant 0 : i32
    %83 = arith.cmpi ne, %82, %c0_i32_50 : i32
    scf.if %83 {
      %84 = vector.broadcast %80 : f32 to vector<128xf32>
      %c0_51 = arith.constant 0 : index
      %c0_52 = arith.constant 0 : index
      %c0_53 = arith.constant 0 : index
      %85 = vector.load %arg21[%c0_51, %c0_52, %c0_53] : memref<1x1x128xf32, #tpu.memory_space<vmem>>, vector<1x1x128xf32>
      %86 = vector.shape_cast %85 : vector<1x1x128xf32> to vector<128xf32>
      %87 = vector.shape_cast %84 : vector<128xf32> to vector<1x1x128xf32>
      tpu.vector_store %arg21[%c0_51, %c0_52, %c0_53], %87 {strides = array<i32>} : memref<1x1x128xf32, #tpu.memory_space<vmem>>, vector<1x1x128xf32>,
    } else {
    }
    return
  }
  func.func @transform_0(%arg0: i32, %arg1: i32) -> i32 {
    %c0_i32 = arith.constant 0 : i32
    %c0_i32_0 = arith.constant 0 : i32
    return %c0_i32 : i32
  }
  func.func @transform_1(%arg0: i32, %arg1: i32) -> i32 {
    %c0_i32 = arith.constant 0 : i32
    %c0_i32_0 = arith.constant 0 : i32
    return %c0_i32 : i32
  }
  func.func @transform_2(%arg0: i32, %arg1: i32) -> (i32, i32, i32) {
    %c0_i32 = arith.constant 0 : i32
    %c0_i32_0 = arith.constant 0 : i32
    return %arg0, %arg1, %c0_i32 : i32, i32, i32
  }
  func.func @transform_3(%arg0: i32, %arg1: i32) -> (i32, i32, i32) {
    %c0_i32 = arith.constant 0 : i32
    %c0_i32_0 = arith.constant 0 : i32
    %c0_i32_1 = arith.constant 0 : i32
    return %arg0, %c0_i32, %c0_i32_0 : i32, i32, i32
  }
  func.func @transform_4(%arg0: i32, %arg1: i32) -> (i32, i32, i32) {
    %c0_i32 = arith.constant 0 : i32
    %c0_i32_0 = arith.constant 0 : i32
    %c0_i32_1 = arith.constant 0 : i32
    return %arg0, %c0_i32, %c0_i32_0 : i32, i32, i32
  }
  func.func @transform_5(%arg0: i32, %arg1: i32) -> (i32, i32) {
    %c0_i32 = arith.constant 0 : i32
    %c0_i32_0 = arith.constant 0 : i32
    %c0_i32_1 = arith.constant 0 : i32
    return %c0_i32, %c0_i32_0 : i32, i32
  }
  func.func @transform_6(%arg0: i32, %arg1: i32) -> (i32, i32) {
    %c0_i32 = arith.constant 0 : i32
    %c0_i32_0 = arith.constant 0 : i32
    %c0_i32_1 = arith.constant 0 : i32
    return %c0_i32, %c0_i32_0 : i32, i32
  }
  func.func @transform_7(%arg0: i32, %arg1: i32) -> (i32, i32) {
    %c0_i32 = arith.constant 0 : i32
    %c0_i32_0 = arith.constant 0 : i32
    %c0_i32_1 = arith.constant 0 : i32
    return %c0_i32, %c0_i32_0 : i32, i32
  }
  func.func @transform_8(%arg0: i32, %arg1: i32) -> (i32, i32) {
    %c0_i32 = arith.constant 0 : i32
    %c0_i32_0 = arith.constant 0 : i32
    %c0_i32_1 = arith.constant 0 : i32
    return %c0_i32, %c0_i32_0 : i32, i32
  }
  func.func @transform_9(%arg0: i32, %arg1: i32) -> (i32, i32) {
    %c0_i32 = arith.constant 0 : i32
    %c0_i32_0 = arith.constant 0 : i32
    %c0_i32_1 = arith.constant 0 : i32
    return %c0_i32, %c0_i32_0 : i32, i32
  }
  func.func @transform_10(%arg0: i32, %arg1: i32) -> (i32, i32) {
    %c0_i32 = arith.constant 0 : i32
    %c0_i32_0 = arith.constant 0 : i32
    %c0_i32_1 = arith.constant 0 : i32
    return %c0_i32, %c0_i32_0 : i32, i32
  }
  func.func @transform_11(%arg0: i32, %arg1: i32) -> (i32, i32) {
    %c0_i32 = arith.constant 0 : i32
    %c0_i32_0 = arith.constant 0 : i32
    %c0_i32_1 = arith.constant 0 : i32
    return %c0_i32, %c0_i32_0 : i32, i32
  }
  func.func @transform_12(%arg0: i32, %arg1: i32) -> (i32, i32) {
    %c0_i32 = arith.constant 0 : i32
    %c0_i32_0 = arith.constant 0 : i32
    %c0_i32_1 = arith.constant 0 : i32
    return %c0_i32, %c0_i32_0 : i32, i32
  }
  func.func @transform_13(%arg0: i32, %arg1: i32) -> (i32, i32) {
    %c0_i32 = arith.constant 0 : i32
    %c0_i32_0 = arith.constant 0 : i32
    %c0_i32_1 = arith.constant 0 : i32
    return %c0_i32, %c0_i32_0 : i32, i32
  }
  func.func @transform_14(%arg0: i32, %arg1: i32) -> (i32, i32) {
    %c0_i32 = arith.constant 0 : i32
    %c0_i32_0 = arith.constant 0 : i32
    %c0_i32_1 = arith.constant 0 : i32
    return %c0_i32, %c0_i32_0 : i32, i32
  }
  func.func @transform_15(%arg0: i32, %arg1: i32) -> (i32, i32) {
    %c0_i32 = arith.constant 0 : i32
    %c0_i32_0 = arith.constant 0 : i32
    %c0_i32_1 = arith.constant 0 : i32
    return %c0_i32, %c0_i32_0 : i32, i32
  }
  func.func @transform_16(%arg0: i32, %arg1: i32) -> (i32, i32) {
    %c0_i32 = arith.constant 0 : i32
    %c0_i32_0 = arith.constant 0 : i32
    %c0_i32_1 = arith.constant 0 : i32
    return %c0_i32, %c0_i32_0 : i32, i32
  }
  func.func @transform_17(%arg0: i32, %arg1: i32) -> (i32, i32, i32) {
    %c0_i32 = arith.constant 0 : i32
    %c0_i32_0 = arith.constant 0 : i32
    return %arg0, %arg1, %c0_i32 : i32, i32, i32
  }
  func.func @transform_18(%arg0: i32, %arg1: i32) -> (i32, i32, i32) {
    %c0_i32 = arith.constant 0 : i32
    %c0_i32_0 = arith.constant 0 : i32
    return %arg0, %c0_i32, %arg1 : i32, i32, i32
  }
  func.func @transform_19(%arg0: i32, %arg1: i32) -> (i32, i32, i32) {
    %c0_i32 = arith.constant 0 : i32
    %c0_i32_0 = arith.constant 0 : i32
    %c0_i32_1 = arith.constant 0 : i32
    return %arg0, %c0_i32, %c0_i32_0 : i32, i32, i32
  }
}

</mosaic_0001>

<bundles_post_ra>
// kernel: _forward_jit.1
= control target key start
LH: loop header
LB: loop body
LE: loop exit
PB: predicated region body
PF: predicated region fallthrough
CT: control target
= control target key end

     0   :  { %s19276_s0 = inlined_call_operand.vmem [shape: f32[2], index: 0, kind: input, shape index: {}]   ;;  %s19277_s1 = inlined_call_operand.<no memory space> [shape: f32[1], index: 1, kind: input, shape index: {}]   ;;  %s19278_s2 = inlined_call_operand.vmem [shape: bf16[2,256,128], index: 2, kind: input, shape index: {}]   ;;  %s19279_s3 = inlined_call_operand.vmem [shape: bf16[2,1,3072], index: 3, kind: input, shape index: {}]   ;;  %s19280_s4 = inlined_call_operand.vmem [shape: f32[2,1,384], index: 4, kind: input, shape index: {}]   ;;  %s19281_s5 = inlined_call_operand.vmem [shape: bf16[128,256], index: 5, kind: input, shape index: {}]   ;;  %s19282_s6 = inlined_call_operand.vmem [shape: f32[1,256], index: 6, kind: input, shape index: {}]   ;;  %s19283_s7 = inlined_call_operand.vmem [shape: f32[1,256], index: 7, kind: input, shape index: {}]   ;;  %s19284_s8 = inlined_call_operand.vmem [shape: f32[1,256], index: 8, kind: input, shape index: {}]   ;;  %s19285_s9 = inlined_call_operand.vmem [shape: f32[384,128], index: 9, kind: input, shape index: {}]   ;;  %s19286_s10 = inlined_call_operand.vmem [shape: f32[1,128], index: 10, kind: input, shape index: {}]   ;;  %s19287_s11 = inlined_call_operand.vmem [shape: f32[128,256], index: 11, kind: input, shape index: {}]   ;;  %s19288_s12 = inlined_call_operand.vmem [shape: f32[1,256], index: 12, kind: input, shape index: {}]   ;;  %s19289_s13 = inlined_call_operand.vmem [shape: f32[256,512], index: 13, kind: input, shape index: {}]   ;;  %s19290_s14 = inlined_call_operand.vmem [shape: f32[1,512], index: 14, kind: input, shape index: {}]   ;;  %s19291_s15 = inlined_call_operand.vmem [shape: bf16[3072,512], index: 15, kind: input, shape index: {}]   ;;  %s19292_s16 = inlined_call_operand.vmem [shape: f32[1,512], index: 16, kind: input, shape index: {}]   ;;  %s19293_s17 = inlined_call_operand.hbm [shape: f32[2,256,256], index: 17, kind: output, shape index: {0}]   ;;  %s19294_s18 = inlined_call_operand.vmem [shape: f32[2,1,256], index: 18, kind: output, shape index: {1}]   ;;  %s19295_s19 = inlined_call_operand.vmem [shape: f32[2,1,128], index: 19, kind: output, shape index: {2}]  }
   0x1   :  { %19345 = sst [smem:[#allocation72_spill]] %s19276_s0 }
   0x2   :  { %19346 = sst [smem:[#allocation73_spill]] %s19277_s1 }
   0x3   :  { %19347 = sst [smem:[#allocation74_spill]] %s19278_s2 }
   0x4   :  { %19348 = sst [smem:[#allocation75_spill]] %s19279_s3 }
   0x5   :  { %19349 = sst [smem:[#allocation76_spill]] %s19280_s4 }
   0x6   :  { %19350 = sst [smem:[#allocation77_spill]] %s19295_s19 }
   0x7   :  { %s19351_s20 = sld [smem:[#allocation73_spill]] }
   0xd   :  { %25 = sst [smem:[#allocation2]] %s19351_s20 }
   0xe   :  { %26 = vsyncpa [#allocation5], 0 }
   0xf   :  { %27 = vsyncpa [#allocation4], 0 }
  0x10   :  { %29 = vsyncpa [#allocation4 + $0x1], 0  ;;  %s13780_s21 = smov 0   ;;  %s13782_s1 = smov 0  }
  0x11   :  { %s13784_s22 = smov 0   ;;  %s13786_s2 = smov 0  }
  0x12   :  { %s13788_s23 = smov 0   ;;  %s13790_s24 = smov 0  }
  0x13 LB: > { %19352 = sst [smem:[#allocation9_spill]] %s13646_s21  ;;  %s11365_s25 = sadd.s32 4294967295, %s13666_s24   ;;  %s13666_s24 = sphi %s13790_s24, %s35_s24   ;;  %s13662_s23 = sphi %s13788_s23, %s19516_s23   ;;  %s13658_s2 = sphi %s13786_s2, %s19515_s2   ;;  %s13654_s22 = sphi %s13784_s22, %s19514_s22   ;;  %s13650_s1 = sphi %s13782_s1, %s19518_s1   ;;  %s13646_s21 = sphi %s13780_s21, %s19517_s21  }
  0x14   : > { %19353 = sst [smem:[#allocation10_spill]] %s13654_s22  ;;  %s11366_s3 = sadd.s32 4294967294, %s13666_s24  }
  0x15   : > { %19354 = sst [smem:[#allocation11_spill]] %s13662_s23  ;;  %s47_s26 = sadd.s32 1, %s13662_s23 }
  0x16   : > { %19355 = sst [smem:[#allocation12_spill]] %s13666_s24  ;;  %s430_s27 = sadd.s32 1, %s13654_s22 }
  0x17   : > { %p49_p0 = scmp.ge.s32.totalorder %s47_s26, 2  ;;  %p440_p1 = scmp.ne.s32.totalorder %s13654_s22, %s13650_s1 }
  0x18   : > { %p441_p2 = scmp.eq.s32.totalorder %s11365_s25, 1  ;;  %p446_p3 = scmp.ne.s32.totalorder %s13650_s1, %s13646_s21 }
  0x19   : > { %s19520_s26 = smov (%p49_p0, %s47_s26), 0  ;;  %p447_p5 = scmp.eq.s32.totalorder %s11366_s3, 1 }
  0x1a   : > { %19356 = sst [smem:[#allocation13_spill]] %s19520_s26  ;;  %p13820_p4 = por %p441_p2, %p440_p1 }
  0x1b   : > { %s425_s29 = ssub.s32 %s13662_s23, %s19520_s26  ;;  %p11367_p6 = scmp.ge.s32.totalorder %s13666_s24, 1 }
  0x1c   : > { %p428_p7 = scmp.eq.s32.totalorder %s425_s29, 0  ;;  %p13827_p8 = por %p447_p5, %p446_p3 }
  0x1d   : > { %p508_p9 = scmp.lt.s32.totalorder %s13666_s24, 3  ;;  %p13839_p11 = scmp.eq.s32.totalorder %s11365_s25, 0 }
  0x1e   : > { %s19358_s0 = scalar_select %p13827_p8, 1, 0 }
  0x1f   : > { %s13833_s30 = scalar_select %p428_p7, %s13654_s22, %s430_s27  }
  0x20   : > { %19359 = sst [smem:[#allocation14_spill]] %s19358_s0  ;;  %p13835_p10 = pnand %p11367_p6, %p508_p9 }
  0x21   : > { %19360 = sst [smem:[#allocation15_spill]] %s13833_s30 }
  0x22   : > { %s19363_s23 = sld [smem:[#allocation72_spill]]  ;;  %p12292_p12 = pneg %p13835_p10 }
  0x24   : > { %p12293_p13 = pnand %p13839_p11, %p12292_p12 }
  0x26   : > { %p13573_p1 = pneg %p12293_p13 }
  0x28   : > { %s521_s29 = sshll.u32 %s19363_s23, 4  ;;  %s522_s29 = int_to_ptr.vmem [resolvable:$true] %s521_s29 }
  0x29   : > { %s13571_s27 = scalar_lea.vmem %s522_s29, 16  ;;  %p13579_p5 = scmp.lt.s32.totalorder %s522_s29, %s522_s29 }
  0x2a   : > { %p13572_p0 = scmp.ne.s32.totalorder %s522_s29, %s13571_s27  ;;  %p13580_p6 = scmp.lt.s32.totalorder %s13571_s27, %s13571_s27 }
  0x2c   : > { %p13574_p2 = pnand %p13573_p1, %p13572_p0  ;;  %p13581_p7 = por %p13580_p6, %p13579_p5 }
  0x2e   : > { %p13575_p3 = pneg %p13574_p2 }
  0x30   : > { %p13582_p9 = pnand %p13581_p7, %p13575_p3 }
  0x32   : > { %13585 = shalt.err (!%p13582_p9)
}
  0x33   : > { %s13668_s25 = smov [#allocation3]   ;;  %600 = sbr.rel (%p13835_p10) target bundleno = 1884 (0x75c), region = 88 }
  0x34   : > { %12295 = dma.vmem_to_smem (!%p12293_p13), %s522_s29, 16, %s13668_s25, [#allocation5]  }
  0x38   : > { %13637 = dma.done.wait (%p13839_p11), [#allocation5], 16  }
  0x39   : > { %13639 = vsyncadd (%p13839_p11), [#allocation5], 4294967280 }
  0x3a   : > { %606 = sfence }
  0x3b   : > { %v745_v0 = vld [vmem:[%s19285_s9 + $0xf8] sm:$0xff]  ;;  %v744_v2 = vld [vmem:[%s19285_s9 + $0xf0] sm:$0xff]  ;;  %p681_p10 = scmp.lt.s32.totalorder %s13658_s2, 1  ;;  %v19303_v3 = vlaneseq  ;;  %v13669_v5 = vmov 0.0   ;;  %v743_v6 = vld [vmem:[%s19285_s9 + $0xe8] sm:$0xff]  ;;  %v13670_v7 = vmov 0  }
  0x3c   : > { %v729_v1 = vld [vmem:[%s19285_s9 + $0x78] sm:$0xff]  ;;  %12185 = vmatprep.subr.mxu1 %v745_v0  ;;  %v728_v4 = vld [vmem:[%s19285_s9 + $0x70] sm:$0xff]  ;;  %1027 = vmatprep.mubr.f32.mxu0 %v13669_v5  ;;  %v727_v8 = vld [vmem:[%s19285_s9 + $0x68] sm:$0xff]  ;;  %s19365_s4 = sld [smem:[#allocation76_spill]]  ;;  %vm13671_vm0 = vmmov 0   ;;  %s662_s30 = sand.u32 1, %s13650_s1  }
  0x3d   : > { %12186 = vmatpush3.msra.mxu1 %v729_v1  ;;  %s13874_s3 = scalar_select %p681_p10, %s13658_s2, 1  ;;  %12359 = vset.pattern.permute.xlu1 %v13670_v7  ;;  %v13881_v9 = vshrl.u32 %v19303_v3, 7  ;;  %v742_v10 = vld [vmem:[%s19285_s9 + $0xe0] sm:$0xff]  ;;  %v741_v12 = vld [vmem:[%s19285_s9 + $0xd8] sm:$0xff]  ;;  %v740_v15 = vld [vmem:[%s19285_s9 + $0xd0] sm:$0xff]  ;;  %vm11076_vm1 = vcmask 1040384  }
  0x3e   : > { %12187 = vmatprep.subr.mxu1 %v744_v2  ;;  %12360 = vset.pattern.permute.xlu0 %v13670_v7  ;;  %v726_v11 = vld [vmem:[%s19285_s9 + $0x60] sm:$0xff]  ;;  %v725_v13 = vld [vmem:[%s19285_s9 + $0x58] sm:$0xff]  ;;  %v724_v16 = vld [vmem:[%s19285_s9 + $0x50] sm:$0xff]  ;;  %s712_s0 = sld [smem:[#allocation3 + %s13658_s2]]  ;;  %s15764_s19 = sshll.u32 %s662_s30, 9 }
  0x3f   : > { %19364 = vst [vmem:[#allocation16_spill] sm:$0xff] %v13881_v9  ;;  %12188 = vmatpush3.msra.mxu1 %v728_v4  ;;  %s12273_s25 = smul.u32 3, %s13874_s3  ;;  %v13901_v14 = vsub.s32 1, %v13881_v9  ;;  %v739_v17 = vld [vmem:[%s19285_s9 + $0xc8] sm:$0xff]  ;;  %v738_v21 = vld [vmem:[%s19285_s9 + $0xc0] sm:$0xff]  ;;  %v737_v23 = vld [vmem:[%s19285_s9 + $0xb8] sm:$0xff] }
  0x40   : > { %12189 = vmatprep.subr.mxu1 %v743_v6  ;;  %v723_v19 = vld [vmem:[%s19285_s9 + $0x48] sm:$0xff]  ;;  %v722_v22 = vld [vmem:[%s19285_s9 + $0x40] sm:$0xff]  ;;  %v721_v24 = vld [vmem:[%s19285_s9 + $0x38] sm:$0xff]  ;;  %s12183_s21 = sshll.u32 %s13874_s3, 7  ;;  %v13963_v35 = vsub.s32 0, %v13881_v9  ;;  %v14037_v54 = vsub.s32 2, %v13881_v9 }
  0x41   : > { %12190 = vmatpush3.msra.mxu1 %v727_v8  ;;  %19366 = vst [vmem:[#allocation17_spill] sm:$0xff] %v13901_v14  ;;  %v736_v25 = vld [vmem:[%s19285_s9 + $0xb0] sm:$0xff]  ;;  %v735_v27 = vld [vmem:[%s19285_s9 + $0xa8] sm:$0xff]  ;;  %v734_v29 = vld [vmem:[%s19285_s9 + $0xa0] sm:$0xff]  ;;  %s19108_s24 = scalar_lea.sflag [#allocation4], %s662_s30 }
  0x42   : > { %12191 = vmatprep.subr.mxu1 %v742_v10  ;;  %s697_s20 = scalar_lea.vmem %s19365_s4, %s12273_s25  ;;  %v720_v26 = vld [vmem:[%s19285_s9 + $0x30] sm:$0xff]  ;;  %v719_v28 = vld [vmem:[%s19285_s9 + $0x28] sm:$0xff]  ;;  %v718_v30 = vld [vmem:[%s19285_s9 + $0x20] sm:$0xff]  ;;  %19367 = vst [vmem:[#allocation18_spill] sm:$0xff] %v13963_v35  ;;  %s19368_s25 = sld [smem:[#allocation74_spill]] }
  0x43   : > { %12192 = vmatpush3.msra.mxu1 %v726_v11  ;;  %v13912_v18 = vld [vmem:[%s697_s20] sm:$0x7]  ;;  %v733_v31 = vld [vmem:[%s19285_s9 + $0x98] sm:$0xff]  ;;  %v732_v33 = vld [vmem:[%s19285_s9 + $0x90] sm:$0xff]  ;;  %19369 = vst [vmem:[#allocation19_spill] sm:$0xff] %v14037_v54  ;;  %s12272_s4 = smul.u32 24, %s13874_s3 }
  0x44   : > { %12193 = vmatprep.subr.mxu1 %v741_v12  ;;  %v771_v20 = vrot.slane %v13912_v18, %v13901_v14  ;;  %v717_v32 = vld [vmem:[%s19285_s9 + $0x18] sm:$0xff]  ;;  %v716_v34 = vld [vmem:[%s19285_s9 + $0x10] sm:$0xff]  ;;  %v731_v36 = vld [vmem:[%s19285_s9 + $0x88] sm:$0xff]  ;;  %v767_v40 = vrot.slane %v13912_v18, %v13963_v35  ;;  %v775_v60 = vrot.slane %v13912_v18, %v14037_v54 }
  0x45   : > { %12194 = vmatpush3.msra.mxu1 %v725_v13  ;;  %v715_v37 = vld [vmem:[%s19285_s9 + $0x8] sm:$0xff]  ;;  %v730_v38 = vld [vmem:[%s19285_s9 + $0x80] sm:$0xff]  ;;  %v761_v41 = vld [vmem:[%s19285_s9 + $0x178] sm:$0xff] }
  0x46   : > { %12195 = vmatprep.subr.mxu1 %v740_v15  ;;  %843 = vmatprep.mubr.f32.mxu1 %v771_v20  ;;  %v714_v39 = vld [vmem:[%s19285_s9] sm:$0xff]  ;;  %v760_v42 = vld [vmem:[%s19285_s9 + $0x170] sm:$0xff]  ;;  %v759_v43 = vld [vmem:[%s19285_s9 + $0x168] sm:$0xff] }
  0x47   : > { %12196 = vmatpush3.msra.mxu1 %v724_v16  ;;  %v758_v44 = vld [vmem:[%s19285_s9 + $0x160] sm:$0xff]  ;;  %v757_v45 = vld [vmem:[%s19285_s9 + $0x158] sm:$0xff]  ;;  %v756_v46 = vld [vmem:[%s19285_s9 + $0x150] sm:$0xff] }
  0x48   : > { %12197 = vmatprep.subr.mxu1 %v739_v17  ;;  %s13971_s29 = scalar_lea.vmem %s19368_s25, %s12183_s21  ;;  %v755_v47 = vld [vmem:[%s19285_s9 + $0x148] sm:$0xff]  ;;  %v754_v48 = vld [vmem:[%s19285_s9 + $0x140] sm:$0xff]  ;;  %v753_v49 = vld [vmem:[%s19285_s9 + $0x138] sm:$0xff]  ;;  %s19370_s25 = sld [smem:[#allocation75_spill]] }
  0x49   : > { %12198 = vmatpush3.msra.mxu1 %v723_v19  ;;  %v752_v50 = vld [vmem:[%s19285_s9 + $0x130] sm:$0xff]  ;;  %v751_v51 = vld [vmem:[%s19285_s9 + $0x128] sm:$0xff]  ;;  %v750_v52 = vld [vmem:[%s19285_s9 + $0x120] sm:$0xff] }
  0x4a   : > { %12199 = vmatprep.subr.mxu1 %v738_v21  ;;  %v749_v53 = vld [vmem:[%s19285_s9 + $0x118] sm:$0xff]  ;;  %v748_v55 = vld [vmem:[%s19285_s9 + $0x110] sm:$0xff]  ;;  %v747_v56 = vld [vmem:[%s19285_s9 + $0x108] sm:$0xff] }
  0x4b   : > { %12200 = vmatpush3.msra.mxu1 %v722_v22  ;;  %v746_v57 = vld [vmem:[%s19285_s9 + $0x100] sm:$0xff]  ;;  %v12363_v58 = vld [vmem:[%s19281_s5 + $0x74] ss:$8 sps:$4 sm:$0xff]   ;;  %v12361_v59 = vld [vmem:[%s19281_s5 + $0x70] ss:$8 sps:$4 sm:$0xff]  }
  0x4c   : > { %12201 = vmatprep.subr.mxu1 %v737_v23  ;;  %v12366_v61 = vld [vmem:[%s19281_s5 + $0x64] ss:$8 sps:$4 sm:$0xff]   ;;  %v12364_v62 = vld [vmem:[%s19281_s5 + $0x60] ss:$8 sps:$4 sm:$0xff]   ;;  %v12369_v63 = vld [vmem:[%s19281_s5 + $0x54] ss:$8 sps:$4 sm:$0xff]  }
  0x4d   : > { %12202 = vmatpush3.msra.mxu1 %v721_v24  ;;  %v12367_v0 = vld [vmem:[%s19281_s5 + $0x50] ss:$8 sps:$4 sm:$0xff]   ;;  %v12372_v1 = vld [vmem:[%s19281_s5 + $0x44] ss:$8 sps:$4 sm:$0xff]   ;;  %v12370_v2 = vld [vmem:[%s19281_s5 + $0x40] ss:$8 sps:$4 sm:$0xff]  }
  0x4e   : > { %12203 = vmatprep.subr.mxu1 %v736_v25  ;;  %v12375_v4 = vld [vmem:[%s19281_s5 + $0x34] ss:$8 sps:$4 sm:$0xff]   ;;  %v12378_v6 = vld [vmem:[%s19281_s5 + $0x24] ss:$8 sps:$4 sm:$0xff]   ;;  %v12376_v8 = vld [vmem:[%s19281_s5 + $0x20] ss:$8 sps:$4 sm:$0xff]   ;;  %s14332_s23 = scalar_lea.vmem %s19370_s25, %s12272_s4 }
  0x4f   : > { %12204 = vmatpush3.msra.mxu1 %v720_v26  ;;  %v12381_v10 = vld [vmem:[%s19281_s5 + $0x14] ss:$8 sps:$4 sm:$0xff]   ;;  %v12379_v11 = vld [vmem:[%s19281_s5 + $0x10] ss:$8 sps:$4 sm:$0xff]   ;;  %v12384_v12 = vld [vmem:[%s19281_s5 + $0x4] ss:$8 sps:$4 sm:$0xff]  }
  0x50   : > { %12205 = vmatprep.subr.mxu1 %v735_v27  ;;  %v12382_v13 = vld [vmem:[%s19281_s5] ss:$8 sps:$4 sm:$0xff]   ;;  %v12395_v15 = vld [vmem:[%s19291_s15 + $0x4e4] ss:$16 sps:$4 sm:$0xff]   ;;  %v950_v22 = vld [vmem:[%s19287_s11 + $0xf8] sm:$0xff]  ;;  %s15822_s4 = scalar_lea.vmem [#allocation6], %s15764_s19 }
  0x51   : > { %12206 = vmatpush3.msra.mxu1 %v719_v28  ;;  %v12385_v16 = vld [vmem:[%s13971_s29] sm:$0xff]   ;;  %v12386_v20 = vld [vmem:[%s13971_s29 + $0x8] sm:$0xff]   ;;  %963 = vmatprep.subr.mxu0 %v950_v22  ;;  %v949_v24 = vld [vmem:[%s19287_s11 + $0xf0] sm:$0xff]  ;;  %s12184_s19 = sshll.u32 %s13658_s2, 13  ;;  %s11192_s27 = sshll.u32 %s15822_s4, 4  ;;  %s19104_s27 = int_to_ptr.vmem [resolvable:$true] %s11192_s27 }
  0x52   : > { %12207 = vmatprep.subr.mxu1 %v734_v29  ;;  %v12393_v17 = vld [vmem:[%s19291_s15 + $0x4e0] ss:$16 sps:$4 sm:$0xff]   ;;  %v12399_v18 = vld [vmem:[%s19291_s15 + $0x4c4] ss:$16 sps:$4 sm:$0xff]   ;;  %v948_v25 = vld [vmem:[%s19287_s11 + $0xe8] sm:$0xff]  ;;  %964 = vmatpush1.msra.mxu0 %v949_v24  ;;  %s19101_s22 = scalar_lea.hbm %s19293_s17, %s12184_s19  ;;  %s13586_s2 = scalar_lea.vmem %s19104_s27, 8192 }
  0x53   : > { %12208 = vmatpush3.msra.mxu1 %v718_v30  ;;  %v12397_v19 = vld [vmem:[%s19291_s15 + $0x4c0] ss:$16 sps:$4 sm:$0xff]   ;;  %v12402_v21 = vld [vmem:[%s19291_s15 + $0x4a4] ss:$16 sps:$4 sm:$0xff]   ;;  %965 = vmatprep.subr.mxu0 %v948_v25  ;;  %v946_v27 = vld [vmem:[%s19287_s11 + $0xd8] sm:$0xff]  ;;  %p13587_p11 = scmp.ne.s32.totalorder %s19104_s27, %s13586_s2 }
  0x54   : > { %12209 = vmatprep.subr.mxu1 %v733_v31  ;;  %v12400_v23 = vld [vmem:[%s19291_s15 + $0x4a0] ss:$16 sps:$4 sm:$0xff]   ;;  %v12406_v29 = vld [vmem:[%s19291_s15 + $0x484] ss:$16 sps:$4 sm:$0xff]   ;;  %v944_v30 = vld [vmem:[%s19287_s11 + $0xc8] sm:$0xff] }
  0x55   : > { %12210 = vmatpush3.msra.mxu1 %v717_v32  ;;  %v947_v26 = vld [vmem:[%s19287_s11 + $0xe0] sm:$0xff]  ;;  %v945_v28 = vld [vmem:[%s19287_s11 + $0xd0] sm:$0xff]  ;;  %p13588_p12 = pnand %p13587_p11, %p13820_p4 }
  0x56   : > { %12211 = vmatprep.subr.mxu1 %v732_v33  ;;  %966 = vmatpush1.msra.mxu0 %v947_v26  ;;  %v12404_v31 = vld [vmem:[%s19291_s15 + $0x480] ss:$16 sps:$4 sm:$0xff]   ;;  %v942_v33 = vld [vmem:[%s19287_s11 + $0xb8] sm:$0xff]  ;;  %v12444_v25 = vld [vmem:[%s19291_s15 + $0x524] ss:$16 sps:$4 sm:$0xff]  }
  0x57   : > { %12212 = vmatpush3.msra.mxu1 %v716_v34  ;;  %967 = vmatprep.subr.mxu0 %v946_v27  ;;  %v943_v32 = vld [vmem:[%s19287_s11 + $0xc0] sm:$0xff]  ;;  %v12387_v34 = vld [vmem:[%s13971_s29 + $0x10] sm:$0xff]   ;;  %v12392_v26 = vld [vmem:[%s13971_s29 + $0x38] sm:$0xff]   ;;  %p13589_p13 = pneg %p13588_p12 }
  0x58   : > { %12213 = vmatprep.subr.mxu1 %v731_v36  ;;  %968 = vmatpush1.msra.mxu0 %v945_v28  ;;  %v12409_v36 = vld [vmem:[%s19291_s15 + $0x464] ss:$16 sps:$4 sm:$0xff]   ;;  %v12435_v22 = vld [vmem:[%s19291_s15 + $0x560] ss:$16 sps:$4 sm:$0xff]  }
  0x59   : > { %12214 = vmatpush3.msra.mxu1 %v715_v37  ;;  %969 = vmatprep.subr.mxu0 %v944_v30  ;;  %v941_v37 = vld [vmem:[%s19287_s11 + $0xb0] sm:$0xff] }
  0x5a   : > { %12215 = vmatprep.subr.mxu1 %v730_v38  ;;  %v940_v38 = vld [vmem:[%s19287_s11 + $0xa8] sm:$0xff]  ;;  %970 = vmatpush1.msra.mxu0 %v943_v32  ;;  %v12439_v24 = vld [vmem:[%s19291_s15 + $0x540] ss:$16 sps:$4 sm:$0xff]   ;;  %v12448_v28 = vld [vmem:[%s19291_s15 + $0x504] ss:$16 sps:$4 sm:$0xff]  }
  0x5b   : > { %12216 = vmatpush3.msra.mxu1 %v714_v39  ;;  %971 = vmatprep.subr.mxu0 %v942_v33  ;;  %v12407_v39 = vld [vmem:[%s19291_s15 + $0x460] ss:$16 sps:$4 sm:$0xff]   ;;  %v12452_v30 = vld [vmem:[%s19291_s15 + $0x8e4] ss:$16 sps:$4 sm:$0xff]   ;;  %v12403_v32 = vld [vmem:[%s13971_s29 + $0x48] sm:$0xff]  }
  0x5c   : > { %844 = vmatmul.mubr.f32.vlgmr.msra.gmra.mxu1 %v767_v40  ;;  %12237 = vmatprep.subr.mxu1 %v13669_v5  ;;  %v939_v40 = vld [vmem:[%s19287_s11 + $0xa0] sm:$0xff]  ;;  %v12410_v33 = vld [vmem:[%s13971_s29 + $0x50] sm:$0xff]  }
  0x5d   : > { %12238 = vmatpush3.msra.mxu1 %v761_v41  ;;  %12269 = vmatprep.mubr.msk.f32.mxu1 %vm13671_vm0, %v13669_v5  ;;  %v938_v41 = vld [vmem:[%s19287_s11 + $0x98] sm:$0xff]  ;;  %v12442_v27 = vld [vmem:[%s19291_s15 + $0x520] ss:$16 sps:$4 sm:$0xff]   ;;  %v12651_v3 = vld [vmem:[%s19291_s15 + $0x1044] ss:$16 sps:$4 sm:$0xff]  }
  0x5e   : > { %12239 = vmatprep.subr.mxu1 %v13669_v5  ;;  %972 = vmatpush1.msra.mxu0 %v941_v37  ;;  %v13672_v37 = vmov 1966171168   ;;  %v12657_v54 = vld [vmem:[%s19291_s15 + $0x1024] ss:$16 sps:$4 sm:$0xff]  }
  0x5f   : > { %12240 = vmatpush3.msra.mxu1 %v760_v42  ;;  %v12413_v42 = vld [vmem:[%s19291_s15 + $0x444] ss:$16 sps:$4 sm:$0xff]   ;;  %973 = vmatprep.subr.mxu0 %v940_v38  ;;  %v3115_v38 = vunpack.c.l.s4 %v13672_v37  ;;  %v12498_v37 = vld [vmem:[%s19291_s15 + $0x960] ss:$16 sps:$4 sm:$0xff]  }
  0x60   : > { %12241 = vmatprep.subr.mxu1 %v13669_v5  ;;  %974 = vmatpush1.msra.mxu0 %v939_v40 }
  0x61   : > { %12242 = vmatpush3.msra.mxu1 %v759_v43  ;;  %v937_v43 = vld [vmem:[%s19287_s11 + $0x90] sm:$0xff]  ;;  %975 = vmatprep.subr.mxu0 %v938_v41  ;;  %v3116_v40 = vunpack.c.0.s8 %v3115_v38  ;;  %v4985_v41 = vld [vmem:[%s14332_s23] sm:$0xff] }
  0x62   : > { %12243 = vmatprep.subr.mxu1 %v13669_v5  ;;  %976 = vmatpush1.msra.mxu0 %v937_v43  ;;  %v5760_v43 = vcombine.high %v4985_v41, %v4985_v41  ;;  %v12503_v38 = vld [vmem:[%s19291_s15 + $0x64] ss:$16 sps:$4 sm:$0xff]  }
  0x63   : > { %12244 = vmatpush3.msra.mxu1 %v758_v44  ;;  %v936_v44 = vld [vmem:[%s19287_s11 + $0x88] sm:$0xff] }
  0x64   : > { %12245 = vmatprep.subr.mxu1 %v13669_v5  ;;  %977 = vmatprep.subr.mxu0 %v936_v44  ;;  %v12438_v44 = vld [vmem:[%s13971_s29 + $0x70] sm:$0xff]  }
  0x65   : > { %12246 = vmatpush3.msra.mxu1 %v757_v45  ;;  %v12411_v45 = vld [vmem:[%s19291_s15 + $0x440] ss:$16 sps:$4 sm:$0xff]  }
  0x66   : > { %12247 = vmatprep.subr.mxu1 %v13669_v5 }
  0x67   : > { %12248 = vmatpush3.msra.mxu1 %v756_v46  ;;  %v12416_v46 = vld [vmem:[%s19291_s15 + $0x424] ss:$16 sps:$4 sm:$0xff]  }
  0x68   : > { %12249 = vmatprep.subr.mxu1 %v13669_v5 }
  0x69   : > { %12250 = vmatpush3.msra.mxu1 %v755_v47  ;;  %v935_v47 = vld [vmem:[%s19287_s11 + $0x80] sm:$0xff] }
  0x6a   : > { %12251 = vmatprep.subr.mxu1 %v13669_v5  ;;  %978 = vmatpush1.msra.mxu0 %v935_v47  ;;  %v14343_v47 = vld [vmem:[%s14332_s23 + $0x8] sm:$0xff] }
  0x6b   : > { %12252 = vmatpush3.msra.mxu1 %v754_v48  ;;  %v12388_v48 = vld [vmem:[%s13971_s29 + $0x18] sm:$0xff]  }
  0x6c   : > { %12253 = vmatprep.subr.mxu1 %v13669_v5 }
  0x6d   : > { %12254 = vmatpush3.msra.mxu1 %v753_v49  ;;  %v934_v49 = vld [vmem:[%s19287_s11 + $0x78] sm:$0xff] }
  0x6e   : > { %12255 = vmatprep.subr.mxu1 %v13669_v5  ;;  %979 = vmatprep.subr.mxu0 %v934_v49 }
  0x6f   : > { %12256 = vmatpush3.msra.mxu1 %v752_v50  ;;  %v933_v50 = vld [vmem:[%s19287_s11 + $0x70] sm:$0xff] }
  0x70   : > { %12257 = vmatprep.subr.mxu1 %v13669_v5  ;;  %980 = vmatpush1.msra.mxu0 %v933_v50 }
  0x71   : > { %12258 = vmatpush3.msra.mxu1 %v751_v51  ;;  %v932_v51 = vld [vmem:[%s19287_s11 + $0x68] sm:$0xff] }
  0x72   : > { %12259 = vmatprep.subr.mxu1 %v13669_v5  ;;  %981 = vmatprep.subr.mxu0 %v932_v51 }
  0x73   : > { %12260 = vmatpush3.msra.mxu1 %v750_v52  ;;  %v12414_v52 = vld [vmem:[%s19291_s15 + $0x420] ss:$16 sps:$4 sm:$0xff]  }
  0x74   : > { %12261 = vmatprep.subr.mxu1 %v13669_v5 }
  0x75   : > { %12262 = vmatpush3.msra.mxu1 %v749_v53  ;;  %v931_v53 = vld [vmem:[%s19287_s11 + $0x60] sm:$0xff] }
  0x76   : > { %12263 = vmatprep.subr.mxu1 %v13669_v5  ;;  %982 = vmatpush1.msra.mxu0 %v931_v53 }
  0x77   : > { %12264 = vmatpush3.msra.mxu1 %v748_v55  ;;  %v12420_v55 = vld [vmem:[%s19291_s15 + $0x404] ss:$16 sps:$4 sm:$0xff]  }
  0x78   : > { %12265 = vmatprep.subr.mxu1 %v13669_v5 }
  0x79   : > { %12266 = vmatpush3.msra.mxu1 %v747_v56  ;;  %v930_v56 = vld [vmem:[%s19287_s11 + $0x58] sm:$0xff] }
  0x7a   : > { %12267 = vmatprep.subr.mxu1 %v13669_v5  ;;  %v12373_v5 = vld [vmem:[%s19281_s5 + $0x30] ss:$8 sps:$4 sm:$0xff]   ;;  %983 = vmatprep.subr.mxu0 %v930_v56 }
  0x7b   : > { %12268 = vmatpush3.msra.mxu1 %v746_v57  ;;  %v929_v57 = vld [vmem:[%s19287_s11 + $0x50] sm:$0xff] }
  0x7c   : > { %12270 = vmatmul.mubr.f32.vlgmr.msra.gmra.mxu1 %v775_v60  ;;  %1282 = vmatprep.subr.bf16.mxu1 %v12363_v58  ;;  %v12418_v58 = vld [vmem:[%s19291_s15 + $0x400] ss:$16 sps:$4 sm:$0xff]   ;;  %v928_v60 = vld [vmem:[%s19287_s11 + $0x48] sm:$0xff] }
  0x7d   : > { %1283 = vmatpush1.bf16.msra.mxu1 %v12361_v59  ;;  %1314 = vmatprep.mubr.bf16.mxu1 %v13670_v7  ;;  %v12423_v59 = vld [vmem:[%s19291_s15 + $0x5e4] ss:$16 sps:$4 sm:$0xff]   ;;  %v12453_v56 = vld [vmem:[%s19291_s15 + $0x8c0] ss:$16 sps:$4 sm:$0xff]  }
  0x7e   : > { %1284 = vmatprep.subr.bf16.mxu1 %v12366_v61  ;;  %v12389_v61 = vld [vmem:[%s13971_s29 + $0x20] sm:$0xff]   ;;  %984 = vmatpush1.msra.mxu0 %v929_v57 }
  0x7f   : > { %985 = vmatprep.subr.mxu0 %v928_v60  ;;  %v12458_v57 = vld [vmem:[%s19291_s15 + $0x8a4] ss:$16 sps:$4 sm:$0xff]   ;;  %v12459_v60 = vld [vmem:[%s19291_s15 + $0x880] ss:$16 sps:$4 sm:$0xff]  }
  0x81   : > { %1285 = vmatpush1.bf16.msra.mxu1 %v12364_v62  ;;  %v927_v62 = vld [vmem:[%s19287_s11 + $0x40] sm:$0xff] }
  0x82   : > { %1286 = vmatprep.subr.bf16.mxu1 %v12369_v63  ;;  %v926_v63 = vld [vmem:[%s19287_s11 + $0x38] sm:$0xff]  ;;  %986 = vmatpush1.msra.mxu0 %v927_v62  ;;  %v12462_v62 = vld [vmem:[%s19291_s15 + $0x860] ss:$16 sps:$4 sm:$0xff]  }
  0x83   : > { %987 = vmatprep.subr.mxu0 %v926_v63  ;;  %v12467_v63 = vld [vmem:[%s19291_s15 + $0x844] ss:$16 sps:$4 sm:$0xff]  }
  0x85   : > { %1287 = vmatpush1.bf16.msra.mxu1 %v12367_v0  ;;  %v925_v0 = vld [vmem:[%s19287_s11 + $0x30] sm:$0xff] }
  0x86   : > { %1288 = vmatprep.subr.bf16.mxu1 %v12372_v1  ;;  %v12421_v1 = vld [vmem:[%s19291_s15 + $0x5e0] ss:$16 sps:$4 sm:$0xff]   ;;  %988 = vmatpush1.msra.mxu0 %v925_v0 }
  0x87   : > { %v12465_v0 = vld [vmem:[%s19291_s15 + $0x840] ss:$16 sps:$4 sm:$0xff]  }
  0x89   : > { %1289 = vmatpush1.bf16.msra.mxu1 %v12370_v2  ;;  %v924_v2 = vld [vmem:[%s19287_s11 + $0x28] sm:$0xff] }
  0x8a   : > { %1290 = vmatprep.subr.bf16.mxu1 %v12375_v4  ;;  %v12427_v4 = vld [vmem:[%s19291_s15 + $0x5c4] ss:$16 sps:$4 sm:$0xff]   ;;  %989 = vmatprep.subr.mxu0 %v924_v2 }
  0x8d   : > { %1291 = vmatpush1.bf16.msra.mxu1 %v12373_v5  ;;  %v923_v5 = vld [vmem:[%s19287_s11 + $0x20] sm:$0xff] }
  0x8e   : > { %1292 = vmatprep.subr.bf16.mxu1 %v12378_v6  ;;  %v12425_v6 = vld [vmem:[%s19291_s15 + $0x5c0] ss:$16 sps:$4 sm:$0xff]   ;;  %990 = vmatpush1.msra.mxu0 %v923_v5  ;;  %v12473_v5 = vld [vmem:[%s19291_s15 + $0x804] ss:$16 sps:$4 sm:$0xff]  }
  0x91   : > { %1293 = vmatpush1.bf16.msra.mxu1 %v12376_v8  ;;  %v922_v8 = vld [vmem:[%s19287_s11 + $0x18] sm:$0xff] }
  0x92   : > { %1294 = vmatprep.subr.bf16.mxu1 %v12381_v10  ;;  %v12430_v10 = vld [vmem:[%s19291_s15 + $0x5a4] ss:$16 sps:$4 sm:$0xff]   ;;  %991 = vmatprep.subr.mxu0 %v922_v8 }
  0x95   : > { %1295 = vmatpush1.bf16.msra.mxu1 %v12379_v11  ;;  %v921_v11 = vld [vmem:[%s19287_s11 + $0x10] sm:$0xff] }
  0x96   : > { %1296 = vmatprep.subr.bf16.mxu1 %v12384_v12  ;;  %v12390_v12 = vld [vmem:[%s13971_s29 + $0x28] sm:$0xff]   ;;  %992 = vmatpush1.msra.mxu0 %v921_v11  ;;  %v12476_v11 = vld [vmem:[%s19291_s15 + $0x9e4] ss:$16 sps:$4 sm:$0xff]  }
  0x99   : > { %1297 = vmatpush1.bf16.msra.mxu1 %v12382_v13  ;;  %v920_v13 = vld [vmem:[%s19287_s11 + $0x8] sm:$0xff] }
  0x9a   : > { %9874 = vmatprep.subr.bf16.mxu1 %v12395_v15  ;;  %v919_v15 = vld [vmem:[%s19287_s11] sm:$0xff]  ;;  %993 = vmatprep.subr.mxu0 %v920_v13 }
  0x9b   : > { %994 = vmatpush1.msra.mxu0 %v919_v15  ;;  %v762_v13 = vld [vmem:[%s19286_s10] sm:$0x1] }
  0x9c   : > { %1315 = vmatmul.mubr.bf16.vlgmr.msra.gmra.mxu1 %v12385_v16  ;;  %v12479_v16 = vld [vmem:[%s19291_s15 + $0xe4] ss:$16 sps:$4 sm:$0xff]  }
  0x9d   : > { %1324 = vmatprep.mubr.bf16.mxu1 %v13670_v7  ;;  %9875 = vmatpush1.bf16.msra.mxu1 %v12393_v17  ;;  %v12428_v17 = vld [vmem:[%s19291_s15 + $0x5a0] ss:$16 sps:$4 sm:$0xff]  }
  0x9e   : > { %9876 = vmatprep.subr.bf16.mxu1 %v12399_v18  ;;  %v12434_v18 = vld [vmem:[%s19291_s15 + $0x584] ss:$16 sps:$4 sm:$0xff]   ;;  %9792 = vmatprep.subr.bf16.mxu0 %v12479_v16  ;;  %v12474_v16 = vld [vmem:[%s19291_s15 + $0x9e0] ss:$16 sps:$4 sm:$0xff]  }
  0xa1   : > { %9877 = vmatpush1.bf16.msra.mxu1 %v12397_v19  ;;  %v12432_v19 = vld [vmem:[%s19291_s15 + $0x580] ss:$16 sps:$4 sm:$0xff]  }
  0xa2   : > { %9878 = vmatprep.subr.bf16.mxu1 %v12402_v21  ;;  %v12391_v21 = vld [vmem:[%s13971_s29 + $0x30] sm:$0xff]  }
  0xa4   : > { %1325 = vmatmul.mubr.bf16.gmra.mxu1 %v12386_v20  ;;  %v12437_v20 = vld [vmem:[%s19291_s15 + $0x564] ss:$16 sps:$4 sm:$0xff]  }
  0xa5   : > { %1334 = vmatprep.mubr.bf16.mxu1 %v13670_v7  ;;  %9879 = vmatpush1.bf16.msra.mxu1 %v12400_v23  ;;  %v12441_v23 = vld [vmem:[%s19291_s15 + $0x544] ss:$16 sps:$4 sm:$0xff]  }
  0xa6   : > { %9880 = vmatprep.subr.bf16.mxu1 %v12406_v29  ;;  %v12446_v29 = vld [vmem:[%s19291_s15 + $0x500] ss:$16 sps:$4 sm:$0xff]  }
  0xa9   : > { %9881 = vmatpush1.bf16.msra.mxu1 %v12404_v31  ;;  %v12396_v31 = vld [vmem:[%s13971_s29 + $0x40] sm:$0xff]  }
  0xaa   : > { %9882 = vmatprep.subr.bf16.mxu1 %v12409_v36  ;;  %v12424_v36 = vld [vmem:[%s13971_s29 + $0x60] sm:$0xff]  }
  0xac   : > { %1335 = vmatmul.mubr.bf16.gmra.mxu1 %v12387_v34  ;;  %v12417_v34 = vld [vmem:[%s13971_s29 + $0x58] sm:$0xff]  }
  0xad   : > { %1344 = vmatprep.mubr.bf16.mxu1 %v13670_v7  ;;  %9883 = vmatpush1.bf16.msra.mxu1 %v12407_v39  ;;  %v12431_v39 = vld [vmem:[%s13971_s29 + $0x68] sm:$0xff]  }
  0xae   : > { %9884 = vmatprep.subr.bf16.mxu1 %v12413_v42  ;;  %v14337_v42 = vsub.s32 %v3116_v40, %v13881_v9  ;;  %v12501_v40 = vld [vmem:[%s19291_s15 + $0x60] ss:$16 sps:$4 sm:$0xff]  }
  0xb0   : > { %19371 = vst [vmem:[#allocation20_spill] sm:$0xff] %v14337_v42  ;;  %v14351_v50 = vrot.slane %v14343_v47, %v14337_v42  ;;  %v14407_v8 = vrot.slane %v4985_v41, %v14337_v42  ;;  %v12504_v41 = vld [vmem:[%s19291_s15 + $0x940] ss:$16 sps:$4 sm:$0xff]  }
  0xb1   : > { %9885 = vmatpush1.bf16.msra.mxu1 %v12411_v45  ;;  %v5774_v45 = vrot.slane %v5760_v43, %v14337_v42  ;;  %v12509_v43 = vld [vmem:[%s19291_s15 + $0x44] ss:$16 sps:$4 sm:$0xff]  }
  0xb2   : > { %9886 = vmatprep.subr.bf16.mxu1 %v12416_v46  ;;  %v5824_v51 = vcombine.high %v14351_v50, %v14351_v50  ;;  %v5775_v15 = vcombine.high %v14407_v8, %v14407_v8 }
  0xb3   : > { %v5776_v46 = vcombine.high %v5774_v45, %v5774_v45 }
  0xb4   : > { %1345 = vmatmul.mubr.bf16.gmra.mxu1 %v12388_v48  ;;  %v12445_v48 = vld [vmem:[%s13971_s29 + $0x78] sm:$0xff]   ;;  %v14363_v53 = vrot.slane %v5824_v51, %v14337_v42  ;;  %v12515_v51 = vld [vmem:[%s19291_s15 + $0x24] ss:$16 sps:$4 sm:$0xff]  }
  0xb5   : > { %1354 = vmatprep.mubr.bf16.mxu1 %v13670_v7  ;;  %9887 = vmatpush1.bf16.msra.mxu1 %v12414_v52  ;;  %v14347_v49 = vrot.slane %v5776_v46, %v14337_v42  ;;  %v14357_v52 = vrot.slane %v5774_v45, %v14337_v42  ;;  %v5809_v45 = vcombine.high %v14343_v47, %v14343_v47  ;;  %v12507_v46 = vld [vmem:[%s19291_s15 + $0x40] ss:$16 sps:$4 sm:$0xff]   ;;  %v12518_v47 = vld [vmem:[%s19291_s15 + $0x904] ss:$16 sps:$4 sm:$0xff]  }
  0xb6   : > { %9888 = vmatprep.subr.bf16.mxu1 %v12420_v55  ;;  %19374 = vst [vmem:[#allocation23_spill] sm:$0xff] %v14363_v53  ;;  %v12455_v55 = vld [vmem:[%s19291_s15 + $0x8c4] ss:$16 sps:$4 sm:$0xff]  }
  0xb7   : > { %19372 = vst [vmem:[#allocation21_spill] sm:$0xff] %v14347_v49  ;;  %19373 = vst [vmem:[#allocation22_spill] sm:$0xff] %v14357_v52 }
  0xb9   : > { %9889 = vmatpush1.bf16.msra.mxu1 %v12418_v58  ;;  %v12456_v58 = vld [vmem:[%s19291_s15 + $0x8a0] ss:$16 sps:$4 sm:$0xff]  }
  0xba   : > { %9890 = vmatprep.subr.bf16.mxu1 %v12423_v59  ;;  %v12461_v59 = vld [vmem:[%s19291_s15 + $0x884] ss:$16 sps:$4 sm:$0xff]  }
  0xbc   : > { %1355 = vmatmul.mubr.bf16.gmra.mxu1 %v12389_v61  ;;  %v12464_v61 = vld [vmem:[%s19291_s15 + $0x864] ss:$16 sps:$4 sm:$0xff]  }
  0xbd   : > { %1364 = vmatprep.mubr.bf16.mxu1 %v13670_v7  ;;  %9891 = vmatpush2.bf16.msra.mxu1 %v12421_v1  ;;  %v12470_v1 = vld [vmem:[%s19291_s15 + $0x824] ss:$16 sps:$4 sm:$0xff]  }
  0xbe   : > { %9892 = vmatprep.subr.bf16.mxu1 %v12427_v4  ;;  %v12468_v4 = vld [vmem:[%s19291_s15 + $0x820] ss:$16 sps:$4 sm:$0xff]  }
  0xc1   : > { %9893 = vmatpush2.bf16.msra.mxu1 %v12425_v6 }
  0xc2   : > { %9894 = vmatprep.subr.bf16.mxu1 %v12430_v10  ;;  %v12471_v10 = vld [vmem:[%s19291_s15 + $0x800] ss:$16 sps:$4 sm:$0xff]  }
  0xc4   : > { %1365 = vmatmul.mubr.bf16.gmra.mxu1 %v12390_v12 }
  0xc5   : > { %1374 = vmatprep.mubr.bf16.mxu1 %v13670_v7  ;;  %9895 = vmatpush2.bf16.msra.mxu1 %v12428_v17  ;;  %v12477_v17 = vld [vmem:[%s19291_s15 + $0xe0] ss:$16 sps:$4 sm:$0xff]  }
  0xc6   : > { %9896 = vmatprep.subr.bf16.mxu1 %v12434_v18  ;;  %v12482_v18 = vld [vmem:[%s19291_s15 + $0x9c4] ss:$16 sps:$4 sm:$0xff]  }
  0xc9   : > { %9897 = vmatpush2.bf16.msra.mxu1 %v12432_v19 }
  0xca   : > { %9898 = vmatprep.subr.bf16.mxu1 %v12437_v20  ;;  %v12480_v20 = vld [vmem:[%s19291_s15 + $0x9c0] ss:$16 sps:$4 sm:$0xff]  }
  0xcc   : > { %1375 = vmatmul.mubr.bf16.gmra.mxu1 %v12391_v21 }
  0xcd   : > { %1384 = vmatprep.mubr.bf16.mxu1 %v13670_v7  ;;  %9899 = vmatpush2.bf16.msra.mxu1 %v12435_v22  ;;  %v14433_v22 = vrot.slane %v5775_v15, %v14337_v42  ;;  %v12539_v15 = vld [vmem:[%s19291_s15 + $0x1a4] ss:$16 sps:$4 sm:$0xff]  }
  0xce   : > { %9900 = vmatprep.subr.bf16.mxu1 %v12441_v23 }
  0xcf   : > { %19375 = vst [vmem:[#allocation24_spill] sm:$0xff] %v14433_v22 }
  0xd1   : > { %9901 = vmatpush2.bf16.msra.mxu1 %v12439_v24  ;;  %v12485_v24 = vld [vmem:[%s19291_s15 + $0xc4] ss:$16 sps:$4 sm:$0xff]  }
  0xd2   : > { %9902 = vmatprep.subr.bf16.mxu1 %v12444_v25 }
  0xd4   : > { %1385 = vmatmul.mubr.bf16.gmra.mxu1 %v12392_v26  ;;  %v12488_v26 = vld [vmem:[%s19291_s15 + $0x9a4] ss:$16 sps:$4 sm:$0xff]  }
  0xd5   : > { %1394 = vmatprep.mubr.bf16.mxu1 %v13670_v7  ;;  %9903 = vmatpush2.bf16.msra.mxu1 %v12442_v27  ;;  %v12483_v27 = vld [vmem:[%s19291_s15 + $0xc0] ss:$16 sps:$4 sm:$0xff]  }
  0xd6   : > { %9904 = vmatprep.subr.bf16.mxu1 %v12448_v28  ;;  %v12486_v28 = vld [vmem:[%s19291_s15 + $0x9a0] ss:$16 sps:$4 sm:$0xff]  }
  0xd9   : > { %9905 = vmatpush2.bf16.msra.mxu1 %v12446_v29  ;;  %v12491_v29 = vld [vmem:[%s19291_s15 + $0xa4] ss:$16 sps:$4 sm:$0xff]  }
  0xda   : > { %9956 = vmatprep.subr.bf16.mxu1 %v12452_v30  ;;  %v12494_v30 = vld [vmem:[%s19291_s15 + $0x984] ss:$16 sps:$4 sm:$0xff]  }
  0xdc   : > { %1395 = vmatmul.mubr.bf16.gmra.mxu1 %v12396_v31  ;;  %v12489_v31 = vld [vmem:[%s19291_s15 + $0xa0] ss:$16 sps:$4 sm:$0xff]  }
  0xdd   : > { %1404 = vmatprep.mubr.bf16.mxu1 %v13670_v7 }
  0xe4   : > { %1405 = vmatmul.mubr.bf16.gmra.mxu1 %v12403_v32  ;;  %v12492_v32 = vld [vmem:[%s19291_s15 + $0x980] ss:$16 sps:$4 sm:$0xff]  }
  0xe5   : > { %1414 = vmatprep.mubr.bf16.mxu1 %v13670_v7 }
  0xec   : > { %1415 = vmatmul.mubr.bf16.gmra.mxu1 %v12410_v33  ;;  %v12497_v33 = vld [vmem:[%s19291_s15 + $0x84] ss:$16 sps:$4 sm:$0xff]  }
  0xed   : > { %1424 = vmatprep.mubr.bf16.mxu1 %v13670_v7 }
  0xf4   : > { %1425 = vmatmul.mubr.bf16.gmra.mxu1 %v12417_v34  ;;  %v12500_v34 = vld [vmem:[%s19291_s15 + $0x964] ss:$16 sps:$4 sm:$0xff]  }
  0xf5   : > { %1434 = vmatprep.mubr.bf16.mxu1 %v13670_v7 }
  0xfc   : > { %1435 = vmatmul.mubr.bf16.gmra.mxu1 %v12424_v36  ;;  %v12495_v36 = vld [vmem:[%s19291_s15 + $0x80] ss:$16 sps:$4 sm:$0xff]  }
  0xfd   : > { %1444 = vmatprep.mubr.bf16.mxu1 %v13670_v7 }
 0x104   : > { %1445 = vmatmul.mubr.bf16.gmra.mxu1 %v12431_v39  ;;  %v12506_v39 = vld [vmem:[%s19291_s15 + $0x944] ss:$16 sps:$4 sm:$0xff]  }
 0x105   : > { %1454 = vmatprep.mubr.bf16.mxu1 %v13670_v7 }
 0x10c   : > { %1455 = vmatmul.mubr.bf16.gmra.mxu1 %v12438_v44  ;;  %v12512_v44 = vld [vmem:[%s19291_s15 + $0x924] ss:$16 sps:$4 sm:$0xff]  }
 0x10d   : > { %1464 = vmatprep.mubr.bf16.mxu1 %v13670_v7  ;;  %v12450_v7 = vld [vmem:[%s19291_s15 + $0x8e0] ss:$16 sps:$4 sm:$0xff]  }
 0x114   : > { %1465 = vmatmul.mubr.bf16.gmra.mxu1 %v12445_v48  ;;  %v12510_v48 = vld [vmem:[%s19291_s15 + $0x920] ss:$16 sps:$4 sm:$0xff]  }
 0x115   : > { %9906 = vmatprep.mubr.bf16.mxu1 %v14347_v49 }
 0x11c   : > { %9907 = vmatmul.mubr.bf16.vlgmr.msra.gmra.mxu1 %v14357_v52  ;;  %v12217_v2 = vpop.f32.mrf.mxu1 }
 0x11d   : > { %9957 = vmatpush1.bf16.msra.mxu1 %v12450_v7  ;;  %9988 = vmatprep.mubr.bf16.mxu1 %v14363_v53  ;;  %v14505_v7 = vrot.slane %v5809_v45, %v14337_v42  ;;  %v12561_v45 = vld [vmem:[%s19291_s15 + $0x120] ss:$16 sps:$4 sm:$0xff]  }
 0x11e   : > { %9958 = vmatprep.subr.bf16.mxu1 %v12455_v55  ;;  %v12218_v6 = vpop.f32.mrf.mxu1  ;;  %v12513_v55 = vld [vmem:[%s19291_s15 + $0x20] ss:$16 sps:$4 sm:$0xff]  }
 0x11f   : > { %v12219_v12 = vadd.f32 %v12218_v6, %v12217_v2  ;;  %v12536_v6 = vld [vmem:[%s19291_s15 + $0xca4] ss:$16 sps:$4 sm:$0xff]  }
 0x121   : > { %9959 = vmatpush1.bf16.msra.mxu1 %v12453_v56  ;;  %v846_v19 = vadd.f32 %v12219_v12, %v762_v13  ;;  %v12516_v56 = vld [vmem:[%s19291_s15 + $0x900] ss:$16 sps:$4 sm:$0xff]  }
 0x122   : > { %9960 = vmatprep.subr.bf16.mxu1 %v12458_v57  ;;  %v12521_v57 = vld [vmem:[%s19291_s15 + $0x4] ss:$16 sps:$4 sm:$0xff]   ;;  %v12534_v13 = vld [vmem:[%s19291_s15 + $0xca0] ss:$16 sps:$4 sm:$0xff]  }
 0x125   : > { %9961 = vmatpush1.bf16.msra.mxu1 %v12456_v58  ;;  %v12524_v58 = vld [vmem:[%s19291_s15 + $0xce4] ss:$16 sps:$4 sm:$0xff]  }
 0x126   : > { %9962 = vmatprep.subr.bf16.mxu1 %v12461_v59  ;;  %v5825_v59 = vcombine.high %v14505_v7, %v14505_v7 }
 0x129   : > { %9963 = vmatpush1.bf16.msra.mxu1 %v12459_v60  ;;  %v12519_v60 = vld [vmem:[%s19291_s15] ss:$16 sps:$4 sm:$0xff]  }
 0x12a   : > { %9964 = vmatprep.subr.bf16.mxu1 %v12464_v61  ;;  %v14526_v61 = vrot.slane %v14351_v50, %v14337_v42  ;;  %v12525_v50 = vld [vmem:[%s19291_s15 + $0x1e0] ss:$16 sps:$4 sm:$0xff]  }
 0x12c   : > { %19376 = vst [vmem:[#allocation25_spill] sm:$0xff] %v14526_v61 }
 0x12d   : > { %9965 = vmatpush1.bf16.msra.mxu1 %v12462_v62  ;;  %v12522_v62 = vld [vmem:[%s19291_s15 + $0xce0] ss:$16 sps:$4 sm:$0xff]  }
 0x12e   : > { %9966 = vmatprep.subr.bf16.mxu1 %v12467_v63  ;;  %v12527_v63 = vld [vmem:[%s19291_s15 + $0x1e4] ss:$16 sps:$4 sm:$0xff]  }
 0x131   : > { %9967 = vmatpush1.bf16.msra.mxu1 %v12465_v0  ;;  %v12530_v0 = vld [vmem:[%s19291_s15 + $0xcc4] ss:$16 sps:$4 sm:$0xff]  }
 0x132   : > { %9968 = vmatprep.subr.bf16.mxu1 %v12470_v1  ;;  %v14538_v1 = vrot.slane %v5825_v59, %v14337_v42  ;;  %v12575_v59 = vld [vmem:[%s19291_s15 + $0x2e4] ss:$16 sps:$4 sm:$0xff]  }
 0x134   : > { %19377 = vst [vmem:[#allocation26_spill] sm:$0xff] %v14538_v1 }
 0x135   : > { %9969 = vmatpush1.bf16.msra.mxu1 %v12468_v4  ;;  %v12528_v4 = vld [vmem:[%s19291_s15 + $0xcc0] ss:$16 sps:$4 sm:$0xff]  }
 0x136   : > { %9970 = vmatprep.subr.bf16.mxu1 %v12473_v5  ;;  %v12533_v5 = vld [vmem:[%s19291_s15 + $0x1c4] ss:$16 sps:$4 sm:$0xff]  }
 0x139   : > { %9971 = vmatpush1.bf16.msra.mxu1 %v12471_v10 }
 0x13a   : > { %9972 = vmatprep.subr.bf16.mxu1 %v12476_v11  ;;  %v12531_v11 = vld [vmem:[%s19291_s15 + $0x1c0] ss:$16 sps:$4 sm:$0xff]  }
 0x13c   : > { %v915_v21 = vpop.f32.mrf.mxu1 }
 0x13d   : > { %v916_v23 = vadd.f32 %v915_v21, %v846_v19  ;;  %9973 = vmatpush2.bf16.msra.mxu1 %v12474_v16  ;;  %v12542_v16 = vld [vmem:[%s19291_s15 + $0xc84] ss:$16 sps:$4 sm:$0xff]  }
 0x13e   : > { %v12271_v25 = vpop.f32.mrf.mxu1  ;;  %9974 = vmatprep.subr.bf16.mxu1 %v12482_v18  ;;  %v12537_v18 = vld [vmem:[%s19291_s15 + $0x1a0] ss:$16 sps:$4 sm:$0xff]   ;;  %v12545_v21 = vld [vmem:[%s19291_s15 + $0x184] ss:$16 sps:$4 sm:$0xff]  }
 0x13f   : > { %1028 = vmatmul.mubr.f32.vlgmr.msra.gmra.mxu0 %v916_v23  ;;  %v12548_v23 = vld [vmem:[%s19291_s15 + $0xc64] ss:$16 sps:$4 sm:$0xff]   ;;  %v12543_v25 = vld [vmem:[%s19291_s15 + $0x180] ss:$16 sps:$4 sm:$0xff]  }
 0x140   : > { %9793 = vmatpush1.bf16.msra.mxu0 %v12477_v17  ;;  %9824 = vmatprep.mubr.bf16.mxu0 %v14433_v22 }
 0x141   : > { %9975 = vmatpush2.bf16.msra.mxu1 %v12480_v20  ;;  %9794 = vmatprep.subr.bf16.mxu0 %v12485_v24  ;;  %v12540_v20 = vld [vmem:[%s19291_s15 + $0xc80] ss:$16 sps:$4 sm:$0xff]  }
 0x142   : > { %9976 = vmatprep.subr.bf16.mxu1 %v12488_v26 }
 0x144   : > { %9795 = vmatpush1.bf16.msra.mxu0 %v12483_v27  ;;  %v12546_v27 = vld [vmem:[%s19291_s15 + $0xc60] ss:$16 sps:$4 sm:$0xff]  }
 0x145   : > { %9977 = vmatpush2.bf16.msra.mxu1 %v12486_v28  ;;  %9796 = vmatprep.subr.bf16.mxu0 %v12491_v29  ;;  %v12551_v28 = vld [vmem:[%s19291_s15 + $0x164] ss:$16 sps:$4 sm:$0xff]  }
 0x146   : > { %9978 = vmatprep.subr.bf16.mxu1 %v12494_v30  ;;  %v12554_v29 = vld [vmem:[%s19291_s15 + $0xc44] ss:$16 sps:$4 sm:$0xff]  }
 0x148   : > { %9797 = vmatpush1.bf16.msra.mxu0 %v12489_v31  ;;  %v12549_v31 = vld [vmem:[%s19291_s15 + $0x160] ss:$16 sps:$4 sm:$0xff]  }
 0x149   : > { %9979 = vmatpush2.bf16.msra.mxu1 %v12492_v32  ;;  %9798 = vmatprep.subr.bf16.mxu0 %v12497_v33  ;;  %v12552_v33 = vld [vmem:[%s19291_s15 + $0xc40] ss:$16 sps:$4 sm:$0xff]  }
 0x14a   : > { %9980 = vmatprep.subr.bf16.mxu1 %v12500_v34  ;;  %v12557_v34 = vld [vmem:[%s19291_s15 + $0x144] ss:$16 sps:$4 sm:$0xff]  }
 0x14c   : > { %9799 = vmatpush1.bf16.msra.mxu0 %v12495_v36  ;;  %v12560_v36 = vld [vmem:[%s19291_s15 + $0xc24] ss:$16 sps:$4 sm:$0xff]  }
 0x14d   : > { %9981 = vmatpush2.bf16.msra.mxu1 %v12498_v37  ;;  %9800 = vmatprep.subr.bf16.mxu0 %v12503_v38  ;;  %v12555_v38 = vld [vmem:[%s19291_s15 + $0x140] ss:$16 sps:$4 sm:$0xff]  }
 0x14e   : > { %9982 = vmatprep.subr.bf16.mxu1 %v12506_v39 }
 0x150   : > { %9801 = vmatpush1.bf16.msra.mxu0 %v12501_v40  ;;  %v12558_v40 = vld [vmem:[%s19291_s15 + $0xc20] ss:$16 sps:$4 sm:$0xff]  }
 0x151   : > { %9983 = vmatpush2.bf16.msra.mxu1 %v12504_v41  ;;  %9802 = vmatprep.subr.bf16.mxu0 %v12509_v43  ;;  %v12563_v41 = vld [vmem:[%s19291_s15 + $0x124] ss:$16 sps:$4 sm:$0xff]  }
 0x152   : > { %9984 = vmatprep.subr.bf16.mxu1 %v12512_v44  ;;  %v12566_v43 = vld [vmem:[%s19291_s15 + $0xc04] ss:$16 sps:$4 sm:$0xff]  }
 0x154   : > { %9803 = vmatpush1.bf16.msra.mxu0 %v12507_v46 }
 0x155   : > { %9985 = vmatpush2.bf16.msra.mxu1 %v12510_v48  ;;  %9804 = vmatprep.subr.bf16.mxu0 %v12515_v51  ;;  %v12564_v48 = vld [vmem:[%s19291_s15 + $0xc00] ss:$16 sps:$4 sm:$0xff]   ;;  %v12569_v51 = vld [vmem:[%s19291_s15 + $0x104] ss:$16 sps:$4 sm:$0xff]  }
 0x156   : > { %9986 = vmatprep.subr.bf16.mxu1 %v12518_v47  ;;  %v12572_v47 = vld [vmem:[%s19291_s15 + $0xde4] ss:$16 sps:$4 sm:$0xff]  }
 0x158   : > { %9805 = vmatpush1.bf16.msra.mxu0 %v12513_v55 }
 0x159   : > { %9987 = vmatpush2.bf16.msra.mxu1 %v12516_v56  ;;  %9806 = vmatprep.subr.bf16.mxu0 %v12521_v57  ;;  %v12567_v56 = vld [vmem:[%s19291_s15 + $0x100] ss:$16 sps:$4 sm:$0xff]  }
 0x15a   : > { %10038 = vmatprep.subr.bf16.mxu1 %v12524_v58  ;;  %v12570_v58 = vld [vmem:[%s19291_s15 + $0xde0] ss:$16 sps:$4 sm:$0xff]  }
 0x15c   : > { %9807 = vmatpush1.bf16.msra.mxu0 %v12519_v60  ;;  %9989 = vmatmul.mubr.bf16.vlgmr.msra.gmra.mxu1 %v14526_v61  ;;  %v14544_v2 = vpop.f32.mrf.mxu1  ;;  %v12573_v60 = vld [vmem:[%s19291_s15 + $0x2e0] ss:$16 sps:$4 sm:$0xff]  }
 0x15d   : > { %10039 = vmatpush1.bf16.msra.mxu1 %v12522_v62  ;;  %9808 = vmatprep.subr.bf16.mxu0 %v12527_v63  ;;  %v12578_v62 = vld [vmem:[%s19291_s15 + $0xdc4] ss:$16 sps:$4 sm:$0xff]  }
 0x15e   : > { %10040 = vmatprep.subr.bf16.mxu1 %v12530_v0  ;;  %10070 = vmatprep.mubr.bf16.mxu1 %v14538_v1  ;;  %v14556_v10 = vpop.f32.mrf.mxu1  ;;  %v14675_v0 = vrot.slane %v14407_v8, %v14337_v42  ;;  %v12579_v8 = vld [vmem:[%s19291_s15 + $0x2c0] ss:$16 sps:$4 sm:$0xff]   ;;  %v12669_v1 = vld [vmem:[%s19291_s15 + $0x11e4] ss:$16 sps:$4 sm:$0xff]  }
 0x160   : > { %9809 = vmatpush2.bf16.msra.mxu0 %v12525_v50  ;;  %v14561_v12 = vpop.f32.mrf.mxu1  ;;  %19378 = vst [vmem:[#allocation27_spill] sm:$0xff] %v14675_v0  ;;  %v12576_v50 = vld [vmem:[%s19291_s15 + $0xdc0] ss:$16 sps:$4 sm:$0xff]   ;;  %v14952_v61 = vcombine.high %v14675_v0, %v14675_v0 }
 0x161   : > { %10041 = vmatpush1.bf16.msra.mxu1 %v12528_v4  ;;  %9810 = vmatprep.subr.bf16.mxu0 %v12533_v5  ;;  %v14682_v4 = vcombine.high %v14433_v22, %v14433_v22 }
 0x162   : > { %10042 = vmatprep.subr.bf16.mxu1 %v12536_v6  ;;  %v14572_v17 = vpop.f32.mrf.mxu1  ;;  %v12581_v6 = vld [vmem:[%s19291_s15 + $0x2c4] ss:$16 sps:$4 sm:$0xff]   ;;  %19386 = vst [vmem:[#allocation35_spill] sm:$0xff] %v14952_v61 }
 0x163   : > { %19379 = vst [vmem:[#allocation28_spill] sm:$0xff] %v14682_v4 }
 0x164   : > { %9811 = vmatpush2.bf16.msra.mxu0 %v12531_v11  ;;  %v14577_v19 = vpop.f32.mrf.mxu1  ;;  %v12584_v11 = vld [vmem:[%s19291_s15 + $0xda4] ss:$16 sps:$4 sm:$0xff]  }
 0x165   : > { %10043 = vmatpush1.bf16.msra.mxu1 %v12534_v13  ;;  %9812 = vmatprep.subr.bf16.mxu0 %v12539_v15  ;;  %v12582_v15 = vld [vmem:[%s19291_s15 + $0xda0] ss:$16 sps:$4 sm:$0xff]  }
 0x166   : > { %10044 = vmatprep.subr.bf16.mxu1 %v12542_v16  ;;  %v14588_v24 = vpop.f32.mrf.mxu1 }
 0x168   : > { %9813 = vmatpush2.bf16.msra.mxu0 %v12537_v18  ;;  %v14593_v26 = vpop.f32.mrf.mxu1  ;;  %v12587_v18 = vld [vmem:[%s19291_s15 + $0x2a4] ss:$16 sps:$4 sm:$0xff]  }
 0x169   : > { %10045 = vmatpush1.bf16.msra.mxu1 %v12540_v20  ;;  %9814 = vmatprep.subr.bf16.mxu0 %v12545_v21  ;;  %v12585_v20 = vld [vmem:[%s19291_s15 + $0x2a0] ss:$16 sps:$4 sm:$0xff]   ;;  %v12590_v21 = vld [vmem:[%s19291_s15 + $0xd84] ss:$16 sps:$4 sm:$0xff]  }
 0x16a   : > { %10046 = vmatprep.subr.bf16.mxu1 %v12548_v23  ;;  %v14604_v30 = vpop.f32.mrf.mxu1 }
 0x16c   : > { %9815 = vmatpush2.bf16.msra.mxu0 %v12543_v25  ;;  %v14609_v32 = vpop.f32.mrf.mxu1  ;;  %v12588_v25 = vld [vmem:[%s19291_s15 + $0xd80] ss:$16 sps:$4 sm:$0xff]  }
 0x16d   : > { %10047 = vmatpush1.bf16.msra.mxu1 %v12546_v27  ;;  %9816 = vmatprep.subr.bf16.mxu0 %v12551_v28  ;;  %v12593_v28 = vld [vmem:[%s19291_s15 + $0x284] ss:$16 sps:$4 sm:$0xff]  }
 0x16e   : > { %10048 = vmatprep.subr.bf16.mxu1 %v12554_v29  ;;  %v14620_v37 = vpop.f32.mrf.mxu1  ;;  %v12591_v29 = vld [vmem:[%s19291_s15 + $0x280] ss:$16 sps:$4 sm:$0xff]  }
 0x170   : > { %9817 = vmatpush2.bf16.msra.mxu0 %v12549_v31  ;;  %v14625_v39 = vpop.f32.mrf.mxu1  ;;  %v12596_v31 = vld [vmem:[%s19291_s15 + $0xd64] ss:$16 sps:$4 sm:$0xff]  }
 0x171   : > { %10049 = vmatpush1.bf16.msra.mxu1 %v12552_v33  ;;  %9818 = vmatprep.subr.bf16.mxu0 %v12557_v34  ;;  %v12594_v34 = vld [vmem:[%s19291_s15 + $0xd60] ss:$16 sps:$4 sm:$0xff]  }
 0x172   : > { %10050 = vmatprep.subr.bf16.mxu1 %v12560_v36  ;;  %v14636_v44 = vpop.f32.mrf.mxu1 }
 0x174   : > { %9819 = vmatpush2.bf16.msra.mxu0 %v12555_v38  ;;  %v14641_v46 = vpop.f32.mrf.mxu1  ;;  %v12599_v38 = vld [vmem:[%s19291_s15 + $0x264] ss:$16 sps:$4 sm:$0xff]  }
 0x175   : > { %10051 = vmatpush1.bf16.msra.mxu1 %v12558_v40  ;;  %9820 = vmatprep.subr.bf16.mxu0 %v12563_v41  ;;  %v12597_v40 = vld [vmem:[%s19291_s15 + $0x260] ss:$16 sps:$4 sm:$0xff]   ;;  %v12602_v41 = vld [vmem:[%s19291_s15 + $0xd44] ss:$16 sps:$4 sm:$0xff]  }
 0x176   : > { %10052 = vmatprep.subr.bf16.mxu1 %v12566_v43  ;;  %v14652_v55 = vpop.f32.mrf.mxu1 }
 0x178   : > { %9821 = vmatpush2.bf16.msra.mxu0 %v12561_v45  ;;  %v14657_v57 = vpop.f32.mrf.mxu1  ;;  %v12600_v45 = vld [vmem:[%s19291_s15 + $0xd40] ss:$16 sps:$4 sm:$0xff]  }
 0x179   : > { %10053 = vmatpush1.bf16.msra.mxu1 %v12564_v48  ;;  %9822 = vmatprep.subr.bf16.mxu0 %v12569_v51  ;;  %v12605_v51 = vld [vmem:[%s19291_s15 + $0x244] ss:$16 sps:$4 sm:$0xff]  }
 0x17a   : > { %10054 = vmatprep.subr.bf16.mxu1 %v12572_v47  ;;  %v14671_v63 = vpop.f32.mrf.mxu1  ;;  %v12603_v47 = vld [vmem:[%s19291_s15 + $0x240] ss:$16 sps:$4 sm:$0xff]  }
 0x17c   : > { %9823 = vmatpush2.bf16.msra.mxu0 %v12567_v56  ;;  %v14684_v5 = vpop.f32.mrf.mxu1  ;;  %v12608_v56 = vld [vmem:[%s19291_s15 + $0xd24] ss:$16 sps:$4 sm:$0xff]  }
 0x17d   : > { %10055 = vmatpush2.bf16.msra.mxu1 %v12570_v58  ;;  %9833 = vmatprep.subr.bf16.mxu0 %v12575_v59  ;;  %v12606_v59 = vld [vmem:[%s19291_s15 + $0xd20] ss:$16 sps:$4 sm:$0xff]  }
 0x17e   : > { %10056 = vmatprep.subr.bf16.mxu1 %v12578_v62  ;;  %v14695_v13 = vpop.f32.mrf.mxu1 }
 0x17f   : > { %9825 = vmatmul.mubr.bf16.vlgmr.msra.gmra.mxu0 %v14675_v0  ;;  %v12678_v0 = vld [vmem:[%s19291_s15 + $0x6c4] ss:$16 sps:$4 sm:$0xff]  }
 0x180   : > { %9834 = vmatpush1.bf16.msra.mxu0 %v12573_v60  ;;  %9865 = vmatprep.mubr.bf16.mxu0 %v14682_v4  ;;  %v14702_v16 = vpop.f32.mrf.mxu1  ;;  %v14767_v60 = vld [vmem:[%s14332_s23 + $0x10] sm:$0xff] }
 0x181   : > { %10057 = vmatpush2.bf16.msra.mxu1 %v12576_v50  ;;  %9835 = vmatprep.subr.bf16.mxu0 %v12581_v6  ;;  %v12611_v50 = vld [vmem:[%s19291_s15 + $0x224] ss:$16 sps:$4 sm:$0xff]   ;;  %v12609_v6 = vld [vmem:[%s19291_s15 + $0x220] ss:$16 sps:$4 sm:$0xff]  }
 0x182   : > { %10058 = vmatprep.subr.bf16.mxu1 %v12584_v11  ;;  %v14713_v23 = vpop.f32.mrf.mxu1 }
 0x184   : > { %9836 = vmatpush1.bf16.msra.mxu0 %v12579_v8  ;;  %v14718_v27 = vpop.f32.mrf.mxu1  ;;  %v12614_v8 = vld [vmem:[%s19291_s15 + $0xd04] ss:$16 sps:$4 sm:$0xff]  }
 0x185   : > { %10059 = vmatpush2.bf16.msra.mxu1 %v12582_v15  ;;  %9837 = vmatprep.subr.bf16.mxu0 %v12587_v18  ;;  %v14784_v15 = vrot.slane %v14767_v60, %v14337_v42  ;;  %v12612_v18 = vld [vmem:[%s19291_s15 + $0xd00] ss:$16 sps:$4 sm:$0xff]  }
 0x186   : > { %10060 = vmatprep.subr.bf16.mxu1 %v12590_v21  ;;  %v14729_v33 = vpop.f32.mrf.mxu1  ;;  %v12617_v21 = vld [vmem:[%s19291_s15 + $0x204] ss:$16 sps:$4 sm:$0xff]  }
 0x188   : > { %9838 = vmatpush1.bf16.msra.mxu0 %v12585_v20  ;;  %v14734_v36 = vpop.f32.mrf.mxu1 }
 0x189   : > { %10061 = vmatpush2.bf16.msra.mxu1 %v12588_v25  ;;  %9839 = vmatprep.subr.bf16.mxu0 %v12593_v28  ;;  %v12615_v25 = vld [vmem:[%s19291_s15 + $0x200] ss:$16 sps:$4 sm:$0xff]   ;;  %v12621_v28 = vld [vmem:[%s19291_s15 + $0x10e4] ss:$16 sps:$4 sm:$0xff]  }
 0x18a   : > { %10062 = vmatprep.subr.bf16.mxu1 %v12596_v31  ;;  %v14745_v43 = vpop.f32.mrf.mxu1  ;;  %v5873_v31 = vcombine.high %v14784_v15, %v14784_v15 }
 0x18c   : > { %9840 = vmatpush1.bf16.msra.mxu0 %v12591_v29  ;;  %v14750_v48 = vpop.f32.mrf.mxu1 }
 0x18d   : > { %10063 = vmatpush2.bf16.msra.mxu1 %v12594_v34  ;;  %9841 = vmatprep.subr.bf16.mxu0 %v12599_v38  ;;  %v12619_v34 = vld [vmem:[%s19291_s15 + $0x10e0] ss:$16 sps:$4 sm:$0xff]   ;;  %v14809_v38 = vrot.slane %v14505_v7, %v14337_v42  ;;  %v14823_v7 = vrot.slane %v5873_v31, %v14337_v42  ;;  %v12639_v31 = vld [vmem:[%s19291_s15 + $0x1084] ss:$16 sps:$4 sm:$0xff]  }
 0x18e   : > { %10064 = vmatprep.subr.bf16.mxu1 %v12602_v41  ;;  %v14761_v58 = vpop.f32.mrf.mxu1  ;;  %v12624_v41 = vld [vmem:[%s19291_s15 + $0x3e4] ss:$16 sps:$4 sm:$0xff]  }
 0x18f   : > { %19380 = vst [vmem:[#allocation29_spill] sm:$0xff] %v14809_v38  ;;  %19381 = vst [vmem:[#allocation30_spill] sm:$0xff] %v14823_v7 }
 0x190   : > { %9842 = vmatpush1.bf16.msra.mxu0 %v12597_v40  ;;  %v14769_v62 = vpop.f32.mrf.mxu1 }
 0x191   : > { %10065 = vmatpush2.bf16.msra.mxu1 %v12600_v45  ;;  %9843 = vmatprep.subr.bf16.mxu0 %v12605_v51  ;;  %v12622_v45 = vld [vmem:[%s19291_s15 + $0x3e0] ss:$16 sps:$4 sm:$0xff]   ;;  %v12627_v51 = vld [vmem:[%s19291_s15 + $0x10c4] ss:$16 sps:$4 sm:$0xff]  }
 0x192   : > { %10066 = vmatprep.subr.bf16.mxu1 %v12608_v56  ;;  %v14780_v11 = vpop.f32.mrf.mxu1  ;;  %v12625_v56 = vld [vmem:[%s19291_s15 + $0x10c0] ss:$16 sps:$4 sm:$0xff]  }
 0x194   : > { %9844 = vmatpush1.bf16.msra.mxu0 %v12603_v47  ;;  %v14789_v20 = vpop.f32.mrf.mxu1 }
 0x195   : > { %10067 = vmatpush2.bf16.msra.mxu1 %v12606_v59  ;;  %9845 = vmatprep.subr.bf16.mxu0 %v12611_v50  ;;  %v12630_v50 = vld [vmem:[%s19291_s15 + $0x3c4] ss:$16 sps:$4 sm:$0xff]  }
 0x196   : > { %10068 = vmatprep.subr.bf16.mxu1 %v12614_v8  ;;  %v14800_v29 = vpop.f32.mrf.mxu1  ;;  %v12633_v8 = vld [vmem:[%s19291_s15 + $0x10a4] ss:$16 sps:$4 sm:$0xff]  }
 0x198   : > { %9846 = vmatpush1.bf16.msra.mxu0 %v12609_v6  ;;  %v14811_v40 = vpop.f32.mrf.mxu1  ;;  %v12628_v6 = vld [vmem:[%s19291_s15 + $0x3c0] ss:$16 sps:$4 sm:$0xff]  }
 0x199   : > { %10069 = vmatpush2.bf16.msra.mxu1 %v12612_v18  ;;  %9847 = vmatprep.subr.bf16.mxu0 %v12617_v21  ;;  %v12631_v21 = vld [vmem:[%s19291_s15 + $0x10a0] ss:$16 sps:$4 sm:$0xff]  }
 0x19a   : > { %10120 = vmatprep.subr.bf16.mxu1 %v12621_v28  ;;  %v14825_v47 = vpop.f32.mrf.mxu1  ;;  %v12636_v28 = vld [vmem:[%s19291_s15 + $0x3a4] ss:$16 sps:$4 sm:$0xff]  }
 0x19c   : > { %9848 = vmatpush1.bf16.msra.mxu0 %v12615_v25  ;;  %10071 = vmatmul.mubr.bf16.vlgmr.msra.gmra.mxu1 %v14809_v38  ;;  %v14831_v59 = vpop.f32.mrf.mxu1 }
 0x19d   : > { %10121 = vmatpush1.bf16.msra.mxu1 %v12619_v34  ;;  %9849 = vmatprep.subr.bf16.mxu0 %v12624_v41  ;;  %v12634_v41 = vld [vmem:[%s19291_s15 + $0x3a0] ss:$16 sps:$4 sm:$0xff]  }
 0x19e   : > { %10122 = vmatprep.subr.bf16.mxu1 %v12627_v51  ;;  %10152 = vmatprep.mubr.bf16.mxu1 %v14823_v7  ;;  %v14843_v18 = vpop.f32.mrf.mxu1  ;;  %v12637_v51 = vld [vmem:[%s19291_s15 + $0x1080] ss:$16 sps:$4 sm:$0xff]   ;;  %v12663_v7 = vld [vmem:[%s19291_s15 + $0x1004] ss:$16 sps:$4 sm:$0xff]  }
 0x1a0   : > { %9850 = vmatpush2.bf16.msra.mxu0 %v12622_v45  ;;  %v14848_v25 = vpop.f32.mrf.mxu1 }
 0x1a1   : > { %10123 = vmatpush1.bf16.msra.mxu1 %v12625_v56  ;;  %9851 = vmatprep.subr.bf16.mxu0 %v12630_v50  ;;  %v12642_v56 = vld [vmem:[%s19291_s15 + $0x384] ss:$16 sps:$4 sm:$0xff]  }
 0x1a2   : > { %10124 = vmatprep.subr.bf16.mxu1 %v12633_v8  ;;  %v14856_v34 = vpop.f32.mrf.mxu1  ;;  %v12645_v50 = vld [vmem:[%s19291_s15 + $0x1064] ss:$16 sps:$4 sm:$0xff]  }
 0x1a4   : > { %9852 = vmatpush2.bf16.msra.mxu0 %v12628_v6  ;;  %v14861_v45 = vpop.f32.mrf.mxu1  ;;  %v12640_v6 = vld [vmem:[%s19291_s15 + $0x380] ss:$16 sps:$4 sm:$0xff]  }
 0x1a5   : > { %10125 = vmatpush1.bf16.msra.mxu1 %v12631_v21  ;;  %9853 = vmatprep.subr.bf16.mxu0 %v12636_v28  ;;  %v12643_v28 = vld [vmem:[%s19291_s15 + $0x1060] ss:$16 sps:$4 sm:$0xff]  }
 0x1a6   : > { %10126 = vmatprep.subr.bf16.mxu1 %v12639_v31  ;;  %v14872_v8 = vpop.f32.mrf.mxu1  ;;  %v12648_v31 = vld [vmem:[%s19291_s15 + $0x364] ss:$16 sps:$4 sm:$0xff]  }
 0x1a8   : > { %9854 = vmatpush2.bf16.msra.mxu0 %v12634_v41  ;;  %v14877_v21 = vpop.f32.mrf.mxu1  ;;  %v12646_v41 = vld [vmem:[%s19291_s15 + $0x360] ss:$16 sps:$4 sm:$0xff]  }
 0x1a9   : > { %10127 = vmatpush1.bf16.msra.mxu1 %v12637_v51  ;;  %9855 = vmatprep.subr.bf16.mxu0 %v12642_v56  ;;  %v12649_v56 = vld [vmem:[%s19291_s15 + $0x1040] ss:$16 sps:$4 sm:$0xff]  }
 0x1aa   : > { %10128 = vmatprep.subr.bf16.mxu1 %v12645_v50  ;;  %v14888_v9 = vpop.f32.mrf.mxu1  ;;  %v12654_v50 = vld [vmem:[%s19291_s15 + $0x344] ss:$16 sps:$4 sm:$0xff]  }
 0x1ac   : > { %9856 = vmatpush2.bf16.msra.mxu0 %v12640_v6  ;;  %v14893_v51 = vpop.f32.mrf.mxu1  ;;  %v12652_v6 = vld [vmem:[%s19291_s15 + $0x340] ss:$16 sps:$4 sm:$0xff]  }
 0x1ad   : > { %10129 = vmatpush1.bf16.msra.mxu1 %v12643_v28  ;;  %9857 = vmatprep.subr.bf16.mxu0 %v12648_v31  ;;  %v12655_v31 = vld [vmem:[%s19291_s15 + $0x1020] ss:$16 sps:$4 sm:$0xff]  }
 0x1ae   : > { %10130 = vmatprep.subr.bf16.mxu1 %v12651_v3  ;;  %v14904_v4 = vpop.f32.mrf.mxu1  ;;  %v12660_v3 = vld [vmem:[%s19291_s15 + $0x324] ss:$16 sps:$4 sm:$0xff]  }
 0x1b0   : > { %9858 = vmatpush2.bf16.msra.mxu0 %v12646_v41  ;;  %v14909_v28 = vpop.f32.mrf.mxu1  ;;  %v12658_v41 = vld [vmem:[%s19291_s15 + $0x320] ss:$16 sps:$4 sm:$0xff]  }
 0x1b1   : > { %19382 = vst [vmem:[#allocation31_spill] sm:$0xff] %v14909_v28  ;;  %10131 = vmatpush1.bf16.msra.mxu1 %v12649_v56  ;;  %9859 = vmatprep.subr.bf16.mxu0 %v12654_v50  ;;  %v12661_v50 = vld [vmem:[%s19291_s15 + $0x1000] ss:$16 sps:$4 sm:$0xff]  }
 0x1b2   : > { %10132 = vmatprep.subr.bf16.mxu1 %v12657_v54  ;;  %v14920_v38 = vpop.f32.mrf.mxu1  ;;  %v12666_v54 = vld [vmem:[%s19291_s15 + $0x304] ss:$16 sps:$4 sm:$0xff]  }
 0x1b3   : > { %19383 = vst [vmem:[#allocation32_spill] sm:$0xff] %v14920_v38 }
 0x1b4   : > { %9860 = vmatpush2.bf16.msra.mxu0 %v12652_v6  ;;  %v14925_v56 = vpop.f32.mrf.mxu1  ;;  %v12664_v6 = vld [vmem:[%s19291_s15 + $0x300] ss:$16 sps:$4 sm:$0xff]  }
 0x1b5   : > { %19384 = vst [vmem:[#allocation33_spill] sm:$0xff] %v14925_v56  ;;  %10133 = vmatpush1.bf16.msra.mxu1 %v12655_v31  ;;  %9861 = vmatprep.subr.bf16.mxu0 %v12660_v3  ;;  %v12667_v31 = vld [vmem:[%s19291_s15 + $0x11e0] ss:$16 sps:$4 sm:$0xff]   ;;  %v12675_v3 = vld [vmem:[%s19291_s15 + $0x11c4] ss:$16 sps:$4 sm:$0xff]  }
 0x1b6   : > { %10134 = vmatprep.subr.bf16.mxu1 %v12663_v7  ;;  %v14939_v22 = vpop.f32.mrf.mxu1  ;;  %v12672_v7 = vld [vmem:[%s19291_s15 + $0x6e4] ss:$16 sps:$4 sm:$0xff]  }
 0x1b7   : > { %19385 = vst [vmem:[#allocation34_spill] sm:$0xff] %v14939_v22 }
 0x1b8   : > { %9862 = vmatpush2.bf16.msra.mxu0 %v12658_v41  ;;  %v12670_v41 = vld [vmem:[%s19291_s15 + $0x6e0] ss:$16 sps:$4 sm:$0xff]  }
 0x1b9   : > { %10135 = vmatpush1.bf16.msra.mxu1 %v12661_v50  ;;  %9863 = vmatprep.subr.bf16.mxu0 %v12666_v54  ;;  %v14957_v50 = vpop.f32.mrf.mxu1  ;;  %v14961_v54 = vcombine.high %v14347_v49, %v14347_v49  ;;  %v12682_v49 = vld [vmem:[%s19291_s15 + $0x6a0] ss:$16 sps:$4 sm:$0xff]  }
 0x1ba   : > { %10136 = vmatprep.subr.bf16.mxu1 %v12669_v1  ;;  %19387 = vst [vmem:[#allocation36_spill] sm:$0xff] %v14957_v50  ;;  %v12673_v1 = vld [vmem:[%s19291_s15 + $0x11c0] ss:$16 sps:$4 sm:$0xff]  }
 0x1bb   : > { %19388 = vst [vmem:[#allocation37_spill] sm:$0xff] %v14961_v54  ;;  %v12676_v50 = vld [vmem:[%s19291_s15 + $0x6c0] ss:$16 sps:$4 sm:$0xff]  }
 0x1bc   : > { %9864 = vmatpush2.bf16.msra.mxu0 %v12664_v6  ;;  %v12681_v6 = vld [vmem:[%s19291_s15 + $0x11a4] ss:$16 sps:$4 sm:$0xff]  }
 0x1bd   : > { %10137 = vmatpush2.bf16.msra.mxu1 %v12667_v31  ;;  %9915 = vmatprep.subr.bf16.mxu0 %v12672_v7  ;;  %v12679_v31 = vld [vmem:[%s19291_s15 + $0x11a0] ss:$16 sps:$4 sm:$0xff]   ;;  %v14979_v7 = vpop.f32.mrf.mxu1 }
 0x1be   : > { %10138 = vmatprep.subr.bf16.mxu1 %v12675_v3  ;;  %19389 = vst [vmem:[#allocation38_spill] sm:$0xff] %v14979_v7  ;;  %v12684_v3 = vld [vmem:[%s19291_s15 + $0x6a4] ss:$16 sps:$4 sm:$0xff]  }
 0x1bf   : > { %9866 = vmatmul.mubr.bf16.vlgmr.msra.gmra.mxu0 %v14952_v61  ;;  %v12687_v61 = vld [vmem:[%s19291_s15 + $0x1184] ss:$16 sps:$4 sm:$0xff]   ;;  %v14991_v22 = vpop.f32.mrf.mxu1 }
 0x1c0   : > { %9916 = vmatpush1.bf16.msra.mxu0 %v12670_v41  ;;  %9947 = vmatprep.mubr.bf16.mxu0 %v14961_v54  ;;  %19390 = vst [vmem:[#allocation39_spill] sm:$0xff] %v14991_v22  ;;  %v12690_v41 = vld [vmem:[%s19291_s15 + $0x684] ss:$16 sps:$4 sm:$0xff]   ;;  %v12694_v54 = vld [vmem:[%s19291_s15 + $0x660] ss:$16 sps:$4 sm:$0xff]  }
 0x1c1   : > { %10139 = vmatpush2.bf16.msra.mxu1 %v12673_v1  ;;  %9917 = vmatprep.subr.bf16.mxu0 %v12678_v0  ;;  %v12685_v0 = vld [vmem:[%s19291_s15 + $0x1180] ss:$16 sps:$4 sm:$0xff]   ;;  %v12693_v1 = vld [vmem:[%s19291_s15 + $0x1164] ss:$16 sps:$4 sm:$0xff]  }
 0x1c2   : > { %10140 = vmatprep.subr.bf16.mxu1 %v12681_v6  ;;  %v12688_v6 = vld [vmem:[%s19291_s15 + $0x680] ss:$16 sps:$4 sm:$0xff]  }
 0x1c4   : > { %9918 = vmatpush1.bf16.msra.mxu0 %v12676_v50  ;;  %v15005_v50 = vpop.f32.mrf.mxu1 }
 0x1c5   : > { %10141 = vmatpush2.bf16.msra.mxu1 %v12679_v31  ;;  %9919 = vmatprep.subr.bf16.mxu0 %v12684_v3  ;;  %19391 = vst [vmem:[#allocation40_spill] sm:$0xff] %v15005_v50  ;;  %v12691_v31 = vld [vmem:[%s19291_s15 + $0x1160] ss:$16 sps:$4 sm:$0xff]   ;;  %v12699_v3 = vld [vmem:[%s19291_s15 + $0x1144] ss:$16 sps:$4 sm:$0xff]   ;;  %v5858_v50 = vcombine.high %v14767_v60, %v14767_v60 }
 0x1c6   : > { %10142 = vmatprep.subr.bf16.mxu1 %v12687_v61  ;;  %v12696_v61 = vld [vmem:[%s19291_s15 + $0x664] ss:$16 sps:$4 sm:$0xff]  }
 0x1c7   : > { %v12711_v60 = vld [vmem:[%s19291_s15 + $0x1104] ss:$16 sps:$4 sm:$0xff]  }
 0x1c8   : > { %9920 = vmatpush1.bf16.msra.mxu0 %v12682_v49  ;;  %v15019_v49 = vpop.f32.mrf.mxu1 }
 0x1c9   : > { %10143 = vmatpush2.bf16.msra.mxu1 %v12685_v0  ;;  %9921 = vmatprep.subr.bf16.mxu0 %v12690_v41  ;;  %19392 = vst [vmem:[#allocation41_spill] sm:$0xff] %v15019_v49  ;;  %v12697_v0 = vld [vmem:[%s19291_s15 + $0x1140] ss:$16 sps:$4 sm:$0xff]   ;;  %v12702_v41 = vld [vmem:[%s19291_s15 + $0x644] ss:$16 sps:$4 sm:$0xff]   ;;  %v15047_v49 = vrot.slane %v5858_v50, %v14337_v42 }
 0x1ca   : > { %10144 = vmatprep.subr.bf16.mxu1 %v12693_v1  ;;  %v12705_v1 = vld [vmem:[%s19291_s15 + $0x1124] ss:$16 sps:$4 sm:$0xff]  }
 0x1cb   : > { %v12717_v50 = vld [vmem:[%s19291_s15 + $0x14e4] ss:$16 sps:$4 sm:$0xff]  }
 0x1cc   : > { %9922 = vmatpush1.bf16.msra.mxu0 %v12688_v6  ;;  %v12700_v6 = vld [vmem:[%s19291_s15 + $0x640] ss:$16 sps:$4 sm:$0xff]  }
 0x1cd   : > { %10145 = vmatpush2.bf16.msra.mxu1 %v12691_v31  ;;  %9923 = vmatprep.subr.bf16.mxu0 %v12696_v61  ;;  %v15035_v31 = vpop.f32.mrf.mxu1  ;;  %v12703_v61 = vld [vmem:[%s19291_s15 + $0x1120] ss:$16 sps:$4 sm:$0xff]  }
 0x1ce   : > { %10146 = vmatprep.subr.bf16.mxu1 %v12699_v3  ;;  %19393 = vst [vmem:[#allocation42_spill] sm:$0xff] %v15035_v31  ;;  %v12708_v3 = vld [vmem:[%s19291_s15 + $0x624] ss:$16 sps:$4 sm:$0xff]   ;;  %v5874_v31 = vcombine.high %v15047_v49, %v15047_v49 }
 0x1d0   : > { %9924 = vmatpush1.bf16.msra.mxu0 %v12694_v54  ;;  %v12706_v54 = vld [vmem:[%s19291_s15 + $0x620] ss:$16 sps:$4 sm:$0xff]  }
 0x1d1   : > { %10147 = vmatpush2.bf16.msra.mxu1 %v12697_v0  ;;  %9925 = vmatprep.subr.bf16.mxu0 %v12702_v41  ;;  %v15052_v0 = vpop.f32.mrf.mxu1  ;;  %v12709_v41 = vld [vmem:[%s19291_s15 + $0x1100] ss:$16 sps:$4 sm:$0xff]  }
 0x1d2   : > { %10148 = vmatprep.subr.bf16.mxu1 %v12705_v1  ;;  %19394 = vst [vmem:[#allocation43_spill] sm:$0xff] %v15052_v0  ;;  %v12714_v1 = vld [vmem:[%s19291_s15 + $0x604] ss:$16 sps:$4 sm:$0xff]  }
 0x1d3   : > { %v12720_v0 = vld [vmem:[%s19291_s15 + $0x7e4] ss:$16 sps:$4 sm:$0xff]  }
 0x1d4   : > { %9926 = vmatpush1.bf16.msra.mxu0 %v12700_v6  ;;  %v12712_v6 = vld [vmem:[%s19291_s15 + $0x600] ss:$16 sps:$4 sm:$0xff]  }
 0x1d5   : > { %10149 = vmatpush2.bf16.msra.mxu1 %v12703_v61  ;;  %9927 = vmatprep.subr.bf16.mxu0 %v12708_v3  ;;  %v15068_v61 = vpop.f32.mrf.mxu1  ;;  %v15072_v3 = vrot.slane %v14784_v15, %v14337_v42  ;;  %v12718_v15 = vld [vmem:[%s19291_s15 + $0x7e0] ss:$16 sps:$4 sm:$0xff]  }
 0x1d6   : > { %10150 = vmatprep.subr.bf16.mxu1 %v12711_v60  ;;  %19395 = vst [vmem:[#allocation44_spill] sm:$0xff] %v15068_v61  ;;  %v12715_v60 = vld [vmem:[%s19291_s15 + $0x14e0] ss:$16 sps:$4 sm:$0xff]   ;;  %v12723_v61 = vld [vmem:[%s19291_s15 + $0x14c4] ss:$16 sps:$4 sm:$0xff]  }
 0x1d7   : > { %19396 = vst [vmem:[#allocation45_spill] sm:$0xff] %v15072_v3 }
 0x1d8   : > { %9928 = vmatpush1.bf16.msra.mxu0 %v12706_v54  ;;  %v15084_v54 = vrot.slane %v5874_v31, %v14337_v42  ;;  %v12726_v31 = vld [vmem:[%s19291_s15 + $0x7c4] ss:$16 sps:$4 sm:$0xff]  }
 0x1d9   : > { %10151 = vmatpush2.bf16.msra.mxu1 %v12709_v41  ;;  %9929 = vmatprep.subr.bf16.mxu0 %v12714_v1  ;;  %v15089_v41 = vpop.f32.mrf.mxu1  ;;  %v12721_v1 = vld [vmem:[%s19291_s15 + $0x14c0] ss:$16 sps:$4 sm:$0xff]  }
 0x1da   : > { %10202 = vmatprep.subr.bf16.mxu1 %v12717_v50  ;;  %19397 = vst [vmem:[#allocation46_spill] sm:$0xff] %v15084_v54  ;;  %19398 = vst [vmem:[#allocation47_spill] sm:$0xff] %v15089_v41  ;;  %v12729_v50 = vld [vmem:[%s19291_s15 + $0x14a4] ss:$16 sps:$4 sm:$0xff]  }
 0x1db   : > { %v12738_v41 = vld [vmem:[%s19291_s15 + $0x784] ss:$16 sps:$4 sm:$0xff]  }
 0x1dc   : > { %9930 = vmatpush1.bf16.msra.mxu0 %v12712_v6  ;;  %10153 = vmatmul.mubr.bf16.vlgmr.msra.gmra.mxu1 %v15072_v3  ;;  %v1094_v6 = vld [vmem:[%s19282_s6] sm:$0x3]  ;;  %v12735_v3 = vld [vmem:[%s19291_s15 + $0x1484] ss:$16 sps:$4 sm:$0xff]  }
 0x1dd   : > { %10203 = vmatpush1.bf16.msra.mxu1 %v12715_v60  ;;  %9931 = vmatprep.subr.bf16.mxu0 %v12720_v0  ;;  %v12724_v0 = vld [vmem:[%s19291_s15 + $0x7c0] ss:$16 sps:$4 sm:$0xff]   ;;  %v15108_v60 = vpop.f32.mrf.mxu1 }
 0x1de   : > { %10204 = vmatprep.subr.bf16.mxu1 %v12723_v61  ;;  %10234 = vmatprep.mubr.bf16.mxu1 %v15084_v54  ;;  %19399 = vst [vmem:[#allocation48_spill] sm:$0xff] %v15108_v60  ;;  %v12727_v61 = vld [vmem:[%s19291_s15 + $0x14a0] ss:$16 sps:$4 sm:$0xff]   ;;  %v12732_v54 = vld [vmem:[%s19291_s15 + $0x7a4] ss:$16 sps:$4 sm:$0xff]  }
 0x1df   : > { %v15123_v60 = vpop.f32.mrf.mxu1 }
 0x1e0   : > { %9932 = vmatpush2.bf16.msra.mxu0 %v12718_v15  ;;  %v12730_v15 = vld [vmem:[%s19291_s15 + $0x7a0] ss:$16 sps:$4 sm:$0xff]   ;;  %19400 = vst [vmem:[#allocation49_spill] sm:$0xff] %v15123_v60  ;;  %v12741_v60 = vld [vmem:[%s19291_s15 + $0x1464] ss:$16 sps:$4 sm:$0xff]  }
 0x1e1   : > { %10205 = vmatpush1.bf16.msra.mxu1 %v12721_v1  ;;  %9933 = vmatprep.subr.bf16.mxu0 %v12726_v31  ;;  %v15126_v1 = vrot.slane %v1094_v6, %v13963_v35  ;;  %v15129_v31 = vrot.slane %v1094_v6, %v13901_v14  ;;  %v15140_v22 = vpop.f32.mrf.mxu1 }
 0x1e2   : > { %10206 = vmatprep.subr.bf16.mxu1 %v12729_v50  ;;  %v12733_v50 = vld [vmem:[%s19291_s15 + $0x1480] ss:$16 sps:$4 sm:$0xff]   ;;  %19401 = vst [vmem:[#allocation50_spill] sm:$0xff] %v15140_v22 }
 0x1e3   : > { %v1317_v6 = vadd.f32 %v14544_v2, %v15126_v1  ;;  %v1321_v22 = vadd.f32 %v14561_v12, %v15126_v1  ;;  %v12739_v2 = vld [vmem:[%s19291_s15 + $0x1460] ss:$16 sps:$4 sm:$0xff]   ;;  %v1327_v7 = vadd.f32 %v14577_v19, %v15126_v1  ;;  %v12747_v12 = vld [vmem:[%s19291_s15 + $0x1444] ss:$16 sps:$4 sm:$0xff]  }
 0x1e4   : > { %9934 = vmatpush2.bf16.msra.mxu0 %v12724_v0  ;;  %v12736_v0 = vld [vmem:[%s19291_s15 + $0x780] ss:$16 sps:$4 sm:$0xff]  }
 0x1e5   : > { %10207 = vmatpush1.bf16.msra.mxu1 %v12727_v61  ;;  %9935 = vmatprep.subr.bf16.mxu0 %v12732_v54  ;;  %v1319_v54 = vadd.f32 %v14556_v10, %v15129_v31  ;;  %v15149_v61 = vstv %s712_s0  ;;  %v12744_v10 = vld [vmem:[%s19291_s15 + $0x764] ss:$16 sps:$4 sm:$0xff]   ;;  %v12742_v19 = vld [vmem:[%s19291_s15 + $0x760] ss:$16 sps:$4 sm:$0xff]   ;;  %s1860_s0 = sld [smem:[#allocation2]] }
 0x1e6   : > { %10208 = vmatprep.subr.bf16.mxu1 %v12735_v3  ;;  %v1540_v3 = vld [vmem:[%s19283_s7] sm:$0x3]  ;;  %v1476_v56 = vmul.f32 %v15149_v61, %v1317_v6  ;;  %v12750_v6 = vld [vmem:[%s19291_s15 + $0x744] ss:$16 sps:$4 sm:$0xff]  }
 0x1e7   : > { %v15175_v38 = vrot.slane %v1540_v3, %v13963_v35  ;;  %v15179_v28 = vrot.slane %v1540_v3, %v13901_v14  ;;  %v1331_v3 = vadd.f32 %v14593_v26, %v15126_v1 }
 0x1e8   : > { %9936 = vmatpush2.bf16.msra.mxu0 %v12730_v15  ;;  %v1323_v15 = vadd.f32 %v14572_v17, %v15129_v31  ;;  %v1477_v17 = vmul.f32 %v15149_v61, %v1319_v54 }
 0x1e9   : > { %10209 = vmatpush1.bf16.msra.mxu1 %v12733_v50  ;;  %9937 = vmatprep.subr.bf16.mxu0 %v12738_v41  ;;  %v1329_v41 = vadd.f32 %v14588_v24, %v15129_v31  ;;  %v15171_v50 = vpop.f32.mrf.mxu1  ;;  %v12745_v24 = vld [vmem:[%s19291_s15 + $0x1440] ss:$16 sps:$4 sm:$0xff]   ;;  %v15208_v26 = vadd.f32 %v15175_v38, %v1476_v56  ;;  %v1347_v56 = vadd.f32 %v14641_v46, %v15126_v1 }
 0x1ea   : > { %10210 = vmatprep.subr.bf16.mxu1 %v12741_v60  ;;  %19402 = vst [vmem:[#allocation51_spill] sm:$0xff] %v15171_v50  ;;  %v1478_v60 = vmul.f32 %v15149_v61, %v1321_v22  ;;  %v1479_v54 = vmul.f32 %v15149_v61, %v1323_v15  ;;  %v1333_v22 = vadd.f32 %v14604_v30, %v15129_v31 }
 0x1eb   : > { %v1337_v50 = vadd.f32 %v14609_v32, %v15126_v1  ;;  %v1339_v15 = vadd.f32 %v14620_v37, %v15129_v31  ;;  %v15211_v30 = vadd.f32 %v15179_v28, %v1477_v17  ;;  %v12748_v32 = vld [vmem:[%s19291_s15 + $0x740] ss:$16 sps:$4 sm:$0xff]   ;;  %v1349_v17 = vadd.f32 %v14652_v55, %v15129_v31 }
 0x1ec   : > { %9938 = vmatpush2.bf16.msra.mxu0 %v12736_v0  ;;  %v1480_v0 = vmul.f32 %v15149_v61, %v1327_v7  ;;  %v15205_v7 = vpop.f32.mrf.mxu1  ;;  %v15221_v37 = vadd.f32 %v15175_v38, %v1478_v60  ;;  %v1482_v46 = vmul.f32 %v15149_v61, %v1331_v3  ;;  %v1483_v55 = vmul.f32 %v15149_v61, %v1333_v22 }
 0x1ed   : > { %10211 = vmatpush1.bf16.msra.mxu1 %v12739_v2  ;;  %9939 = vmatprep.subr.bf16.mxu0 %v12744_v10  ;;  %v12753_v2 = vld [vmem:[%s19291_s15 + $0x1424] ss:$16 sps:$4 sm:$0xff]   ;;  %v1481_v10 = vmul.f32 %v15149_v61, %v1329_v41  ;;  %v1343_v41 = vadd.f32 %v14636_v44, %v15129_v31 }
 0x1ee   : > { %10212 = vmatprep.subr.bf16.mxu1 %v12747_v12  ;;  %v1341_v12 = vadd.f32 %v14625_v39, %v15126_v1  ;;  %19403 = vst [vmem:[#allocation52_spill] sm:$0xff] %v15221_v37  ;;  %v12751_v39 = vld [vmem:[%s19291_s15 + $0x1420] ss:$16 sps:$4 sm:$0xff]   ;;  %v12756_v44 = vld [vmem:[%s19291_s15 + $0x724] ss:$16 sps:$4 sm:$0xff]   ;;  %v15237_v60 = vadd.f32 %v15175_v38, %v1480_v0  ;;  %v1484_v37 = vmul.f32 %v15149_v61, %v1337_v50 }
 0x1ef   : > { %v1351_v0 = vadd.f32 %v14657_v57, %v15126_v1  ;;  %v1487_v22 = vmul.f32 %v15149_v61, %v1343_v41  ;;  %v12754_v50 = vld [vmem:[%s19291_s15 + $0x720] ss:$16 sps:$4 sm:$0xff]   ;;  %v1489_v57 = vmul.f32 %v15149_v61, %v1349_v17  ;;  %v15273_v41 = vadd.f32 %v15175_v38, %v1482_v46  ;;  %v12765_v17 = vld [vmem:[%s19291_s15 + $0x15e4] ss:$16 sps:$4 sm:$0xff]  }
 0x1f0   : > { %9940 = vmatpush2.bf16.msra.mxu0 %v12742_v19  ;;  %v15234_v19 = vadd.f32 %v15179_v28, %v1479_v54  ;;  %v1485_v54 = vmul.f32 %v15149_v61, %v1339_v15  ;;  %v1486_v3 = vmul.f32 %v15149_v61, %v1341_v12  ;;  %v1488_v15 = vmul.f32 %v15149_v61, %v1347_v56 }
 0x1f1   : > { %10213 = vmatpush1.bf16.msra.mxu1 %v12745_v24  ;;  %9941 = vmatprep.subr.bf16.mxu0 %v12750_v6  ;;  %v12759_v24 = vld [vmem:[%s19291_s15 + $0x1404] ss:$16 sps:$4 sm:$0xff]   ;;  %v15245_v6 = vadd.f32 %v15179_v28, %v1481_v10  ;;  %v1357_v10 = vadd.f32 %v14684_v5, %v15126_v1  ;;  %v1359_v12 = vadd.f32 %v14695_v13, %v15129_v31 }
 0x1f2   : > { %19404 = vst [vmem:[#allocation53_spill] sm:$0xff] %v15234_v19  ;;  %10214 = vmatprep.subr.bf16.mxu1 %v12753_v2  ;;  %v15251_v19 = vpop.f32.mrf.mxu1  ;;  %v1353_v2 = vadd.f32 %v14671_v63, %v15129_v31  ;;  %v12757_v63 = vld [vmem:[%s19291_s15 + $0x1400] ss:$16 sps:$4 sm:$0xff]   ;;  %v12762_v5 = vld [vmem:[%s19291_s15 + $0x704] ss:$16 sps:$4 sm:$0xff]   ;;  %v1361_v56 = vadd.f32 %v14702_v16, %v15126_v1  ;;  %v1363_v13 = vadd.f32 %v14713_v23, %v15129_v31 }
 0x1f3   : > { %v1490_v46 = vmul.f32 %v15149_v61, %v1351_v0  ;;  %v15297_v23 = vadd.f32 %v15175_v38, %v1486_v3  ;;  %v15308_v0 = vadd.f32 %v15175_v38, %v1488_v15  ;;  %v1493_v3 = vmul.f32 %v15149_v61, %v1359_v12 }
 0x1f4   : > { %9942 = vmatpush2.bf16.msra.mxu0 %v12748_v32  ;;  %v15276_v32 = vadd.f32 %v15179_v28, %v1483_v55  ;;  %v1367_v55 = vadd.f32 %v14718_v27, %v15126_v1  ;;  %v15294_v16 = vpop.f32.mrf.mxu1  ;;  %v15311_v27 = vadd.f32 %v15179_v28, %v1489_v57  ;;  %v1495_v15 = vmul.f32 %v15149_v61, %v1363_v13 }
 0x1f5   : > { %10215 = vmatpush1.bf16.msra.mxu1 %v12751_v39  ;;  %9943 = vmatprep.subr.bf16.mxu0 %v12756_v44  ;;  %v15286_v39 = vadd.f32 %v15175_v38, %v1484_v37  ;;  %v15289_v44 = vadd.f32 %v15179_v28, %v1485_v54  ;;  %v1492_v37 = vmul.f32 %v15149_v61, %v1357_v10  ;;  %v12760_v54 = vld [vmem:[%s19291_s15 + $0x700] ss:$16 sps:$4 sm:$0xff]  }
 0x1f6   : > { %19405 = vst [vmem:[#allocation54_spill] sm:$0xff] %v15276_v32  ;;  %10216 = vmatprep.subr.bf16.mxu1 %v12759_v24  ;;  %v15300_v24 = vadd.f32 %v15179_v28, %v1487_v22  ;;  %v1491_v32 = vmul.f32 %v15149_v61, %v1353_v2  ;;  %v12763_v22 = vld [vmem:[%s19291_s15 + $0x15e0] ss:$16 sps:$4 sm:$0xff]   ;;  %v12768_v2 = vld [vmem:[%s19291_s15 + $0xae4] ss:$16 sps:$4 sm:$0xff]   ;;  %v1369_v57 = vadd.f32 %v14729_v33, %v15129_v31  ;;  %v15342_v33 = vpop.f32.mrf.mxu1 }
 0x1f7   : > { %v951_v10 = vld [vmem:[%s19288_s12] sm:$0x3]  ;;  %v1371_v12 = vadd.f32 %v14734_v36, %v15126_v1  ;;  %v15340_v13 = vcombine.high %v14357_v52, %v14357_v52  ;;  %v15359_v52 = vadd.f32 %v15179_v28, %v1493_v3  ;;  %v15374_v3 = vadd.f32 %v15179_v28, %v1495_v15 }
 0x1f8   : > { %19406 = vst [vmem:[#allocation55_spill] sm:$0xff] %v15300_v24  ;;  %9944 = vmatpush2.bf16.msra.mxu0 %v12754_v50  ;;  %v1494_v50 = vmul.f32 %v15149_v61, %v1361_v56  ;;  %v1496_v24 = vmul.f32 %v15149_v61, %v1367_v55  ;;  %v1373_v56 = vadd.f32 %v14745_v43, %v15129_v31 }
 0x1f9   : > { %10217 = vmatpush1.bf16.msra.mxu1 %v12757_v63  ;;  %9945 = vmatprep.subr.bf16.mxu0 %v12762_v5  ;;  %v12771_v63 = vld [vmem:[%s19291_s15 + $0x15c4] ss:$16 sps:$4 sm:$0xff]   ;;  %v15333_v5 = vadd.f32 %v15175_v38, %v1490_v46  ;;  %19408 = vst [vmem:[#allocation57_spill] sm:$0xff] %v15340_v13  ;;  %v15345_v36 = vadd.f32 %v15179_v28, %v1491_v32  ;;  %v12766_v46 = vld [vmem:[%s19291_s15 + $0xae0] ss:$16 sps:$4 sm:$0xff]   ;;  %19411 = vst [vmem:[#allocation60_spill] sm:$0xff] %v15374_v3 }
 0x1fa   : > { %10218 = vmatprep.subr.bf16.mxu1 %v12765_v17  ;;  %v15348_v17 = vadd.f32 %v15175_v38, %v1492_v37  ;;  %v956_v55 = vrot.slane %v951_v10, %v13963_v35  ;;  %v15356_v43 = vcombine.high %v14363_v53, %v14363_v53  ;;  %v1377_v32 = vadd.f32 %v14750_v48, %v15126_v1  ;;  %v12769_v37 = vld [vmem:[%s19291_s15 + $0x15c0] ss:$16 sps:$4 sm:$0xff]  }
 0x1fb   : > { %19407 = vst [vmem:[#allocation56_spill] sm:$0xff] %v15333_v5  ;;  %19409 = vst [vmem:[#allocation58_spill] sm:$0xff] %v15345_v36  ;;  %v12774_v36 = vld [vmem:[%s19291_s15 + $0xac4] ss:$16 sps:$4 sm:$0xff]   ;;  %v15371_v53 = vadd.f32 %v15175_v38, %v1494_v50  ;;  %v1497_v48 = vmul.f32 %v15149_v61, %v1369_v57  ;;  %v1499_v5 = vmul.f32 %v15149_v61, %v1373_v56 }
 0x1fc   : > { %9946 = vmatpush2.bf16.msra.mxu0 %v12760_v54  ;;  %19410 = vst [vmem:[#allocation59_spill] sm:$0xff] %v15356_v43  ;;  %v960_v54 = vrot.slane %v951_v10, %v13901_v14  ;;  %v15382_v10 = vadd.f32 %v15175_v38, %v1496_v24  ;;  %v1379_v50 = vadd.f32 %v14761_v58, %v15129_v31  ;;  %v12772_v58 = vld [vmem:[%s19291_s15 + $0xac0] ss:$16 sps:$4 sm:$0xff]  }
 0x1fd   : > { %10219 = vmatpush2.bf16.msra.mxu1 %v12763_v22  ;;  %9997 = vmatprep.subr.bf16.mxu0 %v12768_v2  ;;  %v1498_v22 = vmul.f32 %v15149_v61, %v1371_v12  ;;  %v12777_v2 = vld [vmem:[%s19291_s15 + $0x15a4] ss:$16 sps:$4 sm:$0xff]   ;;  %v1381_v15 = vadd.f32 %v14769_v62, %v15126_v1  ;;  %v15390_v12 = vpop.f32.mrf.mxu1  ;;  %v1387_v24 = vadd.f32 %v14789_v20, %v15126_v1  ;;  %v12775_v20 = vld [vmem:[%s19291_s15 + $0x15a0] ss:$16 sps:$4 sm:$0xff]  }
 0x1fe   : > { %10220 = vmatprep.subr.bf16.mxu1 %v12771_v63  ;;  %v1383_v63 = vadd.f32 %v14780_v11, %v15129_v31  ;;  %v1500_v62 = vmul.f32 %v15149_v61, %v1377_v32  ;;  %v1389_v56 = vadd.f32 %v14800_v29, %v15129_v31  ;;  %v1391_v11 = vadd.f32 %v14811_v40, %v15126_v1 }
 0x1ff   : > { %9948 = vmatmul.mubr.bf16.vlgmr.msra.gmra.mxu0 %v15340_v13  ;;  %v1029_v57 = vpop.f32.mrf.mxu0  ;;  %v15416_v32 = vadd.f32 %v15179_v28, %v1497_v48  ;;  %v15419_v29 = vadd.f32 %v15175_v38, %v1498_v22  ;;  %v1502_v48 = vmul.f32 %v15149_v61, %v1381_v15  ;;  %v1393_v22 = vadd.f32 %v14825_v47, %v15129_v31 }
 0x200   : > { %v15396_v3 = vadd.f32 %v1029_v57, %v956_v55  ;;  %9998 = vmatpush1.bf16.msra.mxu0 %v12766_v46  ;;  %10029 = vmatprep.mubr.bf16.mxu0 %v15356_v43  ;;  %v12780_v46 = vld [vmem:[%s19291_s15 + $0xaa4] ss:$16 sps:$4 sm:$0xff]   ;;  %v15413_v55 = vpop.f32.mrf.mxu1  ;;  %v15428_v57 = vadd.f32 %v15179_v28, %v1499_v5  ;;  %v1501_v43 = vmul.f32 %v15149_v61, %v1379_v50  ;;  %v12778_v5 = vld [vmem:[%s19291_s15 + $0xaa0] ss:$16 sps:$4 sm:$0xff]  }
 0x201   : > { %10221 = vmatpush2.bf16.msra.mxu1 %v12769_v37  ;;  %v1031_v13 = vpop.f32.mrf.mxu0  ;;  %9999 = vmatprep.subr.bf16.mxu0 %v12774_v36  ;;  %19413 = vst [vmem:[#allocation62_spill] sm:$0xff] %v15413_v55  ;;  %19414 = vst [vmem:[#allocation63_spill] sm:$0xff] %v15419_v29  ;;  %v12783_v36 = vld [vmem:[%s19291_s15 + $0x1584] ss:$16 sps:$4 sm:$0xff]   ;;  %v15443_v50 = vadd.f32 %v15175_v38, %v1500_v62  ;;  %v1505_v15 = vmul.f32 %v15149_v61, %v1389_v56 }
 0x202   : > { %19412 = vst [vmem:[#allocation61_spill] sm:$0xff] %v15396_v3  ;;  %v11376_v40 = vmul.f32 -1.442695, %v15396_v3  ;;  %v15422_v37 = vadd.f32 %v1031_v13, %v960_v54  ;;  %10222 = vmatprep.subr.bf16.mxu1 %v12777_v2  ;;  %19416 = vst [vmem:[#allocation65_spill] sm:$0xff] %v15428_v57  ;;  %v15434_v55 = vpop.f32.mrf.mxu1  ;;  %v1503_v13 = vmul.f32 %v15149_v61, %v1383_v63  ;;  %v12781_v63 = vld [vmem:[%s19291_s15 + $0x1580] ss:$16 sps:$4 sm:$0xff]  }
 0x203   : > { %19417 = vst [vmem:[#allocation66_spill] sm:$0xff] %v15434_v55  ;;  %v1504_v54 = vmul.f32 %v15149_v61, %v1387_v24  ;;  %v1506_v47 = vmul.f32 %v15149_v61, %v1391_v11  ;;  %v12786_v24 = vld [vmem:[%s19291_s15 + $0xa84] ss:$16 sps:$4 sm:$0xff]   ;;  %v1399_v62 = vadd.f32 %v14843_v18, %v15129_v31  ;;  %v1401_v56 = vadd.f32 %v14848_v25, %v15126_v1 }
 0x204   : > { %19415 = vst [vmem:[#allocation64_spill] sm:$0xff] %v15422_v37  ;;  %13556 = vpow2.f32 %v11376_v40  ;;  %v11377_v2 = vmul.f32 -1.442695, %v15422_v37  ;;  %10000 = vmatpush1.bf16.msra.mxu0 %v12772_v58  ;;  %v9912_v58 = vpop.f32.mrf.mxu1  ;;  %v1397_v40 = vadd.f32 %v14831_v59, %v15126_v1  ;;  %v12789_v11 = vld [vmem:[%s19291_s15 + $0x1564] ss:$16 sps:$4 sm:$0xff]   ;;  %v1507_v59 = vmul.f32 %v15149_v61, %v1393_v22 }
 0x205   : > { %10223 = vmatpush2.bf16.msra.mxu1 %v12775_v20  ;;  %10001 = vmatprep.subr.bf16.mxu0 %v12780_v46  ;;  %v15463_v20 = vadd.f32 %v15179_v28, %v1501_v43  ;;  %v15466_v46 = vadd.f32 %v15175_v38, %v1502_v48  ;;  %v1403_v18 = vadd.f32 %v14856_v34, %v15129_v31  ;;  %v12784_v48 = vld [vmem:[%s19291_s15 + $0xa80] ss:$16 sps:$4 sm:$0xff]  }
 0x206   : > { %13558 = vpow2.f32 %v11377_v2  ;;  %10224 = vmatprep.subr.bf16.mxu1 %v12783_v36  ;;  %v9913_v58 = vpop.f32.mrf.mxu1  ;;  %v15472_v25 = vadd.f32 %v15179_v28, %v1503_v13  ;;  %v15475_v36 = vadd.f32 %v15175_v38, %v1504_v54  ;;  %v1407_v2 = vadd.f32 %v14861_v45, %v15126_v1  ;;  %v12787_v45 = vld [vmem:[%s19291_s15 + $0x1560] ss:$16 sps:$4 sm:$0xff]  }
 0x207   : > { %19418 = vst [vmem:[#allocation67_spill] sm:$0xff] %v15466_v46  ;;  %v1409_v43 = vadd.f32 %v14872_v8, %v15129_v31  ;;  %v15485_v34 = vadd.f32 %v15179_v28, %v1505_v15  ;;  %v15488_v22 = vadd.f32 %v15175_v38, %v1506_v47  ;;  %v12792_v8 = vld [vmem:[%s19291_s15 + $0xa64] ss:$16 sps:$4 sm:$0xff]   ;;  %v15498_v13 = vrot.slane %v15047_v49, %v14337_v42  ;;  %v19423_v58 = vld [vmem:[#allocation31_spill] sm:$0xff] }
 0x208   : > { %19419 = vst [vmem:[#allocation68_spill] sm:$0xff] %v15472_v25  ;;  %10002 = vmatpush1.bf16.msra.mxu0 %v12778_v5  ;;  %v1508_v54 = vmul.f32 %v15149_v61, %v1397_v40  ;;  %v1509_v5 = vmul.f32 %v15149_v61, %v1399_v62  ;;  %v1510_v15 = vmul.f32 %v15149_v61, %v1401_v56 }
 0x209   : > { %19420 = vst [vmem:[#allocation69_spill] sm:$0xff] %v15488_v22  ;;  %10225 = vmatpush2.bf16.msra.mxu1 %v12781_v63  ;;  %10003 = vmatprep.subr.bf16.mxu0 %v12786_v24  ;;  %19421 = vst [vmem:[#allocation70_spill] sm:$0xff] %v15498_v13  ;;  %v1411_v47 = vadd.f32 %v14877_v21, %v15126_v1  ;;  %v12795_v63 = vld [vmem:[%s19291_s15 + $0x1544] ss:$16 sps:$4 sm:$0xff]   ;;  %v15509_v24 = vadd.f32 %v15179_v28, %v1507_v59  ;;  %v12790_v59 = vld [vmem:[%s19291_s15 + $0xa60] ss:$16 sps:$4 sm:$0xff]  }
 0x20a   : > { %10226 = vmatprep.subr.bf16.mxu1 %v12789_v11  ;;  %v1511_v49 = vmul.f32 %v15149_v61, %v1403_v18  ;;  %v1413_v40 = vadd.f32 %v14888_v9, %v15129_v31  ;;  %v1417_v62 = vadd.f32 %v14893_v51, %v15126_v1  ;;  %v1512_v56 = vmul.f32 %v15149_v61, %v1407_v2  ;;  %v19424_v9 = vld [vmem:[#allocation32_spill] sm:$0xff]  ;;  %v19425_v51 = vld [vmem:[#allocation33_spill] sm:$0xff]  ;;  %v19426_v2 = vld [vmem:[#allocation34_spill] sm:$0xff] }
 0x20b   : > { %19422 = vst [vmem:[#allocation71_spill] sm:$0xff] %v15509_v24  ;;  %v1513_v21 = vmul.f32 %v15149_v61, %v1409_v43  ;;  %v1419_v11 = vadd.f32 %v14904_v4, %v15129_v31  ;;  %v1421_v42 = vadd.f32 %v19423_v58, %v15126_v1  ;;  %v1423_v18 = vadd.f32 %v19424_v9, %v15129_v31  ;;  %v12793_v4 = vld [vmem:[%s19291_s15 + $0x1540] ss:$16 sps:$4 sm:$0xff]  }
 0x20c   : > { %10004 = vmatpush1.bf16.msra.mxu0 %v12784_v48  ;;  %v1427_v3 = vadd.f32 %v19425_v51, %v15126_v1  ;;  %v1429_v43 = vadd.f32 %v19426_v2, %v15129_v31  ;;  %v12798_v48 = vld [vmem:[%s19291_s15 + $0xa44] ss:$16 sps:$4 sm:$0xff]   ;;  %v15538_v58 = vadd.f32 %v15175_v38, %v1508_v54  ;;  %v15541_v9 = vadd.f32 %v15179_v28, %v1509_v5 }
 0x20d   : > { %10227 = vmatpush2.bf16.msra.mxu1 %v12787_v45  ;;  %10005 = vmatprep.subr.bf16.mxu0 %v12792_v8  ;;  %v15544_v51 = vadd.f32 %v15175_v38, %v1510_v15  ;;  %v1514_v45 = vmul.f32 %v15149_v61, %v1411_v47  ;;  %v12801_v8 = vld [vmem:[%s19291_s15 + $0x1524] ss:$16 sps:$4 sm:$0xff]   ;;  %v15551_v2 = vadd.f32 %v15179_v28, %v1511_v49  ;;  %v12796_v49 = vld [vmem:[%s19291_s15 + $0xa40] ss:$16 sps:$4 sm:$0xff]  }
 0x20e   : > { %10228 = vmatprep.subr.bf16.mxu1 %v12795_v63  ;;  %v1515_v37 = vmul.f32 %v15149_v61, %v1413_v40  ;;  %v1516_v54 = vmul.f32 %v15149_v61, %v1417_v62  ;;  %v19429_v5 = vld [vmem:[#allocation36_spill] sm:$0xff]  ;;  %v15558_v15 = vadd.f32 %v15175_v38, %v1512_v56  ;;  %v15561_v47 = vadd.f32 %v15179_v28, %v1513_v21 }
 0x20f   : > { %19427 = vst [vmem:[#allocation31_spill] sm:$0xff] %v15544_v51  ;;  %19428 = vst [vmem:[#allocation32_spill] sm:$0xff] %v15551_v2  ;;  %v1431_v55 = vadd.f32 %v19429_v5, %v15126_v1  ;;  %v1517_v63 = vmul.f32 %v15149_v61, %v1419_v11  ;;  %v1518_v51 = vmul.f32 %v15149_v61, %v1421_v42  ;;  %v12799_v21 = vld [vmem:[%s19291_s15 + $0x1520] ss:$16 sps:$4 sm:$0xff]   ;;  %v12804_v42 = vld [vmem:[%s19291_s15 + $0xa24] ss:$16 sps:$4 sm:$0xff]  }
 0x210   : > { %10006 = vmatpush1.bf16.msra.mxu0 %v12790_v59  ;;  %v1519_v62 = vmul.f32 %v15149_v61, %v1423_v18  ;;  %v1520_v5 = vmul.f32 %v15149_v61, %v1427_v3  ;;  %v1521_v56 = vmul.f32 %v15149_v61, %v1429_v43  ;;  %v15578_v11 = vadd.f32 %v15175_v38, %v1514_v45  ;;  %v19431_v18 = vld [vmem:[#allocation38_spill] sm:$0xff]  ;;  %v19432_v3 = vld [vmem:[#allocation39_spill] sm:$0xff] }
 0x211   : > { %v13557_v40 = vpop.eup %13556  ;;  %10229 = vmatpush2.bf16.msra.mxu1 %v12793_v4  ;;  %10007 = vmatprep.subr.bf16.mxu0 %v12798_v48  ;;  %v1433_v2 = vadd.f32 %v19431_v18, %v15129_v31  ;;  %v1437_v43 = vadd.f32 %v19432_v3, %v15126_v1  ;;  %v12807_v4 = vld [vmem:[%s19291_s15 + $0x1504] ss:$16 sps:$4 sm:$0xff]   ;;  %v15588_v24 = vadd.f32 %v15179_v28, %v1515_v37  ;;  %v12802_v37 = vld [vmem:[%s19291_s15 + $0xa20] ss:$16 sps:$4 sm:$0xff]  }
 0x212   : > { %19430 = vst [vmem:[#allocation33_spill] sm:$0xff] %v15578_v11  ;;  %v1040_v59 = vadd.f32 1.0, %v13557_v40  ;;  %10230 = vmatprep.subr.bf16.mxu1 %v12801_v8  ;;  %v15591_v22 = vadd.f32 %v15175_v38, %v1516_v54  ;;  %v1522_v45 = vmul.f32 %v15149_v61, %v1431_v55  ;;  %v19434_v40 = vld [vmem:[#allocation40_spill] sm:$0xff]  ;;  %v15597_v11 = vadd.f32 %v15179_v28, %v1517_v63 }
 0x213   : > { %v13559_v48 = vpop.eup %13558  ;;  %19433 = vst [vmem:[#allocation34_spill] sm:$0xff] %v15588_v24  ;;  %v1439_v18 = vadd.f32 %v19434_v40, %v15129_v31  ;;  %v15600_v8 = vadd.f32 %v15175_v38, %v1518_v51  ;;  %v15606_v54 = vadd.f32 %v15179_v28, %v1519_v62  ;;  %v15609_v55 = vadd.f32 %v15175_v38, %v1520_v5  ;;  %v12805_v51 = vld [vmem:[%s19291_s15 + $0x1500] ss:$16 sps:$4 sm:$0xff]   ;;  %v12810_v63 = vld [vmem:[%s19291_s15 + $0xa04] ss:$16 sps:$4 sm:$0xff]   ;;  %v19437_v5 = vld [vmem:[#allocation41_spill] sm:$0xff] }
 0x214   : > { %13560 = vrcp.f32 %v1040_v59  ;;  %v1041_v3 = vadd.f32 1.0, %v13559_v48  ;;  %10008 = vmatpush1.bf16.msra.mxu0 %v12796_v49  ;;  %v15612_v40 = vadd.f32 %v15179_v28, %v1521_v56  ;;  %v1523_v49 = vmul.f32 %v15149_v61, %v1433_v2  ;;  %v12814_v56 = vld [vmem:[%s19291_s15 + $0xec] ss:$16 sps:$4 sm:$0xff]   ;;  %v19439_v48 = vld [vmem:[#allocation42_spill] sm:$0xff]  ;;  %v19443_v24 = vld [vmem:[#allocation48_spill] sm:$0xff] }
 0x215   : > { %19435 = vst [vmem:[#allocation36_spill] sm:$0xff] %v15600_v8  ;;  %19436 = vst [vmem:[#allocation38_spill] sm:$0xff] %v15606_v54  ;;  %10231 = vmatpush2.bf16.msra.mxu1 %v12799_v21  ;;  %10009 = vmatprep.subr.bf16.mxu0 %v12804_v42  ;;  %v1524_v62 = vmul.f32 %v15149_v61, %v1437_v43  ;;  %v1441_v59 = vadd.f32 %v19437_v5, %v15126_v1  ;;  %v19440_v2 = vld [vmem:[#allocation43_spill] sm:$0xff]  ;;  %v19441_v43 = vld [vmem:[#allocation44_spill] sm:$0xff] }
 0x216   : > { %13562 = vrcp.f32 %v1041_v3  ;;  %10232 = vmatprep.subr.bf16.mxu1 %v12807_v4  ;;  %v15628_v21 = vadd.f32 %v15175_v38, %v1522_v45  ;;  %v1525_v42 = vmul.f32 %v15149_v61, %v1439_v18  ;;  %v1443_v54 = vadd.f32 %v19439_v48, %v15129_v31  ;;  %v19442_v4 = vld [vmem:[#allocation47_spill] sm:$0xff]  ;;  %v12808_v45 = vld [vmem:[%s19291_s15 + $0xa00] ss:$16 sps:$4 sm:$0xff]   ;;  %v19444_v18 = vld [vmem:[#allocation25_spill] sm:$0xff] }
 0x217   : > { %v1447_v3 = vadd.f32 %v19440_v2, %v15126_v1  ;;  %v1449_v8 = vadd.f32 %v19441_v43, %v15129_v31  ;;  %v1451_v5 = vadd.f32 %v19442_v4, %v15126_v1  ;;  %v1453_v25 = vadd.f32 %v19443_v24, %v15129_v31  ;;  %v19445_v2 = vld [vmem:[#allocation49_spill] sm:$0xff]  ;;  %v19446_v43 = vld [vmem:[#allocation50_spill] sm:$0xff]  ;;  %v19447_v4 = vld [vmem:[#allocation51_spill] sm:$0xff] }
 0x218   : > { %19438 = vst [vmem:[#allocation39_spill] sm:$0xff] %v15628_v21  ;;  %10010 = vmatpush1.bf16.msra.mxu0 %v12802_v37  ;;  %v15646_v48 = vcombine.high %v19444_v18, %v19444_v18  ;;  %v1457_v21 = vadd.f32 %v19445_v2, %v15126_v1  ;;  %v1459_v46 = vadd.f32 %v19446_v43, %v15129_v31  ;;  %v12812_v24 = vld [vmem:[%s19291_s15 + $0xe8] ss:$16 sps:$4 sm:$0xff]   ;;  %v12817_v37 = vld [vmem:[%s19291_s15 + $0xbe4] ss:$16 sps:$4 sm:$0xff]  }
 0x219   : > { %v1461_v57 = vadd.f32 %v19447_v4, %v15126_v1  ;;  %10233 = vmatpush2.bf16.msra.mxu1 %v12805_v51  ;;  %10011 = vmatprep.subr.bf16.mxu0 %v12810_v63  ;;  %v15661_v18 = vadd.f32 %v15179_v28, %v1523_v49  ;;  %v15664_v2 = vadd.f32 %v15175_v38, %v1524_v62  ;;  %v12820_v63 = vld [vmem:[%s19291_s15 + $0xcc] ss:$16 sps:$4 sm:$0xff]  }
 0x21a   : > { %v1526_v43 = vmul.f32 %v15149_v61, %v1441_v59  ;;  %v1467_v51 = vadd.f32 %v15251_v19, %v15126_v1  ;;  %10284 = vmatprep.subr.bf16.mxu1 %v12814_v56  ;;  %v15673_v4 = vadd.f32 %v15179_v28, %v1525_v42  ;;  %v1527_v29 = vmul.f32 %v15149_v61, %v1443_v54  ;;  %v12815_v56 = vld [vmem:[%s19291_s15 + $0xbe0] ss:$16 sps:$4 sm:$0xff]  }
 0x21b   : > { %19448 = vst [vmem:[#allocation40_spill] sm:$0xff] %v15661_v18  ;;  %v1528_v49 = vmul.f32 %v15149_v61, %v1447_v3  ;;  %v1469_v62 = vadd.f32 %v15294_v16, %v15129_v31  ;;  %v1529_v59 = vmul.f32 %v15149_v61, %v1449_v8  ;;  %v1530_v18 = vmul.f32 %v15149_v61, %v1451_v5  ;;  %v12818_v16 = vld [vmem:[%s19291_s15 + $0xc8] ss:$16 sps:$4 sm:$0xff]   ;;  %v19449_v5 = vld [vmem:[#allocation24_spill] sm:$0xff] }
 0x21c   : > { %v1531_v19 = vmul.f32 %v15149_v61, %v1453_v25  ;;  %10012 = vmatpush1.bf16.msra.mxu0 %v12808_v45  ;;  %10235 = vmatmul.mubr.bf16.vlgmr.msra.gmra.mxu1 %v15498_v13  ;;  %v1532_v54 = vmul.f32 %v15149_v61, %v1457_v21  ;;  %v1533_v42 = vmul.f32 %v15149_v61, %v1459_v46  ;;  %v12823_v25 = vld [vmem:[%s19291_s15 + $0xbc4] ss:$16 sps:$4 sm:$0xff]  }
 0x21d   : > { %v1534_v3 = vmul.f32 %v15149_v61, %v1461_v57  ;;  %10285 = vmatpush1.bf16.msra.mxu1 %v12812_v24  ;;  %10013 = vmatprep.subr.bf16.mxu0 %v12817_v37  ;;  %v15696_v8 = vadd.f32 %v15175_v38, %v1526_v43  ;;  %v1463_v21 = vadd.f32 %v15205_v7, %v15129_v31  ;;  %v12826_v57 = vld [vmem:[%s19291_s15 + $0xac] ss:$16 sps:$4 sm:$0xff]   ;;  %v1688_v43 = vld [vmem:[%s19284_s8] sm:$0x3] }
 0x21e   : > { %v1536_v46 = vmul.f32 %v15149_v61, %v1467_v51  ;;  %10286 = vmatprep.subr.bf16.mxu1 %v12820_v63  ;;  %10316 = vmatprep.mubr.bf16.mxu1 %v19449_v5  ;;  %v15706_v45 = vadd.f32 %v15179_v28, %v1527_v29  ;;  %v1537_v24 = vmul.f32 %v15149_v61, %v1469_v62 }
 0x21f   : > { %v1471_v37 = vadd.f32 %v15342_v33, %v15126_v1  ;;  %v1473_v7 = vadd.f32 %v15390_v12, %v15129_v31  ;;  %v15718_v51 = vadd.f32 %v15175_v38, %v1528_v49  ;;  %v15721_v63 = vadd.f32 %v15179_v28, %v1529_v59  ;;  %v12821_v1 = vld [vmem:[%s19291_s15 + $0xbc0] ss:$16 sps:$4 sm:$0xff]   ;;  %v12829_v59 = vld [vmem:[%s19291_s15 + $0xba4] ss:$16 sps:$4 sm:$0xff]  }
 0x220   : > { %v15724_v29 = vadd.f32 %v15175_v38, %v1530_v18  ;;  %v15727_v62 = vadd.f32 %v15179_v28, %v1531_v19  ;;  %10014 = vmatpush2.bf16.msra.mxu0 %v12815_v56  ;;  %v15733_v33 = vadd.f32 %v15175_v38, %v1532_v54  ;;  %v15736_v12 = vadd.f32 %v15179_v28, %v1533_v42  ;;  %v12824_v18 = vld [vmem:[%s19291_s15 + $0xa8] ss:$16 sps:$4 sm:$0xff]   ;;  %v12832_v42 = vld [vmem:[%s19291_s15 + $0x8c] ss:$16 sps:$4 sm:$0xff]  }
 0x221   : > { %v13561_v31 = vpop.eup %13560  ;;  %v15739_v49 = vadd.f32 %v15175_v38, %v1534_v3  ;;  %10287 = vmatpush1.bf16.msra.mxu1 %v12818_v16  ;;  %10015 = vmatprep.subr.bf16.mxu0 %v12823_v25  ;;  %v15751_v56 = vmul.f32 %v15149_v61, %v1463_v21  ;;  %v15754_v54 = vadd.f32 %v15175_v38, %v1536_v46 }
 0x222   : > { %19450 = vst [vmem:[#allocation41_spill] sm:$0xff] %v15724_v29  ;;  %19451 = vst [vmem:[#allocation42_spill] sm:$0xff] %v15727_v62  ;;  %v15748_v19 = vrot.slane %v13561_v31, %v13963_v35  ;;  %10288 = vmatprep.subr.bf16.mxu1 %v12826_v57  ;;  %v15760_v3 = vrot.slane %v1688_v43, %v13963_v35  ;;  %v15767_v25 = vadd.f32 %v15179_v28, %v1537_v24  ;;  %v12827_v31 = vld [vmem:[%s19291_s15 + $0xba0] ss:$16 sps:$4 sm:$0xff]  }
 0x223   : > { %19452 = vst [vmem:[#allocation43_spill] sm:$0xff] %v15739_v49  ;;  %v13563_v16 = vpop.eup %13562  ;;  %v15770_v21 = vmul.f32 %v15149_v61, %v1471_v37  ;;  %v15773_v46 = vmul.f32 %v15149_v61, %v1473_v7  ;;  %v15776_v57 = vrot.slane %v1688_v43, %v13901_v14  ;;  %v12830_v43 = vld [vmem:[%s19291_s15 + $0x88] ss:$16 sps:$4 sm:$0xff]  }
 0x224   : > { %v15779_v5 = vrot.slane %v13563_v16, %v13963_v35  ;;  %10016 = vmatpush2.bf16.msra.mxu0 %v12821_v1  ;;  %v1624_v24 = vmul.f32 %v15748_v19, %v15208_v26  ;;  %v1628_v37 = vmul.f32 %v15748_v19, %v15237_v60  ;;  %v1632_v7 = vmul.f32 %v15748_v19, %v15286_v39  ;;  %v12835_v1 = vld [vmem:[%s19291_s15 + $0xb84] ss:$16 sps:$4 sm:$0xff]   ;;  %v12838_v39 = vld [vmem:[%s19291_s15 + $0x6c] ss:$16 sps:$4 sm:$0xff]  }
 0x225   : > { %10289 = vmatpush1.bf16.msra.mxu1 %v12824_v18  ;;  %10017 = vmatprep.subr.bf16.mxu0 %v12829_v59  ;;  %v1636_v16 = vmul.f32 %v15748_v19, %v15308_v0  ;;  %v1640_v26 = vmul.f32 %v15748_v19, %v15348_v17  ;;  %v1644_v60 = vmul.f32 %v15748_v19, %v15382_v10 }
 0x226   : > { %10290 = vmatprep.subr.bf16.mxu1 %v12832_v42  ;;  %v1625_v18 = vmul.f32 %v15779_v5, %v15211_v30  ;;  %v1700_v59 = vmul.f32 %v15760_v3, %v1624_v24  ;;  %v1894_v13 = vmul.f32 %v1624_v24, %v15149_v61  ;;  %v1629_v0 = vmul.f32 %v15779_v5, %v15245_v6  ;;  %v12833_v30 = vld [vmem:[%s19291_s15 + $0xb80] ss:$16 sps:$4 sm:$0xff]  }
 0x227   : > { %v1704_v17 = vmul.f32 %v15760_v3, %v1628_v37  ;;  %v1898_v14 = vmul.f32 %v1628_v37, %v15149_v61  ;;  %v1633_v10 = vmul.f32 %v15779_v5, %v15289_v44  ;;  %v1708_v42 = vmul.f32 %v15760_v3, %v1632_v7  ;;  %v12841_v37 = vld [vmem:[%s19291_s15 + $0xb64] ss:$16 sps:$4 sm:$0xff]  }
 0x228   : > { %10018 = vmatpush2.bf16.msra.mxu0 %v12827_v31  ;;  %v1701_v35 = vmul.f32 %v15776_v57, %v1625_v18  ;;  %v1895_v24 = vmul.f32 %v1625_v18, %v15149_v61  ;;  %1958 = vst [vmem:[%s15822_s4] sm:$0xff] %v1894_v13  ;;  %v1705_v6 = vmul.f32 %v15776_v57, %v1629_v0  ;;  %v12836_v31 = vld [vmem:[%s19291_s15 + $0x68] ss:$16 sps:$4 sm:$0xff]  }
 0x229   : > { %v1899_v44 = vmul.f32 %v1629_v0, %v15149_v61  ;;  %10291 = vmatpush1.bf16.msra.mxu1 %v12830_v43  ;;  %10019 = vmatprep.subr.bf16.mxu0 %v12835_v1  ;;  %1962 = vst [vmem:[%s15822_s4 + $0x20] sm:$0xff] %v1898_v14  ;;  %v1709_v13 = vmul.f32 %v15776_v57, %v1633_v10  ;;  %v12844_v43 = vld [vmem:[%s19291_s15 + $0x4c] ss:$16 sps:$4 sm:$0xff]  }
 0x22a   : > { %v1902_v18 = vmul.f32 %v1632_v7, %v15149_v61  ;;  %v1903_v49 = vmul.f32 %v1633_v10, %v15149_v61  ;;  %10292 = vmatprep.subr.bf16.mxu1 %v12838_v39  ;;  %v15840_v1 = vadd.f32 %v1701_v35, %v1700_v59  ;;  %1959 = vst [vmem:[%s15822_s4 + $0x8] sm:$0xff] %v1895_v24  ;;  %v12839_v59 = vld [vmem:[%s19291_s15 + $0xb60] ss:$16 sps:$4 sm:$0xff]   ;;  %v12847_v10 = vld [vmem:[%s19291_s15 + $0xb44] ss:$16 sps:$4 sm:$0xff]  }
 0x22b   : > { %v15843_v0 = vadd.f32 %v1705_v6, %v1704_v17  ;;  %1963 = vst [vmem:[%s15822_s4 + $0x28] sm:$0xff] %v1899_v44  ;;  %v1637_v14 = vmul.f32 %v15779_v5, %v15311_v27  ;;  %v1712_v62 = vmul.f32 %v15760_v3, %v1636_v16  ;;  %v15849_v29 = vadd.f32 %v1709_v13, %v1708_v42 }
 0x22c   : > { %1966 = vst [vmem:[%s15822_s4 + $0x40] sm:$0xff] %v1902_v18  ;;  %1967 = vst [vmem:[%s15822_s4 + $0x48] sm:$0xff] %v1903_v49  ;;  %v1906_v7 = vmul.f32 %v1636_v16, %v15149_v61  ;;  %v1641_v35 = vmul.f32 %v15779_v5, %v15359_v52  ;;  %v1716_v39 = vmul.f32 %v15760_v3, %v1640_v26  ;;  %10020 = vmatpush2.bf16.msra.mxu0 %v12833_v30  ;;  %v12842_v52 = vld [vmem:[%s19291_s15 + $0x48] ss:$16 sps:$4 sm:$0xff]  }
 0x22d   : > { %v1713_v27 = vmul.f32 %v15776_v57, %v1637_v14  ;;  %v1907_v17 = vmul.f32 %v1637_v14, %v15149_v61  ;;  %v1910_v49 = vmul.f32 %v1640_v26, %v15149_v61  ;;  %v1645_v16 = vmul.f32 %v15779_v5, %v15416_v32  ;;  %10293 = vmatpush1.bf16.msra.mxu1 %v12836_v31  ;;  %v12850_v32 = vld [vmem:[%s19291_s15 + $0x2c] ss:$16 sps:$4 sm:$0xff]  }
 0x22e   : > { %10021 = vmatprep.subr.bf16.mxu0 %v12841_v37  ;;  %1970 = vst [vmem:[%s15822_s4 + $0x60] sm:$0xff] %v1906_v7  ;;  %v1717_v42 = vmul.f32 %v15776_v57, %v1641_v35  ;;  %v1911_v30 = vmul.f32 %v1641_v35, %v15149_v61  ;;  %v1720_v26 = vmul.f32 %v15760_v3, %v1644_v60  ;;  %v12853_v7 = vld [vmem:[%s19291_s15 + $0xb24] ss:$16 sps:$4 sm:$0xff]  }
 0x22f   : > { %10294 = vmatprep.subr.bf16.mxu1 %v12844_v43  ;;  %v15878_v24 = vadd.f32 %v1713_v27, %v1712_v62  ;;  %1971 = vst [vmem:[%s15822_s4 + $0x68] sm:$0xff] %v1907_v17  ;;  %1974 = vst [vmem:[%s15822_s4 + $0x80] sm:$0xff] %v1910_v49  ;;  %v1721_v6 = vmul.f32 %v15776_v57, %v1645_v16  ;;  %v1914_v44 = vmul.f32 %v1644_v60, %v15149_v61  ;;  %v12845_v43 = vld [vmem:[%s19291_s15 + $0xb40] ss:$16 sps:$4 sm:$0xff]  }
 0x230   : > { %v1915_v31 = vmul.f32 %v1645_v16, %v15149_v61  ;;  %v15885_v37 = vadd.f32 %v1717_v42, %v1716_v39  ;;  %1975 = vst [vmem:[%s15822_s4 + $0x88] sm:$0xff] %v1911_v30  ;;  %v1648_v13 = vmul.f32 %v15748_v19, %v15443_v50  ;;  %v1649_v18 = vmul.f32 %v15779_v5, %v15463_v20  ;;  %v12851_v42 = vld [vmem:[%s19291_s15 + $0xb20] ss:$16 sps:$4 sm:$0xff]  }
 0x231   : > { %v1652_v62 = vmul.f32 %v15748_v19, %v15475_v36  ;;  %10022 = vmatpush2.bf16.msra.mxu0 %v12839_v59  ;;  %v15897_v60 = vadd.f32 %v1721_v6, %v1720_v26  ;;  %1978 = vst [vmem:[%s15822_s4 + $0xa0] sm:$0xff] %v1914_v44  ;;  %v1653_v14 = vmul.f32 %v15779_v5, %v15485_v34  ;;  %v12848_v36 = vld [vmem:[%s19291_s15 + $0x28] ss:$16 sps:$4 sm:$0xff]  }
 0x232   : > { %1979 = vst [vmem:[%s15822_s4 + $0xa8] sm:$0xff] %v1915_v31  ;;  %v1656_v50 = vmul.f32 %v15748_v19, %v15538_v58  ;;  %v1657_v20 = vmul.f32 %v15779_v5, %v15541_v9  ;;  %10295 = vmatpush1.bf16.msra.mxu1 %v12842_v52  ;;  %10023 = vmatprep.subr.bf16.mxu0 %v12847_v10  ;;  %v12856_v9 = vld [vmem:[%s19291_s15 + $0xc] ss:$16 sps:$4 sm:$0xff]   ;;  %v12854_v44 = vld [vmem:[%s19291_s15 + $0x8] ss:$16 sps:$4 sm:$0xff]  }
 0x233   : > { %v1724_v35 = vmul.f32 %v15760_v3, %v1648_v13  ;;  %v1725_v34 = vmul.f32 %v15776_v57, %v1649_v18  ;;  %v1918_v58 = vmul.f32 %v1648_v13, %v15149_v61  ;;  %10296 = vmatprep.subr.bf16.mxu1 %v12850_v32  ;;  %v1919_v39 = vmul.f32 %v1649_v18, %v15149_v61  ;;  %v12859_v31 = vld [vmem:[%s19291_s15 + $0xb04] ss:$16 sps:$4 sm:$0xff]  }
 0x234   : > { %v1728_v59 = vmul.f32 %v15760_v3, %v1652_v62  ;;  %v1729_v27 = vmul.f32 %v15776_v57, %v1653_v14  ;;  %v1922_v17 = vmul.f32 %v1652_v62, %v15149_v61  ;;  %v1923_v16 = vmul.f32 %v1653_v14, %v15149_v61  ;;  %v12862_v62 = vld [vmem:[%s19291_s15 + $0x1ec] ss:$16 sps:$4 sm:$0xff]  }
 0x235   : > { %v15923_v49 = vadd.f32 %v1725_v34, %v1724_v35  ;;  %1982 = vst [vmem:[%s15822_s4 + $0xc0] sm:$0xff] %v1918_v58  ;;  %v1732_v52 = vmul.f32 %v15760_v3, %v1656_v50  ;;  %v1733_v10 = vmul.f32 %v15776_v57, %v1657_v20  ;;  %10024 = vmatpush2.bf16.msra.mxu0 %v12845_v43  ;;  %1983 = vst [vmem:[%s15822_s4 + $0xc8] sm:$0xff] %v1919_v39  ;;  %v12857_v35 = vld [vmem:[%s19291_s15 + $0xb00] ss:$16 sps:$4 sm:$0xff]   ;;  %v12865_v39 = vld [vmem:[%s19291_s15 + $0xee4] ss:$16 sps:$4 sm:$0xff]  }
 0x236   : > { %v15933_v30 = vadd.f32 %v1729_v27, %v1728_v59  ;;  %1986 = vst [vmem:[%s15822_s4 + $0xe0] sm:$0xff] %v1922_v17  ;;  %v1926_v26 = vmul.f32 %v1656_v50, %v15149_v61  ;;  %v1927_v32 = vmul.f32 %v1657_v20, %v15149_v61  ;;  %v1660_v6 = vmul.f32 %v15748_v19, %v15558_v15  ;;  %v12868_v17 = vld [vmem:[%s19291_s15 + $0x1cc] ss:$16 sps:$4 sm:$0xff]  }
 0x237   : > { %10297 = vmatpush1.bf16.msra.mxu1 %v12848_v36  ;;  %10025 = vmatprep.subr.bf16.mxu0 %v12853_v7  ;;  %1987 = vst [vmem:[%s15822_s4 + $0xe8] sm:$0xff] %v1923_v16  ;;  %v15947_v13 = vadd.f32 %v1733_v10, %v1732_v52  ;;  %v1661_v18 = vmul.f32 %v15779_v5, %v15561_v47 }
 0x238   : > { %v1664_v15 = vmul.f32 %v15748_v19, %v15591_v22  ;;  %10298 = vmatprep.subr.bf16.mxu1 %v12856_v9  ;;  %1990 = vst [vmem:[%s15822_s4 + $0x100] sm:$0xff] %v1926_v26  ;;  %1991 = vst [vmem:[%s15822_s4 + $0x108] sm:$0xff] %v1927_v32  ;;  %v1736_v43 = vmul.f32 %v15760_v3, %v1660_v6  ;;  %v1930_v14 = vmul.f32 %v1660_v6, %v15149_v61  ;;  %v12860_v9 = vld [vmem:[%s19291_s15 + $0x1e8] ss:$16 sps:$4 sm:$0xff]   ;;  %v19453_v26 = vld [vmem:[#allocation26_spill] sm:$0xff] }
 0x239   : > { %v1665_v50 = vmul.f32 %v15779_v5, %v15597_v11  ;;  %v1668_v47 = vmul.f32 %v15748_v19, %v15609_v55  ;;  %v1737_v20 = vmul.f32 %v15776_v57, %v1661_v18  ;;  %v1931_v22 = vmul.f32 %v1661_v18, %v15149_v61  ;;  %10026 = vmatpush2.bf16.msra.mxu0 %v12851_v42 }
 0x23a   : > { %v1740_v36 = vmul.f32 %v15760_v3, %v1664_v15  ;;  %v1934_v7 = vmul.f32 %v1664_v15, %v15149_v61  ;;  %1994 = vst [vmem:[%s15822_s4 + $0x120] sm:$0xff] %v1930_v14  ;;  %v1669_v34 = vmul.f32 %v15779_v5, %v15612_v40  ;;  %10027 = vmatprep.subr.bf16.mxu0 %v12859_v31  ;;  %v12863_v31 = vld [vmem:[%s19291_s15 + $0xee0] ss:$16 sps:$4 sm:$0xff]  }
 0x23b   : > { %v1741_v11 = vmul.f32 %v15776_v57, %v1665_v50  ;;  %v1935_v55 = vmul.f32 %v1665_v50, %v15149_v61  ;;  %v1744_v58 = vmul.f32 %v15760_v3, %v1668_v47  ;;  %10299 = vmatpush1.bf16.msra.mxu1 %v12854_v44  ;;  %v15983_v59 = vadd.f32 %v1737_v20, %v1736_v43  ;;  %v12871_v43 = vld [vmem:[%s19291_s15 + $0xec4] ss:$16 sps:$4 sm:$0xff]  }
 0x23c   : > { %1995 = vst [vmem:[%s15822_s4 + $0x128] sm:$0xff] %v1931_v22  ;;  %1998 = vst [vmem:[%s15822_s4 + $0x140] sm:$0xff] %v1934_v7  ;;  %v1938_v27 = vmul.f32 %v1668_v47, %v15149_v61  ;;  %v1672_v40 = vmul.f32 %v15748_v19, %v15664_v2  ;;  %10300 = vmatprep.subr.bf16.mxu1 %v12862_v62  ;;  %v1745_v52 = vmul.f32 %v15776_v57, %v1669_v34 }
 0x23d   : > { %v15993_v16 = vadd.f32 %v1741_v11, %v1740_v36  ;;  %1999 = vst [vmem:[%s15822_s4 + $0x148] sm:$0xff] %v1935_v55  ;;  %v1939_v10 = vmul.f32 %v1669_v34, %v15149_v61  ;;  %v1673_v42 = vmul.f32 %v15779_v5, %v15673_v4  ;;  %v16002_v32 = vcombine.high %v19453_v26, %v19453_v26 }
 0x23e   : > { %2002 = vst [vmem:[%s15822_s4 + $0x160] sm:$0xff] %v1938_v27  ;;  %v1942_v2 = vmul.f32 %v1672_v40, %v15149_v61  ;;  %v1676_v6 = vmul.f32 %v15748_v19, %v15718_v51  ;;  %v1677_v44 = vmul.f32 %v15779_v5, %v15721_v63  ;;  %10028 = vmatpush2.bf16.msra.mxu0 %v12857_v35  ;;  %v12866_v63 = vld [vmem:[%s19291_s15 + $0x1c8] ss:$16 sps:$4 sm:$0xff]   ;;  %v12880_v27 = vld [vmem:[%s19291_s15 + $0x18c] ss:$16 sps:$4 sm:$0xff]  }
 0x23f   : > { %v16013_v4 = vadd.f32 %v1745_v52, %v1744_v58  ;;  %2003 = vst [vmem:[%s15822_s4 + $0x168] sm:$0xff] %v1939_v10  ;;  %v1748_v18 = vmul.f32 %v15760_v3, %v1672_v40  ;;  %v1749_v15 = vmul.f32 %v15776_v57, %v1673_v42  ;;  %v1943_v62 = vmul.f32 %v1673_v42, %v15149_v61  ;;  %v16042_v7 = vpop.f32.mrf.mxu0 }
 0x240   : > { %v16021_v51 = vadd.f32 %v15179_v28, %v15751_v56  ;;  %10301 = vmatpush2.bf16.msra.mxu1 %v12860_v9  ;;  %10079 = vmatprep.subr.bf16.mxu0 %v12865_v39  ;;  %2006 = vst [vmem:[%s15822_s4 + $0x180] sm:$0xff] %v1942_v2  ;;  %v1752_v14 = vmul.f32 %v15760_v3, %v1676_v6  ;;  %v12874_v56 = vld [vmem:[%s19291_s15 + $0x1ac] ss:$16 sps:$4 sm:$0xff]   ;;  %v12869_v9 = vld [vmem:[%s19291_s15 + $0xec0] ss:$16 sps:$4 sm:$0xff]  }
 0x241   : > { %v1753_v50 = vmul.f32 %v15776_v57, %v1677_v44  ;;  %10302 = vmatprep.subr.bf16.mxu1 %v12868_v17  ;;  %v16035_v47 = vadd.f32 %v1749_v15, %v1748_v18  ;;  %2007 = vst [vmem:[%s15822_s4 + $0x188] sm:$0xff] %v1943_v62  ;;  %v1946_v20 = vmul.f32 %v1676_v6, %v15149_v61  ;;  %v19455_v18 = vld [vmem:[#allocation53_spill] sm:$0xff] }
 0x242   : > { %v1947_v22 = vmul.f32 %v1677_v44, %v15149_v61  ;;  %v1680_v36 = vmul.f32 %v15748_v19, %v15733_v33  ;;  %10030 = vmatmul.mubr.bf16.vlgmr.msra.gmra.mxu0 %v15646_v48  ;;  %v1681_v11 = vmul.f32 %v15779_v5, %v15736_v12  ;;  %v1684_v55 = vmul.f32 %v15748_v19, %v15754_v54  ;;  %v16068_v54 = vpop.f32.mrf.mxu0  ;;  %v19454_v44 = vld [vmem:[#allocation52_spill] sm:$0xff] }
 0x243   : > { %v16045_v35 = vadd.f32 %v1753_v50, %v1752_v14  ;;  %v1685_v34 = vmul.f32 %v15779_v5, %v15767_v25  ;;  %v16055_v58 = vadd.f32 %v15175_v38, %v15770_v21  ;;  %v16059_v33 = vadd.f32 %v15179_v28, %v15773_v46  ;;  %10080 = vmatpush1.bf16.msra.mxu0 %v12863_v31  ;;  %v12872_v38 = vld [vmem:[%s19291_s15 + $0x1a8] ss:$16 sps:$4 sm:$0xff]   ;;  %v12877_v28 = vld [vmem:[%s19291_s15 + $0xea4] ss:$16 sps:$4 sm:$0xff]   ;;  %v16076_v25 = vpop.f32.mrf.mxu1 }
 0x244   : > { %10111 = vmatprep.mubr.bf16.mxu0 %v16002_v32  ;;  %2010 = vst [vmem:[%s15822_s4 + $0x1a0] sm:$0xff] %v1946_v20  ;;  %2011 = vst [vmem:[%s15822_s4 + $0x1a8] sm:$0xff] %v1947_v22  ;;  %v1950_v12 = vmul.f32 %v1680_v36, %v15149_v61  ;;  %10303 = vmatpush2.bf16.msra.mxu1 %v12866_v63  ;;  %v1756_v21 = vmul.f32 %v15760_v3, %v1680_v36  ;;  %v9830_v42 = vpop.f32.mrf.mxu0  ;;  %v12875_v63 = vld [vmem:[%s19291_s15 + $0xea0] ss:$16 sps:$4 sm:$0xff]   ;;  %v19457_v20 = vld [vmem:[#allocation55_spill] sm:$0xff] }
 0x245   : > { %10081 = vmatprep.subr.bf16.mxu0 %v12871_v43  ;;  %v1757_v46 = vmul.f32 %v15776_v57, %v1681_v11  ;;  %v1951_v39 = vmul.f32 %v1681_v11, %v15149_v61  ;;  %10304 = vmatprep.subr.bf16.mxu1 %v12874_v56  ;;  %v1760_v40 = vmul.f32 %v15760_v3, %v1684_v55  ;;  %v16089_v2 = vpop.f32.mrf.mxu1  ;;  %v19456_v14 = vld [vmem:[#allocation54_spill] sm:$0xff] }
 0x246   : > { %2014 = vst [vmem:[%s15822_s4 + $0x1c0] sm:$0xff] %v1950_v12  ;;  %v1761_v17 = vmul.f32 %v15776_v57, %v1685_v34  ;;  %v1954_v52 = vmul.f32 %v1684_v55, %v15149_v61  ;;  %v1955_v10 = vmul.f32 %v1685_v34, %v15149_v61  ;;  %v1626_v31 = vmul.f32 %v15748_v19, %v19454_v44  ;;  %v9831_v36 = vpop.f32.mrf.mxu0  ;;  %v12883_v11 = vld [vmem:[%s19291_s15 + $0xe84] ss:$16 sps:$4 sm:$0xff]   ;;  %v12886_v12 = vld [vmem:[%s19291_s15 + $0x16c] ss:$16 sps:$4 sm:$0xff]  }
 0x247   : > { %v16091_v6 = vadd.f32 %v1757_v46, %v1756_v21  ;;  %2015 = vst [vmem:[%s15822_s4 + $0x1c8] sm:$0xff] %v1951_v39  ;;  %v1627_v15 = vmul.f32 %v15779_v5, %v19455_v18  ;;  %v1630_v62 = vmul.f32 %v15748_v19, %v15273_v41  ;;  %10082 = vmatpush1.bf16.msra.mxu0 %v12869_v9  ;;  %v12878_v41 = vld [vmem:[%s19291_s15 + $0x188] ss:$16 sps:$4 sm:$0xff]   ;;  %v9994_v55 = vpop.f32.mrf.mxu1  ;;  %v19458_v18 = vld [vmem:[#allocation56_spill] sm:$0xff] }
 0x248   : > { %v16103_v43 = vadd.f32 %v1761_v17, %v1760_v40  ;;  %2018 = vst [vmem:[%s15822_s4 + $0x1e0] sm:$0xff] %v1954_v52  ;;  %2019 = vst [vmem:[%s15822_s4 + $0x1e8] sm:$0xff] %v1955_v10  ;;  %v1631_v50 = vmul.f32 %v15779_v5, %v19456_v14  ;;  %v1634_v56 = vmul.f32 %v15748_v19, %v15297_v23  ;;  %10305 = vmatpush2.bf16.msra.mxu1 %v12872_v38  ;;  %v12881_v10 = vld [vmem:[%s19291_s15 + $0xe80] ss:$16 sps:$4 sm:$0xff]  }
 0x249   : > { %v1635_v22 = vmul.f32 %v15779_v5, %v19457_v20  ;;  %10083 = vmatprep.subr.bf16.mxu0 %v12877_v28  ;;  %v1702_v34 = vmul.f32 %v15760_v3, %v1626_v31  ;;  %v1703_v23 = vmul.f32 %v15776_v57, %v1627_v15  ;;  %v1896_v9 = vmul.f32 %v1626_v31, %v15149_v61  ;;  %v9995_v39 = vpop.f32.mrf.mxu1 }
 0x24a   : > { %10306 = vmatprep.subr.bf16.mxu1 %v12880_v27  ;;  %v1897_v38 = vmul.f32 %v1627_v15, %v15149_v61  ;;  %v1706_v28 = vmul.f32 %v15760_v3, %v1630_v62  ;;  %v1707_v21 = vmul.f32 %v15776_v57, %v1631_v50  ;;  %v1900_v46 = vmul.f32 %v1630_v62, %v15149_v61  ;;  %v12884_v62 = vld [vmem:[%s19291_s15 + $0x168] ss:$16 sps:$4 sm:$0xff]  }
 0x24b   : > { %v16129_v40 = vadd.f32 %v1703_v23, %v1702_v34  ;;  %1960 = vst [vmem:[%s15822_s4 + $0x10] sm:$0xff] %v1896_v9  ;;  %v1901_v27 = vmul.f32 %v1631_v50, %v15149_v61  ;;  %v1710_v17 = vmul.f32 %v15760_v3, %v1634_v56  ;;  %v1711_v52 = vmul.f32 %v15776_v57, %v1635_v22  ;;  %v19459_v50 = vld [vmem:[#allocation58_spill] sm:$0xff]  ;;  %v19461_v34 = vld [vmem:[#allocation63_spill] sm:$0xff]  ;;  %v19462_v39 = vld [vmem:[#allocation65_spill] sm:$0xff] }
 0x24c   : > { %10084 = vmatpush1.bf16.msra.mxu0 %v12875_v63  ;;  %1961 = vst [vmem:[%s15822_s4 + $0x18] sm:$0xff] %v1897_v38  ;;  %v16139_v42 = vadd.f32 %v1707_v21, %v1706_v28  ;;  %1964 = vst [vmem:[%s15822_s4 + $0x30] sm:$0xff] %v1900_v46  ;;  %v1904_v44 = vmul.f32 %v1634_v56, %v15149_v61  ;;  %v1905_v31 = vmul.f32 %v1635_v22, %v15149_v61  ;;  %v12889_v63 = vld [vmem:[%s19291_s15 + $0xe64] ss:$16 sps:$4 sm:$0xff]   ;;  %v12892_v22 = vld [vmem:[%s19291_s15 + $0x14c] ss:$16 sps:$4 sm:$0xff]  }
 0x24d   : > { %v1638_v15 = vmul.f32 %v15748_v19, %v19458_v18  ;;  %10307 = vmatpush2.bf16.msra.mxu1 %v12878_v41  ;;  %10085 = vmatprep.subr.bf16.mxu0 %v12883_v11  ;;  %1965 = vst [vmem:[%s15822_s4 + $0x38] sm:$0xff] %v1901_v27  ;;  %v16153_v14 = vadd.f32 %v1711_v52, %v1710_v17  ;;  %v19460_v11 = vld [vmem:[#allocation60_spill] sm:$0xff]  ;;  %v12890_v52 = vld [vmem:[%s19291_s15 + $0x148] ss:$16 sps:$4 sm:$0xff]  }
 0x24e   : > { %v1639_v56 = vmul.f32 %v15779_v5, %v19459_v50  ;;  %v1642_v20 = vmul.f32 %v15748_v19, %v15371_v53  ;;  %10308 = vmatprep.subr.bf16.mxu1 %v12886_v12  ;;  %1968 = vst [vmem:[%s15822_s4 + $0x50] sm:$0xff] %v1904_v44  ;;  %1969 = vst [vmem:[%s15822_s4 + $0x58] sm:$0xff] %v1905_v31  ;;  %v1643_v55 = vmul.f32 %v15779_v5, %v19460_v11  ;;  %v12887_v28 = vld [vmem:[%s19291_s15 + $0xe60] ss:$16 sps:$4 sm:$0xff]   ;;  %v19463_v18 = vld [vmem:[#allocation67_spill] sm:$0xff] }
 0x24f   : > { %v1714_v36 = vmul.f32 %v15760_v3, %v1638_v15  ;;  %v1908_v41 = vmul.f32 %v1638_v15, %v15149_v61  ;;  %v1646_v23 = vmul.f32 %v15748_v19, %v19461_v34  ;;  %v1647_v27 = vmul.f32 %v15779_v5, %v19462_v39  ;;  %v19465_v11 = vld [vmem:[#allocation69_spill] sm:$0xff]  ;;  %v19466_v34 = vld [vmem:[#allocation71_spill] sm:$0xff]  ;;  %v12901_v39 = vld [vmem:[%s19291_s15 + $0xe24] ss:$16 sps:$4 sm:$0xff]  }
 0x250   : > { %v1715_v9 = vmul.f32 %v15776_v57, %v1639_v56  ;;  %v1909_v53 = vmul.f32 %v1639_v56, %v15149_v61  ;;  %v1718_v12 = vmul.f32 %v15760_v3, %v1642_v20  ;;  %v1912_v38 = vmul.f32 %v1642_v20, %v15149_v61  ;;  %10086 = vmatpush1.bf16.msra.mxu0 %v12881_v10  ;;  %v12895_v10 = vld [vmem:[%s19291_s15 + $0xe44] ss:$16 sps:$4 sm:$0xff]  }
 0x251   : > { %1972 = vst [vmem:[%s15822_s4 + $0x70] sm:$0xff] %v1908_v41  ;;  %v1719_v21 = vmul.f32 %v15776_v57, %v1643_v55  ;;  %v1913_v46 = vmul.f32 %v1643_v55, %v15149_v61  ;;  %v1722_v17 = vmul.f32 %v15760_v3, %v1646_v23  ;;  %10309 = vmatpush2.bf16.msra.mxu1 %v12884_v62  ;;  %v12898_v62 = vld [vmem:[%s19291_s15 + $0x12c] ss:$16 sps:$4 sm:$0xff]   ;;  %v19464_v20 = vld [vmem:[#allocation68_spill] sm:$0xff] }
 0x252   : > { %10087 = vmatprep.subr.bf16.mxu0 %v12889_v63  ;;  %v16189_v44 = vadd.f32 %v1715_v9, %v1714_v36  ;;  %1973 = vst [vmem:[%s15822_s4 + $0x78] sm:$0xff] %v1909_v53  ;;  %1976 = vst [vmem:[%s15822_s4 + $0x90] sm:$0xff] %v1912_v38  ;;  %v1916_v31 = vmul.f32 %v1646_v23, %v15149_v61  ;;  %v1650_v15 = vmul.f32 %v15748_v19, %v19463_v18  ;;  %v12893_v9 = vld [vmem:[%s19291_s15 + $0xe40] ss:$16 sps:$4 sm:$0xff]  }
 0x253   : > { %10310 = vmatprep.subr.bf16.mxu1 %v12892_v22  ;;  %v16199_v63 = vadd.f32 %v1719_v21, %v1718_v12  ;;  %1977 = vst [vmem:[%s15822_s4 + $0x98] sm:$0xff] %v1913_v46  ;;  %v1723_v50 = vmul.f32 %v15776_v57, %v1647_v27  ;;  %v1917_v56 = vmul.f32 %v1647_v27, %v15149_v61  ;;  %v19467_v21 = vld [vmem:[#allocation31_spill] sm:$0xff] }
 0x254   : > { %v1651_v36 = vmul.f32 %v15779_v5, %v19464_v20  ;;  %1980 = vst [vmem:[%s15822_s4 + $0xb0] sm:$0xff] %v1916_v31  ;;  %v1726_v41 = vmul.f32 %v15760_v3, %v1650_v15  ;;  %v1920_v22 = vmul.f32 %v1650_v15, %v15149_v61  ;;  %v1654_v55 = vmul.f32 %v15748_v19, %v19465_v11  ;;  %v19468_v15 = vld [vmem:[#allocation32_spill] sm:$0xff]  ;;  %v19470_v11 = vld [vmem:[#allocation34_spill] sm:$0xff] }
 0x255   : > { %v1655_v23 = vmul.f32 %v15779_v5, %v19466_v34  ;;  %10088 = vmatpush1.bf16.msra.mxu0 %v12887_v28  ;;  %v16216_v53 = vadd.f32 %v1723_v50, %v1722_v17  ;;  %1981 = vst [vmem:[%s15822_s4 + $0xb8] sm:$0xff] %v1917_v56  ;;  %v1658_v46 = vmul.f32 %v15748_v19, %v19467_v21  ;;  %v12896_v28 = vld [vmem:[%s19291_s15 + $0x128] ss:$16 sps:$4 sm:$0xff]   ;;  %v19472_v21 = vld [vmem:[#allocation38_spill] sm:$0xff] }
 0x256   : > { %v1727_v12 = vmul.f32 %v15776_v57, %v1651_v36  ;;  %v1921_v38 = vmul.f32 %v1651_v36, %v15149_v61  ;;  %10311 = vmatpush2.bf16.msra.mxu1 %v12890_v52  ;;  %10089 = vmatprep.subr.bf16.mxu0 %v12895_v10  ;;  %1984 = vst [vmem:[%s15822_s4 + $0xd0] sm:$0xff] %v1920_v22  ;;  %v12904_v52 = vld [vmem:[%s19291_s15 + $0x10c] ss:$16 sps:$4 sm:$0xff]  }
 0x257   : > { %v1730_v27 = vmul.f32 %v15760_v3, %v1654_v55  ;;  %v1731_v17 = vmul.f32 %v15776_v57, %v1655_v23  ;;  %v1924_v31 = vmul.f32 %v1654_v55, %v15149_v61  ;;  %10312 = vmatprep.subr.bf16.mxu1 %v12898_v62  ;;  %v1925_v18 = vmul.f32 %v1655_v23, %v15149_v61  ;;  %v19469_v36 = vld [vmem:[#allocation33_spill] sm:$0xff]  ;;  %v12899_v55 = vld [vmem:[%s19291_s15 + $0xe20] ss:$16 sps:$4 sm:$0xff]  }
 0x258   : > { %v16236_v10 = vadd.f32 %v1727_v12, %v1726_v41  ;;  %1985 = vst [vmem:[%s15822_s4 + $0xd8] sm:$0xff] %v1921_v38  ;;  %v1659_v50 = vmul.f32 %v15779_v5, %v19468_v15  ;;  %v1734_v56 = vmul.f32 %v15760_v3, %v1658_v46  ;;  %v1928_v62 = vmul.f32 %v1658_v46, %v15149_v61  ;;  %v19471_v12 = vld [vmem:[#allocation36_spill] sm:$0xff] }
 0x259   : > { %v16243_v20 = vadd.f32 %v1731_v17, %v1730_v27  ;;  %1988 = vst [vmem:[%s15822_s4 + $0xf0] sm:$0xff] %v1924_v31  ;;  %v1662_v22 = vmul.f32 %v15748_v19, %v19469_v36  ;;  %v1663_v41 = vmul.f32 %v15779_v5, %v19470_v11  ;;  %10090 = vmatpush1.bf16.msra.mxu0 %v12893_v9  ;;  %1989 = vst [vmem:[%s15822_s4 + $0xf8] sm:$0xff] %v1925_v18  ;;  %v12902_v9 = vld [vmem:[%s19291_s15 + $0x108] ss:$16 sps:$4 sm:$0xff]   ;;  %v12907_v27 = vld [vmem:[%s19291_s15 + $0xe04] ss:$16 sps:$4 sm:$0xff]  }
 0x25a   : > { %v1735_v34 = vmul.f32 %v15776_v57, %v1659_v50  ;;  %v1929_v23 = vmul.f32 %v1659_v50, %v15149_v61  ;;  %v1666_v38 = vmul.f32 %v15748_v19, %v19471_v12  ;;  %v1667_v46 = vmul.f32 %v15779_v5, %v19472_v21  ;;  %10313 = vmatpush2.bf16.msra.mxu1 %v12896_v28  ;;  %v12910_v28 = vld [vmem:[%s19291_s15 + $0x4ec] ss:$16 sps:$4 sm:$0xff]  }
 0x25b   : > { %10091 = vmatprep.subr.bf16.mxu0 %v12901_v39  ;;  %1992 = vst [vmem:[%s15822_s4 + $0x110] sm:$0xff] %v1928_v62  ;;  %v1738_v17 = vmul.f32 %v15760_v3, %v1662_v22  ;;  %v1739_v31 = vmul.f32 %v15776_v57, %v1663_v41  ;;  %v1932_v18 = vmul.f32 %v1662_v22, %v15149_v61  ;;  %v19473_v11 = vld [vmem:[#allocation39_spill] sm:$0xff] }
 0x25c   : > { %10314 = vmatprep.subr.bf16.mxu1 %v12904_v52  ;;  %v16274_v39 = vadd.f32 %v1735_v34, %v1734_v56  ;;  %1993 = vst [vmem:[%s15822_s4 + $0x118] sm:$0xff] %v1929_v23  ;;  %v1933_v15 = vmul.f32 %v1663_v41, %v15149_v61  ;;  %v1742_v50 = vmul.f32 %v15760_v3, %v1666_v38  ;;  %v12905_v41 = vld [vmem:[%s19291_s15 + $0xe00] ss:$16 sps:$4 sm:$0xff]  }
 0x25d   : > { %v1743_v62 = vmul.f32 %v15776_v57, %v1667_v46  ;;  %v16280_v36 = vadd.f32 %v1739_v31, %v1738_v17  ;;  %1996 = vst [vmem:[%s15822_s4 + $0x130] sm:$0xff] %v1932_v18  ;;  %v1936_v52 = vmul.f32 %v1666_v38, %v15149_v61  ;;  %v1937_v22 = vmul.f32 %v1667_v46, %v15149_v61  ;;  %v19474_v23 = vld [vmem:[#allocation40_spill] sm:$0xff]  ;;  %v19475_v31 = vld [vmem:[#allocation41_spill] sm:$0xff] }
 0x25e   : > { %v1670_v56 = vmul.f32 %v15748_v19, %v19473_v11  ;;  %10092 = vmatpush1.bf16.msra.mxu0 %v12899_v55  ;;  %1997 = vst [vmem:[%s15822_s4 + $0x138] sm:$0xff] %v1933_v15  ;;  %v1671_v12 = vmul.f32 %v15779_v5, %v19474_v23  ;;  %v1674_v21 = vmul.f32 %v15748_v19, %v15696_v8  ;;  %v12908_v55 = vld [vmem:[%s19291_s15 + $0x4e8] ss:$16 sps:$4 sm:$0xff]   ;;  %v12913_v46 = vld [vmem:[%s19291_s15 + $0xfe4] ss:$16 sps:$4 sm:$0xff]  }
 0x25f   : > { %v16291_v34 = vadd.f32 %v1743_v62, %v1742_v50  ;;  %v1675_v38 = vmul.f32 %v15779_v5, %v15706_v45  ;;  %10315 = vmatpush2.bf16.msra.mxu1 %v12902_v9  ;;  %10093 = vmatprep.subr.bf16.mxu0 %v12907_v27  ;;  %2000 = vst [vmem:[%s15822_s4 + $0x150] sm:$0xff] %v1936_v52  ;;  %2001 = vst [vmem:[%s15822_s4 + $0x158] sm:$0xff] %v1937_v22  ;;  %v12916_v9 = vld [vmem:[%s19291_s15 + $0x4cc] ss:$16 sps:$4 sm:$0xff]   ;;  %v12911_v23 = vld [vmem:[%s19291_s15 + $0xfe0] ss:$16 sps:$4 sm:$0xff]  }
 0x260   : > { %v1746_v17 = vmul.f32 %v15760_v3, %v1670_v56  ;;  %v1940_v8 = vmul.f32 %v1670_v56, %v15149_v61  ;;  %v1678_v45 = vmul.f32 %v15748_v19, %v19475_v31  ;;  %10366 = vmatprep.subr.bf16.mxu1 %v12910_v28  ;;  %v1747_v27 = vmul.f32 %v15776_v57, %v1671_v12  ;;  %v19476_v28 = vld [vmem:[#allocation42_spill] sm:$0xff]  ;;  %v19477_v56 = vld [vmem:[#allocation27_spill] sm:$0xff] }
 0x261   : > { %v1941_v18 = vmul.f32 %v1671_v12, %v15149_v61  ;;  %v1750_v15 = vmul.f32 %v15760_v3, %v1674_v21  ;;  %v1751_v50 = vmul.f32 %v15776_v57, %v1675_v38  ;;  %v1944_v62 = vmul.f32 %v1674_v21, %v15149_v61 }
 0x262   : > { %2004 = vst [vmem:[%s15822_s4 + $0x170] sm:$0xff] %v1940_v8  ;;  %v1945_v52 = vmul.f32 %v1675_v38, %v15149_v61  ;;  %v1679_v22 = vmul.f32 %v15779_v5, %v19476_v28  ;;  %v1754_v11 = vmul.f32 %v15760_v3, %v1678_v45  ;;  %10094 = vmatpush1.bf16.msra.mxu0 %v12905_v41  ;;  %v12914_v41 = vld [vmem:[%s19291_s15 + $0x4c8] ss:$16 sps:$4 sm:$0xff]   ;;  %v12919_v8 = vld [vmem:[%s19291_s15 + $0xfc4] ss:$16 sps:$4 sm:$0xff]  }
 0x263   : > { %10317 = vmatmul.mubr.bf16.vlgmr.msra.gmra.mxu1 %v19477_v56  ;;  %v16328_v12 = vadd.f32 %v1747_v27, %v1746_v17  ;;  %2005 = vst [vmem:[%s15822_s4 + $0x178] sm:$0xff] %v1941_v18  ;;  %v16331_v21 = vadd.f32 %v1751_v50, %v1750_v15  ;;  %v1948_v38 = vmul.f32 %v1678_v45, %v15149_v61  ;;  %2008 = vst [vmem:[%s15822_s4 + $0x190] sm:$0xff] %v1944_v62  ;;  %v19478_v27 = vld [vmem:[#allocation43_spill] sm:$0xff] }
 0x264   : > { %10367 = vmatpush1.bf16.msra.mxu1 %v12908_v55  ;;  %10095 = vmatprep.subr.bf16.mxu0 %v12913_v46  ;;  %2009 = vst [vmem:[%s15822_s4 + $0x198] sm:$0xff] %v1945_v52  ;;  %v1755_v17 = vmul.f32 %v15776_v57, %v1679_v22  ;;  %v1949_v31 = vmul.f32 %v1679_v22, %v15149_v61  ;;  %v12922_v55 = vld [vmem:[%s19291_s15 + $0x4ac] ss:$16 sps:$4 sm:$0xff]   ;;  %v12925_v22 = vld [vmem:[%s19291_s15 + $0xfa4] ss:$16 sps:$4 sm:$0xff]  }
 0x265   : > { %v1682_v45 = vmul.f32 %v15748_v19, %v19478_v27  ;;  %10368 = vmatprep.subr.bf16.mxu1 %v12916_v9  ;;  %v19479_v46 = vld [vmem:[#allocation21_spill] sm:$0xff]  ;;  %2012 = vst [vmem:[%s15822_s4 + $0x1b0] sm:$0xff] %v1948_v38  ;;  %v1683_v18 = vmul.f32 %v15779_v5, %v16021_v51  ;;  %v1686_v15 = vmul.f32 %v15748_v19, %v16055_v58  ;;  %v12917_v51 = vld [vmem:[%s19291_s15 + $0xfc0] ss:$16 sps:$4 sm:$0xff]  }
 0x266   : > { %10398 = vmatprep.mubr.bf16.mxu1 %v19479_v46  ;;  %v1687_v50 = vmul.f32 %v15779_v5, %v16059_v33  ;;  %v16357_v62 = vadd.f32 %v1755_v17, %v1754_v11  ;;  %2013 = vst [vmem:[%s15822_s4 + $0x1b8] sm:$0xff] %v1949_v31  ;;  %10096 = vmatpush2.bf16.msra.mxu0 %v12911_v23  ;;  %v12920_v33 = vld [vmem:[%s19291_s15 + $0x4a8] ss:$16 sps:$4 sm:$0xff]   ;;  %v12923_v38 = vld [vmem:[%s19291_s15 + $0xfa0] ss:$16 sps:$4 sm:$0xff]  }
 0x267   : > { %v1758_v9 = vmul.f32 %v15760_v3, %v1682_v45  ;;  %v1952_v52 = vmul.f32 %v1682_v45, %v15149_v61  ;;  %v1759_v28 = vmul.f32 %v15776_v57, %v1683_v18  ;;  %v1953_v19 = vmul.f32 %v1683_v18, %v15149_v61  ;;  %10097 = vmatprep.subr.bf16.mxu0 %v12919_v8  ;;  %v12931_v8 = vld [vmem:[%s19291_s15 + $0xf84] ss:$16 sps:$4 sm:$0xff]   ;;  %v12934_v17 = vld [vmem:[%s19291_s15 + $0x46c] ss:$16 sps:$4 sm:$0xff]   ;;  %v12929_v31 = vld [vmem:[%s19291_s15 + $0xf80] ss:$16 sps:$4 sm:$0xff]  }
 0x268   : > { %v1762_v5 = vmul.f32 %v15760_v3, %v1686_v15  ;;  %v1763_v58 = vmul.f32 %v15776_v57, %v1687_v50  ;;  %10369 = vmatpush1.bf16.msra.mxu1 %v12914_v41  ;;  %v1956_v11 = vmul.f32 %v1686_v15, %v15149_v61  ;;  %v1957_v56 = vmul.f32 %v1687_v50, %v15149_v61  ;;  %v12928_v3 = vld [vmem:[%s19291_s15 + $0x48c] ss:$16 sps:$4 sm:$0xff]   ;;  %v12926_v41 = vld [vmem:[%s19291_s15 + $0x488] ss:$16 sps:$4 sm:$0xff]   ;;  %v12937_v45 = vld [vmem:[%s19291_s15 + $0xf64] ss:$16 sps:$4 sm:$0xff]  }
 0x269   : > { %2016 = vst [vmem:[%s15822_s4 + $0x1d0] sm:$0xff] %v1952_v52  ;;  %10370 = vmatprep.subr.bf16.mxu1 %v12922_v55  ;;  %v16381_v57 = vadd.f32 %v1759_v28, %v1758_v9  ;;  %2017 = vst [vmem:[%s15822_s4 + $0x1d8] sm:$0xff] %v1953_v19  ;;  %v12932_v27 = vld [vmem:[%s19291_s15 + $0x468] ss:$16 sps:$4 sm:$0xff]   ;;  %v12940_v55 = vld [vmem:[%s19291_s15 + $0x44c] ss:$16 sps:$4 sm:$0xff]  }
 0x26a   : > { %v16384_v23 = vadd.f32 %v1763_v58, %v1762_v5  ;;  %2020 = vst [vmem:[%s15822_s4 + $0x1f0] sm:$0xff] %v1956_v11  ;;  %2021 = vst [vmem:[%s15822_s4 + $0x1f8] sm:$0xff] %v1957_v56  ;;  %10098 = vmatpush2.bf16.msra.mxu0 %v12917_v51  ;;  %v12935_v46 = vld [vmem:[%s19291_s15 + $0xf60] ss:$16 sps:$4 sm:$0xff]   ;;  %v12938_v18 = vld [vmem:[%s19291_s15 + $0x448] ss:$16 sps:$4 sm:$0xff]  }
 0x26b   : > { %19480 = vst [vmem:[#allocation44_spill] sm:$0xff] %v16381_v57  ;;  %10099 = vmatprep.subr.bf16.mxu0 %v12925_v22  ;;  %v12943_v15 = vld [vmem:[%s19291_s15 + $0xf44] ss:$16 sps:$4 sm:$0xff]   ;;  %v12946_v50 = vld [vmem:[%s19291_s15 + $0x42c] ss:$16 sps:$4 sm:$0xff]  }
 0x26c   : > { %19481 = vst [vmem:[#allocation47_spill] sm:$0xff] %v16384_v23  ;;  %10371 = vmatpush1.bf16.msra.mxu1 %v12920_v33  ;;  %v12941_v9 = vld [vmem:[%s19291_s15 + $0xf40] ss:$16 sps:$4 sm:$0xff]   ;;  %v12944_v52 = vld [vmem:[%s19291_s15 + $0x428] ss:$16 sps:$4 sm:$0xff]  }
 0x26d   : > { %10372 = vmatprep.subr.bf16.mxu1 %v12928_v3  ;;  %v12949_v51 = vld [vmem:[%s19291_s15 + $0xf24] ss:$16 sps:$4 sm:$0xff]   ;;  %v12952_v28 = vld [vmem:[%s19291_s15 + $0x40c] ss:$16 sps:$4 sm:$0xff]   ;;  %v12947_v19 = vld [vmem:[%s19291_s15 + $0xf20] ss:$16 sps:$4 sm:$0xff]  }
 0x26e   : > { %10100 = vmatpush2.bf16.msra.mxu0 %v12923_v38  ;;  %v12950_v5 = vld [vmem:[%s19291_s15 + $0x408] ss:$16 sps:$4 sm:$0xff]   ;;  %v12955_v58 = vld [vmem:[%s19291_s15 + $0xf04] ss:$16 sps:$4 sm:$0xff]   ;;  %v12958_v33 = vld [vmem:[%s19291_s15 + $0x5ec] ss:$16 sps:$4 sm:$0xff]  }
 0x26f   : > { %10101 = vmatprep.subr.bf16.mxu0 %v12931_v8  ;;  %v5756_v22 = vld [vmem:[%s19292_s16] sm:$0xf]  ;;  %v12956_v56 = vld [vmem:[%s19291_s15 + $0x5e8] ss:$16 sps:$4 sm:$0xff]   ;;  %v12961_v3 = vld [vmem:[%s19291_s15 + $0x12e4] ss:$16 sps:$4 sm:$0xff]  }
 0x270   : > { %10373 = vmatpush1.bf16.msra.mxu1 %v12926_v41  ;;  %v12953_v11 = vld [vmem:[%s19291_s15 + $0xf00] ss:$16 sps:$4 sm:$0xff]   ;;  %v12964_v8 = vld [vmem:[%s19291_s15 + $0x5cc] ss:$16 sps:$4 sm:$0xff]   ;;  %v13157_v23 = vld [vmem:[%s19291_s15 + $0x2c8] ss:$16 sps:$4 sm:$0xff]  }
 0x271   : > { %10374 = vmatprep.subr.bf16.mxu1 %v12934_v17  ;;  %v19482_v38 = vld [vmem:[#allocation18_spill] sm:$0xff]  ;;  %v19483_v17 = vld [vmem:[#allocation29_spill] sm:$0xff]  ;;  %v19494_v57 = vld [vmem:[#allocation28_spill] sm:$0xff] }
 0x272   : > { %10102 = vmatpush2.bf16.msra.mxu0 %v12929_v31  ;;  %v9775_v41 = vrot.slane %v5756_v22, %v19482_v38  ;;  %v16466_v31 = vcombine.high %v19483_v17, %v19483_v17 }
 0x273   : > { %10103 = vmatprep.subr.bf16.mxu0 %v12937_v45 }
 0x274   : > { %10375 = vmatpush1.bf16.msra.mxu1 %v12932_v27  ;;  %v19484_v27 = vld [vmem:[#allocation17_spill] sm:$0xff] }
 0x275   : > { %10376 = vmatprep.subr.bf16.mxu1 %v12940_v55  ;;  %v9779_v45 = vrot.slane %v5756_v22, %v19484_v27  ;;  %v12959_v55 = vld [vmem:[%s19291_s15 + $0x12e0] ss:$16 sps:$4 sm:$0xff]  }
 0x276   : > { %10104 = vmatpush2.bf16.msra.mxu0 %v12935_v46  ;;  %v19485_v46 = vld [vmem:[#allocation30_spill] sm:$0xff] }
 0x277   : > { %10105 = vmatprep.subr.bf16.mxu0 %v12943_v15  ;;  %v12962_v15 = vld [vmem:[%s19291_s15 + $0x5c8] ss:$16 sps:$4 sm:$0xff]  }
 0x278   : > { %10377 = vmatpush1.bf16.msra.mxu1 %v12938_v18  ;;  %v16474_v18 = vcombine.high %v19485_v46, %v19485_v46 }
 0x279   : > { %10378 = vmatprep.subr.bf16.mxu1 %v12946_v50  ;;  %v12967_v50 = vld [vmem:[%s19291_s15 + $0x12c4] ss:$16 sps:$4 sm:$0xff]  }
 0x27a   : > { %10106 = vmatpush2.bf16.msra.mxu0 %v12941_v9  ;;  %v9827_v9 = vadd.f32 %v16042_v7, %v9775_v41  ;;  %v12971_v41 = vld [vmem:[%s19291_s15 + $0x12a0] ss:$16 sps:$4 sm:$0xff]  }
 0x27b   : > { %10107 = vmatprep.subr.bf16.mxu0 %v12949_v51 }
 0x27c   : > { %10379 = vmatpush1.bf16.msra.mxu1 %v12944_v52  ;;  %v12970_v52 = vld [vmem:[%s19291_s15 + $0x5ac] ss:$16 sps:$4 sm:$0xff]  }
 0x27d   : > { %10380 = vmatprep.subr.bf16.mxu1 %v12952_v28  ;;  %v9829_v28 = vadd.f32 %v16068_v54, %v9779_v45  ;;  %v12973_v54 = vld [vmem:[%s19291_s15 + $0x12a4] ss:$16 sps:$4 sm:$0xff]   ;;  %v12974_v45 = vld [vmem:[%s19291_s15 + $0x588] ss:$16 sps:$4 sm:$0xff]  }
 0x27e   : > { %10108 = vmatpush2.bf16.msra.mxu0 %v12947_v19 }
 0x27f   : > { %10109 = vmatprep.subr.bf16.mxu0 %v12955_v58  ;;  %v9867_v51 = vpop.f32.mrf.mxu0  ;;  %v12968_v58 = vld [vmem:[%s19291_s15 + $0x5a8] ss:$16 sps:$4 sm:$0xff]  }
 0x280   : > { %10381 = vmatpush1.bf16.msra.mxu1 %v12950_v5  ;;  %v16488_v19 = vadd.f32 %v9867_v51, %v9827_v9  ;;  %v12965_v5 = vld [vmem:[%s19291_s15 + $0x12c0] ss:$16 sps:$4 sm:$0xff]   ;;  %v12980_v51 = vld [vmem:[%s19291_s15 + $0x568] ss:$16 sps:$4 sm:$0xff]  }
 0x281   : > { %10382 = vmatprep.subr.bf16.mxu1 %v12958_v33  ;;  %v9869_v7 = vpop.f32.mrf.mxu0  ;;  %v16500_v33 = vpop.f32.mrf.mxu1 }
 0x282   : > { %10110 = vmatpush2.bf16.msra.mxu0 %v12953_v11  ;;  %v16502_v22 = vadd.f32 %v9869_v7, %v9829_v28  ;;  %v12976_v11 = vld [vmem:[%s19291_s15 + $0x58c] ss:$16 sps:$4 sm:$0xff]   ;;  %v12985_v28 = vld [vmem:[%s19291_s15 + $0x1264] ss:$16 sps:$4 sm:$0xff]   ;;  %v12983_v7 = vld [vmem:[%s19291_s15 + $0x1260] ss:$16 sps:$4 sm:$0xff]  }
 0x283   : > { %10161 = vmatprep.subr.bf16.mxu0 %v12961_v3  ;;  %v16507_v3 = vpop.f32.mrf.mxu1 }
 0x284   : > { %10383 = vmatpush2.bf16.msra.mxu1 %v12956_v56  ;;  %v9871_v56 = vpop.f32.mrf.mxu0 }
 0x285   : > { %10384 = vmatprep.subr.bf16.mxu1 %v12964_v8  ;;  %10112 = vmatmul.mubr.bf16.vlgmr.msra.gmra.mxu0 %v16466_v31  ;;  %v12989_v56 = vld [vmem:[%s19291_s15 + $0x1240] ss:$16 sps:$4 sm:$0xff]  }
 0x286   : > { %10162 = vmatpush1.bf16.msra.mxu0 %v12959_v55  ;;  %10193 = vmatprep.mubr.bf16.mxu0 %v16474_v18  ;;  %v9872_v8 = vpop.f32.mrf.mxu0  ;;  %v12979_v55 = vld [vmem:[%s19291_s15 + $0x1284] ss:$16 sps:$4 sm:$0xff]  }
 0x287   : > { %10163 = vmatprep.subr.bf16.mxu0 %v12967_v50  ;;  %v12982_v50 = vld [vmem:[%s19291_s15 + $0x56c] ss:$16 sps:$4 sm:$0xff]   ;;  %v12997_v8 = vld [vmem:[%s19291_s15 + $0x1224] ss:$16 sps:$4 sm:$0xff]  }
 0x288   : > { %10385 = vmatpush2.bf16.msra.mxu1 %v12962_v15  ;;  %v10076_v15 = vpop.f32.mrf.mxu1 }
 0x289   : > { %10386 = vmatprep.subr.bf16.mxu1 %v12970_v52  ;;  %v12977_v52 = vld [vmem:[%s19291_s15 + $0x1280] ss:$16 sps:$4 sm:$0xff]   ;;  %v12998_v15 = vld [vmem:[%s19291_s15 + $0x508] ss:$16 sps:$4 sm:$0xff]  }
 0x28a   : > { %10164 = vmatpush1.bf16.msra.mxu0 %v12965_v5  ;;  %v10077_v9 = vpop.f32.mrf.mxu1  ;;  %v12988_v5 = vld [vmem:[%s19291_s15 + $0x54c] ss:$16 sps:$4 sm:$0xff]  }
 0x28b   : > { %10165 = vmatprep.subr.bf16.mxu0 %v12973_v54  ;;  %v12991_v54 = vld [vmem:[%s19291_s15 + $0x1244] ss:$16 sps:$4 sm:$0xff]   ;;  %v13006_v9 = vld [vmem:[%s19291_s15 + $0x8ec] ss:$16 sps:$4 sm:$0xff]  }
 0x28c   : > { %10387 = vmatpush2.bf16.msra.mxu1 %v12968_v58  ;;  %v12986_v58 = vld [vmem:[%s19291_s15 + $0x548] ss:$16 sps:$4 sm:$0xff]  }
 0x28d   : > { %10388 = vmatprep.subr.bf16.mxu1 %v12976_v11  ;;  %v12994_v11 = vld [vmem:[%s19291_s15 + $0x52c] ss:$16 sps:$4 sm:$0xff]  }
 0x28e   : > { %10166 = vmatpush1.bf16.msra.mxu0 %v12971_v41  ;;  %v12992_v41 = vld [vmem:[%s19291_s15 + $0x528] ss:$16 sps:$4 sm:$0xff]  }
 0x28f   : > { %10167 = vmatprep.subr.bf16.mxu0 %v12979_v55  ;;  %v12995_v55 = vld [vmem:[%s19291_s15 + $0x1220] ss:$16 sps:$4 sm:$0xff]  }
 0x290   : > { %10389 = vmatpush2.bf16.msra.mxu1 %v12974_v45  ;;  %v13000_v45 = vld [vmem:[%s19291_s15 + $0x50c] ss:$16 sps:$4 sm:$0xff]  }
 0x291   : > { %10390 = vmatprep.subr.bf16.mxu1 %v12982_v50  ;;  %v13003_v50 = vld [vmem:[%s19291_s15 + $0x1204] ss:$16 sps:$4 sm:$0xff]  }
 0x292   : > { %10168 = vmatpush1.bf16.msra.mxu0 %v12977_v52  ;;  %v13001_v52 = vld [vmem:[%s19291_s15 + $0x1200] ss:$16 sps:$4 sm:$0xff]  }
 0x293   : > { %10169 = vmatprep.subr.bf16.mxu0 %v12985_v28  ;;  %v13009_v28 = vld [vmem:[%s19291_s15 + $0x13e4] ss:$16 sps:$4 sm:$0xff]  }
 0x294   : > { %10391 = vmatpush2.bf16.msra.mxu1 %v12980_v51  ;;  %v13004_v51 = vld [vmem:[%s19291_s15 + $0x8e8] ss:$16 sps:$4 sm:$0xff]  }
 0x295   : > { %10392 = vmatprep.subr.bf16.mxu1 %v12988_v5  ;;  %v13012_v5 = vld [vmem:[%s19291_s15 + $0x8cc] ss:$16 sps:$4 sm:$0xff]  }
 0x296   : > { %10170 = vmatpush1.bf16.msra.mxu0 %v12983_v7  ;;  %v19486_v7 = vld [vmem:[#allocation22_spill] sm:$0xff] }
 0x297   : > { %10171 = vmatprep.subr.bf16.mxu0 %v12991_v54  ;;  %v13010_v54 = vld [vmem:[%s19291_s15 + $0x8c8] ss:$16 sps:$4 sm:$0xff]  }
 0x298   : > { %10393 = vmatpush2.bf16.msra.mxu1 %v12986_v58  ;;  %v13007_v58 = vld [vmem:[%s19291_s15 + $0x13e0] ss:$16 sps:$4 sm:$0xff]  }
 0x299   : > { %10394 = vmatprep.subr.bf16.mxu1 %v12994_v11  ;;  %v13015_v11 = vld [vmem:[%s19291_s15 + $0x13c4] ss:$16 sps:$4 sm:$0xff]  }
 0x29a   : > { %10172 = vmatpush1.bf16.msra.mxu0 %v12989_v56  ;;  %v13018_v56 = vld [vmem:[%s19291_s15 + $0x8ac] ss:$16 sps:$4 sm:$0xff]  }
 0x29b   : > { %10173 = vmatprep.subr.bf16.mxu0 %v12997_v8  ;;  %v13013_v8 = vld [vmem:[%s19291_s15 + $0x13c0] ss:$16 sps:$4 sm:$0xff]  }
 0x29c   : > { %10395 = vmatpush2.bf16.msra.mxu1 %v12992_v41  ;;  %v19487_v41 = vld [vmem:[#allocation23_spill] sm:$0xff] }
 0x29d   : > { %10396 = vmatprep.subr.bf16.mxu1 %v13000_v45  ;;  %v13016_v45 = vld [vmem:[%s19291_s15 + $0x8a8] ss:$16 sps:$4 sm:$0xff]  }
 0x29e   : > { %10174 = vmatpush1.bf16.msra.mxu0 %v12995_v55  ;;  %v13021_v55 = vld [vmem:[%s19291_s15 + $0x13a4] ss:$16 sps:$4 sm:$0xff]  }
 0x29f   : > { %10175 = vmatprep.subr.bf16.mxu0 %v13003_v50  ;;  %v13019_v50 = vld [vmem:[%s19291_s15 + $0x13a0] ss:$16 sps:$4 sm:$0xff]  }
 0x2a0   : > { %10397 = vmatpush2.bf16.msra.mxu1 %v12998_v15  ;;  %v13024_v15 = vld [vmem:[%s19291_s15 + $0x88c] ss:$16 sps:$4 sm:$0xff]  }
 0x2a1   : > { %10448 = vmatprep.subr.bf16.mxu1 %v13006_v9  ;;  %v13022_v9 = vld [vmem:[%s19291_s15 + $0x888] ss:$16 sps:$4 sm:$0xff]  }
 0x2a2   : > { %10176 = vmatpush1.bf16.msra.mxu0 %v13001_v52  ;;  %v13027_v52 = vld [vmem:[%s19291_s15 + $0x1384] ss:$16 sps:$4 sm:$0xff]  }
 0x2a3   : > { %10399 = vmatmul.mubr.bf16.vlgmr.msra.gmra.mxu1 %v19486_v7  ;;  %10177 = vmatprep.subr.bf16.mxu0 %v13009_v28  ;;  %v13025_v28 = vld [vmem:[%s19291_s15 + $0x1380] ss:$16 sps:$4 sm:$0xff]   ;;  %v13033_v7 = vld [vmem:[%s19291_s15 + $0x1364] ss:$16 sps:$4 sm:$0xff]  }
 0x2a4   : > { %10449 = vmatpush1.bf16.msra.mxu1 %v13004_v51  ;;  %10480 = vmatprep.mubr.bf16.mxu1 %v19487_v41  ;;  %v13030_v51 = vld [vmem:[%s19291_s15 + $0x86c] ss:$16 sps:$4 sm:$0xff]  }
 0x2a5   : > { %10450 = vmatprep.subr.bf16.mxu1 %v13012_v5  ;;  %v13028_v5 = vld [vmem:[%s19291_s15 + $0x868] ss:$16 sps:$4 sm:$0xff]   ;;  %v13042_v41 = vld [vmem:[%s19291_s15 + $0x82c] ss:$16 sps:$4 sm:$0xff]  }
 0x2a6   : > { %10178 = vmatpush2.bf16.msra.mxu0 %v13007_v58  ;;  %v13036_v58 = vld [vmem:[%s19291_s15 + $0x84c] ss:$16 sps:$4 sm:$0xff]  }
 0x2a7   : > { %10179 = vmatprep.subr.bf16.mxu0 %v13015_v11  ;;  %v13034_v11 = vld [vmem:[%s19291_s15 + $0x848] ss:$16 sps:$4 sm:$0xff]  }
 0x2a8   : > { %10451 = vmatpush1.bf16.msra.mxu1 %v13010_v54  ;;  %v13031_v54 = vld [vmem:[%s19291_s15 + $0x1360] ss:$16 sps:$4 sm:$0xff]  }
 0x2a9   : > { %10452 = vmatprep.subr.bf16.mxu1 %v13018_v56  ;;  %v13039_v56 = vld [vmem:[%s19291_s15 + $0x1344] ss:$16 sps:$4 sm:$0xff]  }
 0x2aa   : > { %10180 = vmatpush2.bf16.msra.mxu0 %v13013_v8  ;;  %v13037_v8 = vld [vmem:[%s19291_s15 + $0x1340] ss:$16 sps:$4 sm:$0xff]  }
 0x2ab   : > { %10181 = vmatprep.subr.bf16.mxu0 %v13021_v55  ;;  %v13045_v55 = vld [vmem:[%s19291_s15 + $0x1324] ss:$16 sps:$4 sm:$0xff]  }
 0x2ac   : > { %10453 = vmatpush1.bf16.msra.mxu1 %v13016_v45  ;;  %v13040_v45 = vld [vmem:[%s19291_s15 + $0x828] ss:$16 sps:$4 sm:$0xff]  }
 0x2ad   : > { %10454 = vmatprep.subr.bf16.mxu1 %v13024_v15  ;;  %v13048_v15 = vld [vmem:[%s19291_s15 + $0x80c] ss:$16 sps:$4 sm:$0xff]  }
 0x2ae   : > { %10182 = vmatpush2.bf16.msra.mxu0 %v13019_v50  ;;  %v13043_v50 = vld [vmem:[%s19291_s15 + $0x1320] ss:$16 sps:$4 sm:$0xff]  }
 0x2af   : > { %10183 = vmatprep.subr.bf16.mxu0 %v13027_v52  ;;  %v13051_v52 = vld [vmem:[%s19291_s15 + $0x1304] ss:$16 sps:$4 sm:$0xff]  }
 0x2b0   : > { %10455 = vmatpush1.bf16.msra.mxu1 %v13022_v9  ;;  %v13046_v9 = vld [vmem:[%s19291_s15 + $0x808] ss:$16 sps:$4 sm:$0xff]  }
 0x2b1   : > { %10456 = vmatprep.subr.bf16.mxu1 %v13030_v51  ;;  %v13054_v51 = vld [vmem:[%s19291_s15 + $0x9ec] ss:$16 sps:$4 sm:$0xff]  }
 0x2b2   : > { %10184 = vmatpush2.bf16.msra.mxu0 %v13025_v28  ;;  %v13049_v28 = vld [vmem:[%s19291_s15 + $0x1300] ss:$16 sps:$4 sm:$0xff]  }
 0x2b3   : > { %10185 = vmatprep.subr.bf16.mxu0 %v13033_v7  ;;  %v13057_v7 = vld [vmem:[%s19291_s15 + $0x16e4] ss:$16 sps:$4 sm:$0xff]  }
 0x2b4   : > { %10457 = vmatpush1.bf16.msra.mxu1 %v13028_v5  ;;  %v13052_v5 = vld [vmem:[%s19291_s15 + $0x9e8] ss:$16 sps:$4 sm:$0xff]  }
 0x2b5   : > { %10458 = vmatprep.subr.bf16.mxu1 %v13036_v58  ;;  %v13060_v58 = vld [vmem:[%s19291_s15 + $0x9cc] ss:$16 sps:$4 sm:$0xff]  }
 0x2b6   : > { %10186 = vmatpush2.bf16.msra.mxu0 %v13031_v54  ;;  %v19488_v54 = vld [vmem:[#allocation45_spill] sm:$0xff] }
 0x2b7   : > { %10187 = vmatprep.subr.bf16.mxu0 %v13039_v56  ;;  %v13055_v56 = vld [vmem:[%s19291_s15 + $0x16e0] ss:$16 sps:$4 sm:$0xff]  }
 0x2b8   : > { %10459 = vmatpush1.bf16.msra.mxu1 %v13034_v11  ;;  %v16681_v11 = vcombine.high %v19488_v54, %v19488_v54 }
 0x2b9   : > { %10460 = vmatprep.subr.bf16.mxu1 %v13042_v41  ;;  %v19489_v41 = vld [vmem:[#allocation46_spill] sm:$0xff] }
 0x2ba   : > { %10188 = vmatpush2.bf16.msra.mxu0 %v13037_v8  ;;  %v16688_v8 = vcombine.high %v19489_v41, %v19489_v41 }
 0x2bb   : > { %10189 = vmatprep.subr.bf16.mxu0 %v13045_v55  ;;  %v13063_v55 = vld [vmem:[%s19291_s15 + $0x16c4] ss:$16 sps:$4 sm:$0xff]  }
 0x2bc   : > { %10461 = vmatpush1.bf16.msra.mxu1 %v13040_v45  ;;  %v13058_v45 = vld [vmem:[%s19291_s15 + $0x9c8] ss:$16 sps:$4 sm:$0xff]  }
 0x2bd   : > { %10462 = vmatprep.subr.bf16.mxu1 %v13048_v15  ;;  %v19490_v15 = vld [vmem:[#allocation62_spill] sm:$0xff] }
 0x2be   : > { %10190 = vmatpush2.bf16.msra.mxu0 %v13043_v50  ;;  %v9909_v50 = vadd.f32 %v19490_v15, %v16488_v19  ;;  %v16716_v15 = vpop.f32.mrf.mxu1 }
 0x2bf   : > { %10191 = vmatprep.subr.bf16.mxu0 %v13051_v52  ;;  %v9949_v52 = vpop.f32.mrf.mxu0 }
 0x2c0   : > { %10463 = vmatpush1.bf16.msra.mxu1 %v13046_v9  ;;  %v13066_v9 = vld [vmem:[%s19291_s15 + $0x9ac] ss:$16 sps:$4 sm:$0xff]  }
 0x2c1   : > { %10464 = vmatprep.subr.bf16.mxu1 %v13054_v51  ;;  %v19491_v51 = vld [vmem:[#allocation66_spill] sm:$0xff]  ;;  %v9951_v19 = vpop.f32.mrf.mxu0 }
 0x2c2   : > { %10192 = vmatpush2.bf16.msra.mxu0 %v13049_v28  ;;  %v9911_v28 = vadd.f32 %v19491_v51, %v16502_v22  ;;  %v13069_v22 = vld [vmem:[%s19291_s15 + $0x16a4] ss:$16 sps:$4 sm:$0xff]  }
 0x2c3   : > { %10243 = vmatprep.subr.bf16.mxu0 %v13057_v7  ;;  %v13061_v7 = vld [vmem:[%s19291_s15 + $0x16c0] ss:$16 sps:$4 sm:$0xff]  }
 0x2c4   : > { %10465 = vmatpush2.bf16.msra.mxu1 %v13052_v5  ;;  %v16704_v5 = vadd.f32 %v9949_v52, %v9909_v50  ;;  %v13072_v50 = vld [vmem:[%s19291_s15 + $0x98c] ss:$16 sps:$4 sm:$0xff]   ;;  %v9953_v52 = vpop.f32.mrf.mxu0 }
 0x2c5   : > { %10466 = vmatprep.subr.bf16.mxu1 %v13060_v58  ;;  %10194 = vmatmul.mubr.bf16.vlgmr.msra.gmra.mxu0 %v16681_v11  ;;  %v13064_v58 = vld [vmem:[%s19291_s15 + $0x9a8] ss:$16 sps:$4 sm:$0xff]  }
 0x2c6   : > { %10244 = vmatpush1.bf16.msra.mxu0 %v13055_v56  ;;  %10275 = vmatprep.mubr.bf16.mxu0 %v16688_v8  ;;  %v16718_v56 = vadd.f32 %v9951_v19, %v9911_v28  ;;  %v9954_v51 = vpop.f32.mrf.mxu0  ;;  %v13070_v28 = vld [vmem:[%s19291_s15 + $0x988] ss:$16 sps:$4 sm:$0xff]  }
 0x2c7   : > { %10245 = vmatprep.subr.bf16.mxu0 %v13063_v55  ;;  %v13067_v55 = vld [vmem:[%s19291_s15 + $0x16a0] ss:$16 sps:$4 sm:$0xff]   ;;  %v13084_v51 = vld [vmem:[%s19291_s15 + $0x94c] ss:$16 sps:$4 sm:$0xff]  }
 0x2c8   : > { %10467 = vmatpush2.bf16.msra.mxu1 %v13058_v45  ;;  %v16723_v45 = vpop.f32.mrf.mxu1 }
 0x2c9   : > { %10468 = vmatprep.subr.bf16.mxu1 %v13066_v9  ;;  %v13075_v9 = vld [vmem:[%s19291_s15 + $0x1684] ss:$16 sps:$4 sm:$0xff]  }
 0x2ca   : > { %10246 = vmatpush1.bf16.msra.mxu0 %v13061_v7  ;;  %v10158_v19 = vpop.f32.mrf.mxu1  ;;  %v13078_v7 = vld [vmem:[%s19291_s15 + $0x96c] ss:$16 sps:$4 sm:$0xff]  }
 0x2cb   : > { %10247 = vmatprep.subr.bf16.mxu0 %v13069_v22  ;;  %v13076_v22 = vld [vmem:[%s19291_s15 + $0x968] ss:$16 sps:$4 sm:$0xff]   ;;  %v13090_v19 = vld [vmem:[%s19291_s15 + $0x92c] ss:$16 sps:$4 sm:$0xff]  }
 0x2cc   : > { %10469 = vmatpush2.bf16.msra.mxu1 %v13064_v58  ;;  %v10159_v52 = vpop.f32.mrf.mxu1  ;;  %v13073_v58 = vld [vmem:[%s19291_s15 + $0x1680] ss:$16 sps:$4 sm:$0xff]  }
 0x2cd   : > { %10470 = vmatprep.subr.bf16.mxu1 %v13072_v50  ;;  %v13081_v50 = vld [vmem:[%s19291_s15 + $0x1664] ss:$16 sps:$4 sm:$0xff]   ;;  %v13088_v52 = vld [vmem:[%s19291_s15 + $0x928] ss:$16 sps:$4 sm:$0xff]  }
 0x2ce   : > { %10248 = vmatpush1.bf16.msra.mxu0 %v13067_v55  ;;  %v13079_v55 = vld [vmem:[%s19291_s15 + $0x1660] ss:$16 sps:$4 sm:$0xff]  }
 0x2cf   : > { %10249 = vmatprep.subr.bf16.mxu0 %v13075_v9  ;;  %v13087_v9 = vld [vmem:[%s19291_s15 + $0x1644] ss:$16 sps:$4 sm:$0xff]  }
 0x2d0   : > { %10471 = vmatpush2.bf16.msra.mxu1 %v13070_v28  ;;  %v13082_v28 = vld [vmem:[%s19291_s15 + $0x948] ss:$16 sps:$4 sm:$0xff]  }
 0x2d1   : > { %10472 = vmatprep.subr.bf16.mxu1 %v13078_v7  ;;  %v13085_v7 = vld [vmem:[%s19291_s15 + $0x1640] ss:$16 sps:$4 sm:$0xff]  }
 0x2d2   : > { %10250 = vmatpush1.bf16.msra.mxu0 %v13073_v58  ;;  %v13093_v58 = vld [vmem:[%s19291_s15 + $0x1624] ss:$16 sps:$4 sm:$0xff]  }
 0x2d3   : > { %10251 = vmatprep.subr.bf16.mxu0 %v13081_v50  ;;  %v13091_v50 = vld [vmem:[%s19291_s15 + $0x1620] ss:$16 sps:$4 sm:$0xff]  }
 0x2d4   : > { %10473 = vmatpush2.bf16.msra.mxu1 %v13076_v22  ;;  %v13096_v22 = vld [vmem:[%s19291_s15 + $0x90c] ss:$16 sps:$4 sm:$0xff]  }
 0x2d5   : > { %10474 = vmatprep.subr.bf16.mxu1 %v13084_v51  ;;  %v13094_v51 = vld [vmem:[%s19291_s15 + $0x908] ss:$16 sps:$4 sm:$0xff]  }
 0x2d6   : > { %10252 = vmatpush1.bf16.msra.mxu0 %v13079_v55  ;;  %v13099_v55 = vld [vmem:[%s19291_s15 + $0x1604] ss:$16 sps:$4 sm:$0xff]  }
 0x2d7   : > { %10253 = vmatprep.subr.bf16.mxu0 %v13087_v9  ;;  %v13097_v9 = vld [vmem:[%s19291_s15 + $0x1600] ss:$16 sps:$4 sm:$0xff]  }
 0x2d8   : > { %10475 = vmatpush2.bf16.msra.mxu1 %v13082_v28  ;;  %v13102_v28 = vld [vmem:[%s19291_s15 + $0xcec] ss:$16 sps:$4 sm:$0xff]  }
 0x2d9   : > { %10476 = vmatprep.subr.bf16.mxu1 %v13090_v19  ;;  %v13100_v19 = vld [vmem:[%s19291_s15 + $0xce8] ss:$16 sps:$4 sm:$0xff]  }
 0x2da   : > { %10254 = vmatpush1.bf16.msra.mxu0 %v13085_v7  ;;  %v13105_v7 = vld [vmem:[%s19291_s15 + $0x17e4] ss:$16 sps:$4 sm:$0xff]  }
 0x2db   : > { %10255 = vmatprep.subr.bf16.mxu0 %v13093_v58  ;;  %v19492_v58 = vld [vmem:[#allocation25_spill] sm:$0xff] }
 0x2dc   : > { %10477 = vmatpush2.bf16.msra.mxu1 %v13088_v52  ;;  %v13108_v52 = vld [vmem:[%s19291_s15 + $0xccc] ss:$16 sps:$4 sm:$0xff]  }
 0x2dd   : > { %10478 = vmatprep.subr.bf16.mxu1 %v13096_v22  ;;  %v13103_v22 = vld [vmem:[%s19291_s15 + $0x17e0] ss:$16 sps:$4 sm:$0xff]  }
 0x2de   : > { %10256 = vmatpush1.bf16.msra.mxu0 %v13091_v50  ;;  %v13106_v50 = vld [vmem:[%s19291_s15 + $0xcc8] ss:$16 sps:$4 sm:$0xff]  }
 0x2df   : > { %10257 = vmatprep.subr.bf16.mxu0 %v13099_v55  ;;  %v13114_v55 = vld [vmem:[%s19291_s15 + $0xcac] ss:$16 sps:$4 sm:$0xff]  }
 0x2e0   : > { %10479 = vmatpush2.bf16.msra.mxu1 %v13094_v51  ;;  %v13111_v51 = vld [vmem:[%s19291_s15 + $0x17c4] ss:$16 sps:$4 sm:$0xff]  }
 0x2e1   : > { %10530 = vmatprep.subr.bf16.mxu1 %v13102_v28  ;;  %v13109_v28 = vld [vmem:[%s19291_s15 + $0x17c0] ss:$16 sps:$4 sm:$0xff]  }
 0x2e2   : > { %10258 = vmatpush1.bf16.msra.mxu0 %v13097_v9  ;;  %v13112_v9 = vld [vmem:[%s19291_s15 + $0xca8] ss:$16 sps:$4 sm:$0xff]  }
 0x2e3   : > { %10481 = vmatmul.mubr.bf16.vlgmr.msra.gmra.mxu1 %v19492_v58  ;;  %10259 = vmatprep.subr.bf16.mxu0 %v13105_v7  ;;  %v13115_v7 = vld [vmem:[%s19291_s15 + $0x17a0] ss:$16 sps:$4 sm:$0xff]   ;;  %v13123_v58 = vld [vmem:[%s19291_s15 + $0x1784] ss:$16 sps:$4 sm:$0xff]  }
 0x2e4   : > { %10531 = vmatpush1.bf16.msra.mxu1 %v13100_v19  ;;  %10562 = vmatprep.mubr.bf16.mxu1 %v19453_v26  ;;  %v13117_v19 = vld [vmem:[%s19291_s15 + $0x17a4] ss:$16 sps:$4 sm:$0xff]   ;;  %v13120_v26 = vld [vmem:[%s19291_s15 + $0xc8c] ss:$16 sps:$4 sm:$0xff]  }
 0x2e5   : > { %10532 = vmatprep.subr.bf16.mxu1 %v13108_v52  ;;  %v13118_v52 = vld [vmem:[%s19291_s15 + $0xc88] ss:$16 sps:$4 sm:$0xff]  }
 0x2e6   : > { %10260 = vmatpush2.bf16.msra.mxu0 %v13103_v22  ;;  %v13126_v22 = vld [vmem:[%s19291_s15 + $0xc6c] ss:$16 sps:$4 sm:$0xff]  }
 0x2e7   : > { %10261 = vmatprep.subr.bf16.mxu0 %v13111_v51  ;;  %v13124_v51 = vld [vmem:[%s19291_s15 + $0xc68] ss:$16 sps:$4 sm:$0xff]  }
 0x2e8   : > { %10533 = vmatpush1.bf16.msra.mxu1 %v13106_v50  ;;  %v13121_v50 = vld [vmem:[%s19291_s15 + $0x1780] ss:$16 sps:$4 sm:$0xff]  }
 0x2e9   : > { %10534 = vmatprep.subr.bf16.mxu1 %v13114_v55  ;;  %v13129_v55 = vld [vmem:[%s19291_s15 + $0x1764] ss:$16 sps:$4 sm:$0xff]  }
 0x2ea   : > { %10262 = vmatpush2.bf16.msra.mxu0 %v13109_v28  ;;  %v13132_v28 = vld [vmem:[%s19291_s15 + $0xc4c] ss:$16 sps:$4 sm:$0xff]  }
 0x2eb   : > { %10263 = vmatprep.subr.bf16.mxu0 %v13117_v19  ;;  %v13130_v19 = vld [vmem:[%s19291_s15 + $0xc48] ss:$16 sps:$4 sm:$0xff]  }
 0x2ec   : > { %10535 = vmatpush1.bf16.msra.mxu1 %v13112_v9  ;;  %v13127_v9 = vld [vmem:[%s19291_s15 + $0x1760] ss:$16 sps:$4 sm:$0xff]  }
 0x2ed   : > { %10536 = vmatprep.subr.bf16.mxu1 %v13120_v26  ;;  %v13135_v26 = vld [vmem:[%s19291_s15 + $0x1744] ss:$16 sps:$4 sm:$0xff]  }
 0x2ee   : > { %10264 = vmatpush2.bf16.msra.mxu0 %v13115_v7  ;;  %v13138_v7 = vld [vmem:[%s19291_s15 + $0xc2c] ss:$16 sps:$4 sm:$0xff]  }
 0x2ef   : > { %10265 = vmatprep.subr.bf16.mxu0 %v13123_v58  ;;  %v13136_v58 = vld [vmem:[%s19291_s15 + $0xc28] ss:$16 sps:$4 sm:$0xff]  }
 0x2f0   : > { %10537 = vmatpush1.bf16.msra.mxu1 %v13118_v52  ;;  %v13133_v52 = vld [vmem:[%s19291_s15 + $0x1740] ss:$16 sps:$4 sm:$0xff]  }
 0x2f1   : > { %10538 = vmatprep.subr.bf16.mxu1 %v13126_v22  ;;  %v13141_v22 = vld [vmem:[%s19291_s15 + $0x1724] ss:$16 sps:$4 sm:$0xff]  }
 0x2f2   : > { %10266 = vmatpush2.bf16.msra.mxu0 %v13121_v50  ;;  %v13144_v50 = vld [vmem:[%s19291_s15 + $0xc0c] ss:$16 sps:$4 sm:$0xff]  }
 0x2f3   : > { %10267 = vmatprep.subr.bf16.mxu0 %v13129_v55  ;;  %v13142_v55 = vld [vmem:[%s19291_s15 + $0xc08] ss:$16 sps:$4 sm:$0xff]  }
 0x2f4   : > { %10539 = vmatpush1.bf16.msra.mxu1 %v13124_v51  ;;  %v13139_v51 = vld [vmem:[%s19291_s15 + $0x1720] ss:$16 sps:$4 sm:$0xff]  }
 0x2f5   : > { %10540 = vmatprep.subr.bf16.mxu1 %v13132_v28  ;;  %v13147_v28 = vld [vmem:[%s19291_s15 + $0x1704] ss:$16 sps:$4 sm:$0xff]  }
 0x2f6   : > { %10268 = vmatpush2.bf16.msra.mxu0 %v13127_v9  ;;  %v13150_v9 = vld [vmem:[%s19291_s15 + $0xdec] ss:$16 sps:$4 sm:$0xff]  }
 0x2f7   : > { %10269 = vmatprep.subr.bf16.mxu0 %v13135_v26  ;;  %v13148_v26 = vld [vmem:[%s19291_s15 + $0xde8] ss:$16 sps:$4 sm:$0xff]  }
 0x2f8   : > { %10541 = vmatpush1.bf16.msra.mxu1 %v13130_v19  ;;  %v13145_v19 = vld [vmem:[%s19291_s15 + $0x1700] ss:$16 sps:$4 sm:$0xff]  }
 0x2f9   : > { %10542 = vmatprep.subr.bf16.mxu1 %v13138_v7  ;;  %v13153_v7 = vld [vmem:[%s19291_s15 + $0x2ec] ss:$16 sps:$4 sm:$0xff]  }
 0x2fa   : > { %10270 = vmatpush2.bf16.msra.mxu0 %v13133_v52  ;;  %v13156_v52 = vld [vmem:[%s19291_s15 + $0xdcc] ss:$16 sps:$4 sm:$0xff]  }
 0x2fb   : > { %10271 = vmatprep.subr.bf16.mxu0 %v13141_v22 }
 0x2fc   : > { %10543 = vmatpush1.bf16.msra.mxu1 %v13136_v58  ;;  %v19493_v58 = vld [vmem:[#allocation70_spill] sm:$0xff] }
 0x2fd   : > { %10544 = vmatprep.subr.bf16.mxu1 %v13144_v50  ;;  %v16897_v22 = vcombine.high %v19493_v58, %v19493_v58  ;;  %v13151_v50 = vld [vmem:[%s19291_s15 + $0x2e8] ss:$16 sps:$4 sm:$0xff]  }
 0x2fe   : > { %10272 = vmatpush2.bf16.msra.mxu0 %v13139_v51  ;;  %v13154_v51 = vld [vmem:[%s19291_s15 + $0xdc8] ss:$16 sps:$4 sm:$0xff]  }
 0x2ff   : > { %10273 = vmatprep.subr.bf16.mxu0 %v13147_v28  ;;  %v9991_v28 = vadd.f32 %v16076_v25, %v16704_v5  ;;  %v13160_v5 = vld [vmem:[%s19291_s15 + $0xda8] ss:$16 sps:$4 sm:$0xff]  }
 0x300   : > { %10545 = vmatpush1.bf16.msra.mxu1 %v13142_v55  ;;  %v13159_v55 = vld [vmem:[%s19291_s15 + $0x2cc] ss:$16 sps:$4 sm:$0xff]  }
 0x301   : > { %10546 = vmatprep.subr.bf16.mxu1 %v13150_v9  ;;  %v13162_v9 = vld [vmem:[%s19291_s15 + $0xdac] ss:$16 sps:$4 sm:$0xff]  }
 0x302   : > { %10274 = vmatpush2.bf16.msra.mxu0 %v13145_v19  ;;  %v10031_v19 = vpop.f32.mrf.mxu0 }
 0x303   : > { %10325 = vmatprep.subr.bf16.mxu0 %v13153_v7  ;;  %v16916_v7 = vadd.f32 %v10031_v19, %v9991_v28  ;;  %v13166_v19 = vld [vmem:[%s19291_s15 + $0xd88] ss:$16 sps:$4 sm:$0xff]  }
 0x304   : > { %10547 = vmatpush2.bf16.msra.mxu1 %v13148_v26  ;;  %v9993_v26 = vadd.f32 %v16089_v2, %v16718_v56  ;;  %v10033_v25 = vpop.f32.mrf.mxu0  ;;  %v13165_v2 = vld [vmem:[%s19291_s15 + $0x2ac] ss:$16 sps:$4 sm:$0xff]   ;;  %v16928_v56 = vpop.f32.mrf.mxu1 }
 0x305   : > { %10548 = vmatprep.subr.bf16.mxu1 %v13156_v52  ;;  %10276 = vmatmul.mubr.bf16.vlgmr.msra.gmra.mxu0 %v16897_v22 }
 0x306   : > { %10326 = vmatpush1.bf16.msra.mxu0 %v13151_v50  ;;  %10357 = vmatprep.mubr.bf16.mxu0 %v19494_v57  ;;  %v16930_v52 = vadd.f32 %v10033_v25, %v9993_v26  ;;  %v13168_v57 = vld [vmem:[%s19291_s15 + $0xd8c] ss:$16 sps:$4 sm:$0xff]   ;;  %v10035_v50 = vpop.f32.mrf.mxu0 }
 0x307   : > { %10327 = vmatprep.subr.bf16.mxu0 %v13159_v55  ;;  %v13163_v55 = vld [vmem:[%s19291_s15 + $0x2a8] ss:$16 sps:$4 sm:$0xff]   ;;  %v13180_v50 = vld [vmem:[%s19291_s15 + $0xd4c] ss:$16 sps:$4 sm:$0xff]  }
 0x308   : > { %10549 = vmatpush2.bf16.msra.mxu1 %v13154_v51  ;;  %v16935_v51 = vpop.f32.mrf.mxu1  ;;  %v10036_v28 = vpop.f32.mrf.mxu0 }
 0x309   : > { %10550 = vmatprep.subr.bf16.mxu1 %v13162_v9  ;;  %v13171_v9 = vld [vmem:[%s19291_s15 + $0x28c] ss:$16 sps:$4 sm:$0xff]   ;;  %v13178_v28 = vld [vmem:[%s19291_s15 + $0xd48] ss:$16 sps:$4 sm:$0xff]  }
 0x30a   : > { %10328 = vmatpush1.bf16.msra.mxu0 %v13157_v23  ;;  %v10240_v26 = vpop.f32.mrf.mxu1  ;;  %v13174_v23 = vld [vmem:[%s19291_s15 + $0xd6c] ss:$16 sps:$4 sm:$0xff]  }
 0x30b   : > { %10329 = vmatprep.subr.bf16.mxu0 %v13165_v2  ;;  %v13172_v2 = vld [vmem:[%s19291_s15 + $0xd68] ss:$16 sps:$4 sm:$0xff]  }
 0x30c   : > { %10551 = vmatpush2.bf16.msra.mxu1 %v13160_v5  ;;  %v10241_v25 = vpop.f32.mrf.mxu1  ;;  %v13169_v5 = vld [vmem:[%s19291_s15 + $0x288] ss:$16 sps:$4 sm:$0xff]  }
 0x30d   : > { %10552 = vmatprep.subr.bf16.mxu1 %v13168_v57  ;;  %v13177_v57 = vld [vmem:[%s19291_s15 + $0x26c] ss:$16 sps:$4 sm:$0xff]   ;;  %v13181_v26 = vld [vmem:[%s19291_s15 + $0x248] ss:$16 sps:$4 sm:$0xff]  }
 0x30e   : > { %10330 = vmatpush1.bf16.msra.mxu0 %v13163_v55  ;;  %v13175_v55 = vld [vmem:[%s19291_s15 + $0x268] ss:$16 sps:$4 sm:$0xff]   ;;  %v13189_v25 = vld [vmem:[%s19291_s15 + $0x22c] ss:$16 sps:$4 sm:$0xff]  }
 0x30f   : > { %10331 = vmatprep.subr.bf16.mxu0 %v13171_v9  ;;  %v13186_v9 = vld [vmem:[%s19291_s15 + $0xd2c] ss:$16 sps:$4 sm:$0xff]  }
 0x310   : > { %10553 = vmatpush2.bf16.msra.mxu1 %v13166_v19  ;;  %v13183_v19 = vld [vmem:[%s19291_s15 + $0x24c] ss:$16 sps:$4 sm:$0xff]  }
 0x311   : > { %10554 = vmatprep.subr.bf16.mxu1 %v13174_v23  ;;  %v13184_v23 = vld [vmem:[%s19291_s15 + $0xd28] ss:$16 sps:$4 sm:$0xff]  }
 0x312   : > { %10332 = vmatpush1.bf16.msra.mxu0 %v13169_v5  ;;  %v13192_v5 = vld [vmem:[%s19291_s15 + $0xd0c] ss:$16 sps:$4 sm:$0xff]  }
 0x313   : > { %10333 = vmatprep.subr.bf16.mxu0 %v13177_v57  ;;  %v13190_v57 = vld [vmem:[%s19291_s15 + $0xd08] ss:$16 sps:$4 sm:$0xff]  }
 0x314   : > { %10555 = vmatpush2.bf16.msra.mxu1 %v13172_v2  ;;  %v13187_v2 = vld [vmem:[%s19291_s15 + $0x228] ss:$16 sps:$4 sm:$0xff]  }
 0x315   : > { %10556 = vmatprep.subr.bf16.mxu1 %v13180_v50  ;;  %v13195_v50 = vld [vmem:[%s19291_s15 + $0x20c] ss:$16 sps:$4 sm:$0xff]  }
 0x316   : > { %10334 = vmatpush1.bf16.msra.mxu0 %v13175_v55  ;;  %v13198_v55 = vld [vmem:[%s19291_s15 + $0x10ec] ss:$16 sps:$4 sm:$0xff]  }
 0x317   : > { %10335 = vmatprep.subr.bf16.mxu0 %v13183_v19  ;;  %v13196_v19 = vld [vmem:[%s19291_s15 + $0x10e8] ss:$16 sps:$4 sm:$0xff]  }
 0x318   : > { %10557 = vmatpush2.bf16.msra.mxu1 %v13178_v28  ;;  %v13193_v28 = vld [vmem:[%s19291_s15 + $0x208] ss:$16 sps:$4 sm:$0xff]  }
 0x319   : > { %10558 = vmatprep.subr.bf16.mxu1 %v13186_v9  ;;  %v13201_v9 = vld [vmem:[%s19291_s15 + $0x3ec] ss:$16 sps:$4 sm:$0xff]  }
 0x31a   : > { %10336 = vmatpush1.bf16.msra.mxu0 %v13181_v26  ;;  %v13204_v26 = vld [vmem:[%s19291_s15 + $0x10cc] ss:$16 sps:$4 sm:$0xff]  }
 0x31b   : > { %10337 = vmatprep.subr.bf16.mxu0 %v13189_v25  ;;  %v13202_v25 = vld [vmem:[%s19291_s15 + $0x10c8] ss:$16 sps:$4 sm:$0xff]  }
 0x31c   : > { %10559 = vmatpush2.bf16.msra.mxu1 %v13184_v23  ;;  %v13199_v23 = vld [vmem:[%s19291_s15 + $0x3e8] ss:$16 sps:$4 sm:$0xff]  }
 0x31d   : > { %10560 = vmatprep.subr.bf16.mxu1 %v13192_v5  ;;  %v13207_v5 = vld [vmem:[%s19291_s15 + $0x3cc] ss:$16 sps:$4 sm:$0xff]  }
 0x31e   : > { %10338 = vmatpush1.bf16.msra.mxu0 %v13187_v2  ;;  %v13210_v2 = vld [vmem:[%s19291_s15 + $0x10ac] ss:$16 sps:$4 sm:$0xff]  }
 0x31f   : > { %10339 = vmatprep.subr.bf16.mxu0 %v13195_v50  ;;  %v13213_v50 = vld [vmem:[%s19291_s15 + $0x3ac] ss:$16 sps:$4 sm:$0xff]  }
 0x320   : > { %10561 = vmatpush2.bf16.msra.mxu1 %v13190_v57  ;;  %v13208_v57 = vld [vmem:[%s19291_s15 + $0x10a8] ss:$16 sps:$4 sm:$0xff]  }
 0x321   : > { %10612 = vmatprep.subr.bf16.mxu1 %v13198_v55  ;;  %v13211_v55 = vld [vmem:[%s19291_s15 + $0x3a8] ss:$16 sps:$4 sm:$0xff]  }
 0x322   : > { %10340 = vmatpush1.bf16.msra.mxu0 %v13193_v28  ;;  %v13214_v28 = vld [vmem:[%s19291_s15 + $0x1088] ss:$16 sps:$4 sm:$0xff]  }
 0x323   : > { %10563 = vmatmul.mubr.bf16.vlgmr.msra.gmra.mxu1 %v19483_v17  ;;  %10341 = vmatprep.subr.bf16.mxu0 %v13201_v9  ;;  %v13205_v17 = vld [vmem:[%s19291_s15 + $0x3c8] ss:$16 sps:$4 sm:$0xff]   ;;  %v13222_v9 = vld [vmem:[%s19291_s15 + $0x106c] ss:$16 sps:$4 sm:$0xff]  }
 0x324   : > { %10613 = vmatpush1.bf16.msra.mxu1 %v13196_v19  ;;  %10644 = vmatprep.mubr.bf16.mxu1 %v19485_v46  ;;  %v13216_v46 = vld [vmem:[%s19291_s15 + $0x108c] ss:$16 sps:$4 sm:$0xff]  }
 0x325   : > { %10614 = vmatprep.subr.bf16.mxu1 %v13204_v26  ;;  %v13219_v19 = vld [vmem:[%s19291_s15 + $0x38c] ss:$16 sps:$4 sm:$0xff]   ;;  %v13217_v26 = vld [vmem:[%s19291_s15 + $0x388] ss:$16 sps:$4 sm:$0xff]  }
 0x326   : > { %10342 = vmatpush2.bf16.msra.mxu0 %v13199_v23  ;;  %v13220_v23 = vld [vmem:[%s19291_s15 + $0x1068] ss:$16 sps:$4 sm:$0xff]  }
 0x327   : > { %10343 = vmatprep.subr.bf16.mxu0 %v13207_v5  ;;  %v13228_v5 = vld [vmem:[%s19291_s15 + $0x104c] ss:$16 sps:$4 sm:$0xff]  }
 0x328   : > { %10615 = vmatpush1.bf16.msra.mxu1 %v13202_v25  ;;  %v13225_v25 = vld [vmem:[%s19291_s15 + $0x36c] ss:$16 sps:$4 sm:$0xff]  }
 0x329   : > { %10616 = vmatprep.subr.bf16.mxu1 %v13210_v2  ;;  %v13223_v2 = vld [vmem:[%s19291_s15 + $0x368] ss:$16 sps:$4 sm:$0xff]  }
 0x32a   : > { %10344 = vmatpush2.bf16.msra.mxu0 %v13205_v17  ;;  %v13226_v17 = vld [vmem:[%s19291_s15 + $0x1048] ss:$16 sps:$4 sm:$0xff]  }
 0x32b   : > { %10345 = vmatprep.subr.bf16.mxu0 %v13213_v50  ;;  %v13234_v50 = vld [vmem:[%s19291_s15 + $0x102c] ss:$16 sps:$4 sm:$0xff]  }
 0x32c   : > { %10617 = vmatpush1.bf16.msra.mxu1 %v13208_v57  ;;  %v13231_v57 = vld [vmem:[%s19291_s15 + $0x34c] ss:$16 sps:$4 sm:$0xff]  }
 0x32d   : > { %10618 = vmatprep.subr.bf16.mxu1 %v13216_v46  ;;  %v13229_v46 = vld [vmem:[%s19291_s15 + $0x348] ss:$16 sps:$4 sm:$0xff]  }
 0x32e   : > { %10346 = vmatpush2.bf16.msra.mxu0 %v13211_v55  ;;  %v13232_v55 = vld [vmem:[%s19291_s15 + $0x1028] ss:$16 sps:$4 sm:$0xff]  }
 0x32f   : > { %10347 = vmatprep.subr.bf16.mxu0 %v13219_v19  ;;  %v13240_v19 = vld [vmem:[%s19291_s15 + $0x100c] ss:$16 sps:$4 sm:$0xff]  }
 0x330   : > { %10619 = vmatpush1.bf16.msra.mxu1 %v13214_v28  ;;  %v13237_v28 = vld [vmem:[%s19291_s15 + $0x32c] ss:$16 sps:$4 sm:$0xff]  }
 0x331   : > { %10620 = vmatprep.subr.bf16.mxu1 %v13222_v9  ;;  %v13235_v9 = vld [vmem:[%s19291_s15 + $0x328] ss:$16 sps:$4 sm:$0xff]  }
 0x332   : > { %10348 = vmatpush2.bf16.msra.mxu0 %v13217_v26  ;;  %v13238_v26 = vld [vmem:[%s19291_s15 + $0x1008] ss:$16 sps:$4 sm:$0xff]  }
 0x333   : > { %10349 = vmatprep.subr.bf16.mxu0 %v13225_v25  ;;  %v13246_v25 = vld [vmem:[%s19291_s15 + $0x11ec] ss:$16 sps:$4 sm:$0xff]  }
 0x334   : > { %10621 = vmatpush1.bf16.msra.mxu1 %v13220_v23  ;;  %v13243_v23 = vld [vmem:[%s19291_s15 + $0x30c] ss:$16 sps:$4 sm:$0xff]  }
 0x335   : > { %10622 = vmatprep.subr.bf16.mxu1 %v13228_v5  ;;  %v13241_v5 = vld [vmem:[%s19291_s15 + $0x308] ss:$16 sps:$4 sm:$0xff]  }
 0x336   : > { %10350 = vmatpush2.bf16.msra.mxu0 %v13223_v2  ;;  %v13244_v2 = vld [vmem:[%s19291_s15 + $0x11e8] ss:$16 sps:$4 sm:$0xff]  }
 0x337   : > { %10351 = vmatprep.subr.bf16.mxu0 %v13231_v57  ;;  %v13252_v57 = vld [vmem:[%s19291_s15 + $0x11cc] ss:$16 sps:$4 sm:$0xff]  }
 0x338   : > { %10623 = vmatpush1.bf16.msra.mxu1 %v13226_v17  ;;  %v13249_v17 = vld [vmem:[%s19291_s15 + $0x6ec] ss:$16 sps:$4 sm:$0xff]  }
 0x339   : > { %10624 = vmatprep.subr.bf16.mxu1 %v13234_v50  ;;  %v13247_v50 = vld [vmem:[%s19291_s15 + $0x6e8] ss:$16 sps:$4 sm:$0xff]  }
 0x33a   : > { %10352 = vmatpush2.bf16.msra.mxu0 %v13229_v46  ;;  %v13250_v46 = vld [vmem:[%s19291_s15 + $0x11c8] ss:$16 sps:$4 sm:$0xff]  }
 0x33b   : > { %10353 = vmatprep.subr.bf16.mxu0 %v13237_v28  ;;  %v10073_v28 = vadd.f32 %v16500_v33, %v16916_v7  ;;  %v13256_v7 = vld [vmem:[%s19291_s15 + $0x11a8] ss:$16 sps:$4 sm:$0xff]  }
 0x33c   : > { %10625 = vmatpush1.bf16.msra.mxu1 %v13232_v55  ;;  %v13255_v55 = vld [vmem:[%s19291_s15 + $0x6cc] ss:$16 sps:$4 sm:$0xff]  }
 0x33d   : > { %10626 = vmatprep.subr.bf16.mxu1 %v13240_v19  ;;  %v13258_v19 = vld [vmem:[%s19291_s15 + $0x11ac] ss:$16 sps:$4 sm:$0xff]  }
 0x33e   : > { %10354 = vmatpush2.bf16.msra.mxu0 %v13235_v9 }
 0x33f   : > { %10355 = vmatprep.subr.bf16.mxu0 %v13243_v23  ;;  %v10075_v23 = vadd.f32 %v16507_v3, %v16930_v52  ;;  %v13261_v3 = vld [vmem:[%s19291_s15 + $0x6ac] ss:$16 sps:$4 sm:$0xff]  }
 0x340   : > { %10627 = vmatpush1.bf16.msra.mxu1 %v13238_v26  ;;  %v19495_v26 = vld [vmem:[#allocation35_spill] sm:$0xff] }
 0x341   : > { %10628 = vmatprep.subr.bf16.mxu1 %v13246_v25 }
 0x342   : > { %10356 = vmatpush2.bf16.msra.mxu0 %v13241_v5  ;;  %v13253_v5 = vld [vmem:[%s19291_s15 + $0x6c8] ss:$16 sps:$4 sm:$0xff]  }
 0x343   : > { %10407 = vmatprep.subr.bf16.mxu0 %v13249_v17  ;;  %v13264_v17 = vld [vmem:[%s19291_s15 + $0x118c] ss:$16 sps:$4 sm:$0xff]  }
 0x344   : > { %10629 = vmatpush2.bf16.msra.mxu1 %v13244_v2  ;;  %v19496_v2 = vld [vmem:[#allocation37_spill] sm:$0xff] }
 0x345   : > { %10630 = vmatprep.subr.bf16.mxu1 %v13252_v57  ;;  %v10113_v9 = vpop.f32.mrf.mxu0  ;;  %10358 = vmatmul.mubr.bf16.vlgmr.msra.gmra.mxu0 %v19495_v26  ;;  %v13268_v26 = vld [vmem:[%s19291_s15 + $0x1168] ss:$16 sps:$4 sm:$0xff]  }
 0x346   : > { %v17124_v25 = vadd.f32 %v10113_v9, %v10073_v28  ;;  %10408 = vmatpush1.bf16.msra.mxu0 %v13247_v50  ;;  %10439 = vmatprep.mubr.bf16.mxu0 %v19496_v2  ;;  %v13259_v50 = vld [vmem:[%s19291_s15 + $0x6a8] ss:$16 sps:$4 sm:$0xff]   ;;  %v13267_v28 = vld [vmem:[%s19291_s15 + $0x68c] ss:$16 sps:$4 sm:$0xff]  }
 0x347   : > { %v10115_v33 = vpop.f32.mrf.mxu0  ;;  %10409 = vmatprep.subr.bf16.mxu0 %v13255_v55  ;;  %v13262_v55 = vld [vmem:[%s19291_s15 + $0x1188] ss:$16 sps:$4 sm:$0xff]  }
 0x348   : > { %10631 = vmatpush2.bf16.msra.mxu1 %v13250_v46  ;;  %v17136_v52 = vadd.f32 %v10115_v33, %v10075_v23  ;;  %v13265_v9 = vld [vmem:[%s19291_s15 + $0x688] ss:$16 sps:$4 sm:$0xff]   ;;  %v13273_v23 = vld [vmem:[%s19291_s15 + $0x66c] ss:$16 sps:$4 sm:$0xff]  }
 0x349   : > { %10632 = vmatprep.subr.bf16.mxu1 %v13258_v19  ;;  %v10117_v57 = vpop.f32.mrf.mxu0  ;;  %v13270_v19 = vld [vmem:[%s19291_s15 + $0x116c] ss:$16 sps:$4 sm:$0xff]   ;;  %v13271_v2 = vld [vmem:[%s19291_s15 + $0x668] ss:$16 sps:$4 sm:$0xff]  }
 0x34a   : > { %10410 = vmatpush1.bf16.msra.mxu0 %v13253_v5  ;;  %v13276_v5 = vld [vmem:[%s19291_s15 + $0x114c] ss:$16 sps:$4 sm:$0xff]   ;;  %v13274_v33 = vld [vmem:[%s19291_s15 + $0x1148] ss:$16 sps:$4 sm:$0xff]  }
 0x34b   : > { %v10118_v46 = vpop.f32.mrf.mxu0  ;;  %10411 = vmatprep.subr.bf16.mxu0 %v13261_v3  ;;  %v13282_v3 = vld [vmem:[%s19291_s15 + $0x112c] ss:$16 sps:$4 sm:$0xff]   ;;  %v13280_v57 = vld [vmem:[%s19291_s15 + $0x1128] ss:$16 sps:$4 sm:$0xff]  }
 0x34c   : > { %10633 = vmatpush2.bf16.msra.mxu1 %v13256_v7  ;;  %v13279_v7 = vld [vmem:[%s19291_s15 + $0x64c] ss:$16 sps:$4 sm:$0xff]  }
 0x34d   : > { %10634 = vmatprep.subr.bf16.mxu1 %v13264_v17  ;;  %v13277_v17 = vld [vmem:[%s19291_s15 + $0x648] ss:$16 sps:$4 sm:$0xff]   ;;  %v13288_v46 = vld [vmem:[%s19291_s15 + $0x110c] ss:$16 sps:$4 sm:$0xff]  }
 0x34e   : > { %10412 = vmatpush1.bf16.msra.mxu0 %v13259_v50  ;;  %v13285_v50 = vld [vmem:[%s19291_s15 + $0x62c] ss:$16 sps:$4 sm:$0xff]  }
 0x34f   : > { %10413 = vmatprep.subr.bf16.mxu0 %v13267_v28  ;;  %v13286_v28 = vld [vmem:[%s19291_s15 + $0x1108] ss:$16 sps:$4 sm:$0xff]  }
 0x350   : > { %10635 = vmatpush2.bf16.msra.mxu1 %v13262_v55  ;;  %v13283_v55 = vld [vmem:[%s19291_s15 + $0x628] ss:$16 sps:$4 sm:$0xff]  }
 0x351   : > { %10636 = vmatprep.subr.bf16.mxu1 %v13270_v19  ;;  %v13291_v19 = vld [vmem:[%s19291_s15 + $0x60c] ss:$16 sps:$4 sm:$0xff]  }
 0x352   : > { %10414 = vmatpush1.bf16.msra.mxu0 %v13265_v9  ;;  %v13294_v9 = vld [vmem:[%s19291_s15 + $0x14ec] ss:$16 sps:$4 sm:$0xff]  }
 0x353   : > { %10415 = vmatprep.subr.bf16.mxu0 %v13273_v23  ;;  %v13292_v23 = vld [vmem:[%s19291_s15 + $0x14e8] ss:$16 sps:$4 sm:$0xff]  }
 0x354   : > { %10637 = vmatpush2.bf16.msra.mxu1 %v13268_v26  ;;  %v13289_v26 = vld [vmem:[%s19291_s15 + $0x608] ss:$16 sps:$4 sm:$0xff]  }
 0x355   : > { %10638 = vmatprep.subr.bf16.mxu1 %v13276_v5  ;;  %v13297_v5 = vld [vmem:[%s19291_s15 + $0x7ec] ss:$16 sps:$4 sm:$0xff]  }
 0x356   : > { %10416 = vmatpush1.bf16.msra.mxu0 %v13271_v2  ;;  %v13300_v2 = vld [vmem:[%s19291_s15 + $0x14cc] ss:$16 sps:$4 sm:$0xff]  }
 0x357   : > { %10417 = vmatprep.subr.bf16.mxu0 %v13279_v7  ;;  %v13298_v7 = vld [vmem:[%s19291_s15 + $0x14c8] ss:$16 sps:$4 sm:$0xff]  }
 0x358   : > { %10639 = vmatpush2.bf16.msra.mxu1 %v13274_v33  ;;  %v13295_v33 = vld [vmem:[%s19291_s15 + $0x7e8] ss:$16 sps:$4 sm:$0xff]  }
 0x359   : > { %10640 = vmatprep.subr.bf16.mxu1 %v13282_v3  ;;  %v13303_v3 = vld [vmem:[%s19291_s15 + $0x7cc] ss:$16 sps:$4 sm:$0xff]  }
 0x35a   : > { %10418 = vmatpush1.bf16.msra.mxu0 %v13277_v17  ;;  %v13306_v17 = vld [vmem:[%s19291_s15 + $0x14ac] ss:$16 sps:$4 sm:$0xff]  }
 0x35b   : > { %10419 = vmatprep.subr.bf16.mxu0 %v13285_v50  ;;  %v13309_v50 = vld [vmem:[%s19291_s15 + $0x7ac] ss:$16 sps:$4 sm:$0xff]  }
 0x35c   : > { %10641 = vmatpush2.bf16.msra.mxu1 %v13280_v57  ;;  %v13304_v57 = vld [vmem:[%s19291_s15 + $0x14a8] ss:$16 sps:$4 sm:$0xff]  }
 0x35d   : > { %10642 = vmatprep.subr.bf16.mxu1 %v13288_v46  ;;  %v13307_v46 = vld [vmem:[%s19291_s15 + $0x7a8] ss:$16 sps:$4 sm:$0xff]  }
 0x35e   : > { %10420 = vmatpush1.bf16.msra.mxu0 %v13283_v55  ;;  %v13310_v55 = vld [vmem:[%s19291_s15 + $0x1488] ss:$16 sps:$4 sm:$0xff]  }
 0x35f   : > { %10421 = vmatprep.subr.bf16.mxu0 %v13291_v19  ;;  %v13318_v19 = vld [vmem:[%s19291_s15 + $0x146c] ss:$16 sps:$4 sm:$0xff]  }
 0x360   : > { %10643 = vmatpush2.bf16.msra.mxu1 %v13286_v28  ;;  %v13315_v28 = vld [vmem:[%s19291_s15 + $0x78c] ss:$16 sps:$4 sm:$0xff]  }
 0x361   : > { %10694 = vmatprep.subr.bf16.mxu1 %v13294_v9  ;;  %v13313_v9 = vld [vmem:[%s19291_s15 + $0x788] ss:$16 sps:$4 sm:$0xff]  }
 0x362   : > { %10422 = vmatpush1.bf16.msra.mxu0 %v13289_v26  ;;  %v13316_v26 = vld [vmem:[%s19291_s15 + $0x1468] ss:$16 sps:$4 sm:$0xff]  }
 0x363   : > { %10645 = vmatmul.mubr.bf16.vlgmr.msra.gmra.mxu1 %v19488_v54  ;;  %10423 = vmatprep.subr.bf16.mxu0 %v13297_v5  ;;  %v13301_v54 = vld [vmem:[%s19291_s15 + $0x7c8] ss:$16 sps:$4 sm:$0xff]   ;;  %v13324_v5 = vld [vmem:[%s19291_s15 + $0x144c] ss:$16 sps:$4 sm:$0xff]  }
 0x364   : > { %10695 = vmatpush1.bf16.msra.mxu1 %v13292_v23  ;;  %10726 = vmatprep.mubr.bf16.mxu1 %v19489_v41  ;;  %v13312_v41 = vld [vmem:[%s19291_s15 + $0x148c] ss:$16 sps:$4 sm:$0xff]  }
 0x365   : > { %10696 = vmatprep.subr.bf16.mxu1 %v13300_v2  ;;  %v13321_v23 = vld [vmem:[%s19291_s15 + $0x76c] ss:$16 sps:$4 sm:$0xff]   ;;  %v13319_v2 = vld [vmem:[%s19291_s15 + $0x768] ss:$16 sps:$4 sm:$0xff]  }
 0x366   : > { %10424 = vmatpush2.bf16.msra.mxu0 %v13295_v33  ;;  %v13322_v33 = vld [vmem:[%s19291_s15 + $0x1448] ss:$16 sps:$4 sm:$0xff]  }
 0x367   : > { %10425 = vmatprep.subr.bf16.mxu0 %v13303_v3  ;;  %v13330_v3 = vld [vmem:[%s19291_s15 + $0x142c] ss:$16 sps:$4 sm:$0xff]  }
 0x368   : > { %10697 = vmatpush1.bf16.msra.mxu1 %v13298_v7  ;;  %v13327_v7 = vld [vmem:[%s19291_s15 + $0x74c] ss:$16 sps:$4 sm:$0xff]  }
 0x369   : > { %10698 = vmatprep.subr.bf16.mxu1 %v13306_v17  ;;  %v13325_v17 = vld [vmem:[%s19291_s15 + $0x748] ss:$16 sps:$4 sm:$0xff]  }
 0x36a   : > { %10426 = vmatpush2.bf16.msra.mxu0 %v13301_v54  ;;  %v13328_v54 = vld [vmem:[%s19291_s15 + $0x1428] ss:$16 sps:$4 sm:$0xff]  }
 0x36b   : > { %10427 = vmatprep.subr.bf16.mxu0 %v13309_v50  ;;  %v13336_v50 = vld [vmem:[%s19291_s15 + $0x140c] ss:$16 sps:$4 sm:$0xff]  }
 0x36c   : > { %10699 = vmatpush1.bf16.msra.mxu1 %v13304_v57  ;;  %v13333_v57 = vld [vmem:[%s19291_s15 + $0x72c] ss:$16 sps:$4 sm:$0xff]  }
 0x36d   : > { %10700 = vmatprep.subr.bf16.mxu1 %v13312_v41  ;;  %v13331_v41 = vld [vmem:[%s19291_s15 + $0x728] ss:$16 sps:$4 sm:$0xff]  }
 0x36e   : > { %10428 = vmatpush2.bf16.msra.mxu0 %v13307_v46  ;;  %v17290_v46 = vpop.f32.mrf.mxu1 }
 0x36f   : > { %10429 = vmatprep.subr.bf16.mxu0 %v13315_v28  ;;  %v13339_v28 = vld [vmem:[%s19291_s15 + $0x70c] ss:$16 sps:$4 sm:$0xff]  }
 0x370   : > { %10701 = vmatpush1.bf16.msra.mxu1 %v13310_v55  ;;  %v13334_v55 = vld [vmem:[%s19291_s15 + $0x1408] ss:$16 sps:$4 sm:$0xff]  }
 0x371   : > { %10702 = vmatprep.subr.bf16.mxu1 %v13318_v19  ;;  %v13342_v19 = vld [vmem:[%s19291_s15 + $0x15ec] ss:$16 sps:$4 sm:$0xff]  }
 0x372   : > { %10430 = vmatpush2.bf16.msra.mxu0 %v13313_v9  ;;  %v17301_v9 = vpop.f32.mrf.mxu1 }
 0x373   : > { %10431 = vmatprep.subr.bf16.mxu0 %v13321_v23 }
 0x374   : > { %10703 = vmatpush1.bf16.msra.mxu1 %v13316_v26  ;;  %v13337_v26 = vld [vmem:[%s19291_s15 + $0x708] ss:$16 sps:$4 sm:$0xff]   ;;  %v10322_v23 = vpop.f32.mrf.mxu1 }
 0x375   : > { %10704 = vmatprep.subr.bf16.mxu1 %v13324_v5  ;;  %v13340_v5 = vld [vmem:[%s19291_s15 + $0x15e8] ss:$16 sps:$4 sm:$0xff]  }
 0x376   : > { %10432 = vmatpush2.bf16.msra.mxu0 %v13319_v2  ;;  %v13345_v2 = vld [vmem:[%s19291_s15 + $0xaec] ss:$16 sps:$4 sm:$0xff]  }
 0x377   : > { %10433 = vmatprep.subr.bf16.mxu0 %v13327_v7  ;;  %v10323_v7 = vpop.f32.mrf.mxu1  ;;  %v19498_v23 = vld [vmem:[#allocation59_spill] sm:$0xff] }
 0x378   : > { %10705 = vmatpush1.bf16.msra.mxu1 %v13322_v33  ;;  %v13348_v33 = vld [vmem:[%s19291_s15 + $0x15cc] ss:$16 sps:$4 sm:$0xff]  }
 0x379   : > { %10706 = vmatprep.subr.bf16.mxu1 %v13330_v3  ;;  %v13343_v3 = vld [vmem:[%s19291_s15 + $0xae8] ss:$16 sps:$4 sm:$0xff]  }
 0x37a   : > { %10434 = vmatpush2.bf16.msra.mxu0 %v13325_v17  ;;  %v13346_v17 = vld [vmem:[%s19291_s15 + $0x15c8] ss:$16 sps:$4 sm:$0xff]  }
 0x37b   : > { %10435 = vmatprep.subr.bf16.mxu0 %v13333_v57  ;;  %v10155_v57 = vadd.f32 %v16716_v15, %v17124_v25  ;;  %v13352_v25 = vld [vmem:[%s19291_s15 + $0x15a8] ss:$16 sps:$4 sm:$0xff]  }
 0x37c   : > { %10707 = vmatpush1.bf16.msra.mxu1 %v13328_v54  ;;  %v13351_v54 = vld [vmem:[%s19291_s15 + $0xacc] ss:$16 sps:$4 sm:$0xff]  }
 0x37d   : > { %10708 = vmatprep.subr.bf16.mxu1 %v13336_v50  ;;  %v13354_v50 = vld [vmem:[%s19291_s15 + $0x15ac] ss:$16 sps:$4 sm:$0xff]  }
 0x37e   : > { %10436 = vmatpush2.bf16.msra.mxu0 %v13331_v41 }
 0x37f   : > { %10437 = vmatprep.subr.bf16.mxu0 %v13339_v28  ;;  %v10157_v28 = vadd.f32 %v16723_v45, %v17136_v52  ;;  %v13357_v45 = vld [vmem:[%s19291_s15 + $0xaac] ss:$16 sps:$4 sm:$0xff]   ;;  %v17344_v52 = vpop.f32.mrf.mxu1 }
 0x380   : > { %10709 = vmatpush1.bf16.msra.mxu1 %v13334_v55  ;;  %v19497_v55 = vld [vmem:[#allocation57_spill] sm:$0xff] }
 0x381   : > { %10710 = vmatprep.subr.bf16.mxu1 %v13342_v19  ;;  %v17351_v7 = vpop.f32.mrf.mxu1 }
 0x382   : > { %10438 = vmatpush2.bf16.msra.mxu0 %v13337_v26  ;;  %v13349_v26 = vld [vmem:[%s19291_s15 + $0xac8] ss:$16 sps:$4 sm:$0xff]  }
 0x383   : > { %10489 = vmatprep.subr.bf16.mxu0 %v13345_v2  ;;  %v13360_v2 = vld [vmem:[%s19291_s15 + $0x158c] ss:$16 sps:$4 sm:$0xff]  }
 0x384   : > { %10711 = vmatpush2.bf16.msra.mxu1 %v13340_v5 }
 0x385   : > { %10712 = vmatprep.subr.bf16.mxu1 %v13348_v33  ;;  %v10195_v41 = vpop.f32.mrf.mxu0  ;;  %10440 = vmatmul.mubr.bf16.vlgmr.msra.gmra.mxu0 %v19497_v55 }
 0x386   : > { %v17332_v19 = vadd.f32 %v10195_v41, %v10155_v57  ;;  %10490 = vmatpush1.bf16.msra.mxu0 %v13343_v3  ;;  %10521 = vmatprep.mubr.bf16.mxu0 %v19498_v23  ;;  %v13355_v3 = vld [vmem:[%s19291_s15 + $0xaa8] ss:$16 sps:$4 sm:$0xff]   ;;  %v13363_v57 = vld [vmem:[%s19291_s15 + $0xa8c] ss:$16 sps:$4 sm:$0xff]  }
 0x387   : > { %v10197_v15 = vpop.f32.mrf.mxu0  ;;  %10491 = vmatprep.subr.bf16.mxu0 %v13351_v54  ;;  %v13358_v54 = vld [vmem:[%s19291_s15 + $0x1588] ss:$16 sps:$4 sm:$0xff]   ;;  %v13366_v41 = vld [vmem:[%s19291_s15 + $0x156c] ss:$16 sps:$4 sm:$0xff]  }
 0x388   : > { %10713 = vmatpush2.bf16.msra.mxu1 %v13346_v17  ;;  %v17346_v5 = vadd.f32 %v10197_v15, %v10157_v28  ;;  %v13361_v28 = vld [vmem:[%s19291_s15 + $0xa88] ss:$16 sps:$4 sm:$0xff]   ;;  %v13369_v23 = vld [vmem:[%s19291_s15 + $0xa6c] ss:$16 sps:$4 sm:$0xff]  }
 0x389   : > { %10714 = vmatprep.subr.bf16.mxu1 %v13354_v50  ;;  %v10199_v33 = vpop.f32.mrf.mxu0  ;;  %v10404_v50 = vpop.f32.mrf.mxu1  ;;  %v13372_v15 = vld [vmem:[%s19291_s15 + $0x154c] ss:$16 sps:$4 sm:$0xff]  }
 0x38a   : > { %10492 = vmatpush1.bf16.msra.mxu0 %v13349_v26  ;;  %v13364_v26 = vld [vmem:[%s19291_s15 + $0x1568] ss:$16 sps:$4 sm:$0xff]   ;;  %v13378_v33 = vld [vmem:[%s19291_s15 + $0x152c] ss:$16 sps:$4 sm:$0xff]  }
 0x38b   : > { %v10200_v17 = vpop.f32.mrf.mxu0  ;;  %10493 = vmatprep.subr.bf16.mxu0 %v13357_v45  ;;  %v10405_v55 = vpop.f32.mrf.mxu1  ;;  %v13370_v45 = vld [vmem:[%s19291_s15 + $0x1548] ss:$16 sps:$4 sm:$0xff]  }
 0x38c   : > { %10715 = vmatpush2.bf16.msra.mxu1 %v13352_v25  ;;  %v13367_v25 = vld [vmem:[%s19291_s15 + $0xa68] ss:$16 sps:$4 sm:$0xff]   ;;  %v13387_v55 = vld [vmem:[%s19291_s15 + $0xa0c] ss:$16 sps:$4 sm:$0xff]  }
 0x38d   : > { %10716 = vmatprep.subr.bf16.mxu1 %v13360_v2  ;;  %v13375_v2 = vld [vmem:[%s19291_s15 + $0xa4c] ss:$16 sps:$4 sm:$0xff]   ;;  %v13376_v17 = vld [vmem:[%s19291_s15 + $0x1528] ss:$16 sps:$4 sm:$0xff]  }
 0x38e   : > { %10494 = vmatpush1.bf16.msra.mxu0 %v13355_v3  ;;  %v13373_v3 = vld [vmem:[%s19291_s15 + $0xa48] ss:$16 sps:$4 sm:$0xff]  }
 0x38f   : > { %10495 = vmatprep.subr.bf16.mxu0 %v13363_v57  ;;  %v13384_v57 = vld [vmem:[%s19291_s15 + $0x150c] ss:$16 sps:$4 sm:$0xff]   ;;  %v13379_v50 = vld [vmem:[%s19291_s15 + $0xa28] ss:$16 sps:$4 sm:$0xff]  }
 0x390   : > { %10717 = vmatpush2.bf16.msra.mxu1 %v13358_v54  ;;  %v13381_v54 = vld [vmem:[%s19291_s15 + $0xa2c] ss:$16 sps:$4 sm:$0xff]  }
 0x391   : > { %10718 = vmatprep.subr.bf16.mxu1 %v13366_v41  ;;  %v13382_v41 = vld [vmem:[%s19291_s15 + $0x1508] ss:$16 sps:$4 sm:$0xff]  }
 0x392   : > { %10496 = vmatpush1.bf16.msra.mxu0 %v13361_v28  ;;  %v10841_v28 = vld [vmem:[%s19289_s13 + $0x1e8] sm:$0xff] }
 0x393   : > { %10497 = vmatprep.subr.bf16.mxu0 %v13369_v23  ;;  %v10840_v23 = vld [vmem:[%s19289_s13 + $0x1e0] sm:$0xff] }
 0x394   : > { %10719 = vmatpush2.bf16.msra.mxu1 %v13364_v26  ;;  %v13385_v26 = vld [vmem:[%s19291_s15 + $0xa08] ss:$16 sps:$4 sm:$0xff]  }
 0x395   : > { %10720 = vmatprep.subr.bf16.mxu1 %v13372_v15  ;;  %v13390_v15 = vld [vmem:[%s19291_s15 + $0xbec] ss:$16 sps:$4 sm:$0xff]  }
 0x396   : > { %10498 = vmatpush1.bf16.msra.mxu0 %v13367_v25  ;;  %v10837_v25 = vld [vmem:[%s19289_s13 + $0x1c8] sm:$0xff] }
 0x397   : > { %10499 = vmatprep.subr.bf16.mxu0 %v13375_v2  ;;  %v10836_v2 = vld [vmem:[%s19289_s13 + $0x1c0] sm:$0xff] }
 0x398   : > { %10721 = vmatpush2.bf16.msra.mxu1 %v13370_v45  ;;  %v13388_v45 = vld [vmem:[%s19291_s15 + $0xbe8] ss:$16 sps:$4 sm:$0xff]  }
 0x399   : > { %10722 = vmatprep.subr.bf16.mxu1 %v13378_v33  ;;  %v19499_v33 = vld [vmem:[#allocation64_spill] sm:$0xff] }
 0x39a   : > { %10500 = vmatpush1.bf16.msra.mxu0 %v13373_v3  ;;  %v10833_v3 = vld [vmem:[%s19289_s13 + $0x1a8] sm:$0xff] }
 0x39b   : > { %10501 = vmatprep.subr.bf16.mxu0 %v13381_v54  ;;  %v10829_v54 = vld [vmem:[%s19289_s13 + $0x188] sm:$0xff] }
 0x39c   : > { %10723 = vmatpush2.bf16.msra.mxu1 %v13376_v17  ;;  %v13393_v17 = vld [vmem:[%s19291_s15 + $0xbcc] ss:$16 sps:$4 sm:$0xff]  }
 0x39d   : > { %10724 = vmatprep.subr.bf16.mxu1 %v13384_v57  ;;  %v13391_v57 = vld [vmem:[%s19291_s15 + $0xbc8] ss:$16 sps:$4 sm:$0xff]  }
 0x39e   : > { %10502 = vmatpush1.bf16.msra.mxu0 %v13379_v50  ;;  %v10828_v50 = vld [vmem:[%s19289_s13 + $0x180] sm:$0xff] }
 0x39f   : > { %10503 = vmatprep.subr.bf16.mxu0 %v13387_v55  ;;  %v13396_v55 = vld [vmem:[%s19291_s15 + $0xbac] ss:$16 sps:$4 sm:$0xff]  }
 0x3a0   : > { %10725 = vmatpush2.bf16.msra.mxu1 %v13382_v41  ;;  %v10825_v41 = vld [vmem:[%s19289_s13 + $0x168] sm:$0xff] }
 0x3a1   : > { %10930 = vmatprep.subr.mxu1 %v10841_v28  ;;  %v10824_v28 = vld [vmem:[%s19289_s13 + $0x160] sm:$0xff] }
 0x3a2   : > { %10504 = vmatpush1.bf16.msra.mxu0 %v13385_v26  ;;  %v10821_v26 = vld [vmem:[%s19289_s13 + $0x148] sm:$0xff] }
 0x3a3   : > { %10727 = vmatmul.mubr.bf16.vlgmr.msra.gmra.mxu1 %v19493_v58  ;;  %10505 = vmatprep.subr.bf16.mxu0 %v13390_v15  ;;  %v10832_v58 = vld [vmem:[%s19289_s13 + $0x1a0] sm:$0xff] }
 0x3a4   : > { %10931 = vmatpush1.msra.mxu1 %v10840_v23  ;;  %10994 = vmatprep.mubr.f32.mxu1 %v19499_v33  ;;  %v13394_v23 = vld [vmem:[%s19291_s15 + $0xba8] ss:$16 sps:$4 sm:$0xff]   ;;  %v10820_v15 = vld [vmem:[%s19289_s13 + $0x140] sm:$0xff] }
 0x3a5   : > { %10932 = vmatprep.subr.mxu1 %v10837_v25  ;;  %v10817_v25 = vld [vmem:[%s19289_s13 + $0x128] sm:$0xff] }
 0x3a6   : > { %10933 = vmatpush1.msra.mxu1 %v10836_v2  ;;  %10506 = vmatpush2.bf16.msra.mxu0 %v13388_v45  ;;  %v13399_v45 = vld [vmem:[%s19291_s15 + $0xb8c] ss:$16 sps:$4 sm:$0xff]   ;;  %v10816_v2 = vld [vmem:[%s19289_s13 + $0x120] sm:$0xff] }
 0x3a7   : > { %10934 = vmatprep.subr.mxu1 %v10833_v3  ;;  %10507 = vmatprep.subr.bf16.mxu0 %v13393_v17  ;;  %v10813_v3 = vld [vmem:[%s19289_s13 + $0x108] sm:$0xff] }
 0x3a8   : > { %10935 = vmatpush1.msra.mxu1 %v10832_v58  ;;  %v13397_v17 = vld [vmem:[%s19291_s15 + $0xb88] ss:$16 sps:$4 sm:$0xff]   ;;  %v10812_v58 = vld [vmem:[%s19289_s13 + $0x100] sm:$0xff] }
 0x3a9   : > { %10936 = vmatprep.subr.mxu1 %v10829_v54  ;;  %v10809_v54 = vld [vmem:[%s19289_s13 + $0xe8] sm:$0xff] }
 0x3aa   : > { %10937 = vmatpush1.msra.mxu1 %v10828_v50  ;;  %10508 = vmatpush2.bf16.msra.mxu0 %v13391_v57  ;;  %v13402_v57 = vld [vmem:[%s19291_s15 + $0xb6c] ss:$16 sps:$4 sm:$0xff]   ;;  %v10808_v50 = vld [vmem:[%s19289_s13 + $0xe0] sm:$0xff] }
 0x3ab   : > { %10938 = vmatprep.subr.mxu1 %v10825_v41  ;;  %10509 = vmatprep.subr.bf16.mxu0 %v13396_v55  ;;  %v10805_v41 = vld [vmem:[%s19289_s13 + $0xc8] sm:$0xff] }
 0x3ac   : > { %10939 = vmatpush1.msra.mxu1 %v10824_v28  ;;  %v13400_v55 = vld [vmem:[%s19291_s15 + $0xb68] ss:$16 sps:$4 sm:$0xff]   ;;  %v10804_v28 = vld [vmem:[%s19289_s13 + $0xc0] sm:$0xff] }
 0x3ad   : > { %10940 = vmatprep.subr.mxu1 %v10821_v26  ;;  %v10801_v26 = vld [vmem:[%s19289_s13 + $0xa8] sm:$0xff] }
 0x3ae   : > { %10941 = vmatpush1.msra.mxu1 %v10820_v15  ;;  %10510 = vmatpush2.bf16.msra.mxu0 %v13394_v23  ;;  %v13405_v23 = vld [vmem:[%s19291_s15 + $0xb4c] ss:$16 sps:$4 sm:$0xff]   ;;  %v10800_v15 = vld [vmem:[%s19289_s13 + $0xa0] sm:$0xff] }
 0x3af   : > { %10942 = vmatprep.subr.mxu1 %v10817_v25  ;;  %10511 = vmatprep.subr.bf16.mxu0 %v13399_v45  ;;  %v10797_v25 = vld [vmem:[%s19289_s13 + $0x88] sm:$0xff] }
 0x3b0   : > { %10943 = vmatpush1.msra.mxu1 %v10816_v2  ;;  %v13403_v45 = vld [vmem:[%s19291_s15 + $0xb48] ss:$16 sps:$4 sm:$0xff]   ;;  %v10796_v2 = vld [vmem:[%s19289_s13 + $0x80] sm:$0xff] }
 0x3b1   : > { %10944 = vmatprep.subr.mxu1 %v10813_v3  ;;  %v10793_v3 = vld [vmem:[%s19289_s13 + $0x68] sm:$0xff] }
 0x3b2   : > { %10945 = vmatpush1.msra.mxu1 %v10812_v58  ;;  %10512 = vmatpush2.bf16.msra.mxu0 %v13397_v17  ;;  %v13408_v17 = vld [vmem:[%s19291_s15 + $0xb2c] ss:$16 sps:$4 sm:$0xff]   ;;  %v10792_v58 = vld [vmem:[%s19289_s13 + $0x60] sm:$0xff] }
 0x3b3   : > { %10946 = vmatprep.subr.mxu1 %v10809_v54  ;;  %10513 = vmatprep.subr.bf16.mxu0 %v13402_v57  ;;  %v10789_v54 = vld [vmem:[%s19289_s13 + $0x48] sm:$0xff] }
 0x3b4   : > { %10947 = vmatpush1.msra.mxu1 %v10808_v50  ;;  %v13406_v57 = vld [vmem:[%s19291_s15 + $0xb28] ss:$16 sps:$4 sm:$0xff]   ;;  %v10788_v50 = vld [vmem:[%s19289_s13 + $0x40] sm:$0xff] }
 0x3b5   : > { %10948 = vmatprep.subr.mxu1 %v10805_v41  ;;  %v10785_v41 = vld [vmem:[%s19289_s13 + $0x28] sm:$0xff] }
 0x3b6   : > { %10949 = vmatpush1.msra.mxu1 %v10804_v28  ;;  %10514 = vmatpush2.bf16.msra.mxu0 %v13400_v55  ;;  %v13411_v55 = vld [vmem:[%s19291_s15 + $0xb0c] ss:$16 sps:$4 sm:$0xff]   ;;  %v10784_v28 = vld [vmem:[%s19289_s13 + $0x20] sm:$0xff] }
 0x3b7   : > { %10950 = vmatprep.subr.mxu1 %v10801_v26  ;;  %10515 = vmatprep.subr.bf16.mxu0 %v13405_v23  ;;  %v10781_v26 = vld [vmem:[%s19289_s13 + $0x8] sm:$0xff] }
 0x3b8   : > { %10951 = vmatpush1.msra.mxu1 %v10800_v15  ;;  %v13409_v23 = vld [vmem:[%s19291_s15 + $0xb08] ss:$16 sps:$4 sm:$0xff]   ;;  %v10780_v15 = vld [vmem:[%s19289_s13] sm:$0xff] }
 0x3b9   : > { %10952 = vmatprep.subr.mxu1 %v10797_v25  ;;  %v10905_v25 = vld [vmem:[%s19289_s13 + $0x3e8] sm:$0xff] }
 0x3ba   : > { %10953 = vmatpush1.msra.mxu1 %v10796_v2  ;;  %10516 = vmatpush2.bf16.msra.mxu0 %v13403_v45  ;;  %v13414_v45 = vld [vmem:[%s19291_s15 + $0xeec] ss:$16 sps:$4 sm:$0xff]   ;;  %v10904_v2 = vld [vmem:[%s19289_s13 + $0x3e0] sm:$0xff] }
 0x3bb   : > { %10954 = vmatprep.subr.mxu1 %v10793_v3  ;;  %10517 = vmatprep.subr.bf16.mxu0 %v13408_v17  ;;  %v10901_v3 = vld [vmem:[%s19289_s13 + $0x3c8] sm:$0xff] }
 0x3bc   : > { %10955 = vmatpush1.msra.mxu1 %v10792_v58  ;;  %v13412_v17 = vld [vmem:[%s19291_s15 + $0xee8] ss:$16 sps:$4 sm:$0xff]   ;;  %v10900_v58 = vld [vmem:[%s19289_s13 + $0x3c0] sm:$0xff] }
 0x3bd   : > { %10956 = vmatprep.subr.mxu1 %v10789_v54  ;;  %v10897_v54 = vld [vmem:[%s19289_s13 + $0x3a8] sm:$0xff] }
 0x3be   : > { %10957 = vmatpush1.msra.mxu1 %v10788_v50  ;;  %10518 = vmatpush2.bf16.msra.mxu0 %v13406_v57  ;;  %v13417_v57 = vld [vmem:[%s19291_s15 + $0xecc] ss:$16 sps:$4 sm:$0xff]   ;;  %v10237_v50 = vadd.f32 %v16928_v56, %v17332_v19  ;;  %v13415_v56 = vld [vmem:[%s19291_s15 + $0xec8] ss:$16 sps:$4 sm:$0xff]   ;;  %v10892_v19 = vld [vmem:[%s19289_s13 + $0x380] sm:$0xff] }
 0x3bf   : > { %10958 = vmatprep.subr.mxu1 %v10785_v41  ;;  %10519 = vmatprep.subr.bf16.mxu0 %v13411_v55  ;;  %v10896_v41 = vld [vmem:[%s19289_s13 + $0x3a0] sm:$0xff] }
 0x3c0   : > { %10959 = vmatpush1.msra.mxu1 %v10784_v28  ;;  %v10893_v28 = vld [vmem:[%s19289_s13 + $0x388] sm:$0xff] }
 0x3c1   : > { %10960 = vmatprep.subr.mxu1 %v10781_v26  ;;  %v10239_v26 = vadd.f32 %v16935_v51, %v17346_v5  ;;  %v13420_v51 = vld [vmem:[%s19291_s15 + $0xeac] ss:$16 sps:$4 sm:$0xff]   ;;  %v17606_v5 = vpop.f32.mrf.mxu1 }
 0x3c2   : > { %10961 = vmatpush1.msra.mxu1 %v10780_v15  ;;  %10520 = vmatpush2.bf16.msra.mxu0 %v13409_v23  ;;  %v10889_v15 = vld [vmem:[%s19289_s13 + $0x368] sm:$0xff] }
 0x3c3   : > { %10962 = vmatprep.subr.mxu1 %v10905_v25  ;;  %10571 = vmatprep.subr.bf16.mxu0 %v13414_v45 }
 0x3c4   : > { %10963 = vmatpush2.msra.mxu1 %v10904_v2  ;;  %v10888_v2 = vld [vmem:[%s19289_s13 + $0x360] sm:$0xff] }
 0x3c5   : > { %10964 = vmatprep.subr.mxu1 %v10901_v3  ;;  %v10277_v55 = vpop.f32.mrf.mxu0  ;;  %10522 = vmatmul.mubr.bf16.vlgmr.msra.gmra.mxu0 %v15646_v48 }
 0x3c6   : > { %10965 = vmatpush2.msra.mxu1 %v10900_v58  ;;  %v10278_v23 = vadd.f32 %v10277_v55, %v10237_v50  ;;  %10572 = vmatpush1.bf16.msra.mxu0 %v13412_v17  ;;  %v10885_v17 = vld [vmem:[%s19289_s13 + $0x348] sm:$0xff]  ;;  %v17618_v58 = vpop.f32.mrf.mxu1  ;;  %v10884_v50 = vld [vmem:[%s19289_s13 + $0x340] sm:$0xff] }
 0x3c7   : > { %10966 = vmatprep.subr.mxu1 %v10897_v54  ;;  %v10279_v48 = vpop.f32.mrf.mxu0  ;;  %10573 = vmatprep.subr.bf16.mxu0 %v13417_v57  ;;  %v10881_v55 = vld [vmem:[%s19289_s13 + $0x328] sm:$0xff] }
 0x3c8   : > { %10967 = vmatpush2.msra.mxu1 %v10896_v41  ;;  %v17609_v25 = vmul.f32 %v10278_v23, %v15149_v61  ;;  %v10280_v45 = vadd.f32 %v10279_v48, %v10239_v26  ;;  %10603 = vmatprep.mubr.bf16.mxu0 %v16002_v32  ;;  %v13418_v32 = vld [vmem:[%s19291_s15 + $0xea8] ss:$16 sps:$4 sm:$0xff]   ;;  %v10486_v26 = vpop.f32.mrf.mxu1 }
 0x3c9   : > { %10968 = vmatprep.subr.mxu1 %v10893_v28  ;;  %v10281_v3 = vpop.f32.mrf.mxu0  ;;  %v13423_v28 = vld [vmem:[%s19291_s15 + $0xe8c] ss:$16 sps:$4 sm:$0xff]  }
 0x3ca   : > { %10969 = vmatpush2.msra.mxu1 %v10892_v19  ;;  %v11122_v54 = vmul.f32 %v17609_v25, %v17609_v25  ;;  %v17623_v57 = vmul.f32 %v10280_v45, %v15149_v61  ;;  %10574 = vmatpush1.bf16.msra.mxu0 %v13415_v56  ;;  %v10880_v56 = vld [vmem:[%s19289_s13 + $0x320] sm:$0xff]  ;;  %v10877_v19 = vld [vmem:[%s19289_s13 + $0x308] sm:$0xff]  ;;  %v10487_v48 = vpop.f32.mrf.mxu1 }
 0x3cb   : > { %10970 = vmatprep.subr.mxu1 %v10889_v15  ;;  %v10282_v41 = vpop.f32.mrf.mxu0  ;;  %10575 = vmatprep.subr.bf16.mxu0 %v13420_v51  ;;  %v13421_v15 = vld [vmem:[%s19291_s15 + $0xe88] ss:$16 sps:$4 sm:$0xff]   ;;  %v10876_v51 = vld [vmem:[%s19289_s13 + $0x300] sm:$0xff]  ;;  %v13429_v26 = vld [vmem:[%s19291_s15 + $0xe4c] ss:$16 sps:$4 sm:$0xff]  }
 0x3cc   : > { %10971 = vmatpush2.msra.mxu1 %v10888_v2  ;;  %v11123_v23 = vmul.f32 %v17623_v57, %v17623_v57  ;;  %v11126_v45 = vsel %vm11076_vm1, %v11122_v54, 0.0  ;;  %v10873_v3 = vld [vmem:[%s19289_s13 + $0x2e8] sm:$0xff]  ;;  %v10860_v48 = vld [vmem:[%s19289_s13 + $0x280] sm:$0xff] }
 0x3cd   : > { %10972 = vmatprep.subr.mxu1 %v10885_v17  ;;  %v13426_v17 = vld [vmem:[%s19291_s15 + $0xe6c] ss:$16 sps:$4 sm:$0xff]   ;;  %v13424_v41 = vld [vmem:[%s19291_s15 + $0xe68] ss:$16 sps:$4 sm:$0xff]  }
 0x3ce   : > { %10973 = vmatpush2.msra.mxu1 %v10884_v50  ;;  %10576 = vmatpush1.bf16.msra.mxu0 %v13418_v32  ;;  %v11127_v2 = vsel %vm11076_vm1, %v11123_v23, 0.0  ;;  %v10872_v50 = vld [vmem:[%s19289_s13 + $0x2e0] sm:$0xff]  ;;  %v10869_v54 = vld [vmem:[%s19289_s13 + $0x2c8] sm:$0xff] }
 0x3cf   : > { %10974 = vmatprep.subr.mxu1 %v10881_v55  ;;  %10577 = vmatprep.subr.bf16.mxu0 %v13423_v28  ;;  %v17659_v32 = vadd.f32 %v11127_v2, %v11126_v45  ;;  %v10868_v55 = vld [vmem:[%s19289_s13 + $0x2c0] sm:$0xff]  ;;  %v10865_v28 = vld [vmem:[%s19289_s13 + $0x2a8] sm:$0xff] }
 0x3d0   : > { %10975 = vmatpush2.msra.mxu1 %v10880_v56  ;;  %v10864_v23 = vld [vmem:[%s19289_s13 + $0x2a0] sm:$0xff]  ;;  %v10861_v56 = vld [vmem:[%s19289_s13 + $0x288] sm:$0xff] }
 0x3d1   : > { %10976 = vmatprep.subr.mxu1 %v10877_v19  ;;  %v13427_v19 = vld [vmem:[%s19291_s15 + $0xe48] ss:$16 sps:$4 sm:$0xff]   ;;  %v10856_v45 = vld [vmem:[%s19289_s13 + $0x260] sm:$0xff] }
 0x3d2   : > { %10977 = vmatpush2.msra.mxu1 %v10876_v51  ;;  %10578 = vmatpush1.bf16.msra.mxu0 %v13421_v15  ;;  %v10857_v15 = vld [vmem:[%s19289_s13 + $0x268] sm:$0xff] }
 0x3d3   : > { %10978 = vmatprep.subr.mxu1 %v10873_v3  ;;  %10579 = vmatprep.subr.bf16.mxu0 %v13426_v17  ;;  %v13432_v51 = vld [vmem:[%s19291_s15 + $0xe2c] ss:$16 sps:$4 sm:$0xff]   ;;  %v13430_v3 = vld [vmem:[%s19291_s15 + $0xe28] ss:$16 sps:$4 sm:$0xff]   ;;  %v10852_v17 = vld [vmem:[%s19289_s13 + $0x240] sm:$0xff] }
 0x3d4   : > { %10979 = vmatpush2.msra.mxu1 %v10872_v50  ;;  %v10853_v2 = vld [vmem:[%s19289_s13 + $0x248] sm:$0xff] }
 0x3d5   : > { %10980 = vmatprep.subr.mxu1 %v10869_v54  ;;  %v10849_v50 = vld [vmem:[%s19289_s13 + $0x228] sm:$0xff] }
 0x3d6   : > { %10981 = vmatpush2.msra.mxu1 %v10868_v55  ;;  %10580 = vmatpush1.bf16.msra.mxu0 %v13424_v41  ;;  %v13435_v54 = vld [vmem:[%s19291_s15 + $0xe0c] ss:$16 sps:$4 sm:$0xff]   ;;  %v10848_v41 = vld [vmem:[%s19289_s13 + $0x220] sm:$0xff] }
 0x3d7   : > { %10982 = vmatprep.subr.mxu1 %v10865_v28  ;;  %10581 = vmatprep.subr.bf16.mxu0 %v13429_v26  ;;  %v10845_v55 = vld [vmem:[%s19289_s13 + $0x208] sm:$0xff]  ;;  %v10844_v26 = vld [vmem:[%s19289_s13 + $0x200] sm:$0xff] }
 0x3d8   : > { %10983 = vmatpush2.msra.mxu1 %v10864_v23  ;;  %v13433_v28 = vld [vmem:[%s19291_s15 + $0xe08] ss:$16 sps:$4 sm:$0xff]   ;;  %v13438_v23 = vld [vmem:[%s19291_s15 + $0xfec] ss:$16 sps:$4 sm:$0xff]  }
 0x3d9   : > { %10984 = vmatprep.subr.mxu1 %v10861_v56  ;;  %v19500_v56 = vld [vmem:[#allocation61_spill] sm:$0xff] }
 0x3da   : > { %10985 = vmatpush2.msra.mxu1 %v10860_v48  ;;  %10582 = vmatpush1.bf16.msra.mxu0 %v13427_v19  ;;  %v13436_v19 = vld [vmem:[%s19291_s15 + $0xfe8] ss:$16 sps:$4 sm:$0xff]   ;;  %v13441_v48 = vld [vmem:[%s19291_s15 + $0xfcc] ss:$16 sps:$4 sm:$0xff]  }
 0x3db   : > { %10986 = vmatprep.subr.mxu1 %v10857_v15  ;;  %10583 = vmatprep.subr.bf16.mxu0 %v13432_v51  ;;  %v13439_v15 = vld [vmem:[%s19291_s15 + $0xfc8] ss:$16 sps:$4 sm:$0xff]   ;;  %v13444_v51 = vld [vmem:[%s19291_s15 + $0xfac] ss:$16 sps:$4 sm:$0xff]  }
 0x3dc   : > { %10987 = vmatpush2.msra.mxu1 %v10856_v45  ;;  %v13442_v45 = vld [vmem:[%s19291_s15 + $0xfa8] ss:$16 sps:$4 sm:$0xff]  }
 0x3dd   : > { %10988 = vmatprep.subr.mxu1 %v10853_v2  ;;  %v13447_v2 = vld [vmem:[%s19291_s15 + $0xf8c] ss:$16 sps:$4 sm:$0xff]  }
 0x3de   : > { %10989 = vmatpush2.msra.mxu1 %v10852_v17  ;;  %10584 = vmatpush1.bf16.msra.mxu0 %v13430_v3  ;;  %v13445_v3 = vld [vmem:[%s19291_s15 + $0xf88] ss:$16 sps:$4 sm:$0xff]   ;;  %v13450_v17 = vld [vmem:[%s19291_s15 + $0xf6c] ss:$16 sps:$4 sm:$0xff]  }
 0x3df   : > { %10990 = vmatprep.subr.mxu1 %v10849_v50  ;;  %10585 = vmatprep.subr.bf16.mxu0 %v13435_v54  ;;  %v13448_v50 = vld [vmem:[%s19291_s15 + $0xf68] ss:$16 sps:$4 sm:$0xff]   ;;  %v13453_v54 = vld [vmem:[%s19291_s15 + $0xf4c] ss:$16 sps:$4 sm:$0xff]  }
 0x3e0   : > { %10991 = vmatpush2.msra.mxu1 %v10848_v41  ;;  %v13451_v41 = vld [vmem:[%s19291_s15 + $0xf48] ss:$16 sps:$4 sm:$0xff]  }
 0x3e1   : > { %10992 = vmatprep.subr.mxu1 %v10845_v55  ;;  %v13456_v55 = vld [vmem:[%s19291_s15 + $0xf2c] ss:$16 sps:$4 sm:$0xff]  }
 0x3e2   : > { %10993 = vmatpush2.msra.mxu1 %v10844_v26  ;;  %10586 = vmatpush1.bf16.msra.mxu0 %v13433_v28  ;;  %v13454_v28 = vld [vmem:[%s19291_s15 + $0xf28] ss:$16 sps:$4 sm:$0xff]   ;;  %v13459_v26 = vld [vmem:[%s19291_s15 + $0xf0c] ss:$16 sps:$4 sm:$0xff]  }
 0x3e3   : > { %10995 = vmatmul.mubr.f32.vlgmr.msra.gmra.mxu1 %v19500_v56  ;;  %10587 = vmatprep.subr.bf16.mxu0 %v13438_v23  ;;  %v13570_v23 = vld [vmem:[%s19292_s16] sm:$0xf] }
 0x3e6   : > { %10588 = vmatpush2.bf16.msra.mxu0 %v13436_v19  ;;  %v19501_v19 = vld [vmem:[#allocation19_spill] sm:$0xff] }
 0x3e7   : > { %10589 = vmatprep.subr.bf16.mxu0 %v13441_v48  ;;  %v9783_v48 = vrot.slane %v13570_v23, %v19501_v19 }
 0x3ea   : > { %10590 = vmatpush2.bf16.msra.mxu0 %v13439_v15  ;;  %v19502_v15 = vld [vmem:[#allocation16_spill] sm:$0xff] }
 0x3eb   : > { %10591 = vmatprep.subr.bf16.mxu0 %v13444_v51  ;;  %v17778_v51 = vsub.s32 3, %v19502_v15 }
 0x3ee   : > { %10592 = vmatpush2.bf16.msra.mxu0 %v13442_v45  ;;  %v13457_v45 = vld [vmem:[%s19291_s15 + $0xf08] ss:$16 sps:$4 sm:$0xff]  }
 0x3ef   : > { %10593 = vmatprep.subr.bf16.mxu0 %v13447_v2  ;;  %v13462_v2 = vld [vmem:[%s19291_s15 + $0x12ec] ss:$16 sps:$4 sm:$0xff]  }
 0x3f2   : > { %10594 = vmatpush2.bf16.msra.mxu0 %v13445_v3  ;;  %v10319_v3 = vadd.f32 %v17290_v46, %v9783_v48  ;;  %v13463_v46 = vld [vmem:[%s19291_s15 + $0x12c8] ss:$16 sps:$4 sm:$0xff]   ;;  %v17805_v48 = vpop.f32.mrf.mxu1 }
 0x3f3   : > { %10595 = vmatprep.subr.bf16.mxu0 %v13450_v17  ;;  %v9787_v17 = vrot.slane %v13570_v23, %v17778_v51  ;;  %v13468_v23 = vld [vmem:[%s19291_s15 + $0x12ac] ss:$16 sps:$4 sm:$0xff]  }
 0x3f6   : > { %10596 = vmatpush2.bf16.msra.mxu0 %v13448_v50  ;;  %v13460_v50 = vld [vmem:[%s19291_s15 + $0x12e8] ss:$16 sps:$4 sm:$0xff]  }
 0x3f7   : > { %10597 = vmatprep.subr.bf16.mxu0 %v13453_v54  ;;  %v13465_v54 = vld [vmem:[%s19291_s15 + $0x12cc] ss:$16 sps:$4 sm:$0xff]  }
 0x3fa   : > { %10598 = vmatpush2.bf16.msra.mxu0 %v13451_v41 }
 0x3fb   : > { %10599 = vmatprep.subr.bf16.mxu0 %v13456_v55  ;;  %v10321_v55 = vadd.f32 %v17301_v9, %v9787_v17 }
 0x3fe   : > { %10600 = vmatpush2.bf16.msra.mxu0 %v13454_v28 }
 0x3ff   : > { %10601 = vmatprep.subr.bf16.mxu0 %v13459_v26 }
 0x402   : > { %10602 = vmatpush2.bf16.msra.mxu0 %v13457_v45  ;;  %v17809_v45 = vpop.f32.mrf.mxu1 }
 0x403   : > { %10653 = vmatprep.subr.bf16.mxu0 %v13462_v2  ;;  %v13466_v2 = vld [vmem:[%s19291_s15 + $0x12a8] ss:$16 sps:$4 sm:$0xff]  }
 0x404   : > { %v10568_v17 = vpop.f32.mrf.mxu1 }
 0x405   : > { %v10359_v41 = vpop.f32.mrf.mxu0  ;;  %10604 = vmatmul.mubr.bf16.vlgmr.msra.gmra.mxu0 %v16466_v31  ;;  %v13484_v17 = vld [vmem:[%s19291_s15 + $0x13e8] ss:$16 sps:$4 sm:$0xff]  }
 0x406   : > { %v17796_v28 = vadd.f32 %v10359_v41, %v10319_v3  ;;  %10654 = vmatpush1.bf16.msra.mxu0 %v13460_v50  ;;  %10685 = vmatprep.mubr.bf16.mxu0 %v16474_v18  ;;  %v13471_v18 = vld [vmem:[%s19291_s15 + $0x128c] ss:$16 sps:$4 sm:$0xff]   ;;  %v10569_v50 = vpop.f32.mrf.mxu1 }
 0x407   : > { %v10361_v26 = vpop.f32.mrf.mxu0  ;;  %10655 = vmatprep.subr.bf16.mxu0 %v13465_v54  ;;  %v13469_v54 = vld [vmem:[%s19291_s15 + $0x1288] ss:$16 sps:$4 sm:$0xff]   ;;  %v13474_v41 = vld [vmem:[%s19291_s15 + $0x126c] ss:$16 sps:$4 sm:$0xff]  }
 0x408   : > { %v17807_v31 = vadd.f32 %v10361_v26, %v10321_v55  ;;  %v13472_v55 = vld [vmem:[%s19291_s15 + $0x1268] ss:$16 sps:$4 sm:$0xff]  }
 0x409   : > { %v10363_v9 = vpop.f32.mrf.mxu0  ;;  %v13475_v26 = vld [vmem:[%s19291_s15 + $0x1248] ss:$16 sps:$4 sm:$0xff]  }
 0x40a   : > { %10656 = vmatpush1.bf16.msra.mxu0 %v13463_v46  ;;  %v13477_v46 = vld [vmem:[%s19291_s15 + $0x124c] ss:$16 sps:$4 sm:$0xff]   ;;  %v13478_v9 = vld [vmem:[%s19291_s15 + $0x1228] ss:$16 sps:$4 sm:$0xff]  }
 0x40b   : > { %v10364_v3 = vpop.f32.mrf.mxu0  ;;  %10657 = vmatprep.subr.bf16.mxu0 %v13468_v23  ;;  %v13480_v23 = vld [vmem:[%s19291_s15 + $0x122c] ss:$16 sps:$4 sm:$0xff]  }
 0x40c   : > { %v13481_v3 = vld [vmem:[%s19291_s15 + $0x1208] ss:$16 sps:$4 sm:$0xff]  }
 0x40e   : > { %10658 = vmatpush1.bf16.msra.mxu0 %v13466_v2  ;;  %v13483_v2 = vld [vmem:[%s19291_s15 + $0x120c] ss:$16 sps:$4 sm:$0xff]  }
 0x40f   : > { %10659 = vmatprep.subr.bf16.mxu0 %v13471_v18  ;;  %v13486_v18 = vld [vmem:[%s19291_s15 + $0x13ec] ss:$16 sps:$4 sm:$0xff]  }
 0x412   : > { %10660 = vmatpush1.bf16.msra.mxu0 %v13469_v54  ;;  %v13489_v54 = vld [vmem:[%s19291_s15 + $0x13cc] ss:$16 sps:$4 sm:$0xff]  }
 0x413   : > { %10661 = vmatprep.subr.bf16.mxu0 %v13474_v41 }
 0x416   : > { %10662 = vmatpush1.bf16.msra.mxu0 %v13472_v55  ;;  %v13487_v55 = vld [vmem:[%s19291_s15 + $0x13c8] ss:$16 sps:$4 sm:$0xff]  }
 0x417   : > { %10663 = vmatprep.subr.bf16.mxu0 %v13477_v46 }
 0x41a   : > { %10664 = vmatpush1.bf16.msra.mxu0 %v13475_v26  ;;  %v13492_v26 = vld [vmem:[%s19291_s15 + $0x13ac] ss:$16 sps:$4 sm:$0xff]  }
 0x41b   : > { %10665 = vmatprep.subr.bf16.mxu0 %v13480_v23 }
 0x41e   : > { %10666 = vmatpush1.bf16.msra.mxu0 %v13478_v9  ;;  %v13490_v9 = vld [vmem:[%s19291_s15 + $0x13a8] ss:$16 sps:$4 sm:$0xff]  }
 0x41f   : > { %10667 = vmatprep.subr.bf16.mxu0 %v13483_v2  ;;  %v13495_v2 = vld [vmem:[%s19291_s15 + $0x138c] ss:$16 sps:$4 sm:$0xff]  }
 0x422   : > { %10668 = vmatpush1.bf16.msra.mxu0 %v13481_v3  ;;  %v13493_v3 = vld [vmem:[%s19291_s15 + $0x1388] ss:$16 sps:$4 sm:$0xff]  }
 0x423   : > { %v17850_v50 = vpop.f32.mrf.mxu1  ;;  %10669 = vmatprep.subr.bf16.mxu0 %v13486_v18  ;;  %v13498_v18 = vld [vmem:[%s19291_s15 + $0x136c] ss:$16 sps:$4 sm:$0xff]  }
 0x425   : > { %v17855_v41 = vpop.f32.mrf.mxu1 }
 0x426   : > { %10670 = vmatpush2.bf16.msra.mxu0 %v13484_v17  ;;  %v13496_v17 = vld [vmem:[%s19291_s15 + $0x1368] ss:$16 sps:$4 sm:$0xff]  }
 0x427   : > { %v10650_v46 = vpop.f32.mrf.mxu1  ;;  %10671 = vmatprep.subr.bf16.mxu0 %v13489_v54  ;;  %v13501_v54 = vld [vmem:[%s19291_s15 + $0x134c] ss:$16 sps:$4 sm:$0xff]  }
 0x428   : > { %v13504_v46 = vld [vmem:[%s19291_s15 + $0x132c] ss:$16 sps:$4 sm:$0xff]  }
 0x429   : > { %v10651_v23 = vpop.f32.mrf.mxu1 }
 0x42a   : > { %10672 = vmatpush2.bf16.msra.mxu0 %v13487_v55  ;;  %v13499_v55 = vld [vmem:[%s19291_s15 + $0x1348] ss:$16 sps:$4 sm:$0xff]   ;;  %v13507_v23 = vld [vmem:[%s19291_s15 + $0x130c] ss:$16 sps:$4 sm:$0xff]  }
 0x42b   : > { %10673 = vmatprep.subr.bf16.mxu0 %v13492_v26  ;;  %v13502_v26 = vld [vmem:[%s19291_s15 + $0x1328] ss:$16 sps:$4 sm:$0xff]  }
 0x42e   : > { %10674 = vmatpush2.bf16.msra.mxu0 %v13490_v9  ;;  %v13505_v9 = vld [vmem:[%s19291_s15 + $0x1308] ss:$16 sps:$4 sm:$0xff]  }
 0x42f   : > { %10675 = vmatprep.subr.bf16.mxu0 %v13495_v2  ;;  %v13510_v2 = vld [vmem:[%s19291_s15 + $0x16ec] ss:$16 sps:$4 sm:$0xff]  }
 0x432   : > { %10676 = vmatpush2.bf16.msra.mxu0 %v13493_v3  ;;  %v13508_v3 = vld [vmem:[%s19291_s15 + $0x16e8] ss:$16 sps:$4 sm:$0xff]  }
 0x433   : > { %10677 = vmatprep.subr.bf16.mxu0 %v13498_v18  ;;  %v13513_v18 = vld [vmem:[%s19291_s15 + $0x16cc] ss:$16 sps:$4 sm:$0xff]  }
 0x436   : > { %10678 = vmatpush2.bf16.msra.mxu0 %v13496_v17  ;;  %v10401_v17 = vadd.f32 %v17344_v52, %v17796_v28  ;;  %v13516_v52 = vld [vmem:[%s19291_s15 + $0x16ac] ss:$16 sps:$4 sm:$0xff]  }
 0x437   : > { %10679 = vmatprep.subr.bf16.mxu0 %v13501_v54 }
 0x43a   : > { %10680 = vmatpush2.bf16.msra.mxu0 %v13499_v55  ;;  %v10403_v55 = vadd.f32 %v17351_v7, %v17807_v31  ;;  %v13514_v7 = vld [vmem:[%s19291_s15 + $0x16a8] ss:$16 sps:$4 sm:$0xff]  }
 0x43b   : > { %10681 = vmatprep.subr.bf16.mxu0 %v13504_v46 }
 0x43e   : > { %10682 = vmatpush2.bf16.msra.mxu0 %v13502_v26  ;;  %v13511_v26 = vld [vmem:[%s19291_s15 + $0x16c8] ss:$16 sps:$4 sm:$0xff]  }
 0x43f   : > { %10683 = vmatprep.subr.bf16.mxu0 %v13507_v23 }
 0x442   : > { %10684 = vmatpush2.bf16.msra.mxu0 %v13505_v9  ;;  %v13517_v9 = vld [vmem:[%s19291_s15 + $0x1688] ss:$16 sps:$4 sm:$0xff]  }
 0x443   : > { %10735 = vmatprep.subr.bf16.mxu0 %v13510_v2  ;;  %v13522_v2 = vld [vmem:[%s19291_s15 + $0x166c] ss:$16 sps:$4 sm:$0xff]  }
 0x445   : > { %v10441_v54 = vpop.f32.mrf.mxu0  ;;  %10686 = vmatmul.mubr.bf16.vlgmr.msra.gmra.mxu0 %v16681_v11 }
 0x446   : > { %v17910_v46 = vadd.f32 %v10441_v54, %v10401_v17  ;;  %10736 = vmatpush1.bf16.msra.mxu0 %v13508_v3  ;;  %10767 = vmatprep.mubr.bf16.mxu0 %v16688_v8  ;;  %v13519_v8 = vld [vmem:[%s19291_s15 + $0x168c] ss:$16 sps:$4 sm:$0xff]   ;;  %v13520_v3 = vld [vmem:[%s19291_s15 + $0x1668] ss:$16 sps:$4 sm:$0xff]  }
 0x447   : > { %v10443_v23 = vpop.f32.mrf.mxu0  ;;  %10737 = vmatprep.subr.bf16.mxu0 %v13513_v18  ;;  %v13525_v18 = vld [vmem:[%s19291_s15 + $0x164c] ss:$16 sps:$4 sm:$0xff]   ;;  %v13523_v17 = vld [vmem:[%s19291_s15 + $0x1648] ss:$16 sps:$4 sm:$0xff]  }
 0x448   : > { %v17919_v28 = vadd.f32 %v10443_v23, %v10403_v55  ;;  %v13528_v54 = vld [vmem:[%s19291_s15 + $0x162c] ss:$16 sps:$4 sm:$0xff]   ;;  %v13526_v55 = vld [vmem:[%s19291_s15 + $0x1628] ss:$16 sps:$4 sm:$0xff]  }
 0x449   : > { %v10445_v11 = vpop.f32.mrf.mxu0  ;;  %v13529_v23 = vld [vmem:[%s19291_s15 + $0x1608] ss:$16 sps:$4 sm:$0xff]  }
 0x44a   : > { %10738 = vmatpush1.bf16.msra.mxu0 %v13511_v26  ;;  %v13531_v26 = vld [vmem:[%s19291_s15 + $0x160c] ss:$16 sps:$4 sm:$0xff]   ;;  %v13532_v11 = vld [vmem:[%s19291_s15 + $0x17e8] ss:$16 sps:$4 sm:$0xff]  }
 0x44b   : > { %v10446_v31 = vpop.f32.mrf.mxu0  ;;  %10739 = vmatprep.subr.bf16.mxu0 %v13516_v52  ;;  %v13534_v52 = vld [vmem:[%s19291_s15 + $0x17ec] ss:$16 sps:$4 sm:$0xff]  }
 0x44c   : > { %v13537_v31 = vld [vmem:[%s19291_s15 + $0x17cc] ss:$16 sps:$4 sm:$0xff]  }
 0x44e   : > { %10740 = vmatpush1.bf16.msra.mxu0 %v13514_v7 }
 0x44f   : > { %10741 = vmatprep.subr.bf16.mxu0 %v13519_v8 }
 0x452   : > { %10742 = vmatpush1.bf16.msra.mxu0 %v13517_v9  ;;  %v13535_v9 = vld [vmem:[%s19291_s15 + $0x17c8] ss:$16 sps:$4 sm:$0xff]  }
 0x453   : > { %10743 = vmatprep.subr.bf16.mxu0 %v13522_v2 }
 0x456   : > { %10744 = vmatpush1.bf16.msra.mxu0 %v13520_v3  ;;  %v13540_v3 = vld [vmem:[%s19291_s15 + $0x17ac] ss:$16 sps:$4 sm:$0xff]  }
 0x457   : > { %10745 = vmatprep.subr.bf16.mxu0 %v13525_v18 }
 0x45a   : > { %10746 = vmatpush1.bf16.msra.mxu0 %v13523_v17  ;;  %v13538_v17 = vld [vmem:[%s19291_s15 + $0x17a8] ss:$16 sps:$4 sm:$0xff]  }
 0x45b   : > { %10747 = vmatprep.subr.bf16.mxu0 %v13528_v54  ;;  %v13543_v54 = vld [vmem:[%s19291_s15 + $0x178c] ss:$16 sps:$4 sm:$0xff]  }
 0x45e   : > { %10748 = vmatpush1.bf16.msra.mxu0 %v13526_v55  ;;  %v13541_v55 = vld [vmem:[%s19291_s15 + $0x1788] ss:$16 sps:$4 sm:$0xff]  }
 0x45f   : > { %10749 = vmatprep.subr.bf16.mxu0 %v13531_v26  ;;  %v13546_v26 = vld [vmem:[%s19291_s15 + $0x176c] ss:$16 sps:$4 sm:$0xff]  }
 0x462   : > { %10750 = vmatpush1.bf16.msra.mxu0 %v13529_v23  ;;  %v13544_v23 = vld [vmem:[%s19291_s15 + $0x1768] ss:$16 sps:$4 sm:$0xff]  }
 0x463   : > { %v17960_v7 = vpop.f32.mrf.mxu1  ;;  %10751 = vmatprep.subr.bf16.mxu0 %v13534_v52  ;;  %v13549_v52 = vld [vmem:[%s19291_s15 + $0x174c] ss:$16 sps:$4 sm:$0xff]  }
 0x465   : > { %v17965_v8 = vpop.f32.mrf.mxu1 }
 0x466   : > { %10752 = vmatpush2.bf16.msra.mxu0 %v13532_v11  ;;  %v13547_v11 = vld [vmem:[%s19291_s15 + $0x1748] ss:$16 sps:$4 sm:$0xff]  }
 0x467   : > { %v10732_v2 = vpop.f32.mrf.mxu1  ;;  %10753 = vmatprep.subr.bf16.mxu0 %v13537_v31  ;;  %v13552_v31 = vld [vmem:[%s19291_s15 + $0x172c] ss:$16 sps:$4 sm:$0xff]  }
 0x468   : > { %v13555_v2 = vld [vmem:[%s19291_s15 + $0x170c] ss:$16 sps:$4 sm:$0xff]  }
 0x469   : > { %v10733_v18 = vpop.f32.mrf.mxu1 }
 0x46a   : > { %10754 = vmatpush2.bf16.msra.mxu0 %v13535_v9  ;;  %v13550_v9 = vld [vmem:[%s19291_s15 + $0x1728] ss:$16 sps:$4 sm:$0xff]  }
 0x46b   : > { %10755 = vmatprep.subr.bf16.mxu0 %v13540_v3  ;;  %v13553_v3 = vld [vmem:[%s19291_s15 + $0x1708] ss:$16 sps:$4 sm:$0xff]  }
 0x46c   : > { %v10843_v18 = vld [vmem:[%s19289_s13 + $0x1f8] sm:$0xff] }
 0x46e   : > { %10756 = vmatpush2.bf16.msra.mxu0 %v13538_v17  ;;  %v10842_v17 = vld [vmem:[%s19289_s13 + $0x1f0] sm:$0xff] }
 0x46f   : > { %10757 = vmatprep.subr.bf16.mxu0 %v13543_v54  ;;  %v10483_v54 = vadd.f32 %v17606_v5, %v17910_v46  ;;  %v10835_v5 = vld [vmem:[%s19289_s13 + $0x1b8] sm:$0xff] }
 0x472   : > { %10758 = vmatpush2.bf16.msra.mxu0 %v13541_v55  ;;  %v10839_v55 = vld [vmem:[%s19289_s13 + $0x1d8] sm:$0xff] }
 0x473   : > { %10759 = vmatprep.subr.bf16.mxu0 %v13546_v26 }
 0x476   : > { %10760 = vmatpush2.bf16.msra.mxu0 %v13544_v23  ;;  %v10838_v23 = vld [vmem:[%s19289_s13 + $0x1d0] sm:$0xff] }
 0x477   : > { %10761 = vmatprep.subr.bf16.mxu0 %v13549_v52  ;;  %v10485_v52 = vadd.f32 %v17618_v58, %v17919_v28  ;;  %v10831_v58 = vld [vmem:[%s19289_s13 + $0x198] sm:$0xff] }
 0x47a   : > { %10762 = vmatpush2.bf16.msra.mxu0 %v13547_v11 }
 0x47b   : > { %10763 = vmatprep.subr.bf16.mxu0 %v13552_v31 }
 0x47e   : > { %10764 = vmatpush2.bf16.msra.mxu0 %v13550_v9  ;;  %v10827_v9 = vld [vmem:[%s19289_s13 + $0x178] sm:$0xff] }
 0x47f   : > { %10765 = vmatprep.subr.bf16.mxu0 %v13555_v2 }
 0x482   : > { %10766 = vmatpush2.bf16.msra.mxu0 %v13553_v3  ;;  %v10826_v3 = vld [vmem:[%s19289_s13 + $0x170] sm:$0xff] }
 0x483   : > { %11001 = vmatprep.subr.mxu0 %v10843_v18  ;;  %v10823_v18 = vld [vmem:[%s19289_s13 + $0x158] sm:$0xff] }
 0x485   : > { %v10523_v26 = vpop.f32.mrf.mxu0  ;;  %10768 = vmatmul.mubr.bf16.vlgmr.msra.gmra.mxu0 %v16897_v22  ;;  %v10834_v22 = vld [vmem:[%s19289_s13 + $0x1b0] sm:$0xff] }
 0x486   : > { %v18023_v11 = vadd.f32 %v10523_v26, %v10483_v54  ;;  %11002 = vmatpush1.msra.mxu0 %v10842_v17  ;;  %11065 = vmatprep.mubr.f32.mxu0 %v19499_v33  ;;  %v10830_v33 = vld [vmem:[%s19289_s13 + $0x190] sm:$0xff]  ;;  %v10819_v54 = vld [vmem:[%s19289_s13 + $0x138] sm:$0xff] }
 0x487   : > { %v10525_v46 = vpop.f32.mrf.mxu0  ;;  %11003 = vmatprep.subr.mxu0 %v10839_v55  ;;  %v10822_v17 = vld [vmem:[%s19289_s13 + $0x150] sm:$0xff]  ;;  %v10815_v26 = vld [vmem:[%s19289_s13 + $0x118] sm:$0xff] }
 0x488   : > { %v18032_v31 = vadd.f32 %v10525_v46, %v10485_v52  ;;  %11004 = vmatpush1.msra.mxu0 %v10838_v23  ;;  %v10818_v55 = vld [vmem:[%s19289_s13 + $0x130] sm:$0xff]  ;;  %v10811_v52 = vld [vmem:[%s19289_s13 + $0xf8] sm:$0xff] }
 0x489   : > { %v10527_v28 = vpop.f32.mrf.mxu0  ;;  %11005 = vmatprep.subr.mxu0 %v10835_v5  ;;  %v10814_v23 = vld [vmem:[%s19289_s13 + $0x110] sm:$0xff]  ;;  %v10807_v46 = vld [vmem:[%s19289_s13 + $0xd8] sm:$0xff] }
 0x48a   : > { %11006 = vmatpush1.msra.mxu0 %v10834_v22  ;;  %v10810_v5 = vld [vmem:[%s19289_s13 + $0xf0] sm:$0xff] }
 0x48b   : > { %v10528_v2 = vpop.f32.mrf.mxu0  ;;  %11007 = vmatprep.subr.mxu0 %v10831_v58  ;;  %v10806_v22 = vld [vmem:[%s19289_s13 + $0xd0] sm:$0xff]  ;;  %v10803_v58 = vld [vmem:[%s19289_s13 + $0xb8] sm:$0xff] }
 0x48c   : > { %11008 = vmatpush1.msra.mxu0 %v10830_v33  ;;  %v10802_v28 = vld [vmem:[%s19289_s13 + $0xb0] sm:$0xff]  ;;  %v10799_v33 = vld [vmem:[%s19289_s13 + $0x98] sm:$0xff] }
 0x48d   : > { %11009 = vmatprep.subr.mxu0 %v10827_v9  ;;  %v10798_v9 = vld [vmem:[%s19289_s13 + $0x90] sm:$0xff]  ;;  %v10795_v2 = vld [vmem:[%s19289_s13 + $0x78] sm:$0xff] }
 0x48e   : > { %11010 = vmatpush1.msra.mxu0 %v10826_v3  ;;  %v10794_v3 = vld [vmem:[%s19289_s13 + $0x70] sm:$0xff] }
 0x48f   : > { %11011 = vmatprep.subr.mxu0 %v10823_v18  ;;  %v10791_v18 = vld [vmem:[%s19289_s13 + $0x58] sm:$0xff] }
 0x490   : > { %11012 = vmatpush1.msra.mxu0 %v10822_v17  ;;  %v18100_v17 = vld [vmem:[%s19290_s14] sm:$0xf] }
 0x491   : > { %11013 = vmatprep.subr.mxu0 %v10819_v54  ;;  %v10790_v54 = vld [vmem:[%s19289_s13 + $0x50] sm:$0xff] }
 0x492   : > { %11014 = vmatpush1.msra.mxu0 %v10818_v55  ;;  %v10787_v55 = vld [vmem:[%s19289_s13 + $0x38] sm:$0xff] }
 0x493   : > { %11015 = vmatprep.subr.mxu0 %v10815_v26  ;;  %v10913_v26 = vrot.slane %v18100_v17, %v19482_v38 }
 0x494   : > { %11016 = vmatpush1.msra.mxu0 %v10814_v23  ;;  %v10786_v23 = vld [vmem:[%s19289_s13 + $0x30] sm:$0xff] }
 0x495   : > { %11017 = vmatprep.subr.mxu0 %v10811_v52  ;;  %v10783_v52 = vld [vmem:[%s19289_s13 + $0x18] sm:$0xff] }
 0x496   : > { %11018 = vmatpush1.msra.mxu0 %v10810_v5  ;;  %v10917_v5 = vrot.slane %v18100_v17, %v19484_v27 }
 0x497   : > { %11019 = vmatprep.subr.mxu0 %v10807_v46  ;;  %v10782_v46 = vld [vmem:[%s19289_s13 + $0x10] sm:$0xff] }
 0x498   : > { %11020 = vmatpush1.msra.mxu0 %v10806_v22 }
 0x499   : > { %11021 = vmatprep.subr.mxu0 %v10803_v58  ;;  %v10907_v58 = vld [vmem:[%s19289_s13 + $0x3f8] sm:$0xff] }
 0x49a   : > { %11022 = vmatpush1.msra.mxu0 %v10802_v28 }
 0x49b   : > { %11023 = vmatprep.subr.mxu0 %v10799_v33  ;;  %v10906_v33 = vld [vmem:[%s19289_s13 + $0x3f0] sm:$0xff] }
 0x49c   : > { %11024 = vmatpush1.msra.mxu0 %v10798_v9 }
 0x49d   : > { %11025 = vmatprep.subr.mxu0 %v10795_v2  ;;  %v10903_v2 = vld [vmem:[%s19289_s13 + $0x3d8] sm:$0xff] }
 0x49e   : > { %11026 = vmatpush1.msra.mxu0 %v10794_v3 }
 0x49f   : > { %11027 = vmatprep.subr.mxu0 %v10791_v18 }
 0x4a0   : > { %11028 = vmatpush1.msra.mxu0 %v10790_v54  ;;  %v10902_v54 = vld [vmem:[%s19289_s13 + $0x3d0] sm:$0xff] }
 0x4a1   : > { %11029 = vmatprep.subr.mxu0 %v10787_v55  ;;  %v10899_v55 = vld [vmem:[%s19289_s13 + $0x3b8] sm:$0xff] }
 0x4a2   : > { %11030 = vmatpush1.msra.mxu0 %v10786_v23  ;;  %v10895_v23 = vld [vmem:[%s19289_s13 + $0x398] sm:$0xff] }
 0x4a3   : > { %v10996_v22 = vpop.f32.mrf.mxu1  ;;  %11031 = vmatprep.subr.mxu0 %v10783_v52 }
 0x4a4   : > { %v18124_v28 = vadd.f32 %v10996_v22, %v10913_v26  ;;  %11032 = vmatpush1.msra.mxu0 %v10782_v46  ;;  %v10894_v46 = vld [vmem:[%s19289_s13 + $0x390] sm:$0xff] }
 0x4a5   : > { %v10998_v9 = vpop.f32.mrf.mxu1  ;;  %11033 = vmatprep.subr.mxu0 %v10907_v58  ;;  %v10890_v58 = vld [vmem:[%s19289_s13 + $0x370] sm:$0xff] }
 0x4a6   : > { %v11072_v3 = vmul.f32 %v18124_v28, %v17609_v25  ;;  %v18134_v18 = vadd.f32 %v10998_v9, %v10917_v5  ;;  %11034 = vmatpush2.msra.mxu0 %v10906_v33  ;;  %v10898_v25 = vld [vmem:[%s19289_s13 + $0x3b0] sm:$0xff]  ;;  %v10887_v33 = vld [vmem:[%s19289_s13 + $0x358] sm:$0xff] }
 0x4a7   : > { %11035 = vmatprep.subr.mxu0 %v10903_v2  ;;  %v10886_v9 = vld [vmem:[%s19289_s13 + $0x350] sm:$0xff]  ;;  %v10883_v2 = vld [vmem:[%s19289_s13 + $0x338] sm:$0xff] }
 0x4a8   : > { %v11073_v26 = vmul.f32 %v18134_v18, %v17623_v57  ;;  %11036 = vmatpush2.msra.mxu0 %v10902_v54  ;;  %v11077_v52 = vsel %vm11076_vm1, %v11072_v3, 0.0  ;;  %v10891_v57 = vld [vmem:[%s19289_s13 + $0x378] sm:$0xff]  ;;  %v10882_v3 = vld [vmem:[%s19289_s13 + $0x330] sm:$0xff] }
 0x4a9   : > { %11037 = vmatprep.subr.mxu0 %v10899_v55  ;;  %v10879_v54 = vld [vmem:[%s19289_s13 + $0x318] sm:$0xff]  ;;  %v10878_v55 = vld [vmem:[%s19289_s13 + $0x310] sm:$0xff] }
 0x4aa   : > { %v11078_v5 = vsel %vm11076_vm1, %v11073_v26, 0.0  ;;  %11038 = vmatpush2.msra.mxu0 %v10898_v25  ;;  %v10875_v26 = vld [vmem:[%s19289_s13 + $0x2f8] sm:$0xff]  ;;  %v10874_v25 = vld [vmem:[%s19289_s13 + $0x2f0] sm:$0xff] }
 0x4ab   : > { %v18158_v22 = vadd.f32 %v11078_v5, %v11077_v52  ;;  %11039 = vmatprep.subr.mxu0 %v10895_v23  ;;  %v10871_v23 = vld [vmem:[%s19289_s13 + $0x2d8] sm:$0xff]  ;;  %v10870_v52 = vld [vmem:[%s19289_s13 + $0x2d0] sm:$0xff] }
 0x4ac   : > { %11040 = vmatpush2.msra.mxu0 %v10894_v46  ;;  %v10867_v5 = vld [vmem:[%s19289_s13 + $0x2b8] sm:$0xff]  ;;  %v10866_v46 = vld [vmem:[%s19289_s13 + $0x2b0] sm:$0xff] }
 0x4ad   : > { %11041 = vmatprep.subr.mxu0 %v10891_v57  ;;  %v10863_v57 = vld [vmem:[%s19289_s13 + $0x298] sm:$0xff] }
 0x4ae   : > { %11042 = vmatpush2.msra.mxu0 %v10890_v58  ;;  %v10862_v58 = vld [vmem:[%s19289_s13 + $0x290] sm:$0xff] }
 0x4af   : > { %11043 = vmatprep.subr.mxu0 %v10887_v33  ;;  %v10859_v33 = vld [vmem:[%s19289_s13 + $0x278] sm:$0xff] }
 0x4b0   : > { %11044 = vmatpush2.msra.mxu0 %v10886_v9  ;;  %v10858_v9 = vld [vmem:[%s19289_s13 + $0x270] sm:$0xff] }
 0x4b1   : > { %11045 = vmatprep.subr.mxu0 %v10883_v2  ;;  %v10855_v2 = vld [vmem:[%s19289_s13 + $0x258] sm:$0xff] }
 0x4b2   : > { %11046 = vmatpush2.msra.mxu0 %v10882_v3  ;;  %v10854_v3 = vld [vmem:[%s19289_s13 + $0x250] sm:$0xff] }
 0x4b3   : > { %11047 = vmatprep.subr.mxu0 %v10879_v54  ;;  %v10851_v54 = vld [vmem:[%s19289_s13 + $0x238] sm:$0xff] }
 0x4b4   : > { %11048 = vmatpush2.msra.mxu0 %v10878_v55  ;;  %v10850_v55 = vld [vmem:[%s19289_s13 + $0x230] sm:$0xff] }
 0x4b5   : > { %11049 = vmatprep.subr.mxu0 %v10875_v26  ;;  %v10847_v26 = vld [vmem:[%s19289_s13 + $0x218] sm:$0xff] }
 0x4b6   : > { %11050 = vmatpush2.msra.mxu0 %v10874_v25  ;;  %v10846_v25 = vld [vmem:[%s19289_s13 + $0x210] sm:$0xff] }
 0x4b7   : > { %11051 = vmatprep.subr.mxu0 %v10871_v23  ;;  %v10565_v23 = vadd.f32 %v17805_v48, %v18023_v11 }
 0x4b8   : > { %11052 = vmatpush2.msra.mxu0 %v10870_v52 }
 0x4b9   : > { %11053 = vmatprep.subr.mxu0 %v10867_v5  ;;  %v10567_v5 = vadd.f32 %v17809_v45, %v18032_v31 }
 0x4ba   : > { %11054 = vmatpush2.msra.mxu0 %v10866_v46 }
 0x4bb   : > { %11055 = vmatprep.subr.mxu0 %v10863_v57 }
 0x4bc   : > { %11056 = vmatpush2.msra.mxu0 %v10862_v58 }
 0x4bd   : > { %11057 = vmatprep.subr.mxu0 %v10859_v33 }
 0x4be   : > { %11058 = vmatpush2.msra.mxu0 %v10858_v9 }
 0x4bf   : > { %11059 = vmatprep.subr.mxu0 %v10855_v2 }
 0x4c0   : > { %11060 = vmatpush2.msra.mxu0 %v10854_v3 }
 0x4c1   : > { %11061 = vmatprep.subr.mxu0 %v10851_v54 }
 0x4c2   : > { %11062 = vmatpush2.msra.mxu0 %v10850_v55 }
 0x4c3   : > { %11063 = vmatprep.subr.mxu0 %v10847_v26 }
 0x4c4   : > { %11064 = vmatpush2.msra.mxu0 %v10846_v25 }
 0x4c5   : > { %v10605_v52 = vpop.f32.mrf.mxu0  ;;  %11066 = vmatmul.mubr.f32.vlgmr.msra.gmra.mxu0 %v19500_v56 }
 0x4c6   : > { %v10606_v46 = vadd.f32 %v10605_v52, %v10565_v23 }
 0x4c7   : > { %v10607_v57 = vpop.f32.mrf.mxu0 }
 0x4c8   : > { %v10608_v58 = vadd.f32 %v10607_v57, %v10567_v5  ;;  %v10647_v26 = vadd.f32 %v17850_v50, %v10606_v46 }
 0x4c9   : > { %v10609_v33 = vpop.f32.mrf.mxu0 }
 0x4ca   : > { %v10649_v48 = vadd.f32 %v17855_v41, %v10608_v58 }
 0x4cb   : > { %v10610_v9 = vpop.f32.mrf.mxu0 }
 0x505   : > { %v10687_v2 = vpop.f32.mrf.mxu0 }
 0x506   : > { %v10688_v27 = vadd.f32 %v10687_v2, %v10647_v26 }
 0x507   : > { %v10689_v3 = vpop.f32.mrf.mxu0 }
 0x508   : > { %v10690_v11 = vadd.f32 %v10689_v3, %v10649_v48  ;;  %v10729_v56 = vadd.f32 %v17960_v7, %v10688_v27 }
 0x509   : > { %v10691_v54 = vpop.f32.mrf.mxu0 }
 0x50a   : > { %v10731_v45 = vadd.f32 %v17965_v8, %v10690_v11 }
 0x50b   : > { %v10692_v55 = vpop.f32.mrf.mxu0 }
 0x50c   : > { %v19506_v55 = vld [vmem:[#allocation17_spill] sm:$0xff] }
 0x545   : > { %v10769_v25 = vpop.f32.mrf.mxu0 }
 0x546   : > { %v10770_v38 = vadd.f32 %v10769_v25, %v10729_v56 }
 0x547   : > { %v10771_v31 = vpop.f32.mrf.mxu0 }
 0x548   : > { %v10778_v23 = vmul.f32 %v10770_v38, %v15149_v61  ;;  %v10772_v52 = vadd.f32 %v10771_v31, %v10731_v45 }
 0x549   : > { %v10773_v5 = vpop.f32.mrf.mxu0 }
 0x54a   : > { %v11124_v57 = vmul.f32 %v10778_v23, %v10778_v23  ;;  %v10779_v33 = vmul.f32 %v10772_v52, %v15149_v61 }
 0x54b   : > { %v10774_v9 = vpop.f32.mrf.mxu0 }
 0x54c   : > { %v11125_v50 = vmul.f32 %v10779_v33, %v10779_v33  ;;  %v11129_v46 = vsel %vm11076_vm1, %v11124_v57, 0.0 }
 0x54d   : > { %v11130_v41 = vadd.f32 %v11129_v46, %v17659_v32 }
 0x54e   : > { %v11131_v27 = vsel %vm11076_vm1, %v11125_v50, 0.0 }
 0x54f   : > { %v11132_v7 = vadd.f32 %v11131_v27, %v11130_v41  ;;  %v19507_v41 = vld [vmem:[#allocation20_spill] sm:$0xff] }
 0x551   : > { %11133 = vadd.xlane.f32.xlu1 %v11132_v7 }
 0x555   : > { %1765 = vadd.xlane.f32.xlu1 %v15840_v1  ;;  %v11094_v1 = vmul.f32 %v18134_v18, %v18134_v18 }
 0x559   : > { %1771 = vadd.xlane.f32.xlu1 %v15843_v0  ;;  %v10925_v0 = vrot.slane %v18100_v17, %v17778_v51 }
 0x55d   : > { %1777 = vadd.xlane.f32.xlu1 %v15849_v29  ;;  %v10921_v29 = vrot.slane %v18100_v17, %v19501_v19 }
 0x561   : > { %1783 = vadd.xlane.f32.xlu1 %v15878_v24  ;;  %v11093_v24 = vmul.f32 %v18124_v28, %v18124_v28 }
 0x565   : > { %1789 = vadd.xlane.f32.xlu1 %v15885_v37 }
 0x569   : > { %1795 = vadd.xlane.f32.xlu1 %v15897_v60 }
 0x56d   : > { %1801 = vadd.xlane.f32.xlu1 %v15923_v49 }
 0x571   : > { %1807 = vadd.xlane.f32.xlu1 %v15933_v30  ;;  %v11098_v30 = vsel %vm11076_vm1, %v11094_v1, 0.0 }
 0x575   : > { %1813 = vadd.xlane.f32.xlu1 %v15947_v13 }
 0x579   : > { %1819 = vadd.xlane.f32.xlu1 %v15983_v59 }
 0x57d   : > { %1825 = vadd.xlane.f32.xlu1 %v15993_v16 }
 0x581   : > { %1831 = vadd.xlane.f32.xlu1 %v16013_v4  ;;  %v11097_v4 = vsel %vm11076_vm1, %v11093_v24, 0.0 }
 0x585   : > { %v11067_v37 = vpop.f32.mrf.mxu0  ;;  %1837 = vadd.xlane.f32.xlu1 %v16035_v47  ;;  %v11099_v47 = vadd.f32 %v11098_v30, %v11097_v4 }
 0x586   : > { %v11068_v60 = vadd.f32 %v11067_v37, %v10921_v29 }
 0x587   : > { %v11069_v49 = vpop.f32.mrf.mxu0 }
 0x588   : > { %v11074_v13 = vmul.f32 %v11068_v60, %v10778_v23  ;;  %v11095_v59 = vmul.f32 %v11068_v60, %v11068_v60  ;;  %v11070_v16 = vadd.f32 %v11069_v49, %v10925_v0 }
 0x589   : > { %1843 = vadd.xlane.f32.xlu1 %v16045_v35 }
 0x58a   : > { %v11075_v38 = vmul.f32 %v11070_v16, %v10779_v33  ;;  %v11096_v32 = vmul.f32 %v11070_v16, %v11070_v16  ;;  %v11080_v8 = vsel %vm11076_vm1, %v11074_v13, 0.0  ;;  %v11100_v17 = vsel %vm11076_vm1, %v11095_v59, 0.0 }
 0x58b   : > { %v11081_v28 = vadd.f32 %v11080_v8, %v18158_v22  ;;  %v11101_v2 = vadd.f32 %v11100_v17, %v11099_v47  ;;  %v19505_v22 = vld [vmem:[#allocation18_spill] sm:$0xff] }
 0x58c   : > { %v11082_v18 = vsel %vm11076_vm1, %v11075_v38, 0.0  ;;  %v11102_v3 = vsel %vm11076_vm1, %v11096_v32, 0.0 }
 0x58d   : > { %1849 = vadd.xlane.f32.xlu1 %v16091_v6  ;;  %v11083_v58 = vadd.f32 %v11082_v18, %v11081_v28  ;;  %v11103_v35 = vadd.f32 %v11102_v3, %v11101_v2  ;;  %v19503_v6 = vld [vmem:[#allocation44_spill] sm:$0xff] }
 0x58f   : > { %11084 = vadd.xlane.f32.xlu0 %v11083_v58 }
 0x591   : > { %1855 = vadd.xlane.f32.xlu1 %v16103_v43  ;;  %v19504_v43 = vld [vmem:[#allocation47_spill] sm:$0xff] }
 0x593   : > { %11104 = vadd.xlane.f32.xlu0 %v11103_v35 }
 0x597   : > { %1768 = vadd.xlane.f32.xlu0 %v16129_v40 }
 0x59b   : > { %1774 = vadd.xlane.f32.xlu0 %v16139_v42 }
 0x59f   : > { %1780 = vadd.xlane.f32.xlu0 %v16153_v14  ;;  %v18290_v14 = vstv %s1860_s0  ;;  %s13673_s0 = smov [#allocation6]  }
 0x5a3   : > { %1786 = vadd.xlane.f32.xlu0 %v16189_v44 }
 0x5a7   : > { %1792 = vadd.xlane.f32.xlu0 %v16199_v63 }
 0x5ab   : > { %1798 = vadd.xlane.f32.xlu0 %v16216_v53 }
 0x5af   : > { %1804 = vadd.xlane.f32.xlu0 %v16236_v10  ;;  %v18294_v10 = vsub.s32 4, %v19502_v15 }
 0x5b3   : > { %1810 = vadd.xlane.f32.xlu0 %v16243_v20  ;;  %v18297_v20 = vsub.s32 5, %v19502_v15 }
 0x5b7   : > { %1816 = vadd.xlane.f32.xlu0 %v16274_v39  ;;  %v18300_v39 = vsub.s32 6, %v19502_v15 }
 0x5bb   : > { %1822 = vadd.xlane.f32.xlu0 %v16280_v36 }
 0x5bf   : > { %1828 = vadd.xlane.f32.xlu0 %v16291_v34  ;;  %v18304_v34 = vsub.s32 7, %v19502_v15 }
 0x5c3   : > { %1834 = vadd.xlane.f32.xlu0 %v16328_v12 }
 0x5c7   : > { %1840 = vadd.xlane.f32.xlu0 %v16331_v21 }
 0x5cb   : > { %1846 = vadd.xlane.f32.xlu0 %v16357_v62 }
 0x5cf   : > { %1852 = vadd.xlane.f32.xlu0 %v19503_v6 }
 0x5d3   : > { %1858 = vadd.xlane.f32.xlu0 %v19504_v43 }
 0x5da   : > { %v11134_v40 = vpop.xlane.xlu1 %11133 }
 0x5db   : > { %v11135_v42 = vrot.slane %v11134_v40, 4 }
 0x5dd   : > { %v11136_v44 = vadd.f32 %v11135_v42, %v11134_v40 }
 0x5de   : > { %v1766_v63 = vpop.xlane.xlu1 %1765 }
 0x5df   : > { %v1862_v53 = vadd.f32 %v18290_v14, %v1766_v63  ;;  %v11137_v12 = vrot.slane %v11136_v44, 2 }
 0x5e1   : > { %v2022_v36 = vmul.f32 %v1862_v53, %v15149_v61  ;;  %v18316_v9 = vadd.f32 %v11137_v12, %v11136_v44 }
 0x5e2   : > { %v1772_v21 = vpop.xlane.xlu1 %1771 }
 0x5e3   : > { %v1864_v62 = vadd.f32 %v18290_v14, %v1772_v21  ;;  %v2089_v54 = vrot.slane %v2022_v36, %v19505_v22  ;;  %v2093_v26 = vrot.slane %v2022_v36, %v19506_v55  ;;  %v2097_v48 = vrot.slane %v2022_v36, %v19501_v19 }
 0x5e4   : > { %v2101_v11 = vrot.slane %v2022_v36, %v17778_v51  ;;  %v2105_v56 = vrot.slane %v2022_v36, %v18294_v10  ;;  %v2109_v25 = vrot.slane %v2022_v36, %v18297_v20  ;;  %v2113_v45 = vrot.slane %v2022_v36, %v18300_v39 }
 0x5e5   : > { %v2024_v31 = vmul.f32 %v1864_v62, %v15149_v61  ;;  %v2117_v23 = vrot.slane %v2022_v36, %v18304_v34  ;;  %v3110_v52 = vcombine.low %v2089_v54, %v2093_v26 }
 0x5e6   : > { %v1778_v5 = vpop.xlane.xlu1 %1777  ;;  %v3111_v57 = vcombine.low %v2097_v48, %v2101_v11  ;;  %v3112_v33 = vcombine.low %v2105_v56, %v2109_v25 }
 0x5e7   : > { %v1866_v50 = vadd.f32 %v18290_v14, %v1778_v5  ;;  %v3113_v46 = vcombine.low %v2113_v45, %v2117_v23  ;;  %v3120_v27 = vrot.slane %v3110_v52, %v19507_v41  ;;  %v2153_v7 = vrot.slane %v2024_v31, %v19505_v22 }
 0x5e8   : > { %v3127_v29 = vrot.slane %v3111_v57, %v19507_v41  ;;  %v3134_v1 = vrot.slane %v3112_v33, %v19507_v41  ;;  %v2157_v0 = vrot.slane %v2024_v31, %v19506_v55  ;;  %v2161_v24 = vrot.slane %v2024_v31, %v19501_v19 }
 0x5e9   : > { %v2026_v37 = vmul.f32 %v1866_v50, %v15149_v61  ;;  %v3141_v60 = vrot.slane %v3113_v46, %v19507_v41  ;;  %v2165_v49 = vrot.slane %v2024_v31, %v17778_v51  ;;  %v2169_v30 = vrot.slane %v2024_v31, %v18294_v10 }
 0x5ea   : > { %v1784_v13 = vpop.xlane.xlu1 %1783  ;;  %v3142_v59 = vcombine.low %v3120_v27, %v3127_v29  ;;  %v2173_v16 = vrot.slane %v2024_v31, %v18297_v20  ;;  %v2177_v4 = vrot.slane %v2024_v31, %v18300_v39  ;;  %v2181_v38 = vrot.slane %v2024_v31, %v18304_v34 }
 0x5eb   : > { %v1868_v32 = vadd.f32 %v18290_v14, %v1784_v13  ;;  %v3143_v8 = vcombine.low %v3134_v1, %v3141_v60  ;;  %v3208_v17 = vcombine.low %v2153_v7, %v2157_v0  ;;  %v3209_v28 = vcombine.low %v2161_v24, %v2165_v49 }
 0x5ec   : > { %v3150_v47 = vrot.slane %v3142_v59, %v19507_v41  ;;  %v3210_v18 = vcombine.low %v2169_v30, %v2173_v16  ;;  %v3211_v58 = vcombine.low %v2177_v4, %v2181_v38  ;;  %v2217_v2 = vrot.slane %v2026_v37, %v19505_v22 }
 0x5ed   : > { %v18336_v3 = vmul.f32 %v1868_v32, %v15149_v61  ;;  %v3157_v35 = vrot.slane %v3143_v8, %v19507_v41  ;;  %v3218_v6 = vrot.slane %v3208_v17, %v19507_v41  ;;  %v3225_v43 = vrot.slane %v3209_v28, %v19507_v41 }
 0x5ee   : > { %v1790_v40 = vpop.xlane.xlu1 %1789  ;;  %v3232_v42 = vrot.slane %v3210_v18, %v19507_v41  ;;  %v3239_v44 = vrot.slane %v3211_v58, %v19507_v41  ;;  %v2221_v63 = vrot.slane %v2026_v37, %v19506_v55  ;;  %v2225_v53 = vrot.slane %v2026_v37, %v19501_v19 }
 0x5ef   : > { %v1870_v36 = vadd.f32 %v18290_v14, %v1790_v40  ;;  %v3158_v12 = vcombine.low %v3150_v47, %v3157_v35  ;;  %v3240_v21 = vcombine.low %v3218_v6, %v3225_v43  ;;  %v2229_v62 = vrot.slane %v2026_v37, %v17778_v51 }
 0x5f0   : > { %v3241_v54 = vcombine.low %v3232_v42, %v3239_v44  ;;  %v2233_v26 = vrot.slane %v2026_v37, %v18294_v10  ;;  %v2237_v48 = vrot.slane %v2026_v37, %v18297_v20  ;;  %v2241_v11 = vrot.slane %v2026_v37, %v18300_v39 }
 0x5f1   : > { %4679 = vperm.xlu1 %12359, %v3158_v12   ;;  %v3248_v56 = vrot.slane %v3240_v21, %v19507_v41  ;;  %v2245_v25 = vrot.slane %v2026_v37, %v18304_v34  ;;  %v3306_v45 = vcombine.low %v2217_v2, %v2221_v63  ;;  %v3307_v52 = vcombine.low %v2225_v53, %v2229_v62 }
 0x5f2   : > { %v1796_v31 = vpop.xlane.xlu1 %1795  ;;  %v3255_v23 = vrot.slane %v3241_v54, %v19507_v41  ;;  %v3308_v5 = vcombine.low %v2233_v26, %v2237_v48  ;;  %v18355_v50 = vmul.f32 %v1870_v36, %v15149_v61  ;;  %v2281_v27 = vrot.slane %v18336_v3, %v19505_v22 }
 0x5f3   : > { %v1872_v57 = vadd.f32 %v18290_v14, %v1796_v31  ;;  %v3309_v33 = vcombine.low %v2241_v11, %v2245_v25  ;;  %v11139_v7 = vrot.slane %v18316_v9, 1  ;;  %v3316_v1 = vrot.slane %v3306_v45, %v19507_v41 }
 0x5f4   : > { %v3256_v46 = vcombine.low %v3248_v56, %v3255_v23  ;;  %v3323_v0 = vrot.slane %v3307_v52, %v19507_v41  ;;  %v2285_v24 = vrot.slane %v18336_v3, %v19506_v55  ;;  %v3330_v60 = vrot.slane %v3308_v5, %v19507_v41 }
 0x5f5   : > { %v2032_v29 = vmul.f32 %v1872_v57, %v15149_v61  ;;  %v3337_v49 = vrot.slane %v3309_v33, %v19507_v41  ;;  %v2289_v30 = vrot.slane %v18336_v3, %v19501_v19  ;;  %v2293_v13 = vrot.slane %v18336_v3, %v17778_v51 }
 0x5f6   : > { %4685 = vperm.xlu1 %12359, %v3256_v46   ;;  %v1802_v37 = vpop.xlane.xlu1 %1801  ;;  %v18381_v2 = vcombine.low %v3316_v1, %v3323_v0  ;;  %v2297_v40 = vrot.slane %v18336_v3, %v18294_v10  ;;  %v2301_v42 = vrot.slane %v18336_v3, %v18297_v20  ;;  %v2305_v53 = vrot.slane %v18336_v3, %v18300_v39 }
 0x5f7   : > { %v1874_v59 = vadd.f32 %v18290_v14, %v1802_v37  ;;  %v2409_v16 = vrot.slane %v2032_v29, %v19505_v22  ;;  %v2413_v4 = vrot.slane %v2032_v29, %v19506_v55  ;;  %v2417_v38 = vrot.slane %v2032_v29, %v19501_v19 }
 0x5f8   : > { %v2421_v32 = vrot.slane %v2032_v29, %v17778_v51  ;;  %v2425_v8 = vrot.slane %v2032_v29, %v18294_v10  ;;  %v2429_v17 = vrot.slane %v2032_v29, %v18297_v20  ;;  %v2433_v28 = vrot.slane %v2032_v29, %v18300_v39 }
 0x5f9   : > { %v2034_v47 = vmul.f32 %v1874_v59, %v15149_v61  ;;  %v2437_v18 = vrot.slane %v2032_v29, %v18304_v34  ;;  %v3600_v58 = vcombine.low %v2409_v16, %v2413_v4  ;;  %v2309_v36 = vrot.slane %v18336_v3, %v18304_v34 }
 0x5fa   : > { %v1808_v35 = vpop.xlane.xlu1 %1807  ;;  %v3601_v6 = vcombine.low %v2417_v38, %v2421_v32  ;;  %v3602_v43 = vcombine.low %v2425_v8, %v2429_v17  ;;  %v18397_v48 = vcombine.low %v3330_v60, %v3337_v49  ;;  %v3346_v11 = vrot.slane %v18381_v2, %v19507_v41 }
 0x5fb   : > { %v3603_v44 = vcombine.low %v2433_v28, %v2437_v18  ;;  %v3610_v63 = vrot.slane %v3600_v58, %v19507_v41  ;;  %v2473_v62 = vrot.slane %v2034_v47, %v19505_v22  ;;  %v2477_v54 = vrot.slane %v2034_v47, %v19506_v55 }
 0x5fc   : > { %v3617_v12 = vrot.slane %v3601_v6, %v19507_v41  ;;  %v3624_v21 = vrot.slane %v3602_v43, %v19507_v41  ;;  %v2481_v56 = vrot.slane %v2034_v47, %v19501_v19  ;;  %v2485_v31 = vrot.slane %v2034_v47, %v17778_v51 }
 0x5fd   : > { %v3631_v26 = vrot.slane %v3603_v44, %v19507_v41  ;;  %v2489_v23 = vrot.slane %v2034_v47, %v18294_v10  ;;  %v2493_v52 = vrot.slane %v2034_v47, %v18297_v20  ;;  %v2497_v33 = vrot.slane %v2034_v47, %v18300_v39 }
 0x5fe   : > { %v1814_v25 = vpop.xlane.xlu1 %1813  ;;  %v18402_v45 = vcombine.low %v3610_v63, %v3617_v12  ;;  %v2501_v46 = vrot.slane %v2034_v47, %v18304_v34  ;;  %v3698_v29 = vcombine.low %v2473_v62, %v2477_v54  ;;  %v3699_v1 = vcombine.low %v2481_v56, %v2485_v31 }
 0x5ff   : > { %v1878_v5 = vadd.f32 %v18290_v14, %v1814_v25  ;;  %v18408_v57 = vcombine.low %v3624_v21, %v3631_v26  ;;  %v3700_v0 = vcombine.low %v2489_v23, %v2493_v52  ;;  %v3404_v37 = vcombine.low %v2281_v27, %v2285_v24 }
 0x600   : > { %v1876_v60 = vadd.f32 %v18290_v14, %v1808_v35  ;;  %v3353_v59 = vrot.slane %v18397_v48, %v19507_v41  ;;  %v3701_v16 = vcombine.low %v2497_v33, %v2501_v46  ;;  %v3640_v38 = vrot.slane %v18402_v45, %v19507_v41 }
 0x601   : > { %v2038_v49 = vmul.f32 %v1878_v5, %v15149_v61  ;;  %v3708_v32 = vrot.slane %v3698_v29, %v19507_v41  ;;  %v3715_v8 = vrot.slane %v3699_v1, %v19507_v41  ;;  %v3722_v17 = vrot.slane %v3700_v0, %v19507_v41 }
 0x602   : > { %v1820_v4 = vpop.xlane.xlu1 %1819  ;;  %v3647_v24 = vrot.slane %v18408_v57, %v19507_v41  ;;  %v3729_v28 = vrot.slane %v3701_v16, %v19507_v41  ;;  %v3405_v63 = vcombine.low %v2289_v30, %v2293_v13  ;;  %v3406_v26 = vcombine.low %v2297_v40, %v2301_v42 }
 0x603   : > { %v1880_v27 = vadd.f32 %v18290_v14, %v1820_v4  ;;  %v2601_v47 = vrot.slane %v2038_v49, %v19505_v22  ;;  %v3730_v18 = vcombine.low %v3708_v32, %v3715_v8  ;;  %v2605_v58 = vrot.slane %v2038_v49, %v19506_v55 }
 0x604   : > { %v2609_v2 = vrot.slane %v2038_v49, %v19501_v19  ;;  %v2613_v35 = vrot.slane %v2038_v49, %v17778_v51  ;;  %v3731_v6 = vcombine.low %v3722_v17, %v3729_v28  ;;  %v2617_v43 = vrot.slane %v2038_v49, %v18294_v10 }
 0x605   : > { %v2621_v44 = vrot.slane %v2038_v49, %v18297_v20  ;;  %v2625_v21 = vrot.slane %v2038_v49, %v18300_v39  ;;  %v2629_v62 = vrot.slane %v2038_v49, %v18304_v34  ;;  %v3894_v54 = vcombine.low %v2601_v47, %v2605_v58 }
 0x606   : > { %v1826_v12 = vpop.xlane.xlu1 %1825  ;;  %v2040_v48 = vmul.f32 %v1880_v27, %v15149_v61  ;;  %v3738_v56 = vrot.slane %v3730_v18, %v19507_v41  ;;  %v3895_v25 = vcombine.low %v2609_v2, %v2613_v35  ;;  %v3407_v52 = vcombine.low %v2305_v53, %v2309_v36 }
 0x607   : > { %v3896_v45 = vcombine.low %v2617_v43, %v2621_v44  ;;  %v3897_v31 = vcombine.low %v2625_v21, %v2629_v62  ;;  %v3904_v23 = vrot.slane %v3894_v54, %v19507_v41  ;;  %v3414_v3 = vrot.slane %v3404_v37, %v19507_v41 }
 0x608   : > { %v1882_v30 = vadd.f32 %v18290_v14, %v1826_v12  ;;  %v3745_v13 = vrot.slane %v3731_v6, %v19507_v41  ;;  %v3911_v5 = vrot.slane %v3895_v25, %v19507_v41  ;;  %v3421_v33 = vrot.slane %v3405_v63, %v19507_v41 }
 0x609   : > { %v3918_v40 = vrot.slane %v3896_v45, %v19507_v41  ;;  %v3925_v57 = vrot.slane %v3897_v31, %v19507_v41  ;;  %v3428_v46 = vrot.slane %v3406_v26, %v19507_v41  ;;  %v3435_v29 = vrot.slane %v3407_v52, %v19507_v41 }
 0x60a   : > { %v1832_v42 = vpop.xlane.xlu1 %1831  ;;  %v18452_v53 = vmul.f32 %v1876_v60, %v15149_v61  ;;  %v3926_v36 = vcombine.low %v3904_v23, %v3911_v5  ;;  %v2665_v1 = vrot.slane %v2040_v48, %v19505_v22  ;;  %v2669_v0 = vrot.slane %v2040_v48, %v19506_v55 }
 0x60b   : > { %v18456_v37 = vcombine.low %v3346_v11, %v3353_v59  ;;  %v3927_v49 = vcombine.low %v3918_v40, %v3925_v57  ;;  %v3436_v16 = vcombine.low %v3414_v3, %v3421_v33  ;;  %v2673_v4 = vrot.slane %v2040_v48, %v19501_v19 }
 0x60c   : > { %v2042_v32 = vmul.f32 %v1882_v30, %v15149_v61  ;;  %v3437_v8 = vcombine.low %v3428_v46, %v3435_v29  ;;  %v2677_v17 = vrot.slane %v2040_v48, %v17778_v51  ;;  %v2681_v27 = vrot.slane %v2040_v48, %v18294_v10 }
 0x60d   : > { %v1884_v60 = vadd.f32 %v18290_v14, %v1832_v42  ;;  %v18463_v47 = vcombine.low %v3640_v38, %v3647_v24  ;;  %v18465_v18 = vcombine.low %v3738_v56, %v3745_v13  ;;  %v2685_v11 = vrot.slane %v2040_v48, %v18297_v20 }
 0x60e   : > { %v1838_v28 = vpop.xlane.xlu1 %1837  ;;  %v3934_v59 = vrot.slane %v3926_v36, %v19507_v41  ;;  %v2689_v58 = vrot.slane %v2040_v48, %v18300_v39  ;;  %v2693_v2 = vrot.slane %v2040_v48, %v18304_v34  ;;  %v3992_v35 = vcombine.low %v2665_v1, %v2669_v0 }
 0x60f   : > { %v3941_v6 = vrot.slane %v3927_v49, %v19507_v41  ;;  %v3444_v43 = vrot.slane %v3436_v16, %v19507_v41  ;;  %v3993_v44 = vcombine.low %v2673_v4, %v2677_v17  ;;  %v3994_v63 = vcombine.low %v2681_v27, %v2685_v11 }
 0x610   : > { %v3451_v38 = vrot.slane %v3437_v8, %v19507_v41  ;;  %v3995_v24 = vcombine.low %v2689_v58, %v2693_v2  ;;  %v4002_v12 = vrot.slane %v3992_v35, %v19507_v41  ;;  %v2729_v21 = vrot.slane %v2042_v32, %v19505_v22 }
 0x611   : > { %v1886_v62 = vadd.f32 %v18290_v14, %v1838_v28  ;;  %v4009_v26 = vrot.slane %v3993_v44, %v19507_v41  ;;  %v2733_v48 = vrot.slane %v2042_v32, %v19506_v55  ;;  %v2737_v56 = vrot.slane %v2042_v32, %v19501_v19 }
 0x612   : > { %v1844_v54 = vpop.xlane.xlu1 %1843  ;;  %v4016_v25 = vrot.slane %v3994_v63, %v19507_v41  ;;  %v4023_v45 = vrot.slane %v3995_v24, %v19507_v41  ;;  %v2741_v31 = vrot.slane %v2042_v32, %v17778_v51  ;;  %v2745_v23 = vrot.slane %v2042_v32, %v18294_v10 }
 0x613   : > { %v18485_v52 = vmul.f32 %v1884_v60, %v15149_v61  ;;  %v2749_v3 = vrot.slane %v2042_v32, %v18297_v20  ;;  %v2753_v30 = vrot.slane %v2042_v32, %v18300_v39  ;;  %v2757_v13 = vrot.slane %v2042_v32, %v18304_v34 }
 0x614   : > { %v18490_v5 = vcombine.low %v3934_v59, %v3941_v6  ;;  %v4024_v40 = vcombine.low %v4002_v12, %v4009_v26  ;;  %v4090_v42 = vcombine.low %v2729_v21, %v2733_v48  ;;  %v4091_v57 = vcombine.low %v2737_v56, %v2741_v31 }
 0x615   : > { %v18493_v33 = vmul.f32 %v1886_v62, %v15149_v61  ;;  %v18495_v46 = vcombine.low %v3444_v43, %v3451_v38  ;;  %v4092_v29 = vcombine.low %v2745_v23, %v2749_v3  ;;  %v4093_v36 = vcombine.low %v2753_v30, %v2757_v13 }
 0x616   : > { %v1850_v1 = vpop.xlane.xlu1 %1849  ;;  %v4025_v0 = vcombine.low %v4016_v25, %v4023_v45  ;;  %v4100_v49 = vrot.slane %v4090_v42, %v19507_v41  ;;  %v4107_v16 = vrot.slane %v4091_v57, %v19507_v41  ;;  %v2345_v4 = vrot.slane %v18355_v50, %v19505_v22 }
 0x617   : > { %v4114_v8 = vrot.slane %v4092_v29, %v19507_v41  ;;  %v4121_v17 = vrot.slane %v4093_v36, %v19507_v41  ;;  %v2349_v27 = vrot.slane %v18355_v50, %v19506_v55  ;;  %v2353_v60 = vrot.slane %v18355_v50, %v19501_v19 }
 0x618   : > { %v11085_v32 = vpop.xlane.xlu0 %11084  ;;  %v1888_v28 = vadd.f32 %v18290_v14, %v1844_v54  ;;  %v4032_v59 = vrot.slane %v4024_v40, %v19507_v41  ;;  %v4122_v58 = vcombine.low %v4100_v49, %v4107_v16  ;;  %v2357_v35 = vrot.slane %v18355_v50, %v17778_v51 }
 0x619   : > { %v11086_v11 = vrot.slane %v11085_v32, 4  ;;  %v4123_v2 = vcombine.low %v4114_v8, %v4121_v17  ;;  %v2361_v6 = vrot.slane %v18355_v50, %v18294_v10  ;;  %v2365_v43 = vrot.slane %v18355_v50, %v18297_v20 }
 0x61a   : > { %v1890_v44 = vadd.f32 %v18290_v14, %v1850_v1  ;;  %v4039_v38 = vrot.slane %v4025_v0, %v19507_v41  ;;  %v2369_v24 = vrot.slane %v18355_v50, %v18300_v39  ;;  %v4130_v21 = vrot.slane %v4122_v58, %v19507_v41  ;;  %v1856_v56 = vpop.xlane.xlu1 %1855 }
 0x61b   : > { %v11087_v63 = vadd.f32 %v11086_v11, %v11085_v32  ;;  %v2373_v62 = vrot.slane %v18355_v50, %v18304_v34  ;;  %v3502_v54 = vcombine.low %v2345_v4, %v2349_v27  ;;  %v3503_v26 = vcombine.low %v2353_v60, %v2357_v35 }
 0x61c   : > { %v11105_v12 = vpop.xlane.xlu0 %11104  ;;  %v4137_v45 = vrot.slane %v4123_v2, %v19507_v41  ;;  %v3504_v31 = vcombine.low %v2361_v6, %v2365_v43  ;;  %v18524_v23 = vmul.f32 %v1888_v28, %v15149_v61  ;;  %v18529_v40 = vmul.f32 %v1890_v44, %v15149_v61 }
 0x61d   : > { %v11088_v48 = vrot.slane %v11087_v63, 2  ;;  %v11106_v25 = vrot.slane %v11105_v12, 4  ;;  %v3505_v3 = vcombine.low %v2369_v24, %v2373_v62  ;;  %v3512_v30 = vrot.slane %v3502_v54, %v19507_v41 }
 0x61e   : > { %v3519_v13 = vrot.slane %v3503_v26, %v19507_v41  ;;  %v3526_v57 = vrot.slane %v3504_v31, %v19507_v41  ;;  %v18533_v29 = vadd.f32 %v18290_v14, %v1856_v56  ;;  %v18535_v1 = vcombine.low %v4032_v59, %v4039_v38 }
 0x61f   : > { %v11107_v50 = vadd.f32 %v11106_v25, %v11105_v12  ;;  %v11089_v42 = vadd.f32 %v11088_v48, %v11087_v63  ;;  %v3533_v0 = vrot.slane %v3505_v3, %v19507_v41  ;;  %v18541_v8 = vcombine.low %v4130_v21, %v4137_v45 }
 0x620   : > { %v1769_v36 = vpop.xlane.xlu0 %1768  ;;  %v18538_v49 = vcombine.low %v3512_v30, %v3519_v13  ;;  %v2793_v17 = vrot.slane %v18485_v52, %v19505_v22  ;;  %v2797_v27 = vrot.slane %v18485_v52, %v19506_v55  ;;  %v2801_v60 = vrot.slane %v18485_v52, %v19501_v19 }
 0x621   : > { %v11108_v16 = vrot.slane %v11107_v50, 2  ;;  %v1863_v4 = vadd.f32 %v18290_v14, %v1769_v36  ;;  %v11090_v32 = vrot.slane %v11089_v42, 1  ;;  %v2805_v28 = vrot.slane %v18485_v52, %v17778_v51 }
 0x622   : > { %v18552_v2 = vcombine.low %v3526_v57, %v3533_v0  ;;  %v3542_v6 = vrot.slane %v18538_v49, %v19507_v41  ;;  %v2809_v43 = vrot.slane %v18485_v52, %v18294_v10  ;;  %v2813_v44 = vrot.slane %v18485_v52, %v18297_v20 }
 0x623   : > { %v2023_v11 = vmul.f32 %v1863_v4, %v15149_v61  ;;  %v11091_v59 = vadd.f32 %v11090_v32, %v11089_v42  ;;  %v11109_v58 = vadd.f32 %v11108_v16, %v11107_v50  ;;  %v2817_v63 = vrot.slane %v18485_v52, %v18300_v39 }
 0x624   : > { %v1775_v35 = vpop.xlane.xlu0 %1774  ;;  %v3549_v42 = vrot.slane %v18552_v2, %v19507_v41 }
 0x625   : > { %v1865_v38 = vadd.f32 %v18290_v14, %v1775_v35  ;;  %12274 = vpush %v11091_v59  ;;  %v11110_v24 = vrot.slane %v11109_v58, 1  ;;  %v2121_v12 = vrot.slane %v2023_v11, %v19505_v22  ;;  %v2125_v21 = vrot.slane %v2023_v11, %v19506_v55 }
 0x626   : > { %v2129_v62 = vrot.slane %v2023_v11, %v19501_v19  ;;  %v2133_v54 = vrot.slane %v2023_v11, %v17778_v51  ;;  %v2137_v26 = vrot.slane %v2023_v11, %v18294_v10  ;;  %v2141_v48 = vrot.slane %v2023_v11, %v18297_v20 }
 0x627   : > { %v2025_v56 = vmul.f32 %v1865_v38, %v15149_v61  ;;  %v11111_v25 = vadd.f32 %v11110_v24, %v11109_v58  ;;  %v2145_v45 = vrot.slane %v2023_v11, %v18300_v39  ;;  %v2149_v31 = vrot.slane %v2023_v11, %v18304_v34 }
 0x628   : > { %v1781_v3 = vpop.xlane.xlu0 %1780  ;;  %v3159_v30 = vcombine.low %v2121_v12, %v2125_v21  ;;  %v3160_v13 = vcombine.low %v2129_v62, %v2133_v54  ;;  %v3161_v50 = vcombine.low %v2137_v26, %v2141_v48 }
 0x629   : > { %v1867_v57 = vadd.f32 %v18290_v14, %v1781_v3  ;;  %12276 = vpush %v11111_v25  ;;  %v3162_v36 = vcombine.low %v2145_v45, %v2149_v31  ;;  %v2185_v0 = vrot.slane %v2025_v56, %v19505_v22  ;;  %v2189_v16 = vrot.slane %v2025_v56, %v19506_v55 }
 0x62a   : > { %v3169_v4 = vrot.slane %v3159_v30, %v19507_v41  ;;  %v3176_v32 = vrot.slane %v3160_v13, %v19507_v41  ;;  %v3183_v11 = vrot.slane %v3161_v50, %v19507_v41  ;;  %v2193_v59 = vrot.slane %v2025_v56, %v19501_v19 }
 0x62b   : > { %v2027_v58 = vmul.f32 %v1867_v57, %v15149_v61  ;;  %v3190_v35 = vrot.slane %v3162_v36, %v19507_v41  ;;  %v2197_v38 = vrot.slane %v2025_v56, %v17778_v51  ;;  %v2201_v24 = vrot.slane %v2025_v56, %v18294_v10 }
 0x62c   : > { %v1787_v12 = vpop.xlane.xlu0 %1786  ;;  %v3191_v21 = vcombine.low %v3169_v4, %v3176_v32  ;;  %v2205_v62 = vrot.slane %v2025_v56, %v18297_v20  ;;  %v2209_v54 = vrot.slane %v2025_v56, %v18300_v39  ;;  %v2213_v26 = vrot.slane %v2025_v56, %v18304_v34 }
 0x62d   : > { %v1869_v48 = vadd.f32 %v18290_v14, %v1787_v12  ;;  %v3192_v25 = vcombine.low %v3183_v11, %v3190_v35  ;;  %v3257_v45 = vcombine.low %v2185_v0, %v2189_v16  ;;  %v3258_v31 = vcombine.low %v2193_v59, %v2197_v38 }
 0x62e   : > { %v3199_v3 = vrot.slane %v3191_v21, %v19507_v41  ;;  %v3259_v30 = vcombine.low %v2201_v24, %v2205_v62  ;;  %v3260_v13 = vcombine.low %v2209_v54, %v2213_v26  ;;  %v2821_v50 = vrot.slane %v18485_v52, %v18304_v34 }
 0x62f   : > { %v3206_v57 = vrot.slane %v3192_v25, %v19507_v41  ;;  %v3267_v36 = vrot.slane %v3257_v45, %v19507_v41  ;;  %v3274_v4 = vrot.slane %v3258_v31, %v19507_v41  ;;  %v2249_v56 = vrot.slane %v2027_v58, %v19505_v22 }
 0x630   : > { %v1793_v32 = vpop.xlane.xlu0 %1792  ;;  %v3281_v11 = vrot.slane %v3259_v30, %v19507_v41  ;;  %v3288_v0 = vrot.slane %v3260_v13, %v19507_v41  ;;  %v2253_v16 = vrot.slane %v2027_v58, %v19506_v55  ;;  %v2257_v59 = vrot.slane %v2027_v58, %v19501_v19 }
 0x631   : > { %v2029_v35 = vmul.f32 %v1869_v48, %v15149_v61  ;;  %v3207_v38 = vcombine.low %v3199_v3, %v3206_v57  ;;  %v3289_v24 = vcombine.low %v3267_v36, %v3274_v4  ;;  %v2261_v12 = vrot.slane %v2027_v58, %v17778_v51 }
 0x632   : > { %v3290_v21 = vcombine.low %v3281_v11, %v3288_v0  ;;  %v2265_v62 = vrot.slane %v2027_v58, %v18294_v10  ;;  %v2269_v54 = vrot.slane %v2027_v58, %v18297_v20  ;;  %v2273_v26 = vrot.slane %v2027_v58, %v18300_v39 }
 0x633   : > { %4682 = vperm.xlu0 %12360, %v3207_v38   ;;  %v3297_v25 = vrot.slane %v3289_v24, %v19507_v41  ;;  %v2277_v45 = vrot.slane %v2027_v58, %v18304_v34  ;;  %v3355_v31 = vcombine.low %v2249_v56, %v2253_v16  ;;  %v4188_v48 = vcombine.low %v2793_v17, %v2797_v27 }
 0x634   : > { %v1871_v3 = vadd.f32 %v18290_v14, %v1793_v32  ;;  %v1799_v30 = vpop.xlane.xlu0 %1798  ;;  %v3304_v13 = vrot.slane %v3290_v21, %v19507_v41  ;;  %v3356_v57 = vcombine.low %v2257_v59, %v2261_v12  ;;  %v3357_v36 = vcombine.low %v2265_v62, %v2269_v54 }
 0x635   : > { %v3358_v4 = vcombine.low %v2273_v26, %v2277_v45  ;;  %v3365_v11 = vrot.slane %v3355_v31, %v19507_v41  ;;  %v2313_v58 = vrot.slane %v2029_v35, %v19505_v22  ;;  %v2317_v56 = vrot.slane %v2029_v35, %v19506_v55 }
 0x636   : > { %v3305_v0 = vcombine.low %v3297_v25, %v3304_v13  ;;  %v3372_v16 = vrot.slane %v3356_v57, %v19507_v41  ;;  %v3379_v38 = vrot.slane %v3357_v36, %v19507_v41  ;;  %v2321_v17 = vrot.slane %v2029_v35, %v19501_v19 }
 0x637   : > { %4709 = vperm.xlu0 %12360, %v18463_v47   ;;  %v3386_v27 = vrot.slane %v3358_v4, %v19507_v41  ;;  %v2325_v32 = vrot.slane %v2029_v35, %v17778_v51  ;;  %v2329_v59 = vrot.slane %v2029_v35, %v18294_v10  ;;  %v4189_v24 = vcombine.low %v2801_v60, %v2805_v28 }
 0x638   : > { %4688 = vperm.xlu1 %12359, %v3305_v0   ;;  %v1805_v12 = vpop.xlane.xlu0 %1804  ;;  %v3387_v21 = vcombine.low %v3365_v11, %v3372_v16  ;;  %v2333_v62 = vrot.slane %v2029_v35, %v18297_v20  ;;  %v2337_v47 = vrot.slane %v2029_v35, %v18300_v39  ;;  %v2341_v54 = vrot.slane %v2029_v35, %v18304_v34 }
 0x639   : > { %v2031_v26 = vmul.f32 %v1871_v3, %v15149_v61  ;;  %v3388_v25 = vcombine.low %v3379_v38, %v3386_v27  ;;  %v3453_v45 = vcombine.low %v2313_v58, %v2317_v56  ;;  %v3454_v31 = vcombine.low %v2321_v17, %v2325_v32 }
 0x63a   : > { %v3395_v13 = vrot.slane %v3387_v21, %v19507_v41  ;;  %v3455_v57 = vcombine.low %v2329_v59, %v2333_v62  ;;  %v3456_v36 = vcombine.low %v2337_v47, %v2341_v54  ;;  %v4190_v60 = vcombine.low %v2809_v43, %v2813_v44 }
 0x63b   : > { %v1873_v28 = vadd.f32 %v18290_v14, %v1799_v30  ;;  %4715 = vperm.xlu0 %12360, %v18465_v18   ;;  %v3402_v35 = vrot.slane %v3388_v25, %v19507_v41  ;;  %v3463_v3 = vrot.slane %v3453_v45, %v19507_v41  ;;  %v3470_v4 = vrot.slane %v3454_v31, %v19507_v41 }
 0x63c   : > { %4691 = vperm.xlu1 %12359, %v18456_v37   ;;  %v1811_v11 = vpop.xlane.xlu0 %1810  ;;  %v3477_v58 = vrot.slane %v3455_v57, %v19507_v41  ;;  %v3484_v56 = vrot.slane %v3456_v36, %v19507_v41  ;;  %v4191_v18 = vcombine.low %v2817_v63, %v2821_v50  ;;  %v4198_v43 = vrot.slane %v4188_v48, %v19507_v41 }
 0x63d   : > { %v1875_v44 = vadd.f32 %v18290_v14, %v1805_v12  ;;  %v1877_v30 = vadd.f32 %v18290_v14, %v1811_v11  ;;  %v3485_v0 = vcombine.low %v3463_v3, %v3470_v4  ;;  %v4205_v37 = vrot.slane %v4189_v24, %v19507_v41 }
 0x63e   : > { %v3403_v16 = vcombine.low %v3395_v13, %v3402_v35  ;;  %v3486_v38 = vcombine.low %v3477_v58, %v3484_v56  ;;  %v4212_v17 = vrot.slane %v4190_v60, %v19507_v41  ;;  %v4219_v27 = vrot.slane %v4191_v18, %v19507_v41 }
 0x63f   : > { %4727 = vperm.xlu0 %12360, %v18490_v5   ;;  %v3550_v52 = vcombine.low %v3542_v6, %v3549_v42  ;;  %v4220_v63 = vcombine.low %v4198_v43, %v4205_v37  ;;  %v2377_v50 = vrot.slane %v2031_v26, %v19505_v22  ;;  %v2381_v48 = vrot.slane %v2031_v26, %v19506_v55 }
 0x640   : > { %4694 = vperm.xlu1 %12359, %v3403_v16   ;;  %v1817_v32 = vpop.xlane.xlu0 %1816  ;;  %v3493_v59 = vrot.slane %v3485_v0, %v19507_v41  ;;  %v3500_v24 = vrot.slane %v3486_v38, %v19507_v41  ;;  %v2385_v5 = vrot.slane %v2031_v26, %v19501_v19  ;;  %v2389_v12 = vrot.slane %v2031_v26, %v17778_v51 }
 0x641   : > { %v18676_v2 = vmul.f32 %v1873_v28, %v15149_v61  ;;  %v4221_v49 = vcombine.low %v4212_v17, %v4219_v27  ;;  %v2393_v6 = vrot.slane %v2031_v26, %v18294_v10  ;;  %v2397_v42 = vrot.slane %v2031_v26, %v18297_v20 }
 0x642   : > { %v18681_v21 = vmul.f32 %v1875_v44, %v15149_v61  ;;  %v18684_v62 = vmul.f32 %v1877_v30, %v15149_v61  ;;  %v2401_v47 = vrot.slane %v2031_v26, %v18300_v39  ;;  %v2405_v54 = vrot.slane %v2031_v26, %v18304_v34 }
 0x643   : > { %4733 = vperm.xlu0 %12360, %v18535_v1   ;;  %v4228_v25 = vrot.slane %v4220_v63, %v19507_v41  ;;  %v3551_v45 = vcombine.low %v2377_v50, %v2381_v48  ;;  %v3552_v31 = vcombine.low %v2385_v5, %v2389_v12  ;;  %v3553_v13 = vcombine.low %v2393_v6, %v2397_v42 }
 0x644   : > { %4697 = vperm.xlu1 %12359, %v18495_v46   ;;  %v1823_v57 = vpop.xlane.xlu0 %1822  ;;  %v3501_v36 = vcombine.low %v3493_v59, %v3500_v24  ;;  %v3554_v60 = vcombine.low %v2401_v47, %v2405_v54  ;;  %v2857_v28 = vrot.slane %v18493_v33, %v19505_v22  ;;  %v2861_v35 = vrot.slane %v18493_v33, %v19506_v55 }
 0x645   : > { %v4235_v26 = vrot.slane %v4221_v49, %v19507_v41  ;;  %v3561_v1 = vrot.slane %v3551_v45, %v19507_v41  ;;  %v3568_v3 = vrot.slane %v3552_v31, %v19507_v41  ;;  %v3575_v4 = vrot.slane %v3553_v13, %v19507_v41 }
 0x646   : > { %v3582_v11 = vrot.slane %v3554_v60, %v19507_v41  ;;  %v2865_v46 = vrot.slane %v18493_v33, %v19501_v19  ;;  %v2869_v58 = vrot.slane %v18493_v33, %v17778_v51  ;;  %v2873_v56 = vrot.slane %v18493_v33, %v18294_v10 }
 0x647   : > { %v1879_v18 = vadd.f32 %v18290_v14, %v1817_v32  ;;  %4739 = vperm.xlu0 %12360, %v18541_v8   ;;  %v3583_v43 = vcombine.low %v3561_v1, %v3568_v3  ;;  %v2877_v44 = vrot.slane %v18493_v33, %v18297_v20  ;;  %v2881_v30 = vrot.slane %v18493_v33, %v18300_v39 }
 0x648   : > { %4700 = vperm.xlu1 %12359, %v3501_v36   ;;  %v3584_v0 = vcombine.low %v3575_v4, %v3582_v11  ;;  %v2885_v37 = vrot.slane %v18493_v33, %v18304_v34  ;;  %v4286_v16 = vcombine.low %v2857_v28, %v2861_v35  ;;  %v4287_v38 = vcombine.low %v2865_v46, %v2869_v58  ;;  %v1829_v50 = vpop.xlane.xlu0 %1828 }
 0x649   : > { %v4236_v17 = vcombine.low %v4228_v25, %v4235_v26  ;;  %v3591_v27 = vrot.slane %v3583_v43, %v19507_v41  ;;  %v4288_v63 = vcombine.low %v2873_v56, %v2877_v44  ;;  %v2441_v8 = vrot.slane %v18676_v2, %v19505_v22 }
 0x64a   : > { %v3598_v48 = vrot.slane %v3584_v0, %v19507_v41  ;;  %v4289_v32 = vcombine.low %v2881_v30, %v2885_v37  ;;  %v4296_v59 = vrot.slane %v4286_v16, %v19507_v41  ;;  %v4303_v24 = vrot.slane %v4287_v38, %v19507_v41 }
 0x64b   : > { %v1881_v5 = vadd.f32 %v18290_v14, %v1823_v57  ;;  %4745 = vperm.xlu0 %12360, %v4236_v17   ;;  %v4310_v33 = vrot.slane %v4288_v63, %v19507_v41  ;;  %v2445_v12 = vrot.slane %v18676_v2, %v19506_v55  ;;  %v2449_v49 = vrot.slane %v18676_v2, %v19501_v19 }
 0x64c   : > { %v18727_v6 = vmul.f32 %v1879_v18, %v15149_v61  ;;  %4703 = vperm.xlu1 %12359, %v3550_v52   ;;  %v4317_v42 = vrot.slane %v4289_v32, %v19507_v41  ;;  %v4318_v47 = vcombine.low %v4296_v59, %v4303_v24  ;;  %v2453_v54 = vrot.slane %v18676_v2, %v17778_v51  ;;  %v1835_v3 = vpop.xlane.xlu0 %1834 }
 0x64d   : > { %v3599_v25 = vcombine.low %v3591_v27, %v3598_v48  ;;  %v2457_v45 = vrot.slane %v18676_v2, %v18294_v10  ;;  %v2461_v31 = vrot.slane %v18676_v2, %v18297_v20  ;;  %v2465_v13 = vrot.slane %v18676_v2, %v18300_v39 }
 0x64e   : > { %v4319_v57 = vcombine.low %v4310_v33, %v4317_v42  ;;  %v4326_v36 = vrot.slane %v4318_v47, %v19507_v41  ;;  %v2469_v52 = vrot.slane %v18676_v2, %v18304_v34  ;;  %v3649_v60 = vcombine.low %v2441_v8, %v2445_v12 }
 0x64f   : > { %v18742_v28 = vmul.f32 %v1881_v5, %v15149_v61  ;;  %v3650_v35 = vcombine.low %v2449_v49, %v2453_v54  ;;  %v3651_v26 = vcombine.low %v2457_v45, %v2461_v31  ;;  %v2921_v1 = vrot.slane %v18524_v23, %v19505_v22 }
 0x650   : > { %4706 = vperm.xlu1 %12359, %v3599_v25   ;;  %v4333_v4 = vrot.slane %v4319_v57, %v19507_v41  ;;  %v3652_v11 = vcombine.low %v2465_v13, %v2469_v52  ;;  %v3659_v46 = vrot.slane %v3649_v60, %v19507_v41  ;;  %v2925_v58 = vrot.slane %v18524_v23, %v19506_v55 }
 0x651   : > { %v1883_v2 = vadd.f32 %v18290_v14, %v1829_v50  ;;  %v3666_v56 = vrot.slane %v3650_v35, %v19507_v41  ;;  %v3673_v18 = vrot.slane %v3651_v26, %v19507_v41  ;;  %v2929_v43 = vrot.slane %v18524_v23, %v19501_v19 }
 0x652   : > { %v4334_v44 = vcombine.low %v4326_v36, %v4333_v4  ;;  %v3680_v30 = vrot.slane %v3652_v11, %v19507_v41  ;;  %v2933_v0 = vrot.slane %v18524_v23, %v17778_v51  ;;  %v2937_v37 = vrot.slane %v18524_v23, %v18294_v10  ;;  %v1841_v36 = vpop.xlane.xlu0 %1840 }
 0x653   : > { %v1885_v16 = vadd.f32 %v18290_v14, %v1835_v3  ;;  %v3681_v38 = vcombine.low %v3659_v46, %v3666_v56  ;;  %v2941_v17 = vrot.slane %v18524_v23, %v18297_v20  ;;  %v2945_v27 = vrot.slane %v18524_v23, %v18300_v39 }
 0x654   : > { %4751 = vperm.xlu0 %12360, %v4334_v44   ;;  %v3682_v63 = vcombine.low %v3673_v18, %v3680_v30  ;;  %v2949_v8 = vrot.slane %v18524_v23, %v18304_v34  ;;  %v4384_v50 = vcombine.low %v2921_v1, %v2925_v58  ;;  %v4385_v48 = vcombine.low %v2929_v43, %v2933_v0 }
 0x655   : > { %v18768_v32 = vmul.f32 %v1883_v2, %v15149_v61  ;;  %v3689_v59 = vrot.slane %v3681_v38, %v19507_v41  ;;  %v4386_v24 = vcombine.low %v2937_v37, %v2941_v17  ;;  %v2505_v5 = vrot.slane %v18681_v21, %v19505_v22 }
 0x656   : > { %v3696_v33 = vrot.slane %v3682_v63, %v19507_v41  ;;  %v4387_v12 = vcombine.low %v2945_v27, %v2949_v8  ;;  %v4394_v49 = vrot.slane %v4384_v50, %v19507_v41  ;;  %v4401_v42 = vrot.slane %v4385_v48, %v19507_v41  ;;  %v1847_v8 = vpop.xlane.xlu0 %1846  ;;  %s18847_s25 = spop %12274 }
 0x657   : > { %v18777_v23 = vmul.f32 %v1885_v16, %v15149_v61  ;;  %v4408_v47 = vrot.slane %v4386_v24, %v19507_v41  ;;  %v2509_v54 = vrot.slane %v18681_v21, %v19506_v55  ;;  %v2513_v25 = vrot.slane %v18681_v21, %v19501_v19 }
 0x658   : > { %v3697_v45 = vcombine.low %v3689_v59, %v3696_v33  ;;  %v4415_v31 = vrot.slane %v4387_v12, %v19507_v41  ;;  %v4416_v13 = vcombine.low %v4394_v49, %v4401_v42  ;;  %v2517_v57 = vrot.slane %v18681_v21, %v17778_v51 }
 0x659   : > { %v2521_v52 = vrot.slane %v18681_v21, %v18294_v10  ;;  %v2525_v60 = vrot.slane %v18681_v21, %v18297_v20  ;;  %v2529_v35 = vrot.slane %v18681_v21, %v18300_v39  ;;  %v2533_v26 = vrot.slane %v18681_v21, %v18304_v34 }
 0x65a   : > { %4712 = vperm.xlu1 %12359, %v3697_v45   ;;  %v4417_v1 = vcombine.low %v4408_v47, %v4415_v31  ;;  %v4424_v3 = vrot.slane %v4416_v13, %v19507_v41  ;;  %v3747_v4 = vcombine.low %v2505_v5, %v2509_v54  ;;  %v3748_v11 = vcombine.low %v2513_v25, %v2517_v57  ;;  %s12277_s23 = spop %12276 }
 0x65b   : > { %v3749_v46 = vcombine.low %v2521_v52, %v2525_v60  ;;  %v3750_v58 = vcombine.low %v2529_v35, %v2533_v26  ;;  %v2985_v2 = vrot.slane %v18529_v40, %v19505_v22  ;;  %v2989_v56 = vrot.slane %v18529_v40, %v19506_v55 }
 0x65c   : > { %v4431_v18 = vrot.slane %v4417_v1, %v19507_v41  ;;  %v3757_v43 = vrot.slane %v3747_v4, %v19507_v41  ;;  %v3764_v21 = vrot.slane %v3748_v11, %v19507_v41  ;;  %v2993_v44 = vrot.slane %v18529_v40, %v19501_v19 }
 0x65d   : > { %v3771_v30 = vrot.slane %v3749_v46, %v19507_v41  ;;  %v3778_v0 = vrot.slane %v3750_v58, %v19507_v41  ;;  %v2997_v37 = vrot.slane %v18529_v40, %v17778_v51  ;;  %v3001_v16 = vrot.slane %v18529_v40, %v18294_v10 }
 0x65e   : > { %v4432_v38 = vcombine.low %v4424_v3, %v4431_v18  ;;  %v3779_v17 = vcombine.low %v3757_v43, %v3764_v21  ;;  %v3005_v27 = vrot.slane %v18529_v40, %v18297_v20  ;;  %v3009_v63 = vrot.slane %v18529_v40, %v18300_v39 }
 0x65f   : > { %v3780_v50 = vcombine.low %v3771_v30, %v3778_v0  ;;  %v3013_v48 = vrot.slane %v18529_v40, %v18304_v34  ;;  %v4482_v59 = vcombine.low %v2985_v2, %v2989_v56  ;;  %v4483_v24 = vcombine.low %v2993_v44, %v2997_v37 }
 0x660   : > { %v1887_v5 = vadd.f32 %v18290_v14, %v1841_v36  ;;  %4757 = vperm.xlu0 %12360, %v4432_v38   ;;  %v3787_v33 = vrot.slane %v3779_v17, %v19507_v41  ;;  %v4484_v12 = vcombine.low %v3001_v16, %v3005_v27  ;;  %v2633_v49 = vrot.slane %v18727_v6, %v19505_v22 }
 0x661   : > { %v3794_v42 = vrot.slane %v3780_v50, %v19507_v41  ;;  %v4485_v47 = vcombine.low %v3009_v63, %v3013_v48  ;;  %v4492_v54 = vrot.slane %v4482_v59, %v19507_v41  ;;  %v4499_v25 = vrot.slane %v4483_v24, %v19507_v41 }
 0x662   : > { %v1889_v40 = vadd.f32 %v18290_v14, %v1847_v8  ;;  %v4506_v45 = vrot.slane %v4484_v12, %v19507_v41  ;;  %v2637_v31 = vrot.slane %v18727_v6, %v19506_v55  ;;  %v2641_v13 = vrot.slane %v18727_v6, %v19501_v19 }
 0x663   : > { %v3795_v57 = vcombine.low %v3787_v33, %v3794_v42  ;;  %v4513_v36 = vrot.slane %v4485_v47, %v19507_v41  ;;  %v4514_v52 = vcombine.low %v4492_v54, %v4499_v25  ;;  %v2645_v60 = vrot.slane %v18727_v6, %v17778_v51 }
 0x664   : > { %v2649_v35 = vrot.slane %v18727_v6, %v18294_v10  ;;  %v2653_v26 = vrot.slane %v18727_v6, %v18297_v20  ;;  %v2657_v1 = vrot.slane %v18727_v6, %v18300_v39  ;;  %v2661_v3 = vrot.slane %v18727_v6, %v18304_v34 }
 0x665   : > { %4718 = vperm.xlu1 %12359, %v3795_v57   ;;  %v4515_v4 = vcombine.low %v4506_v45, %v4513_v36  ;;  %v4522_v11 = vrot.slane %v4514_v52, %v19507_v41  ;;  %v3943_v46 = vcombine.low %v2633_v49, %v2637_v31  ;;  %v3944_v58 = vcombine.low %v2641_v13, %v2645_v60 }
 0x666   : > { %v3945_v2 = vcombine.low %v2649_v35, %v2653_v26  ;;  %v3946_v56 = vcombine.low %v2657_v1, %v2661_v3  ;;  %v2537_v18 = vrot.slane %v18452_v53, %v19505_v22  ;;  %v2541_v43 = vrot.slane %v18452_v53, %v19506_v55 }
 0x667   : > { %v4529_v21 = vrot.slane %v4515_v4, %v19507_v41  ;;  %v3953_v6 = vrot.slane %v3943_v46, %v19507_v41  ;;  %v3960_v44 = vrot.slane %v3944_v58, %v19507_v41  ;;  %v2545_v30 = vrot.slane %v18452_v53, %v19501_v19 }
 0x668   : > { %v3967_v0 = vrot.slane %v3945_v2, %v19507_v41  ;;  %v3974_v37 = vrot.slane %v3946_v56, %v19507_v41  ;;  %v2549_v16 = vrot.slane %v18452_v53, %v17778_v51  ;;  %v2553_v38 = vrot.slane %v18452_v53, %v18294_v10 }
 0x669   : > { %v4530_v17 = vcombine.low %v4522_v11, %v4529_v21  ;;  %v3975_v27 = vcombine.low %v3953_v6, %v3960_v44  ;;  %v2557_v63 = vrot.slane %v18452_v53, %v18297_v20  ;;  %v2561_v8 = vrot.slane %v18452_v53, %v18300_v39 }
 0x66a   : > { %v3976_v50 = vcombine.low %v3967_v0, %v3974_v37  ;;  %v2565_v48 = vrot.slane %v18452_v53, %v18304_v34  ;;  %v3796_v59 = vcombine.low %v2537_v18, %v2541_v43  ;;  %v3797_v24 = vcombine.low %v2545_v30, %v2549_v16 }
 0x66b   : > { %v18866_v33 = vmul.f32 %v1887_v5, %v15149_v61  ;;  %4763 = vperm.xlu0 %12360, %v4530_v17   ;;  %v3983_v12 = vrot.slane %v3975_v27, %v19507_v41  ;;  %v3798_v49 = vcombine.low %v2553_v38, %v2557_v63  ;;  %v18869_v42 = vstv %s12277_s23  ;;  %s13590_s23 = sshll.u32 %s13673_s0, 4  ;;  %s13591_s23 = int_to_ptr.vmem [resolvable:$false] %s13590_s23 }
 0x66c   : > { %v3990_v47 = vrot.slane %v3976_v50, %v19507_v41  ;;  %v3799_v54 = vcombine.low %v2561_v8, %v2565_v48  ;;  %v3806_v25 = vrot.slane %v3796_v59, %v19507_v41  ;;  %v3813_v45 = vrot.slane %v3797_v24, %v19507_v41  ;;  %s13592_s4 = scalar_lea.vmem %s13591_s23, 16384  ;;  %p13593_p0 = scmp.lt.s32.totalorder %s19104_s27, %s13591_s23 }
 0x66d   : > { %v18875_v53 = vmul.f32 %v1889_v40, %v15149_v61  ;;  %v3820_v31 = vrot.slane %v3798_v49, %v19507_v41  ;;  %13564 = vrsqrt.f32 %v18869_v42  ;;  %v2697_v5 = vrot.slane %v18742_v28, %v19505_v22  ;;  %p13594_p1 = scmp.lt.s32.totalorder %s13592_s4, %s13586_s2 }
 0x66e   : > { %v3991_v13 = vcombine.low %v3983_v12, %v3990_v47  ;;  %v3827_v57 = vrot.slane %v3799_v54, %v19507_v41  ;;  %v3828_v36 = vcombine.low %v3806_v25, %v3813_v45  ;;  %v2701_v52 = vrot.slane %v18742_v28, %v19506_v55 }
 0x66f   : > { %v2705_v60 = vrot.slane %v18742_v28, %v19501_v19  ;;  %v2709_v40 = vrot.slane %v18742_v28, %v17778_v51  ;;  %v2713_v35 = vrot.slane %v18742_v28, %v18294_v10  ;;  %v2717_v26 = vrot.slane %v18742_v28, %v18297_v20  ;;  %p13595_p2 = por %p13594_p1, %p13593_p0 }
 0x670   : > { %4730 = vperm.xlu1 %12359, %v3991_v13   ;;  %v3829_v1 = vcombine.low %v3820_v31, %v3827_v57  ;;  %v3836_v3 = vrot.slane %v3828_v36, %v19507_v41  ;;  %v2721_v4 = vrot.slane %v18742_v28, %v18300_v39  ;;  %v2725_v11 = vrot.slane %v18742_v28, %v18304_v34 }
 0x671   : > { %v4041_v46 = vcombine.low %v2697_v5, %v2701_v52  ;;  %v4042_v58 = vcombine.low %v2705_v60, %v2709_v40  ;;  %v4043_v2 = vcombine.low %v2713_v35, %v2717_v26  ;;  %v2569_v56 = vrot.slane %v18684_v62, %v19505_v22  ;;  %p13596_p3 = pnand %p13595_p2, %p13589_p13 }
 0x672   : > { %v3843_v18 = vrot.slane %v3829_v1, %v19507_v41  ;;  %v4044_v43 = vcombine.low %v2721_v4, %v2725_v11  ;;  %v2573_v21 = vrot.slane %v18684_v62, %v19506_v55  ;;  %v2577_v6 = vrot.slane %v18684_v62, %v19501_v19 }
 0x673   : > { %v4051_v44 = vrot.slane %v4041_v46, %v19507_v41  ;;  %v4058_v30 = vrot.slane %v4042_v58, %v19507_v41  ;;  %v4065_v28 = vrot.slane %v4043_v2, %v19507_v41  ;;  %v2581_v0 = vrot.slane %v18684_v62, %v17778_v51 }
 0x674   : > { %v3844_v37 = vcombine.low %v3836_v3, %v3843_v18  ;;  %v4072_v16 = vrot.slane %v4044_v43, %v19507_v41  ;;  %v2585_v38 = vrot.slane %v18684_v62, %v18294_v10  ;;  %v2589_v17 = vrot.slane %v18684_v62, %v18297_v20 }
 0x675   : > { %v4073_v27 = vcombine.low %v4051_v44, %v4058_v30  ;;  %v2593_v63 = vrot.slane %v18684_v62, %v18300_v39  ;;  %v2597_v8 = vrot.slane %v18684_v62, %v18304_v34  ;;  %v3845_v50 = vcombine.low %v2569_v56, %v2573_v21 }
 0x676   : > { %4721 = vperm.xlu0 %12360, %v3844_v37   ;;  %v4074_v48 = vcombine.low %v4065_v28, %v4072_v16  ;;  %v3846_v59 = vcombine.low %v2577_v6, %v2581_v0  ;;  %v3847_v24 = vcombine.low %v2585_v38, %v2589_v17  ;;  %v2761_v12 = vrot.slane %v18768_v32, %v19505_v22 }
 0x677   : > { %v4081_v49 = vrot.slane %v4073_v27, %v19507_v41  ;;  %v3848_v47 = vcombine.low %v2593_v63, %v2597_v8  ;;  %v3855_v54 = vrot.slane %v3845_v50, %v19507_v41  ;;  %v2765_v25 = vrot.slane %v18768_v32, %v19506_v55 }
 0x678   : > { %v4088_v45 = vrot.slane %v4074_v48, %v19507_v41  ;;  %v3862_v62 = vrot.slane %v3846_v59, %v19507_v41  ;;  %v3869_v31 = vrot.slane %v3847_v24, %v19507_v41  ;;  %v2769_v5 = vrot.slane %v18768_v32, %v19501_v19 }
 0x679   : > { %v3876_v13 = vrot.slane %v3848_v47, %v19507_v41  ;;  %v2773_v57 = vrot.slane %v18768_v32, %v17778_v51  ;;  %v2777_v36 = vrot.slane %v18768_v32, %v18294_v10  ;;  %v2781_v52 = vrot.slane %v18768_v32, %v18297_v20 }
 0x67a   : > { %v18936_v60 = vpop.eup %13564  ;;  %v4089_v40 = vcombine.low %v4081_v49, %v4088_v45  ;;  %v3877_v35 = vcombine.low %v3855_v54, %v3862_v62  ;;  %v2785_v26 = vrot.slane %v18768_v32, %v18300_v39  ;;  %v2789_v1 = vrot.slane %v18768_v32, %v18304_v34 }
 0x67b   : > { %v3878_v3 = vcombine.low %v3869_v31, %v3876_v13  ;;  %v4139_v4 = vcombine.low %v2761_v12, %v2765_v25  ;;  %v4140_v11 = vcombine.low %v2769_v5, %v2773_v57  ;;  %v4141_v46 = vcombine.low %v2777_v36, %v2781_v52 }
 0x67c   : > { %4736 = vperm.xlu1 %12359, %v4089_v40   ;;  %v3885_v58 = vrot.slane %v3877_v35, %v19507_v41  ;;  %v4142_v2 = vcombine.low %v2785_v26, %v2789_v1  ;;  %v2825_v56 = vrot.slane %v18777_v23, %v19505_v22  ;;  %v2829_v18 = vrot.slane %v18777_v23, %v19506_v55 }
 0x67d   : > { %v3892_v43 = vrot.slane %v3878_v3, %v19507_v41  ;;  %v4149_v21 = vrot.slane %v4139_v4, %v19507_v41  ;;  %v4156_v32 = vrot.slane %v4140_v11, %v19507_v41  ;;  %v4163_v6 = vrot.slane %v4141_v46, %v19507_v41 }
 0x67e   : > { %v4170_v44 = vrot.slane %v4142_v2, %v19507_v41  ;;  %v2833_v30 = vrot.slane %v18777_v23, %v19501_v19  ;;  %v2837_v28 = vrot.slane %v18777_v23, %v17778_v51  ;;  %v2841_v0 = vrot.slane %v18777_v23, %v18294_v10 }
 0x67f   : > { %v3893_v37 = vcombine.low %v3885_v58, %v3892_v43  ;;  %v4171_v16 = vcombine.low %v4149_v21, %v4156_v32  ;;  %v2845_v38 = vrot.slane %v18777_v23, %v18297_v20  ;;  %v2849_v17 = vrot.slane %v18777_v23, %v18300_v39 }
 0x680   : > { %v4172_v27 = vcombine.low %v4163_v6, %v4170_v44  ;;  %v2853_v63 = vrot.slane %v18777_v23, %v18304_v34  ;;  %v4237_v8 = vcombine.low %v2825_v56, %v2829_v18  ;;  %v4238_v50 = vcombine.low %v2833_v30, %v2837_v28  ;;  %v1853_v23 = vpop.xlane.xlu0 %1852 }
 0x681   : > { %4724 = vperm.xlu0 %12360, %v3893_v37   ;;  %v4179_v48 = vrot.slane %v4171_v16, %v19507_v41  ;;  %v4239_v59 = vcombine.low %v2841_v0, %v2845_v38  ;;  %v2889_v24 = vrot.slane %v18866_v33, %v19505_v22  ;;  %v2893_v12 = vrot.slane %v18866_v33, %v19506_v55 }
 0x682   : > { %v4186_v49 = vrot.slane %v4172_v27, %v19507_v41  ;;  %v4240_v47 = vcombine.low %v2849_v17, %v2853_v63  ;;  %v4247_v54 = vrot.slane %v4237_v8, %v19507_v41  ;;  %v4254_v25 = vrot.slane %v4238_v50, %v19507_v41 }
 0x683   : > { %v4261_v45 = vrot.slane %v4239_v59, %v19507_v41  ;;  %v2897_v62 = vrot.slane %v18866_v33, %v19501_v19  ;;  %v2901_v31 = vrot.slane %v18866_v33, %v17778_v51  ;;  %v2905_v5 = vrot.slane %v18866_v33, %v18294_v10 }
 0x684   : > { %v4187_v13 = vcombine.low %v4179_v48, %v4186_v49  ;;  %v4268_v57 = vrot.slane %v4240_v47, %v19507_v41  ;;  %v4269_v36 = vcombine.low %v4247_v54, %v4254_v25  ;;  %v2909_v52 = vrot.slane %v18866_v33, %v18297_v20  ;;  %v1859_v0 = vpop.xlane.xlu0 %1858 }
 0x685   : > { %v2913_v40 = vrot.slane %v18866_v33, %v18300_v39  ;;  %v2917_v35 = vrot.slane %v18866_v33, %v18304_v34  ;;  %v4335_v26 = vcombine.low %v2889_v24, %v2893_v12  ;;  %v4336_v1 = vcombine.low %v2897_v62, %v2901_v31 }
 0x686   : > { %v1891_v3 = vadd.f32 %v18290_v14, %v1853_v23  ;;  %4742 = vperm.xlu1 %12359, %v4187_v13   ;;  %v4270_v4 = vcombine.low %v4261_v45, %v4268_v57  ;;  %v4277_v11 = vrot.slane %v4269_v36, %v19507_v41  ;;  %v4337_v46 = vcombine.low %v2905_v5, %v2909_v52 }
 0x687   : > { %v18990_v58 = vmul.f32 %v18533_v29, %v15149_v61  ;;  %v4338_v2 = vcombine.low %v2913_v40, %v2917_v35  ;;  %v4345_v56 = vrot.slane %v4335_v26, %v19507_v41  ;;  %v4352_v18 = vrot.slane %v4336_v1, %v19507_v41 }
 0x688   : > { %v4284_v33 = vrot.slane %v4270_v4, %v19507_v41  ;;  %v4359_v43 = vrot.slane %v4337_v46, %v19507_v41  ;;  %v2953_v21 = vrot.slane %v18875_v53, %v19505_v22  ;;  %v2957_v32 = vrot.slane %v18875_v53, %v19506_v55 }
 0x689   : > { %v4366_v6 = vrot.slane %v4338_v2, %v19507_v41  ;;  %v4367_v44 = vcombine.low %v4345_v56, %v4352_v18  ;;  %v2961_v29 = vrot.slane %v18875_v53, %v19501_v19  ;;  %v2965_v30 = vrot.slane %v18875_v53, %v17778_v51 }
 0x68a   : > { %v2051_v28 = vmul.f32 %v1891_v3, %v15149_v61  ;;  %v4285_v37 = vcombine.low %v4277_v11, %v4284_v33  ;;  %v2969_v16 = vrot.slane %v18875_v53, %v18294_v10  ;;  %v2973_v38 = vrot.slane %v18875_v53, %v18297_v20 }
 0x68b   : > { %v4368_v17 = vcombine.low %v4359_v43, %v4366_v6  ;;  %v4375_v27 = vrot.slane %v4367_v44, %v19507_v41  ;;  %v2977_v63 = vrot.slane %v18875_v53, %v18300_v39  ;;  %v2981_v8 = vrot.slane %v18875_v53, %v18304_v34 }
 0x68c   : > { %4748 = vperm.xlu1 %12359, %v4285_v37   ;;  %v4433_v50 = vcombine.low %v2953_v21, %v2957_v32  ;;  %v4434_v48 = vcombine.low %v2961_v29, %v2965_v30  ;;  %v4435_v59 = vcombine.low %v2969_v16, %v2973_v38  ;;  %v11115_v24 = vmul.f32 %v18936_v60, %v18869_v42 }
 0x68d   : > { %v1893_v12 = vadd.f32 %v18290_v14, %v1859_v0  ;;  %v4382_v49 = vrot.slane %v4368_v17, %v19507_v41  ;;  %v4436_v47 = vcombine.low %v2977_v63, %v2981_v8  ;;  %vm11116_vm2 = vcmp.eq.f32.partialorder %v18869_v42, inf }
 0x68e   : > { %v4443_v54 = vrot.slane %v4433_v50, %v19507_v41  ;;  %v4450_v25 = vrot.slane %v4434_v48, %v19507_v41  ;;  %v4457_v53 = vrot.slane %v4435_v59, %v19507_v41  ;;  %v11117_v23 = vsel %vm11116_vm2, %v18869_v42, %v11115_v24 }
 0x68f   : > { %v4383_v45 = vcombine.low %v4375_v27, %v4382_v49  ;;  %v4464_v62 = vrot.slane %v4436_v47, %v19507_v41  ;;  %vm11118_vm3 = vcmp.eq.f32.partialorder %v18869_v42, 0.0  ;;  %v11119_v14 = vand.u32 2147483648, %v18869_v42 }
 0x690   : > { %v4465_v60 = vcombine.low %v4443_v54, %v4450_v25  ;;  %v11140_v31 = vadd.f32 %v11139_v7, %v18316_v9  ;;  %v3017_v5 = vrot.slane %v2051_v28, %v19505_v22  ;;  %v3021_v13 = vrot.slane %v2051_v28, %v19506_v55 }
 0x691   : > { %4754 = vperm.xlu1 %12359, %v4383_v45   ;;  %v4466_v57 = vcombine.low %v4457_v53, %v4464_v62  ;;  %v11120_v36 = vsel %vm11118_vm3, %v11119_v14, %v11117_v23  ;;  %v3025_v52 = vrot.slane %v2051_v28, %v19501_v19  ;;  %v3029_v40 = vrot.slane %v2051_v28, %v17778_v51 }
 0x692   : > { %v4473_v35 = vrot.slane %v4465_v60, %v19507_v41  ;;  %12278 = vpush %v11120_v36  ;;  %v3033_v42 = vrot.slane %v2051_v28, %v18294_v10  ;;  %v3037_v26 = vrot.slane %v2051_v28, %v18297_v20  ;;  %v3041_v7 = vrot.slane %v2051_v28, %v18300_v39 }
 0x693   : > { %v4480_v9 = vrot.slane %v4466_v57, %v19507_v41  ;;  %12280 = vpush %v11140_v31  ;;  %v3045_v1 = vrot.slane %v2051_v28, %v18304_v34  ;;  %v4531_v3 = vcombine.low %v3017_v5, %v3021_v13  ;;  %v2053_v4 = vmul.f32 %v1893_v12, %v15149_v61 }
 0x694   : > { %v4532_v11 = vcombine.low %v3025_v52, %v3029_v40  ;;  %v4533_v46 = vcombine.low %v3033_v42, %v3037_v26  ;;  %v3049_v2 = vrot.slane %v18990_v58, %v19505_v22  ;;  %v3053_v43 = vrot.slane %v18990_v58, %v19506_v55  ;;  %v19083_v42 = vpop.permute.xlu1 %4679 }
 0x695   : > { %v4481_v56 = vcombine.low %v4473_v35, %v4480_v9  ;;  %v4534_v18 = vcombine.low %v3041_v7, %v3045_v1  ;;  %v4541_v33 = vrot.slane %v4531_v3, %v19507_v41  ;;  %v3057_v6 = vrot.slane %v18990_v58, %v19501_v19 }
 0x696   : > { %v4548_v21 = vrot.slane %v4532_v11, %v19507_v41  ;;  %v4555_v32 = vrot.slane %v4533_v46, %v19507_v41  ;;  %v3061_v61 = vrot.slane %v18990_v58, %v17778_v51  ;;  %v3065_v29 = vrot.slane %v18990_v58, %v18294_v10 }
 0x697   : > { %4760 = vperm.xlu1 %12359, %v4481_v56   ;;  %v4562_v44 = vrot.slane %v4534_v18, %v19507_v41  ;;  %v3069_v30 = vrot.slane %v18990_v58, %v18297_v20  ;;  %v3073_v28 = vrot.slane %v18990_v58, %v18300_v39  ;;  %v3077_v37 = vrot.slane %v18990_v58, %v18304_v34 }
 0x698   : > { %v4563_v0 = vcombine.low %v4541_v33, %v4548_v21  ;;  %v4580_v16 = vcombine.low %v3049_v2, %v3053_v43  ;;  %v4581_v38 = vcombine.low %v3057_v6, %v3061_v61  ;;  %v3081_v63 = vrot.slane %v2053_v4, %v19505_v22  ;;  %v19085_v26 = vpop.permute.xlu1 %4685 }
 0x699   : > { %v4564_v17 = vcombine.low %v4555_v32, %v4562_v44  ;;  %v4582_v27 = vcombine.low %v3065_v29, %v3069_v30  ;;  %v3085_v8 = vrot.slane %v2053_v4, %v19506_v55  ;;  %v4583_v48 = vcombine.low %v3073_v28, %v3077_v37 }
 0x69a   : > { %v4571_v50 = vrot.slane %v4563_v0, %v19507_v41  ;;  %v4590_v59 = vrot.slane %v4580_v16, %v19507_v41  ;;  %v4597_v24 = vrot.slane %v4581_v38, %v19507_v41  ;;  %v3089_v58 = vrot.slane %v2053_v4, %v19501_v19 }
 0x69b   : > { %v4578_v12 = vrot.slane %v4564_v17, %v19507_v41  ;;  %v4604_v49 = vrot.slane %v4582_v27, %v19507_v41  ;;  %v3093_v47 = vrot.slane %v2053_v4, %v17778_v51  ;;  %v4611_v54 = vrot.slane %v4583_v48, %v19507_v41 }
 0x69c   : > { %v4612_v22 = vcombine.low %v4590_v59, %v4597_v24  ;;  %v3097_v55 = vrot.slane %v2053_v4, %v18294_v10  ;;  %v3101_v25 = vrot.slane %v2053_v4, %v18297_v20  ;;  %v3105_v23 = vrot.slane %v2053_v4, %v18300_v39 }
 0x69d   : > { %v4579_v53 = vcombine.low %v4571_v50, %v4578_v12  ;;  %v3109_v45 = vrot.slane %v2053_v4, %v18304_v34  ;;  %v4629_v62 = vcombine.low %v3081_v63, %v3085_v8  ;;  %v4613_v14 = vcombine.low %v4604_v49, %v4611_v54 }
 0x69e   : > { %v4620_v60 = vrot.slane %v4612_v22, %v19507_v41  ;;  %v4630_v31 = vcombine.low %v3089_v58, %v3093_v47  ;;  %v4631_v19 = vcombine.low %v3097_v55, %v3101_v25 }
 0x69f   : > { %4766 = vperm.xlu1 %12359, %v4579_v53   ;;  %v4632_v51 = vcombine.low %v3105_v23, %v3109_v45  ;;  %v4639_v5 = vrot.slane %v4629_v62, %v19507_v41  ;;  %v4627_v13 = vrot.slane %v4613_v14, %v19507_v41 }
 0x6a0   : > { %v4646_v10 = vrot.slane %v4630_v31, %v19507_v41  ;;  %v4653_v20 = vrot.slane %v4631_v19, %v19507_v41 }
 0x6a1   : > { %v4660_v39 = vrot.slane %v4632_v51, %v19507_v41  ;;  %v4628_v57 = vcombine.low %v4620_v60, %v4627_v13 }
 0x6a2   : > { %v4661_v34 = vcombine.low %v4639_v5, %v4646_v10 }
 0x6a3   : > { %v4662_v36 = vcombine.low %v4653_v20, %v4660_v39  ;;  %4769 = vperm.xlu1 %12359, %v4628_v57  }
 0x6a4   : > { %v4669_v52 = vrot.slane %v4661_v34, %v19507_v41 }
 0x6a5   : > { %v4676_v40 = vrot.slane %v4662_v36, %v19507_v41 }
 0x6a7   : > { %v4677_v35 = vcombine.low %v4669_v52, %v4676_v40 }
 0x6a9   : > { %4772 = vperm.xlu1 %12359, %v4677_v35  }
 0x6b3   : > { %v19087_v9 = vpop.permute.xlu1 %4688 }
 0x6b7   : > { %v19091_v1 = vpop.permute.xlu1 %4691 }
 0x6bb   : > { %v19093_v3 = vpop.permute.xlu1 %4694 }
 0x6bf   : > { %v19096_v4 = vpop.permute.xlu1 %4697 }
 0x6c3   : > { %s19089_s20 = spop %12278 }
 0x6c4   : > { %s12281_s29 = spop %12280 }
 0x6c5   : > { %v11142_v7 = vstv %s12281_s29 }
 0x6c6   : > { %13566 = vrsqrt.f32 %v11142_v7  ;;  %vm11145_vm4 = vcmp.eq.f32.partialorder %v11142_v7, inf  ;;  %v11148_v2 = vand.u32 2147483648, %v11142_v7 }
 0x6d3   : > { %v13567_v11 = vpop.eup %13566 }
 0x6d4   : > { %v11144_v46 = vmul.f32 %v13567_v11, %v11142_v7 }
 0x6d5   : > { %13599 = shalt.err (!%p13596_p3)
}
 0x6d6   : > { %s13600_s30 = scalar_lea.hbm %s19101_s22, 8192  ;;  %s13604_s26 = scalar_lea.hbm %s19293_s17, 16384 }
 0x6d7   : > { %p13601_p5 = scmp.ne.s32.totalorder %s19101_s22, %s13600_s30  ;;  %p13605_p9 = scmp.lt.s32.totalorder %s19101_s22, %s19293_s17 }
 0x6d8   : > { %p13606_p10 = scmp.lt.s32.totalorder %s13604_s26, %s13600_s30 }
 0x6d9   : > { %p13602_p6 = pnand %p13601_p5, %p13820_p4 }
 0x6da   : > { %p13607_p11 = por %p13606_p10, %p13605_p9 }
 0x6db   : > { %p13603_p7 = pneg %p13602_p6 }
 0x6dd   : > { %p13608_p12 = pnand %p13607_p11, %p13603_p7 }
 0x6df   : > { %13611 = shalt.err (!%p13608_p12)
}
 0x6e0   : > { %s13674_s2 = smov 256   ;;  %s13675_s23 = smov 16   ;;  %v11146_v56 = vsel %vm11145_vm4, %v11142_v7, %v11144_v46  ;;  %vm11147_vm5 = vcmp.eq.f32.partialorder %v11142_v7, 0.0  ;;  %v19132_v33 = vpop.permute.xlu1 %4700  ;;  %v19134_v43 = vpop.permute.xlu0 %4682  ;;  %v19508_v38 = vlaneseq  ;;  %vm4785_vm6 = vcmask 130112  }
 0x6e1   : > { %12290 = dma.vmem_to_hbm [thread:$0]  (%p13820_p4), %s19104_s27, 8192, %s19101_s22, %s19108_s24, %s13674_s2, %s13674_s2, %s13675_s23   ;;  %v11149_v18 = vsel %vm11147_vm5, %v11148_v2, %v11146_v56  ;;  %vm4792_vm7 = vcmask 195712   ;;  %vm4799_vm8 = vcmask 261312   ;;  %vm4806_vm9 = vcmask 326912  }
 0x6e2   : > { %12282 = vpush %v11149_v18  ;;  %v19149_v17 = vand.u32 127, %v19508_v38  ;;  %s13676_s22 = smov 1e-08   ;;  %vm4813_vm10 = vcmask 392512   ;;  %vm4820_vm11 = vcmask 458112   ;;  %vm4827_vm12 = vcmask 523712  }
 0x6e3   : > { %s11151_s27 = smax.f32 %s13676_s22, %s19089_s20  ;;  %vm4834_vm13 = vcmask 589312   ;;  %vm4841_vm14 = vcmask 654912   ;;  %vm4848_vm15 = vcmask 720512   ;;  %vm4855_vm0 = vcmask 786112   ;;  %s11375_s20 = sshll.u32 %s13874_s3, 1 }
 0x6e4   : > { %v19136_v21 = vpop.permute.xlu1 %4703  ;;  %v19138_v32 = vpop.permute.xlu0 %4709  ;;  %v4780_v8 = vadd.s32 4294967288, %v19149_v17  ;;  %v4787_v50 = vadd.s32 4294967280, %v19149_v17  ;;  %v4794_v59 = vadd.s32 4294967272, %v19149_v17  ;;  %v4778_v24 = vsub.s32 %v19149_v17, %v19502_v15  ;;  %s706_s19 = scalar_lea.vmem %s19294_s18, %s11375_s20  ;;  %s19509_s2 = sld [smem:[#allocation77_spill]] }
 0x6e5   : > { %v4843_v54 = vadd.s32 4294967216, %v19149_v17  ;;  %v4808_v25 = vadd.s32 4294967256, %v19149_v17  ;;  %v4801_v23 = vadd.s32 4294967264, %v19149_v17  ;;  %v4815_v19 = vadd.s32 4294967248, %v19149_v17 }
 0x6e6   : > { %v4783_v48 = vsub.s32 %v4780_v8, %v19502_v15  ;;  %v4790_v58 = vsub.s32 %v4787_v50, %v19502_v15  ;;  %v4797_v22 = vsub.s32 %v4794_v59, %v19502_v15  ;;  %v4779_v53 = vrot.slane %v19083_v42, %v4778_v24 }
 0x6e7   : > { %v19179_v10 = vsub.s32 %v4843_v54, %v19502_v15  ;;  %v4811_v20 = vsub.s32 %v4808_v25, %v19502_v15  ;;  %v4822_v39 = vadd.s32 4294967240, %v19149_v17  ;;  %v4804_v57 = vsub.s32 %v4801_v23, %v19502_v15 }
 0x6e8   : > { %v19140_v6 = vpop.permute.xlu1 %4706  ;;  %v19142_v61 = vpop.permute.xlu0 %4715  ;;  %v4791_v45 = vrot.slane %v19085_v26, %v4790_v58  ;;  %v4784_v13 = vrot.slane %v19134_v43, %v4783_v48  ;;  %v4829_v34 = vadd.s32 4294967232, %v19149_v17  ;;  %v4857_v52 = vadd.s32 4294967200, %v19149_v17 }
 0x6e9   : > { %v4836_v40 = vadd.s32 4294967224, %v19149_v17  ;;  %v4818_v26 = vsub.s32 %v4815_v19, %v19502_v15  ;;  %v4798_v46 = vrot.slane %v19087_v9, %v4797_v22  ;;  %v4825_v2 = vsub.s32 %v4822_v39, %v19502_v15 }
 0x6ea   : > { %v4786_v11 = vsel %vm4785_vm6, %v4784_v13, %v4779_v53  ;;  %v4805_v56 = vrot.slane %v19091_v1, %v4804_v57  ;;  %v4832_v18 = vsub.s32 %v4829_v34, %v19502_v15  ;;  %v4850_v43 = vadd.s32 4294967208, %v19149_v17  ;;  %s710_s23 = scalar_lea.vmem %s19509_s2, %s13874_s3 }
 0x6eb   : > { %v4793_v8 = vsel %vm4792_vm7, %v4791_v45, %v4786_v11  ;;  %v4819_v1 = vrot.slane %v19096_v4, %v4818_v26  ;;  %v4826_v59 = vrot.slane %v19132_v33, %v4825_v2  ;;  %v4871_v25 = vadd.s32 4294967184, %v19149_v17 }
 0x6ec   : > { %v19144_v44 = vpop.permute.xlu1 %4712  ;;  %v4728_v29 = vpop.permute.xlu0 %4727  ;;  %v4860_v45 = vsub.s32 %v4857_v52, %v19502_v15  ;;  %vm4862_vm1 = vcmask 851712   ;;  %vm4869_vm2 = vcmask 917312   ;;  %vm4876_vm3 = vcmask 982912  }
 0x6ed   : > { %v4888_v55 = vrot.slane %v4728_v29, %v4778_v24  ;;  %vm4883_vm4 = vcmask 1048512   ;;  %vm4982_vm5 = vcmp.lt.s32.totalorder %v19508_v38, 256 }
 0x6f0   : > { %v19146_v30 = vpop.permute.xlu1 %4718  ;;  %v4734_v28 = vpop.permute.xlu0 %4733 }
 0x6f1   : > { %v4897_v31 = vrot.slane %v4734_v28, %v4790_v58  ;;  %v4833_v58 = vrot.slane %v19136_v21, %v4832_v18 }
 0x6f4   : > { %v4731_v0 = vpop.permute.xlu1 %4730  ;;  %v4740_v37 = vpop.permute.xlu0 %4739 }
 0x6f5   : > { %v4892_v47 = vrot.slane %v4731_v0, %v4783_v48  ;;  %v4907_v7 = vrot.slane %v4740_v37, %v4804_v57  ;;  %v4812_v37 = vrot.slane %v19093_v3, %v4811_v20  ;;  %v4800_v48 = vsel %vm4799_vm8, %v4798_v46, %v4793_v8 }
 0x6f6   : > { %v4864_v3 = vadd.s32 4294967192, %v19149_v17  ;;  %v4807_v24 = vsel %vm4806_vm9, %v4805_v56, %v4800_v48 }
 0x6f7   : > { %v4893_v62 = vsel %vm4785_vm6, %v4892_v47, %v4888_v55  ;;  %v4814_v4 = vsel %vm4813_vm10, %v4812_v37, %v4807_v24 }
 0x6f8   : > { %v4737_v16 = vpop.permute.xlu1 %4736  ;;  %v19151_v27 = vpop.permute.xlu0 %4745  ;;  %v4898_v36 = vsel %vm4792_vm7, %v4897_v31, %v4893_v62  ;;  %v4821_v33 = vsel %vm4820_vm11, %v4819_v1, %v4814_v4 }
 0x6f9   : > { %v4902_v14 = vrot.slane %v4737_v16, %v4797_v22  ;;  %v4839_v16 = vsub.s32 %v4836_v40, %v19502_v15  ;;  %v4917_v50 = vrot.slane %v19151_v27, %v4818_v26  ;;  %v4828_v62 = vsel %vm4827_vm12, %v4826_v59, %v4821_v33 }
 0x6fb   : > { %v4903_v35 = vsel %vm4799_vm8, %v4902_v14, %v4898_v36  ;;  %v4840_v54 = vrot.slane %v19140_v6, %v4839_v16  ;;  %v4878_v6 = vadd.s32 4294967176, %v19149_v17  ;;  %v4835_v14 = vsel %vm4834_vm13, %v4833_v58, %v4828_v62 }
 0x6fc   : > { %v19159_v12 = vpop.permute.xlu0 %4751  ;;  %v4908_v28 = vsel %vm4806_vm9, %v4907_v7, %v4903_v35  ;;  %v4874_v17 = vsub.s32 %v4871_v25, %v19502_v15 }
 0x6fd   : > { %v4927_v55 = vrot.slane %v19159_v12, %v4832_v18  ;;  %v4842_v12 = vsel %vm4841_vm14, %v4840_v54, %v4835_v14  ;;  %v4881_v57 = vsub.s32 %v4878_v6, %v19502_v15 }
 0x700   : > { %v19173_v51 = vpop.permute.xlu0 %4757 }
 0x701   : > { %v4743_v63 = vpop.permute.xlu1 %4742  ;;  %v4937_v39 = vrot.slane %v19173_v51, %v19179_v10  ;;  %v4861_v51 = vrot.slane %v19142_v61, %v4860_v45 }
 0x702   : > { %v4912_v42 = vrot.slane %v4743_v63, %v4811_v20  ;;  %v4847_v20 = vrot.slane %v19138_v32, %v19179_v10 }
 0x704   : > { %v19196_v29 = vpop.permute.xlu0 %4763  ;;  %v4913_v9 = vsel %vm4813_vm10, %v4912_v42, %v4908_v28  ;;  %v4849_v36 = vsel %vm4848_vm15, %v4847_v20, %v4842_v12 }
 0x705   : > { %v4918_v47 = vsel %vm4820_vm11, %v4917_v50, %v4913_v9  ;;  %v4947_v10 = vrot.slane %v19196_v29, %v4860_v45 }
 0x707   : > { %v19161_v49 = vpop.permute.xlu1 %4748 }
 0x708   : > { %v4922_v63 = vrot.slane %v19161_v49, %v4825_v2  ;;  %v4853_v49 = vsub.s32 %v4850_v43, %v19502_v15  ;;  %v4722_v21 = vpop.permute.xlu0 %4721 }
 0x709   : > { %v4875_v26 = vrot.slane %v4722_v21, %v4874_v17 }
 0x70a   : > { %v4923_v27 = vsel %vm4827_vm12, %v4922_v63, %v4918_v47  ;;  %v4854_v19 = vrot.slane %v19144_v44, %v4853_v49 }
 0x70b   : > { %v4928_v31 = vsel %vm4834_vm13, %v4927_v55, %v4923_v27 }
 0x70c   : > { %v19175_v5 = vpop.permute.xlu1 %4754  ;;  %v4725_v52 = vpop.permute.xlu0 %4724  ;;  %v4856_v40 = vsel %vm4855_vm0, %v4854_v19, %v4849_v36 }
 0x70d   : > { %v4932_v22 = vrot.slane %v19175_v5, %v4839_v16  ;;  %v4882_v7 = vrot.slane %v4725_v52, %v4881_v57  ;;  %v4863_v11 = vsel %vm4862_vm1, %v4861_v51, %v4856_v40 }
 0x70f   : > { %v4933_v5 = vsel %vm4841_vm14, %v4932_v22, %v4928_v31 }
 0x710   : > { %v4938_v44 = vsel %vm4848_vm15, %v4937_v39, %v4933_v5 }
 0x712   : > { %v4761_v0 = vpop.permute.xlu1 %4760 }
 0x713   : > { %s12283_s28 = spop %12282  ;;  %v4942_v13 = vrot.slane %v4761_v0, %v4853_v49 }
 0x714   : > { %s11152_s24 = smax.f32 %s13676_s22, %s12283_s28 }
 0x715   : > { %s11153_s4 = smul.f32 %s11152_s24, %s11151_s27  ;;  %v4943_v32 = vsel %vm4855_vm0, %v4942_v13, %v4938_v44 }
 0x716   : > { %v4948_v46 = vsel %vm4862_vm1, %v4947_v10, %v4943_v32 }
 0x717   : > { %v11154_v60 = vstv %s11153_s4 }
 0x718   : > { %13568 = vrcp.f32 %v11154_v60  ;;  %v4867_v60 = vsub.s32 %v4864_v3, %v19502_v15 }
 0x71a   : > { %v4767_v53 = vpop.permute.xlu1 %4766  ;;  %v4868_v35 = vrot.slane %v19146_v30, %v4867_v60 }
 0x71b   : > { %v4952_v42 = vrot.slane %v4767_v53, %v4867_v60 }
 0x71c   : > { %v4870_v30 = vsel %vm4869_vm2, %v4868_v35, %v4863_v11 }
 0x71d   : > { %v4953_v56 = vsel %vm4869_vm2, %v4952_v42, %v4948_v46  ;;  %v4877_v18 = vsel %vm4876_vm3, %v4875_v26, %v4870_v30 }
 0x71e   : > { %v4770_v34 = vpop.permute.xlu1 %4769  ;;  %v4884_v29 = vsel %vm4883_vm4, %v4882_v7, %v4877_v18 }
 0x71f   : > { %v4957_v15 = vrot.slane %v4770_v34, %v4874_v17 }
 0x721   : > { %v4958_v43 = vsel %vm4876_vm3, %v4957_v15, %v4953_v56 }
 0x724   : > { %v4773_v2 = vpop.permute.xlu1 %4772 }
 0x725   : > { %v13569_v23 = vpop.eup %13568  ;;  %v4962_v61 = vrot.slane %v4773_v2, %v4881_v57 }
 0x726   : > { %12284 = vpush %v13569_v23 }
 0x727   : > { %v4963_v28 = vsel %vm4883_vm4, %v4962_v61, %v4958_v43 }
 0x728   : > { %v4964_v0 = vcombine.low %v4884_v29, %v4963_v28 }
 0x72a   : > { %v4971_v37 = vrot.slane %v4964_v0, %v19507_v41 }
 0x72c   : > { %v4978_v16 = vrot.slane %v4971_v37, %v19507_v41 }
 0x72e   : > { %4984 = vst.msk [vmem:[%s706_s19] sm:$0x3] %vm4982_vm5, %v4978_v16 }
 0x757   : > { %s12285_s26 = spop %12284 }
 0x758   : > { %s11157_s28 = smul.f32 %s12285_s26, %s18847_s25 }
 0x75a   : > { %v11162_v9 = vstv %s11157_s28 }
 0x75b   : > { %11163 = vst [vmem:[%s710_s23] sm:$0x1] %v11162_v9 }
 0x75c PF: > { %s19510_s22 = sld [smem:[#allocation12_spill]] }
 0x75d   : > { %s19511_s27 = sld [smem:[#allocation9_spill]] }
 0x762   : > { %p12302_p4 = scmp.ge.s32.totalorder %s19510_s22, 2 }
 0x763   : > { %s11214_s4 = sand.u32 1, %s19511_s27  }
 0x764   : > { %p12297_p13 = pnand %p12302_p4, %p13827_p8  ;;  %s11215_s20 = scalar_lea.sflag [#allocation4], %s11214_s4 }
 0x766   : > { %p12298_p0 = pneg %p12297_p13 }
 0x768   : > { %13641 = dma.done.wait (%p12298_p0), %s11215_s20, 8192  }
 0x769   : > { %13643 = vsyncadd (%p12298_p0), %s11215_s20, 4294959104  ;;  %s35_s24 = sadd.s32 1, %s19510_s22   ;;  %s19513_s3 = sld [smem:[#allocation10_spill]] }
 0x76a   : > { %p32_p1 = scmp.ge.s32.totalorder %s35_s24, 4   ;;  %s19514_s22 = sld [smem:[#allocation15_spill]] }
 0x76b   : > { %s19515_s2 = sld [smem:[#allocation11_spill]]  ;;  %s19517_s21 = smov %s13650_s1 }
 0x76c   : > { %s19516_s23 = sld [smem:[#allocation13_spill]]  ;;  %34 = sbr.rel (!%p32_p1) target bundleno = 19 (0x13), region = 162 }
 0x76f   : > { %s19518_s1 = smov %s19513_s3 }
 0x771   :  { %11237 = vsyncpa [#allocation4], 1 }
 0x772   :  { %11239 = vsyncpa [#allocation4 + $0x1], 1 }
 0x773   :  { %11240 = vsyncpa [#allocation5], 1 }
 0x774   :  { %11242 = vsyncpa [#allocation5 + $0x1], 1 }

</bundles_post_ra>
